<compile_context>
chip_gen: v6e
topology: v6e:2x2x1
jax: 0.10.0
libtpu: 0.0.40
codegen_flags: <defaults>
</compile_context>

<pallas_src>
import math
import functools

import jax
import jax.numpy as jnp
from jax.experimental import pallas as pl
from jax.experimental.pallas import tpu as pltpu

HIDDEN = 128
NUM_EQ_PARAMS = 18          # 6 biquad sections x (gain_db, cutoff_hz, Q)
MIN_GAIN_DB = -48.0
MAX_GAIN_DB = 48.0


def _round_up(x, d):
    return (x + d - 1) // d * d


def _vmem_capacity_bytes():
    try:
        return int(pltpu.get_tpu_info().vmem_capacity_bytes)
    except Exception:
        return 64 * 1024 * 1024   # conservative (v7x-sized) fallback


# --------------------------------------------------------------------------- #
# Pallas kernel: pointwise MLP nonlinearity (the compute hot path)
# --------------------------------------------------------------------------- #
def _mlp_kernel(x_ref, vec_ref, w2_ref, w3_ref, w4_ref, b5_ref, o_ref):
    # vec_ref packs the (128,)-sized f32 vectors as columns:
    #   0: w1 (Linear(1,128) weight)   1: b1   2: b2   3: b3   4: b4
    #   5: w5 (Linear(128,1) weight, stored as a column)     6,7: zero padding
    x = x_ref[...]                                                   # (1, TM) f32
    w1 = vec_ref[:, 0:1]
    b1 = vec_ref[:, 1:2]
    b2 = vec_ref[:, 2:3]
    b3 = vec_ref[:, 3:4]
    b4 = vec_ref[:, 4:5]
    w5 = vec_ref[:, 5:6]

    # Layer 1: Linear(1, 128) as a column x row broadcast (out-features on sublanes).
    # Bias/ReLU in f32, fused straight into a single bf16 materialization (one store).
    h = jnp.maximum(w1 * x + b1, 0.0).astype(jnp.bfloat16)           # (128, TM)

    # Layers 2-4: Linear(128, 128) + ReLU; bf16 MXU operands, f32 accumulate, and only
    # the post-ReLU bf16 tensor is kept live into the next dot.
    h = jnp.maximum(
        jnp.dot(w2_ref[...], h, preferred_element_type=jnp.float32) + b2,
        0.0).astype(jnp.bfloat16)
    h = jnp.maximum(
        jnp.dot(w3_ref[...], h, preferred_element_type=jnp.float32) + b3,
        0.0).astype(jnp.bfloat16)
    h = jnp.maximum(
        jnp.dot(w4_ref[...], h, preferred_element_type=jnp.float32) + b4,
        0.0)                                                          # stays f32

    # Layer 5: Linear(128, 1) OFF the MXU — VPU multiply + sublane (XLU) reduce; the
    # reduce stays f32 so no extra bf16 cast of h is needed.
    o_ref[...] = jnp.sum(w5 * h, axis=0, keepdims=True) + b5_ref[0, 0]


def mlp_nonlinearity(flat, mlp_params, *, tm=None):
    """flat: (M,) float32 samples -> (M,) float32 through the 5-layer per-sample MLP."""
    vec, w2, w3, w4, b5 = mlp_params
    m = flat.shape[0]

    vmem_cap = _vmem_capacity_bytes()
    if tm is None:
        # Big lane-dense tiles amortize the ~0.35us per-grid-step overhead.  v5e/v6e
        # (128 MiB VMEM) take TM=16384; on v7x (64 MiB) cap at 8192 so the (128, TM)
        # activation temporaries keep headroom.
        tm = 16384 if vmem_cap >= 96 * 1024 * 1024 else 8192

    m_padded = _round_up(m, 128)
    tm_eff = min(tm, m_padded)
    steps = -(-m_padded // tm_eff)
    if m_padded >= 4096:
        # Prefer >= 2 grid steps with an even count so a v7x megacore shards the
        # "parallel" axis evenly across both TensorCores and the input/output DMA
        # pipeline stays active; on 1-TC chips this costs one extra ~0.35us step.
        if steps == 1:
            steps = 2
        if steps % 2:
            steps += 1
        tm_eff = _round_up(-(-m_padded // steps), 128)
        steps = -(-m_padded // tm_eff)
    m_pad = steps * tm_eff

    rows = flat
    if m_pad != m:
        # Padded tail samples produce bias-driven nonzero outputs; sliced off below.
        rows = jnp.pad(rows, (0, m_pad - m))
    rows = rows.reshape(1, m_pad)

    # VMEM budget from actual buffers: ~2 f32 + 1 bf16 live (128, TM) activation slabs
    # at a layer boundary, plus pipelined (1, TM) blocks, resident weights and headroom.
    act_bytes = HIDDEN * tm_eff * (4 + 4 + 2)
    vmem_limit = min(3 * act_bytes + (8 << 20), 112 << 20, vmem_cap - (4 << 20))
    vmem_limit = int(max(vmem_limit, 16 << 20))

    const = lambda shape: pl.BlockSpec(shape, lambda i: (0, 0))

    out = pl.pallas_call(
        _mlp_kernel,
        out_shape=jax.ShapeDtypeStruct((1, m_pad), jnp.float32),
        grid=(m_pad // tm_eff,),
        in_specs=[
            pl.BlockSpec((1, tm_eff), lambda i: (0, i)),        # samples, lane-dense
            const((HIDDEN, 8)),                                 # packed w1/b1..b4/w5, f32
            const((HIDDEN, HIDDEN)),                            # w2 bf16
            const((HIDDEN, HIDDEN)),                            # w3 bf16
            const((HIDDEN, HIDDEN)),                            # w4 bf16
            pl.BlockSpec(memory_space=pltpu.MemorySpace.SMEM),  # b5 (1,1) f32 scalar
        ],
        out_specs=pl.BlockSpec((1, tm_eff), lambda i: (0, i)),
        compiler_params=pltpu.CompilerParams(
            dimension_semantics=("parallel",),
            vmem_limit_bytes=vmem_limit),
    )(rows, vec, w2, w3, w4, b5)
    return out.reshape(m_pad)[:m]


# --------------------------------------------------------------------------- #
# ParametricEQ (plain JAX): 6-section biquad cascade applied via FFT
# --------------------------------------------------------------------------- #
# TODO(synk): ParametricEQ source is not provided with the module; this re-implements
# it as the standard audio-EQ cascade (low shelf, 4 peaking bands, high shelf) applied
# with frequency sampling + FFT filtering.  The FFT has no Pallas equivalent, so the
# EQ stays in plain JAX.
def _low_shelf(gain_db, fc, q, fs):
    A = 10.0 ** (gain_db / 40.0)
    w0 = 2.0 * jnp.pi * fc / fs
    cosw, alpha = jnp.cos(w0), jnp.sin(w0) / (2.0 * q)
    sqA = jnp.sqrt(A)
    b = jnp.stack([A * ((A + 1) - (A - 1) * cosw + 2 * sqA * alpha),
                   2 * A * ((A - 1) - (A + 1) * cosw),
                   A * ((A + 1) - (A - 1) * cosw - 2 * sqA * alpha)])
    a = jnp.stack([(A + 1) + (A - 1) * cosw + 2 * sqA * alpha,
                   -2 * ((A - 1) + (A + 1) * cosw),
                   (A + 1) + (A - 1) * cosw - 2 * sqA * alpha])
    return b, a


def _high_shelf(gain_db, fc, q, fs):
    A = 10.0 ** (gain_db / 40.0)
    w0 = 2.0 * jnp.pi * fc / fs
    cosw, alpha = jnp.cos(w0), jnp.sin(w0) / (2.0 * q)
    sqA = jnp.sqrt(A)
    b = jnp.stack([A * ((A + 1) + (A - 1) * cosw + 2 * sqA * alpha),
                   -2 * A * ((A - 1) + (A + 1) * cosw),
                   A * ((A + 1) + (A - 1) * cosw - 2 * sqA * alpha)])
    a = jnp.stack([(A + 1) - (A - 1) * cosw + 2 * sqA * alpha,
                   2 * ((A - 1) - (A + 1) * cosw),
                   (A + 1) - (A - 1) * cosw - 2 * sqA * alpha])
    return b, a


def _peaking(gain_db, fc, q, fs):
    A = 10.0 ** (gain_db / 40.0)
    w0 = 2.0 * jnp.pi * fc / fs
    cosw, alpha = jnp.cos(w0), jnp.sin(w0) / (2.0 * q)
    b = jnp.stack([1 + alpha * A, -2 * cosw, 1 - alpha * A])
    a = jnp.stack([1 + alpha / A, -2 * cosw, 1 - alpha / A])
    return b, a


def _biquad_response(ba, z1, z2):
    b, a = ba
    num = b[0] + b[1] * z1 + b[2] * z2
    den = a[0] + a[1] * z1 + a[2] * z2
    return num / den


def parametric_eq_process_normalized(x, norm_params, sample_rate):
    """x: (B, C, N); norm_params: (1, 18) already in [0, 1] (post-sigmoid)."""
    p = norm_params[0]
    gain = lambda v: MIN_GAIN_DB + v * (MAX_GAIN_DB - MIN_GAIN_DB)
    qfac = lambda v: 0.1 + v * (6.0 - 0.1)
    nyq = 0.5 * sample_rate

    sections = [
        _low_shelf(gain(p[0]), 20.0 + p[1] * (2000.0 - 20.0), qfac(p[2]), sample_rate),
        _peaking(gain(p[3]), 200.0 + p[4] * (0.9 * nyq - 200.0), qfac(p[5]), sample_rate),
        _peaking(gain(p[6]), 200.0 + p[7] * (0.9 * nyq - 200.0), qfac(p[8]), sample_rate),
        _peaking(gain(p[9]), 200.0 + p[10] * (0.9 * nyq - 200.0), qfac(p[11]), sample_rate),
        _peaking(gain(p[12]), 200.0 + p[13] * (0.9 * nyq - 200.0), qfac(p[14]), sample_rate),
        _high_shelf(gain(p[15]), 2000.0 + p[16] * (0.95 * nyq - 2000.0), qfac(p[17]),
                    sample_rate),
    ]

    n = x.shape[-1]
    n_fft = int(2 ** math.ceil(math.log2(2 * n)))
    w = 2.0 * jnp.pi * jnp.fft.rfftfreq(n_fft)           # rad / sample
    z1 = jnp.exp(-1j * w)
    z2 = jnp.exp(-2j * w)

    H = jnp.ones_like(z1)
    for ba in sections:
        H = H * _biquad_response(ba, z1, z2)

    X = jnp.fft.rfft(x, n=n_fft, axis=-1)
    y = jnp.fft.irfft(X * H, n=n_fft, axis=-1)[..., :n]
    return y.astype(x.dtype)


# --------------------------------------------------------------------------- #
# DistortionModel parameters + forward
# --------------------------------------------------------------------------- #
def init_distortion_params(key):
    keys = jax.random.split(key, 12)

    pre_filter_params = jax.random.uniform(keys[0], (1, NUM_EQ_PARAMS)) * 0.1
    post_filter_params = jax.random.uniform(keys[1], (1, NUM_EQ_PARAMS)) * 0.1
    dc_offset = jnp.array(0.0, jnp.float32)  # present in the module but unused in forward

    def linear(kw, kb, fan_in, fan_out):
        # PyTorch nn.Linear layout: weight (out, in), bias (out,); U(-1/sqrt(in), 1/sqrt(in)).
        bound = 1.0 / math.sqrt(fan_in)
        w = jax.random.uniform(kw, (fan_out, fan_in), minval=-bound, maxval=bound)
        b = jax.random.uniform(kb, (fan_out, 1), minval=-bound, maxval=bound)
        return w.astype(jnp.float32), b.astype(jnp.float32)

    w1, b1 = linear(keys[2], keys[3], 1, HIDDEN)          # (128, 1), (128, 1)
    w2, b2 = linear(keys[4], keys[5], HIDDEN, HIDDEN)     # (128, 128), (128, 1)
    w3, b3 = linear(keys[6], keys[7], HIDDEN, HIDDEN)
    w4, b4 = linear(keys[8], keys[9], HIDDEN, HIDDEN)
    w5, b5 = linear(keys[10], keys[11], HIDDEN, 1)        # (1, 128), (1, 1)

    # Pack every (128,)-sized f32 vector operand into one resident (128, 8) block (a
    # single DMA, lane-padded anyway); w5 is stored as a column for the VPU projection.
    vec = jnp.concatenate(
        [w1, b1, b2, b3, b4, w5.T, jnp.zeros((HIDDEN, 2), jnp.float32)], axis=1)

    # Pre-cast the MXU weights to bf16 once on the host; everything else stays f32.
    mlp = (vec,
           w2.astype(jnp.bfloat16),
           w3.astype(jnp.bfloat16),
           w4.astype(jnp.bfloat16),
           b5)
    return dict(pre=pre_filter_params, post=post_filter_params,
                dc_offset=dc_offset, mlp=mlp)


@functools.partial(jax.jit, static_argnames=("sample_rate",))
def distortion_forward(x, params, *, sample_rate):
    """x: (batch, channels=1, samples) float32 -> same shape."""
    b, c, n = x.shape
    # Linear(1, 128) in the torch module requires channels == 1; with c == 1 the
    # permute(0,2,1) -> per-sample MLP -> permute back collapses to a flat per-sample
    # map, so a plain reshape (no transpose / extra HBM copy) feeds the kernel.
    assert c == 1, "DistortionModel's Linear(1, 128) nonlinearity requires n_channels == 1"
    y = parametric_eq_process_normalized(x, jax.nn.sigmoid(params["pre"]), sample_rate)
    flat = y.reshape(-1)                       # (B*C*N,), same element order as permute
    flat = mlp_nonlinearity(flat, params["mlp"])
    y = flat.reshape(b, c, n)
    y = parametric_eq_process_normalized(y, jax.nn.sigmoid(params["post"]), sample_rate)
    return y


if __name__ == "__main__":
    sample_rate = 44100
    batch, channels, samples = 2, 1, 2048   # Linear(1, 128) implies channels == 1

    key = jax.random.PRNGKey(0)
    k_param, k_x = jax.random.split(key)
    params = init_distortion_params(k_param)
    x = (jax.random.normal(k_x, (batch, channels, samples), dtype=jnp.float32) * 0.1)

    y = distortion_forward(x, params, sample_rate=sample_rate)
    y = jax.block_until_ready(y)
    assert y.shape == (batch, channels, samples)
    assert bool(jnp.all(jnp.isfinite(y)))
    print("KERNEL_OK")
</pallas_src>

<mosaic_0001>
module attributes {stable_mosaic.version = 11 : i64} {
  func.func @_mlp_kernel(%arg0: i32, %arg1: memref<1x2048xf32, #tpu.memory_space<vmem>>, %arg2: memref<128x8xf32, #tpu.memory_space<vmem>>, %arg3: memref<128x128xbf16, #tpu.memory_space<vmem>>, %arg4: memref<128x128xbf16, #tpu.memory_space<vmem>>, %arg5: memref<128x128xbf16, #tpu.memory_space<vmem>>, %arg6: memref<1x1xf32, #tpu.memory_space<smem>>, %arg7: memref<1x2048xf32, #tpu.memory_space<vmem>>) attributes {dimension_semantics = [#tpu.dimension_semantics<parallel>], iteration_bounds = array<i64: 2>, scalar_prefetch = 0 : i64, scratch_operands = 0 : i64, tpu.core_type = #tpu.core_type<tc>, window_params = [{transform_indices = @transform_0, window_bounds = array<i64: 1, 2048>}, {pipeline_mode = #tpu.pipeline_mode<synchronous>, transform_indices = @transform_1, window_bounds = array<i64: 128, 8>}, {pipeline_mode = #tpu.pipeline_mode<synchronous>, transform_indices = @transform_2, window_bounds = array<i64: 128, 128>}, {pipeline_mode = #tpu.pipeline_mode<synchronous>, transform_indices = @transform_3, window_bounds = array<i64: 128, 128>}, {pipeline_mode = #tpu.pipeline_mode<synchronous>, transform_indices = @transform_4, window_bounds = array<i64: 128, 128>}, {transform_indices = @transform_5, window_bounds = array<i64: 1, 1>}, {transform_indices = @transform_6, window_bounds = array<i64: 1, 2048>}]} {
    %c0 = arith.constant 0 : index
    %c0_0 = arith.constant 0 : index
    %0 = vector.load %arg1[%c0, %c0_0] : memref<1x2048xf32, #tpu.memory_space<vmem>>, vector<1x2048xf32>
    %c0_1 = arith.constant 0 : index
    %c0_2 = arith.constant 0 : index
    %1 = vector.load %arg2[%c0_1, %c0_2] : memref<128x8xf32, #tpu.memory_space<vmem>>, vector<128x1xf32>
    %c0_3 = arith.constant 0 : index
    %c1 = arith.constant 1 : index
    %2 = vector.load %arg2[%c0_3, %c1] : memref<128x8xf32, #tpu.memory_space<vmem>>, vector<128x1xf32>
    %c0_4 = arith.constant 0 : index
    %c2 = arith.constant 2 : index
    %3 = vector.load %arg2[%c0_4, %c2] : memref<128x8xf32, #tpu.memory_space<vmem>>, vector<128x1xf32>
    %c0_5 = arith.constant 0 : index
    %c3 = arith.constant 3 : index
    %4 = vector.load %arg2[%c0_5, %c3] : memref<128x8xf32, #tpu.memory_space<vmem>>, vector<128x1xf32>
    %c0_6 = arith.constant 0 : index
    %c4 = arith.constant 4 : index
    %5 = vector.load %arg2[%c0_6, %c4] : memref<128x8xf32, #tpu.memory_space<vmem>>, vector<128x1xf32>
    %c0_7 = arith.constant 0 : index
    %c5 = arith.constant 5 : index
    %6 = vector.load %arg2[%c0_7, %c5] : memref<128x8xf32, #tpu.memory_space<vmem>>, vector<128x1xf32>
    %7 = vector.broadcast %1 : vector<128x1xf32> to vector<128x2048xf32>
    %8 = vector.broadcast %0 : vector<1x2048xf32> to vector<128x2048xf32>
    %9 = arith.mulf %7, %8 : vector<128x2048xf32>
    %10 = vector.broadcast %2 : vector<128x1xf32> to vector<128x2048xf32>
    %11 = arith.addf %9, %10 : vector<128x2048xf32>
    %cst = arith.constant 0.000000e+00 : f32
    %12 = vector.broadcast %cst : f32 to vector<128x2048xf32>
    %13 = arith.maximumf %11, %12 : vector<128x2048xf32>
    %14 = arith.truncf %13 : vector<128x2048xf32> to vector<128x2048xbf16>
    %c0_8 = arith.constant 0 : index
    %c0_9 = arith.constant 0 : index
    %15 = vector.load %arg3[%c0_8, %c0_9] : memref<128x128xbf16, #tpu.memory_space<vmem>>, vector<128x128xbf16>
    %cst_10 = arith.constant dense<0.000000e+00> : vector<128x2048xf32>
    %16 = tpu.matmul %15, %14, %cst_10 {dimension_numbers = #tpu.dot_dimension_numbers<[1], [0], [0], [1], [0, 0, 1, 1], [], []>} : vector<128x128xbf16>, vector<128x2048xbf16>, vector<128x2048xf32> -> vector<128x2048xf32>
    %17 = vector.broadcast %3 : vector<128x1xf32> to vector<128x2048xf32>
    %18 = arith.addf %16, %17 : vector<128x2048xf32>
    %cst_11 = arith.constant 0.000000e+00 : f32
    %19 = vector.broadcast %cst_11 : f32 to vector<128x2048xf32>
    %20 = arith.maximumf %18, %19 : vector<128x2048xf32>
    %21 = arith.truncf %20 : vector<128x2048xf32> to vector<128x2048xbf16>
    %c0_12 = arith.constant 0 : index
    %c0_13 = arith.constant 0 : index
    %22 = vector.load %arg4[%c0_12, %c0_13] : memref<128x128xbf16, #tpu.memory_space<vmem>>, vector<128x128xbf16>
    %cst_14 = arith.constant dense<0.000000e+00> : vector<128x2048xf32>
    %23 = tpu.matmul %22, %21, %cst_14 {dimension_numbers = #tpu.dot_dimension_numbers<[1], [0], [0], [1], [0, 0, 1, 1], [], []>} : vector<128x128xbf16>, vector<128x2048xbf16>, vector<128x2048xf32> -> vector<128x2048xf32>
    %24 = vector.broadcast %4 : vector<128x1xf32> to vector<128x2048xf32>
    %25 = arith.addf %23, %24 : vector<128x2048xf32>
    %cst_15 = arith.constant 0.000000e+00 : f32
    %26 = vector.broadcast %cst_15 : f32 to vector<128x2048xf32>
    %27 = arith.maximumf %25, %26 : vector<128x2048xf32>
    %28 = arith.truncf %27 : vector<128x2048xf32> to vector<128x2048xbf16>
    %c0_16 = arith.constant 0 : index
    %c0_17 = arith.constant 0 : index
    %29 = vector.load %arg5[%c0_16, %c0_17] : memref<128x128xbf16, #tpu.memory_space<vmem>>, vector<128x128xbf16>
    %cst_18 = arith.constant dense<0.000000e+00> : vector<128x2048xf32>
    %30 = tpu.matmul %29, %28, %cst_18 {dimension_numbers = #tpu.dot_dimension_numbers<[1], [0], [0], [1], [0, 0, 1, 1], [], []>} : vector<128x128xbf16>, vector<128x2048xbf16>, vector<128x2048xf32> -> vector<128x2048xf32>
    %31 = vector.broadcast %5 : vector<128x1xf32> to vector<128x2048xf32>
    %32 = arith.addf %30, %31 : vector<128x2048xf32>
    %cst_19 = arith.constant 0.000000e+00 : f32
    %33 = vector.broadcast %cst_19 : f32 to vector<128x2048xf32>
    %34 = arith.maximumf %32, %33 : vector<128x2048xf32>
    %35 = vector.broadcast %6 : vector<128x1xf32> to vector<128x2048xf32>
    %36 = arith.mulf %35, %34 : vector<128x2048xf32>
    %cst_20 = arith.constant dense<0.000000e+00> : vector<2048xf32>
    %37 = vector.multi_reduction <add>, %36, %cst_20 [0] : vector<128x2048xf32> to vector<2048xf32>
    %38 = vector.shape_cast %37 : vector<2048xf32> to vector<1x2048xf32>
    %c0_21 = arith.constant 0 : index
    %c0_22 = arith.constant 0 : index
    %39 = memref.load %arg6[%c0_21, %c0_22] : memref<1x1xf32, #tpu.memory_space<smem>>
    %40 = vector.broadcast %39 : f32 to vector<1x2048xf32>
    %41 = arith.addf %38, %40 : vector<1x2048xf32>
    %c0_23 = arith.constant 0 : index
    %c0_24 = arith.constant 0 : index
    %42 = vector.load %arg7[%c0_23, %c0_24] : memref<1x2048xf32, #tpu.memory_space<vmem>>, vector<1x2048xf32>
    tpu.vector_store %arg7[%c0_23, %c0_24], %41 {strides = array<i32>} : memref<1x2048xf32, #tpu.memory_space<vmem>>, vector<1x2048xf32>,
    return
  }
  func.func @transform_0(%arg0: i32) -> (i32, i32) {
    %c0_i32 = arith.constant 0 : i32
    %c0_i32_0 = arith.constant 0 : i32
    return %c0_i32, %arg0 : i32, i32
  }
  func.func @transform_1(%arg0: i32) -> (i32, i32) {
    %c0_i32 = arith.constant 0 : i32
    %c0_i32_0 = arith.constant 0 : i32
    %c0_i32_1 = arith.constant 0 : i32
    return %c0_i32, %c0_i32_0 : i32, i32
  }
  func.func @transform_2(%arg0: i32) -> (i32, i32) {
    %c0_i32 = arith.constant 0 : i32
    %c0_i32_0 = arith.constant 0 : i32
    %c0_i32_1 = arith.constant 0 : i32
    return %c0_i32, %c0_i32_0 : i32, i32
  }
  func.func @transform_3(%arg0: i32) -> (i32, i32) {
    %c0_i32 = arith.constant 0 : i32
    %c0_i32_0 = arith.constant 0 : i32
    %c0_i32_1 = arith.constant 0 : i32
    return %c0_i32, %c0_i32_0 : i32, i32
  }
  func.func @transform_4(%arg0: i32) -> (i32, i32) {
    %c0_i32 = arith.constant 0 : i32
    %c0_i32_0 = arith.constant 0 : i32
    %c0_i32_1 = arith.constant 0 : i32
    return %c0_i32, %c0_i32_0 : i32, i32
  }
  func.func @transform_5(%arg0: i32) -> (i32, i32) {
    %c0_i32 = arith.constant 0 : i32
    %c0_i32_0 = arith.constant 0 : i32
    %c0_i32_1 = arith.constant 0 : i32
    return %c0_i32, %c0_i32_0 : i32, i32
  }
  func.func @transform_6(%arg0: i32) -> (i32, i32) {
    %c0_i32 = arith.constant 0 : i32
    %c0_i32_0 = arith.constant 0 : i32
    return %c0_i32, %arg0 : i32, i32
  }
}

</mosaic_0001>

<bundles_post_ra>
// kernel: reverse.9
= control target key start
LH: loop header
LB: loop body
LE: loop exit
PB: predicated region body
PF: predicated region fallthrough
CT: control target
= control target key end

     0   :  { %v2_v0 = vlaneseq  ;;  %s336_s0 = inlined_call_operand.vmem [shape: f32[2,1,2048], index: 0, kind: input, shape index: {}]   ;;  %s337_s1 = inlined_call_operand.vmem [shape: f32[2,1,2048], index: 1, kind: output, shape index: {}]  }
   0x2   :  { %v3_v1 = vsub.s32 127, %v2_v0 }
   0x4   :  { %4 = vset.pattern.permute.xlu0 %v3_v1 }
   0x5   :  { %s296_s6 = smov 0   ;;  %s298_s7 = smov 0  }
   0x6   :  { %s300_s8 = smov 0  }
   0x7 LB: > { %s226_s9 = sadd.s32 4294967295, %s284_s8   ;;  %s22_s10 = sadd.s32 1, %s280_s7  ;;  %s284_s8 = sphi %s300_s8, %s10_s8   ;;  %s280_s7 = sphi %s298_s7, %s339_s7   ;;  %s276_s6 = sphi %s296_s6, %s338_s6  }
   0x8   : > { %p23_p0 = scmp.ge.s32.totalorder %s22_s10, 16  ;;  %p228_p1 = scmp.ge.s32.totalorder %s284_s8, 16 }
   0x9   : > { %s45_s11 = sand.u32 (!%p228_p1), 1, %s284_s8   ;;  %s48_s12 = ssub.s32 (!%p228_p1), 15, %s280_s7 }
   0xa   : > { %s341_s10 = smov (%p23_p0, %s22_s10), 0  ;;  %43 = sbr.rel (%p228_p1) target bundleno = 17 (0x11), region = 16 }
   0xb   : > { %s229_s13 = sshll.u32 (!%p228_p1), %s45_s11, 1  ;;  %s230_s14 = sshll.u32 (!%p228_p1), %s48_s12, 1 }
   0xc   : > { %s54_s17 = scalar_lea.vmem (!%p228_p1), %s336_s0, %s230_s14  ;;  %s47_s18 = scalar_lea.vmem (!%p228_p1), [#allocation1], %s229_s13 }
   0xf   : > { %v71_v2 = vld [vmem:[%s54_s17] sm:$0x3] }
  0x10   : > { %72 = vst [vmem:[%s47_s18] sm:$0x3] %v71_v2 }
  0x11 PF: > { %p231_p2 = scmp.ge.s32.totalorder %s284_s8, 1  ;;  %p89_p3 = scmp.lt.s32.totalorder %s284_s8, 17 }
  0x13   : > { %p90_p4 = pnand %p231_p2, %p89_p3 }
  0x14   : > { %s100_s19 = sand.u32 (!%p90_p4), 1, %s226_s9   ;;  %s235_s23 = sshll.u32 (!%p90_p4), %s276_s6, 1 }
  0x15   : > { %93 = sbr.rel (%p90_p4) target bundleno = 176 (0xb0), region = 50  ;;  %s232_s20 = sshll.u32 (!%p90_p4), %s100_s19, 1 }
  0x16   : > { %s102_s21 = scalar_lea.vmem (!%p90_p4), [#allocation1], %s232_s20  ;;  %s106_s22 = scalar_lea.vmem (!%p90_p4), [#allocation3], %s232_s20 }
  0x17   : > { %s134_s26 = scalar_lea.vmem (!%p90_p4), %s337_s1, %s235_s23 }
  0x1a   : > { %v110_v3 = vld [vmem:[%s102_s21] sm:$0x3] }
  0x1b   : > { %111 = vst [vmem:[#allocation0] sm:$0x3] %v110_v3 }
  0x22   : > { %v113_v4 = vld [vmem:[#allocation0] sm:$0xff] }
  0x23   : > { %114 = vperm.xlu0 %4, %v113_v4  }
  0x9e   : > { %v115_v5 = vpop.permute.xlu0 %114 }
  0x9f   : > { %116 = vst [vmem:[#allocation2] sm:$0xff] %v115_v5 }
  0xa6   : > { %v121_v6 = vld [vmem:[#allocation2] sm:$0x3] }
  0xa7   : > { %124 = vst [vmem:[%s106_s22] sm:$0x3] %v121_v6 }
  0xae   : > { %v151_v7 = vld [vmem:[%s106_s22] sm:$0x3] }
  0xaf   : > { %152 = vst [vmem:[%s134_s26] sm:$0x3] %v151_v7 }
  0xb0 PF: > { %s10_s8 = sadd.s32 1, %s284_s8   ;;  %s338_s6 = smov %s280_s7 }
  0xb1   : > { %p7_p5 = scmp.ge.s32.totalorder %s10_s8, 18   ;;  %s339_s7 = smov %s341_s10 }
  0xb3   :  { %9 = sbr.rel (!%p7_p5) target bundleno = 7 (0x7), region = 110 }

// kernel: distortion_forward.1
= control target key start
LH: loop header
LB: loop body
LE: loop exit
PB: predicated region body
PF: predicated region fallthrough
CT: control target
= control target key end

     0   :  { %s6561_s23 = smov 0   ;;  %s11871_s0 = inlined_call_operand.vmem [shape: f32[1,4096], index: 0, kind: input, shape index: {}]   ;;  %s11872_s1 = inlined_call_operand.vmem [shape: f32[128,8], index: 1, kind: input, shape index: {}]   ;;  %s11873_s2 = inlined_call_operand.vmem [shape: bf16[128,128], index: 2, kind: input, shape index: {}]   ;;  %s11874_s3 = inlined_call_operand.vmem [shape: bf16[128,128], index: 3, kind: input, shape index: {}]   ;;  %s11875_s4 = inlined_call_operand.vmem [shape: bf16[128,128], index: 4, kind: input, shape index: {}]   ;;  %s11876_s5 = inlined_call_operand.<no memory space> [shape: f32[1,1], index: 5, kind: input, shape index: {}]   ;;  %s11877_s6 = inlined_call_operand.vmem [shape: f32[1,4096], index: 6, kind: output, shape index: {}]  }
   0x1   :  { %11 = sst [smem:[#allocation2]] %s11876_s5 }
   0x2 LB: > { %s6351_s24 = sadd.s32 4294967295, %s6514_s23   ;;  %p6355_p0 = scmp.ge.s32.totalorder %s6514_s23, 1  ;;  %s6514_s23 = sphi %s6561_s23, %s17_s23  }
   0x3   : > { %p213_p1 = scmp.lt.s32.totalorder %s6514_s23, 3 }
   0x5   : > { %p214_p2 = pnand %p6355_p0, %p213_p1 }
   0x7   : > { %217 = sbr.rel (%p214_p2) target bundleno = 1344 (0x540), region = 44 }
   0xc   : > { %v6572_v0 = vld [vmem:[%s11872_s1 + $0x70] sm:$0xff]  ;;  %v6577_v1 = vld [vmem:[%s11872_s1 + $0x60] sm:$0xff]  ;;  %v6516_v2 = vmov 1   ;;  %v6586_v3 = vld [vmem:[%s11872_s1 + $0x78] sm:$0xff]  ;;  %v11883_v5 = vmov 0   ;;  %s6356_s9 = sshll.u32 %s6351_s24, 4  ;;  %v352_v18 = vlaneseq }
   0xd   : > { %6401 = vset.pattern.permute.xlu0 %v6516_v2  ;;  %6399 = vset.pattern.permute.xlu1 %v6516_v2  ;;  %v6591_v4 = vld [vmem:[%s11872_s1 + $0x40] sm:$0xff]  ;;  %v6605_v7 = vld [vmem:[%s11872_s1 + $0x68] sm:$0xff]  ;;  %v6617_v8 = vld [vmem:[%s11872_s1 + $0x50] sm:$0xff]  ;;  %p242_p3 = scmp.lt.s32.totalorder %s6356_s9, 31  ;;  %v6518_v32 = vmov 2  }
   0xe   : > { %745 = vperm.xlu1 %6399, %v6572_v0   ;;  %737 = vperm.xlu0 %6401, %v6577_v1   ;;  %v6600_v6 = vld [vmem:[%s11872_s1 + $0x20] sm:$0xff]  ;;  %v6626_v9 = vld [vmem:[%s11872_s1 + $0x58] sm:$0xff]  ;;  %v6636_v10 = vld [vmem:[%s11872_s1 + $0x48] sm:$0xff]  ;;  %v6709_v21 = vshrl.u32 %v352_v18, 7 }
   0xf   : > { %1552 = vmatprep.mubr.bf16.mxu0 %v11883_v5  ;;  %1665 = vmatprep.mubr.bf16.mxu1 %v11883_v5  ;;  %v6641_v11 = vld [vmem:[%s11872_s1 + $0x38] sm:$0xff]  ;;  %v6657_v13 = vld [vmem:[%s11872_s1 + $0x30] sm:$0xff]  ;;  %v6664_v14 = vld [vmem:[%s11872_s1] sm:$0xff]  ;;  %s12911_s9 = smov (!%p242_p3, %s6356_s9), 31 }
  0x10   : > { %v6652_v12 = vld [vmem:[%s11872_s1 + $0x18] sm:$0xff]  ;;  %v6676_v15 = vld [vmem:[%s11872_s1 + $0x28] sm:$0xff]  ;;  %v6685_v16 = vld [vmem:[%s11872_s1 + $0x10] sm:$0xff]  ;;  %12192 = vst [vmem:[#allocation5_spill] sm:$0xff] %v6709_v21  ;;  %s6715_s12 = scalar_lea.vmem %s11871_s0, %s12911_s9  ;;  %v358_v24 = vsub.s32 1, %v6709_v21  ;;  %v366_v25 = vsub.s32 3, %v6709_v21  ;;  %s11434_s14 = scalar_lea.vmem %s11877_s6, %s12911_s9 }
  0x11   : > { %v6695_v17 = vld [vmem:[%s11872_s1 + $0x8] sm:$0xff]  ;;  %v354_v26 = vsub.s32 0, %v6709_v21  ;;  %v11882_v27 = vsub.s32 2, %v6709_v21  ;;  %v252_v28 = vld [vmem:[%s6715_s12] sm:$0xff]  ;;  %v11881_v29 = vsub.s32 5, %v6709_v21  ;;  %v11880_v30 = vsub.s32 7, %v6709_v21 }
  0x12   : > { %749 = vperm.xlu1 %6399, %v6586_v3   ;;  %721 = vperm.xlu0 %6401, %v6591_v4   ;;  %v11879_v31 = vsub.s32 4, %v6709_v21  ;;  %v253_v34 = vld [vmem:[%s6715_s12 + $0x8] sm:$0xff]  ;;  %v11878_v35 = vsub.s32 6, %v6709_v21  ;;  %v6737_v37 = vrot.slane %v252_v28, %v358_v24  ;;  %v6739_v38 = vrot.slane %v252_v28, %v366_v25 }
  0x13   : > { %v6741_v39 = vrot.slane %v252_v28, %v354_v26  ;;  %v6745_v40 = vrot.slane %v252_v28, %v11882_v27  ;;  %v6747_v41 = vrot.slane %v253_v34, %v354_v26  ;;  %v6751_v42 = vrot.slane %v252_v28, %v11881_v29 }
  0x14   : > { %v6755_v43 = vrot.slane %v252_v28, %v11880_v30  ;;  %v6759_v44 = vrot.slane %v252_v28, %v11879_v31  ;;  %v6763_v45 = vrot.slane %v252_v28, %v11878_v35  ;;  %v6765_v46 = vrot.slane %v253_v34, %v358_v24 }
  0x15   : > { %12197 = vst [vmem:[#allocation10_spill] sm:$0xff] %v6747_v41  ;;  %v6767_v47 = vrot.slane %v253_v34, %v366_v25 }
  0x16   : > { %6400 = vset.pattern.permute.xlu1 %v11883_v5  ;;  %705 = vperm.xlu0 %6401, %v6600_v6   ;;  %12198 = vst [vmem:[#allocation11_spill] sm:$0xff] %v6765_v46 }
  0x17   : > { %337 = vperm.xlu1 %6400, %v6605_v7   ;;  %12199 = vst [vmem:[#allocation12_spill] sm:$0xff] %v6767_v47 }
  0x1a   : > { %6410 = vset.pattern.permute.xlu0 %v11883_v5 }
  0x1b   : > { %6402 = vset.pattern.permute.xlu1 %v6516_v2  ;;  %342 = vperm.xlu0 %6410, %v6572_v0  }
  0x1c   : > { %741 = vperm.xlu1 %6402, %v6605_v7  }
  0x1f   : > { %347 = vperm.xlu0 %6410, %v6586_v3  }
  0x20   : > { %6403 = vset.pattern.permute.xlu1 %v11883_v5 }
  0x21   : > { %322 = vperm.xlu1 %6403, %v6617_v8  }
  0x23   : > { %332 = vperm.xlu0 %6410, %v6577_v1  }
  0x25   : > { %6404 = vset.pattern.permute.xlu1 %v6516_v2 }
  0x26   : > { %729 = vperm.xlu1 %6404, %v6617_v8  }
  0x27   : > { %327 = vperm.xlu0 %6410, %v6626_v9  }
  0x2a   : > { %733 = vperm.xlu1 %6404, %v6626_v9  }
  0x2b   : > { %312 = vperm.xlu0 %6410, %v6591_v4  }
  0x2e   : > { %6405 = vset.pattern.permute.xlu1 %v11883_v5 }
  0x2f   : > { %317 = vperm.xlu1 %6405, %v6636_v10   ;;  %307 = vperm.xlu0 %6410, %v6641_v11  }
  0x33   : > { %6406 = vset.pattern.permute.xlu1 %v6516_v2  ;;  %292 = vperm.xlu0 %6410, %v6600_v6  }
  0x34   : > { %725 = vperm.xlu1 %6406, %v6636_v10  }
  0x37   : > { %287 = vperm.xlu0 %6410, %v6652_v12  }
  0x38   : > { %6407 = vset.pattern.permute.xlu1 %v11883_v5 }
  0x39   : > { %302 = vperm.xlu1 %6407, %v6657_v13  }
  0x3b   : > { %272 = vperm.xlu0 %6410, %v6664_v14  }
  0x3d   : > { %6408 = vset.pattern.permute.xlu1 %v6516_v2 }
  0x3e   : > { %713 = vperm.xlu1 %6408, %v6657_v13  }
  0x3f   : > { %6415 = vset.pattern.permute.xlu0 %v6516_v2 }
  0x40   : > { %689 = vperm.xlu0 %6415, %v6664_v14  }
  0x42   : > { %717 = vperm.xlu1 %6408, %v6641_v11  }
  0x44   : > { %6418 = vset.pattern.permute.xlu0 %v6518_v32 }
  0x45   : > { %1469 = vperm.xlu0 %6418, %v6586_v3  }
  0x46   : > { %6409 = vset.pattern.permute.xlu1 %v11883_v5 }
  0x47   : > { %297 = vperm.xlu1 %6409, %v6676_v15  }
  0x49   : > { %1449 = vperm.xlu0 %6418, %v6617_v8  }
  0x4b   : > { %6411 = vset.pattern.permute.xlu1 %v6516_v2 }
  0x4c   : > { %709 = vperm.xlu1 %6411, %v6676_v15  }
  0x4d   : > { %1441 = vperm.xlu0 %6418, %v6591_v4  }
  0x50   : > { %6412 = vset.pattern.permute.xlu1 %v11883_v5 }
  0x51   : > { %282 = vperm.xlu1 %6412, %v6685_v16   ;;  %1433 = vperm.xlu0 %6418, %v6657_v13  }
  0x55   : > { %6413 = vset.pattern.permute.xlu1 %v6516_v2  ;;  %1425 = vperm.xlu0 %6418, %v6600_v6  }
  0x56   : > { %697 = vperm.xlu1 %6413, %v6685_v16  }
  0x59   : > { %1417 = vperm.xlu0 %6418, %v6685_v16  }
  0x5a   : > { %701 = vperm.xlu1 %6413, %v6652_v12  }
  0x5d   : > { %1409 = vperm.xlu0 %6418, %v6664_v14  }
  0x5e   : > { %6414 = vset.pattern.permute.xlu1 %v11883_v5 }
  0x5f   : > { %277 = vperm.xlu1 %6414, %v6695_v17  }
  0x63   : > { %6416 = vset.pattern.permute.xlu1 %v6516_v2 }
  0x64   : > { %693 = vperm.xlu1 %6416, %v6695_v17  }
  0x68   : > { %6417 = vset.pattern.permute.xlu1 %v6518_v32 }
  0x69   : > { %1465 = vperm.xlu1 %6417, %v6572_v0  }
  0x6d   : > { %1457 = vperm.xlu1 %6417, %v6577_v1  }
  0x71   : > { %1461 = vperm.xlu1 %6417, %v6605_v7  }
  0x75   : > { %1453 = vperm.xlu1 %6417, %v6626_v9  }
  0x79   : > { %1445 = vperm.xlu1 %6417, %v6636_v10  }
  0x7d   : > { %1437 = vperm.xlu1 %6417, %v6641_v11  }
  0x81   : > { %1429 = vperm.xlu1 %6417, %v6676_v15  }
  0x85   : > { %1421 = vperm.xlu1 %6417, %v6652_v12  }
  0x89   : > { %v6705_v19 = vpop.permute.xlu1 %745  ;;  %v6707_v20 = vpop.permute.xlu0 %737  ;;  %1413 = vperm.xlu1 %6417, %v6695_v17  }
  0x8a   : > { %12190 = vst [vmem:[#allocation3_spill] sm:$0xff] %v6705_v19  ;;  %12191 = vst [vmem:[#allocation4_spill] sm:$0xff] %v6707_v20 }
  0x8d   : > { %v6717_v22 = vpop.permute.xlu1 %749  ;;  %v6719_v23 = vpop.permute.xlu0 %721 }
  0x8e   : > { %12193 = vst [vmem:[#allocation6_spill] sm:$0xff] %v6717_v22  ;;  %12194 = vst [vmem:[#allocation7_spill] sm:$0xff] %v6719_v23 }
  0x91   : > { %v6729_v33 = vpop.permute.xlu0 %705 }
  0x92   : > { %12195 = vst [vmem:[#allocation8_spill] sm:$0xff] %v6729_v33  ;;  %v6735_v36 = vpop.permute.xlu1 %337 }
  0x93   : > { %12196 = vst [vmem:[#allocation9_spill] sm:$0xff] %v6735_v36  ;;  %v641_v49 = vmul.f32 %v6737_v37, %v6735_v36  ;;  %v643_v50 = vmul.f32 %v6739_v38, %v6735_v36  ;;  %v640_v51 = vmul.f32 %v6741_v39, %v6735_v36  ;;  %v642_v52 = vmul.f32 %v6745_v40, %v6735_v36 }
  0x94   : > { %v6898_v15 = vmul.f32 %v6755_v43, %v6735_v36 }
  0x96   : > { %v6771_v48 = vpop.permute.xlu0 %342 }
  0x97   : > { %v6781_v53 = vpop.permute.xlu1 %741  ;;  %v657_v54 = vmul.f32 %v6737_v37, %v6771_v48  ;;  %v659_v55 = vmul.f32 %v6739_v38, %v6771_v48  ;;  %v656_v56 = vmul.f32 %v6741_v39, %v6771_v48  ;;  %v658_v57 = vmul.f32 %v6745_v40, %v6771_v48 }
  0x98   : > { %12200 = vst [vmem:[#allocation13_spill] sm:$0xff] %v6781_v53  ;;  %v6792_v58 = vadd.f32 %v6781_v53, %v641_v49  ;;  %v6795_v59 = vadd.f32 %v6781_v53, %v643_v50  ;;  %v6798_v60 = vadd.f32 %v6781_v53, %v640_v51  ;;  %v6801_v61 = vadd.f32 %v6781_v53, %v642_v52 }
  0x99   : > { %v977_v62 = vadd.f32 %v6705_v19, %v657_v54  ;;  %v979_v63 = vadd.f32 %v6705_v19, %v659_v55  ;;  %v976_v0 = vadd.f32 %v6705_v19, %v656_v56  ;;  %v978_v1 = vadd.f32 %v6705_v19, %v658_v57 }
  0x9a   : > { %v6808_v2 = vpop.permute.xlu0 %347  ;;  %v1217_v3 = vmax.f32 %v6792_v58, 0.0  ;;  %v1219_v8 = vmax.f32 %v6795_v59, 0.0  ;;  %v1216_v18 = vmax.f32 %v6798_v60, 0.0  ;;  %v1218_v24 = vmax.f32 %v6801_v61, 0.0 }
  0x9b   : > { %12201 = vst [vmem:[#allocation14_spill] sm:$0xff] %v6808_v2  ;;  %v673_v25 = vmul.f32 %v6737_v37, %v6808_v2  ;;  %v1233_v26 = vmax.f32 %v977_v62, 0.0  ;;  %v675_v28 = vmul.f32 %v6739_v38, %v6808_v2  ;;  %v1235_v7 = vmax.f32 %v979_v63, 0.0 }
  0x9c   : > { %v6819_v32 = vpop.permute.xlu1 %322  ;;  %v672_v34 = vmul.f32 %v6741_v39, %v6808_v2  ;;  %v1232_v49 = vmax.f32 %v976_v0, 0.0  ;;  %v674_v50 = vmul.f32 %v6745_v40, %v6808_v2  ;;  %v1234_v51 = vmax.f32 %v978_v1, 0.0 }
  0x9d   : > { %12202 = vst [vmem:[#allocation15_spill] sm:$0xff] %v6819_v32  ;;  %v993_v4 = vadd.f32 %v6717_v22, %v673_v25  ;;  %v995_v52 = vadd.f32 %v6717_v22, %v675_v28  ;;  %v593_v54 = vmul.f32 %v6737_v37, %v6819_v32  ;;  %v595_v55 = vmul.f32 %v6739_v38, %v6819_v32 }
  0x9e   : > { %v6832_v56 = vpop.permute.xlu0 %332  ;;  %v992_v57 = vadd.f32 %v6717_v22, %v672_v34  ;;  %v994_v58 = vadd.f32 %v6717_v22, %v674_v50  ;;  %v592_v59 = vmul.f32 %v6741_v39, %v6819_v32  ;;  %v594_v60 = vmul.f32 %v6745_v40, %v6819_v32 }
  0x9f   : > { %12203 = vst [vmem:[#allocation16_spill] sm:$0xff] %v6832_v56  ;;  %v1249_v61 = vmax.f32 %v993_v4, 0.0  ;;  %v1251_v62 = vmax.f32 %v995_v52, 0.0  ;;  %v625_v63 = vmul.f32 %v6737_v37, %v6832_v56  ;;  %v627_v9 = vmul.f32 %v6739_v38, %v6832_v56 }
  0xa0   : > { %v1248_v0 = vmax.f32 %v992_v57, 0.0  ;;  %v1250_v1 = vmax.f32 %v994_v58, 0.0  ;;  %v624_v25 = vmul.f32 %v6741_v39, %v6832_v56  ;;  %v626_v28 = vmul.f32 %v6745_v40, %v6832_v56 }
  0xa1   : > { %v6849_v34 = vpop.permute.xlu1 %729  ;;  %v1377_v50 = vpack.c.bf16 %v1249_v61, %v1233_v26  ;;  %v1379_v13 = vpack.c.bf16 %v1251_v62, %v1235_v7  ;;  %v945_v4 = vadd.f32 %v6707_v20, %v625_v63  ;;  %v947_v52 = vadd.f32 %v6707_v20, %v627_v9 }
  0xa2   : > { %12204 = vst [vmem:[#allocation17_spill] sm:$0xff] %v6849_v34  ;;  %v6854_v35 = vpop.permute.xlu0 %327  ;;  %v1376_v57 = vpack.c.bf16 %v1248_v0, %v1232_v49  ;;  %v1378_v58 = vpack.c.bf16 %v1250_v1, %v1234_v51  ;;  %v944_v31 = vadd.f32 %v6707_v20, %v624_v25  ;;  %v946_v30 = vadd.f32 %v6707_v20, %v626_v28 }
  0xa3   : > { %12205 = vst [vmem:[#allocation18_spill] sm:$0xff] %v6854_v35  ;;  %1520 = vmatprep.subr.bf16.mxu0 %v1377_v50  ;;  %1633 = vmatprep.subr.bf16.mxu1 %v1379_v13  ;;  %v1201_v26 = vmax.f32 %v945_v4, 0.0  ;;  %v1203_v7 = vmax.f32 %v947_v52, 0.0  ;;  %v609_v61 = vmul.f32 %v6737_v37, %v6854_v35  ;;  %v913_v62 = vadd.f32 %v6849_v34, %v593_v54 }
  0xa4   : > { %1521 = vmatpush1.bf16.msra.mxu0 %v1376_v57  ;;  %1634 = vmatpush1.bf16.msra.mxu1 %v1378_v58  ;;  %v1200_v10 = vmax.f32 %v944_v31, 0.0  ;;  %v1202_v49 = vmax.f32 %v946_v30, 0.0  ;;  %v611_v51 = vmul.f32 %v6739_v38, %v6854_v35  ;;  %v915_v63 = vadd.f32 %v6849_v34, %v595_v55 }
  0xa5   : > { %v6865_v9 = vpop.permute.xlu1 %733  ;;  %v1361_v6 = vpack.c.bf16 %v1217_v3, %v1201_v26  ;;  %v1363_v0 = vpack.c.bf16 %v1219_v8, %v1203_v7  ;;  %v1169_v1 = vmax.f32 %v913_v62, 0.0  ;;  %v608_v25 = vmul.f32 %v6741_v39, %v6854_v35 }
  0xa6   : > { %12206 = vst [vmem:[#allocation19_spill] sm:$0xff] %v6865_v9  ;;  %v6870_v54 = vpop.permute.xlu0 %312  ;;  %v1360_v28 = vpack.c.bf16 %v1216_v18, %v1200_v10  ;;  %v1362_v31 = vpack.c.bf16 %v1218_v24, %v1202_v49  ;;  %v929_v30 = vadd.f32 %v6865_v9, %v609_v61  ;;  %v931_v50 = vadd.f32 %v6865_v9, %v611_v51 }
  0xa7   : > { %1522 = vmatprep.subr.bf16.mxu0 %v1361_v6  ;;  %1635 = vmatprep.subr.bf16.mxu1 %v1363_v0  ;;  %v1171_v3 = vmax.f32 %v915_v63, 0.0  ;;  %v912_v8 = vadd.f32 %v6849_v34, %v592_v59  ;;  %v928_v55 = vadd.f32 %v6865_v9, %v608_v25  ;;  %v610_v11 = vmul.f32 %v6745_v40, %v6854_v35 }
  0xa8   : > { %1523 = vmatpush1.bf16.msra.mxu0 %v1360_v28  ;;  %1636 = vmatpush1.bf16.msra.mxu1 %v1362_v31  ;;  %v1185_v18 = vmax.f32 %v929_v30, 0.0  ;;  %v1187_v24 = vmax.f32 %v931_v50, 0.0  ;;  %v914_v13 = vadd.f32 %v6849_v34, %v594_v60  ;;  %v561_v4 = vmul.f32 %v6737_v37, %v6870_v54 }
  0xa9   : > { %v1168_v16 = vmax.f32 %v912_v8, 0.0  ;;  %v1184_v52 = vmax.f32 %v928_v55, 0.0  ;;  %v930_v57 = vadd.f32 %v6865_v9, %v610_v11  ;;  %v563_v59 = vmul.f32 %v6739_v38, %v6870_v54 }
  0xaa   : > { %v6886_v58 = vpop.permute.xlu1 %317  ;;  %v6888_v26 = vpop.permute.xlu0 %307  ;;  %v1345_v7 = vpack.c.bf16 %v1185_v18, %v1169_v1  ;;  %v1347_v61 = vpack.c.bf16 %v1187_v24, %v1171_v3  ;;  %v881_v60 = vadd.f32 %v6719_v23, %v561_v4  ;;  %v6893_v62 = vmul.f32 %v6751_v42, %v6735_v36 }
  0xab   : > { %12207 = vst [vmem:[#allocation20_spill] sm:$0xff] %v6886_v58  ;;  %12208 = vst [vmem:[#allocation21_spill] sm:$0xff] %v6888_v26  ;;  %v1344_v10 = vpack.c.bf16 %v1184_v52, %v1168_v16  ;;  %v1170_v49 = vmax.f32 %v914_v13, 0.0  ;;  %v1186_v51 = vmax.f32 %v930_v57, 0.0  ;;  %v883_v63 = vadd.f32 %v6719_v23, %v563_v59 }
  0xac   : > { %1524 = vmatprep.subr.bf16.mxu0 %v1345_v7  ;;  %1637 = vmatprep.subr.bf16.mxu1 %v1347_v61  ;;  %v560_v6 = vmul.f32 %v6741_v39, %v6870_v54  ;;  %v6905_v0 = vmul.f32 %v6759_v44, %v6735_v36  ;;  %v577_v1 = vmul.f32 %v6737_v37, %v6886_v58  ;;  %v1137_v30 = vmax.f32 %v881_v60, 0.0 }
  0xad   : > { %1525 = vmatpush1.bf16.msra.mxu0 %v1344_v10  ;;  %v1346_v14 = vpack.c.bf16 %v1186_v51, %v1170_v49  ;;  %v562_v25 = vmul.f32 %v6745_v40, %v6870_v54  ;;  %v6913_v28 = vmul.f32 %v6763_v45, %v6735_v36  ;;  %v579_v50 = vmul.f32 %v6739_v38, %v6886_v58 }
  0xae   : > { %v6915_v31 = vpop.permute.xlu0 %292  ;;  %v576_v3 = vmul.f32 %v6741_v39, %v6886_v58  ;;  %v880_v8 = vadd.f32 %v6719_v23, %v560_v6  ;;  %v578_v11 = vmul.f32 %v6745_v40, %v6886_v58  ;;  %v1139_v52 = vmax.f32 %v883_v63, 0.0 }
  0xaf   : > { %12209 = vst [vmem:[#allocation22_spill] sm:$0xff] %v6915_v31  ;;  %1638 = vmatpush1.bf16.msra.mxu1 %v1346_v14  ;;  %v6923_v55 = vpop.permute.xlu1 %725  ;;  %v882_v18 = vadd.f32 %v6719_v23, %v562_v25  ;;  %v497_v24 = vmul.f32 %v6737_v37, %v6915_v31  ;;  %v499_v13 = vmul.f32 %v6739_v38, %v6915_v31 }
  0xb0   : > { %12210 = vst [vmem:[#allocation23_spill] sm:$0xff] %v6923_v55  ;;  %v897_v4 = vadd.f32 %v6923_v55, %v577_v1  ;;  %v899_v16 = vadd.f32 %v6923_v55, %v579_v50  ;;  %v896_v12 = vadd.f32 %v6923_v55, %v576_v3  ;;  %v1136_v57 = vmax.f32 %v880_v8, 0.0 }
  0xb1   : > { %v898_v59 = vadd.f32 %v6923_v55, %v578_v11  ;;  %v6937_v7 = vadd.f32 %v6729_v33, %v497_v24  ;;  %v6940_v61 = vadd.f32 %v6729_v33, %v499_v13  ;;  %v496_v6 = vmul.f32 %v6741_v39, %v6915_v31 }
  0xb2   : > { %v6942_v60 = vpop.permute.xlu0 %287  ;;  %v1153_v10 = vmax.f32 %v897_v4, 0.0  ;;  %v1155_v49 = vmax.f32 %v899_v16, 0.0  ;;  %v1152_v51 = vmax.f32 %v896_v12, 0.0  ;;  %v1138_v63 = vmax.f32 %v882_v18, 0.0 }
  0xb3   : > { %12211 = vst [vmem:[#allocation24_spill] sm:$0xff] %v6942_v60  ;;  %v1154_v14 = vmax.f32 %v898_v59, 0.0  ;;  %v545_v1 = vmul.f32 %v6737_v37, %v6888_v26  ;;  %v498_v25 = vmul.f32 %v6745_v40, %v6915_v31  ;;  %v6954_v24 = vadd.f32 %v6729_v33, %v496_v6 }
  0xb4   : > { %v6951_v50 = vpop.permute.xlu1 %302  ;;  %v1329_v3 = vpack.c.bf16 %v1153_v10, %v1137_v30  ;;  %v1331_v8 = vpack.c.bf16 %v1155_v49, %v1139_v52  ;;  %v1328_v11 = vpack.c.bf16 %v1152_v51, %v1136_v57  ;;  %v547_v17 = vmul.f32 %v6739_v38, %v6888_v26 }
  0xb5   : > { %12212 = vst [vmem:[#allocation25_spill] sm:$0xff] %v6951_v50  ;;  %v1330_v13 = vpack.c.bf16 %v1154_v14, %v1138_v63  ;;  %v544_v18 = vmul.f32 %v6741_v39, %v6888_v26  ;;  %v546_v4 = vmul.f32 %v6745_v40, %v6888_v26  ;;  %v529_v30 = vmul.f32 %v6737_v37, %v6951_v50 }
  0xb6   : > { %1526 = vmatprep.subr.bf16.mxu0 %v1329_v3  ;;  %1639 = vmatprep.subr.bf16.mxu1 %v1331_v8  ;;  %v6962_v16 = vpop.permute.xlu0 %272  ;;  %v6969_v57 = vadd.f32 %v6729_v33, %v498_v25  ;;  %v531_v59 = vmul.f32 %v6739_v38, %v6951_v50  ;;  %v528_v10 = vmul.f32 %v6741_v39, %v6951_v50 }
  0xb7   : > { %12213 = vst [vmem:[#allocation26_spill] sm:$0xff] %v6962_v16  ;;  %1527 = vmatpush1.bf16.msra.mxu0 %v1328_v11  ;;  %1640 = vmatpush1.bf16.msra.mxu1 %v1330_v13  ;;  %v530_v49 = vmul.f32 %v6745_v40, %v6951_v50  ;;  %v6980_v6 = vmul.f32 %v6737_v37, %v6942_v60 }
  0xb8   : > { %v6984_v63 = vmul.f32 %v6739_v38, %v6942_v60  ;;  %v6988_v14 = vmul.f32 %v6741_v39, %v6942_v60  ;;  %v6992_v25 = vmul.f32 %v6745_v40, %v6942_v60  ;;  %v661_v11 = vmul.f32 %v6751_v42, %v6771_v48 }
  0xb9   : > { %v6994_v3 = vpop.permute.xlu1 %713  ;;  %v677_v13 = vmul.f32 %v6751_v42, %v6808_v2  ;;  %v663_v29 = vmul.f32 %v6755_v43, %v6771_v48  ;;  %v433_v8 = vmul.f32 %v6737_v37, %v6962_v16  ;;  %v435_v52 = vmul.f32 %v6739_v38, %v6962_v16 }
  0xba   : > { %12214 = vst [vmem:[#allocation27_spill] sm:$0xff] %v6994_v3  ;;  %v849_v27 = vadd.f32 %v6994_v3, %v529_v30  ;;  %v851_v5 = vadd.f32 %v6994_v3, %v531_v59  ;;  %v848_v51 = vadd.f32 %v6994_v3, %v528_v10  ;;  %v850_v12 = vadd.f32 %v6994_v3, %v530_v49 }
  0xbb   : > { %v432_v36 = vmul.f32 %v6741_v39, %v6962_v16  ;;  %v434_v41 = vmul.f32 %v6745_v40, %v6962_v16  ;;  %v7015_v21 = vpop.permute.xlu0 %689  ;;  %v981_v30 = vadd.f32 %v6705_v19, %v661_v11  ;;  %v997_v59 = vadd.f32 %v6717_v22, %v677_v13 }
  0xbc   : > { %v679_v10 = vmul.f32 %v6755_v43, %v6808_v2  ;;  %v983_v49 = vadd.f32 %v6705_v19, %v663_v29  ;;  %v1105_v46 = vmax.f32 %v849_v27, 0.0  ;;  %v1107_v60 = vmax.f32 %v851_v5, 0.0 }
  0xbd   : > { %v7022_v47 = vpop.permute.xlu1 %717  ;;  %v1104_v33 = vmax.f32 %v848_v51, 0.0  ;;  %v1106_v31 = vmax.f32 %v850_v12, 0.0  ;;  %v7029_v13 = vadd.f32 %v7015_v21, %v433_v8  ;;  %v7032_v50 = vadd.f32 %v7015_v21, %v435_v52 }
  0xbe   : > { %12215 = vst [vmem:[#allocation28_spill] sm:$0xff] %v7022_v47  ;;  %v865_v3 = vadd.f32 %v7022_v47, %v545_v1  ;;  %v867_v16 = vadd.f32 %v7022_v47, %v547_v17  ;;  %v864_v26 = vadd.f32 %v7022_v47, %v544_v18  ;;  %v866_v11 = vadd.f32 %v7022_v47, %v546_v4 }
  0xbf   : > { %v7035_v29 = vadd.f32 %v7015_v21, %v432_v36  ;;  %v7038_v5 = vadd.f32 %v7015_v21, %v434_v41  ;;  %v1237_v51 = vmax.f32 %v981_v30, 0.0  ;;  %v1253_v18 = vmax.f32 %v997_v59, 0.0 }
  0xc0   : > { %v1121_v27 = vmax.f32 %v865_v3, 0.0  ;;  %v1123_v1 = vmax.f32 %v867_v16, 0.0  ;;  %v1120_v12 = vmax.f32 %v864_v26, 0.0  ;;  %v1122_v17 = vmax.f32 %v866_v11, 0.0 }
  0xc1   : > { %v999_v4 = vadd.f32 %v6717_v22, %v679_v10  ;;  %v1239_v47 = vmax.f32 %v983_v49, 0.0  ;;  %v7051_v3 = vpack.c.bf16 %v1253_v18, %v1237_v51  ;;  %v662_v30 = vmul.f32 %v6763_v45, %v6771_v48 }
  0xc2   : > { %v7041_v8 = vpop.permute.xlu1 %297  ;;  %v1313_v55 = vpack.c.bf16 %v1121_v27, %v1105_v46  ;;  %v1315_v52 = vpack.c.bf16 %v1123_v1, %v1107_v60  ;;  %v1312_v23 = vpack.c.bf16 %v1120_v12, %v1104_v33  ;;  %v1314_v58 = vpack.c.bf16 %v1122_v17, %v1106_v31 }
  0xc3   : > { %v513_v36 = vmul.f32 %v6737_v37, %v7041_v8  ;;  %v515_v41 = vmul.f32 %v6739_v38, %v7041_v8  ;;  %v512_v26 = vmul.f32 %v6741_v39, %v7041_v8  ;;  %v514_v16 = vmul.f32 %v6745_v40, %v7041_v8 }
  0xc4   : > { %1528 = vmatprep.subr.bf16.mxu0 %v1313_v55  ;;  %1641 = vmatprep.subr.bf16.mxu1 %v1315_v52  ;;  %v1255_v46 = vmax.f32 %v999_v4, 0.0  ;;  %v660_v33 = vmul.f32 %v6759_v44, %v6771_v48  ;;  %v676_v31 = vmul.f32 %v6759_v44, %v6808_v2  ;;  %v678_v55 = vmul.f32 %v6763_v45, %v6808_v2 }
  0xc5   : > { %1529 = vmatpush1.bf16.msra.mxu0 %v1312_v23  ;;  %1642 = vmatpush1.bf16.msra.mxu1 %v1314_v58  ;;  %v629_v59 = vmul.f32 %v6751_v42, %v6832_v56  ;;  %v965_v23 = vadd.f32 %v6781_v53, %v6893_v62  ;;  %v982_v27 = vadd.f32 %v6705_v19, %v662_v30 }
  0xc6   : > { %v7064_v10 = vpack.c.bf16 %v1255_v46, %v1239_v47  ;;  %v980_v49 = vadd.f32 %v6705_v19, %v660_v33  ;;  %v996_v11 = vadd.f32 %v6717_v22, %v676_v31  ;;  %v998_v1 = vadd.f32 %v6717_v22, %v678_v55 }
  0xc7   : > { %v7070_v58 = vpop.permute.xlu1 %709  ;;  %v949_v12 = vadd.f32 %v6707_v20, %v629_v59  ;;  %v631_v17 = vmul.f32 %v6755_v43, %v6832_v56  ;;  %v1238_v46 = vmax.f32 %v982_v27, 0.0 }
  0xc8   : > { %v833_v47 = vadd.f32 %v7070_v58, %v513_v36  ;;  %v835_v51 = vadd.f32 %v7070_v58, %v515_v41  ;;  %v832_v18 = vadd.f32 %v7070_v58, %v512_v26  ;;  %v834_v4 = vadd.f32 %v7070_v58, %v514_v16 }
  0xc9   : > { %v1236_v62 = vmax.f32 %v980_v49, 0.0  ;;  %v1252_v52 = vmax.f32 %v996_v11, 0.0  ;;  %v1254_v33 = vmax.f32 %v998_v1, 0.0  ;;  %v1205_v19 = vmax.f32 %v949_v12, 0.0 }
  0xca   : > { %v1089_v31 = vmax.f32 %v833_v47, 0.0  ;;  %v1091_v30 = vmax.f32 %v835_v51, 0.0  ;;  %v1088_v55 = vmax.f32 %v832_v18, 0.0  ;;  %v1090_v60 = vmax.f32 %v834_v4, 0.0 }
  0xcb   : > { %v7081_v59 = vpack.c.bf16 %v1252_v52, %v1236_v62  ;;  %v7083_v22 = vpack.c.bf16 %v1254_v33, %v1238_v46  ;;  %v1221_v36 = vmax.f32 %v965_v23, 0.0  ;;  %v12216_v41 = vmax.f32 %v6937_v7, 0.0 }
  0xcc   : > { %v7085_v2 = vpop.permute.xlu1 %282  ;;  %v12217_v16 = vmax.f32 %v6940_v61, 0.0  ;;  %v12218_v11 = vmax.f32 %v6954_v24, 0.0  ;;  %v12219_v1 = vmax.f32 %v6969_v57, 0.0  ;;  %v951_v57 = vadd.f32 %v6707_v20, %v631_v17 }
  0xcd   : > { %v1297_v26 = vpack.c.bf16 %v1089_v31, %v12216_v41  ;;  %v465_v51 = vmul.f32 %v6737_v37, %v7085_v2  ;;  %v467_v23 = vmul.f32 %v6739_v38, %v7085_v2  ;;  %v464_v12 = vmul.f32 %v6741_v39, %v7085_v2 }
  0xce   : > { %v1299_v49 = vpack.c.bf16 %v1091_v30, %v12217_v16  ;;  %v1296_v27 = vpack.c.bf16 %v1088_v55, %v12218_v11  ;;  %v1298_v47 = vpack.c.bf16 %v1090_v60, %v12219_v1  ;;  %v466_v7 = vmul.f32 %v6745_v40, %v7085_v2 }
  0xcf   : > { %1530 = vmatprep.subr.bf16.mxu0 %v1297_v26  ;;  %v7104_v24 = vpack.c.bf16 %v1221_v36, %v1205_v19  ;;  %v967_v60 = vadd.f32 %v6781_v53, %v6898_v15  ;;  %v628_v4 = vmul.f32 %v6759_v44, %v6832_v56  ;;  %v964_v62 = vadd.f32 %v6781_v53, %v6905_v0 }
  0xd0   : > { %1643 = vmatprep.subr.bf16.mxu1 %v1299_v49  ;;  %1531 = vmatpush1.bf16.msra.mxu0 %v1296_v27  ;;  %v630_v52 = vmul.f32 %v6763_v45, %v6832_v56  ;;  %v1207_v19 = vmax.f32 %v951_v57, 0.0  ;;  %v966_v17 = vadd.f32 %v6781_v53, %v6913_v28  ;;  %v597_v15 = vmul.f32 %v6751_v42, %v6819_v32 }
  0xd1   : > { %1644 = vmatpush1.bf16.msra.mxu1 %v1298_v47  ;;  %v1223_v46 = vmax.f32 %v967_v60, 0.0  ;;  %v7120_v33 = vpop.permute.xlu1 %697  ;;  %v948_v31 = vadd.f32 %v6707_v20, %v628_v4  ;;  %v1220_v30 = vmax.f32 %v964_v62, 0.0  ;;  %v613_v0 = vmul.f32 %v6751_v42, %v6854_v35 }
  0xd2   : > { %v950_v55 = vadd.f32 %v6707_v20, %v630_v52  ;;  %v785_v36 = vadd.f32 %v7120_v33, %v465_v51  ;;  %v787_v41 = vadd.f32 %v7120_v33, %v467_v23  ;;  %v784_v26 = vadd.f32 %v7120_v33, %v464_v12 }
  0xd3   : > { %v786_v28 = vadd.f32 %v7120_v33, %v466_v7  ;;  %v7130_v16 = vpack.c.bf16 %v1223_v46, %v1207_v19  ;;  %v1204_v49 = vmax.f32 %v948_v31, 0.0  ;;  %v1222_v27 = vmax.f32 %v966_v17, 0.0 }
  0xd4   : > { %v1206_v11 = vmax.f32 %v950_v55, 0.0  ;;  %v1041_v1 = vmax.f32 %v785_v36, 0.0  ;;  %v1043_v47 = vmax.f32 %v787_v41, 0.0  ;;  %v1040_v57 = vmax.f32 %v784_v26, 0.0 }
  0xd5   : > { %v1042_v60 = vmax.f32 %v786_v28, 0.0  ;;  %v7132_v4 = vpop.permute.xlu1 %701  ;;  %v7134_v62 = vpack.c.bf16 %v1220_v30, %v1204_v49  ;;  %v917_v23 = vadd.f32 %v6849_v34, %v597_v15  ;;  %v933_v12 = vadd.f32 %v6865_v9, %v613_v0 }
  0xd6   : > { %v7136_v51 = vpack.c.bf16 %v1222_v27, %v1206_v11  ;;  %v801_v7 = vadd.f32 %v7132_v4, %v6980_v6  ;;  %v803_v52 = vadd.f32 %v7132_v4, %v6984_v63  ;;  %v800_v19 = vadd.f32 %v7132_v4, %v6988_v14 }
  0xd7   : > { %v802_v46 = vadd.f32 %v7132_v4, %v6992_v25  ;;  %v1173_v17 = vmax.f32 %v917_v23, 0.0  ;;  %v1189_v31 = vmax.f32 %v933_v12, 0.0  ;;  %v599_v30 = vmul.f32 %v6755_v43, %v6819_v32 }
  0xd8   : > { %v615_v15 = vmul.f32 %v6755_v43, %v6854_v35  ;;  %v1057_v55 = vmax.f32 %v801_v7, 0.0  ;;  %v1059_v0 = vmax.f32 %v803_v52, 0.0  ;;  %v1056_v6 = vmax.f32 %v800_v19, 0.0 }
  0xd9   : > { %v1058_v36 = vmax.f32 %v802_v46, 0.0  ;;  %v7152_v41 = vpack.c.bf16 %v1189_v31, %v1173_v17  ;;  %v919_v63 = vadd.f32 %v6849_v34, %v599_v30  ;;  %v596_v25 = vmul.f32 %v6759_v44, %v6819_v32  ;;  %v12220_v31 = vld [vmem:[#allocation20_spill] sm:$0xff] }
  0xda   : > { %v935_v14 = vadd.f32 %v6865_v9, %v615_v15  ;;  %v7158_v26 = vpop.permute.xlu1 %277  ;;  %v1281_v28 = vpack.c.bf16 %v1057_v55, %v1041_v1  ;;  %v1283_v49 = vpack.c.bf16 %v1059_v0, %v1043_v47  ;;  %v1280_v11 = vpack.c.bf16 %v1056_v6, %v1040_v57  ;;  %v12221_v0 = vld [vmem:[#allocation7_spill] sm:$0xff] }
  0xdb   : > { %v1282_v27 = vpack.c.bf16 %v1058_v36, %v1042_v60  ;;  %v449_v23 = vmul.f32 %v6737_v37, %v7158_v26  ;;  %v451_v12 = vmul.f32 %v6739_v38, %v7158_v26  ;;  %v448_v7 = vmul.f32 %v6741_v39, %v7158_v26 }
  0xdc   : > { %v450_v52 = vmul.f32 %v6745_v40, %v7158_v26  ;;  %1532 = vmatprep.subr.bf16.mxu0 %v1281_v28  ;;  %1645 = vmatprep.subr.bf16.mxu1 %v1283_v49  ;;  %v1175_v19 = vmax.f32 %v919_v63, 0.0  ;;  %v1191_v46 = vmax.f32 %v935_v14, 0.0  ;;  %v612_v1 = vmul.f32 %v6759_v44, %v6854_v35 }
  0xdd   : > { %v916_v47 = vadd.f32 %v6849_v34, %v596_v25  ;;  %1533 = vmatpush1.bf16.msra.mxu0 %v1280_v11  ;;  %1646 = vmatpush1.bf16.msra.mxu1 %v1282_v27  ;;  %v1010_v37 = vmax.f32 %v7038_v5, 0.0  ;;  %v598_v38 = vmul.f32 %v6763_v45, %v6819_v32  ;;  %v614_v39 = vmul.f32 %v6763_v45, %v6854_v35 }
  0xde   : > { %v565_v40 = vmul.f32 %v6751_v42, %v6870_v54  ;;  %v7178_v57 = vpack.c.bf16 %v1191_v46, %v1175_v19  ;;  %v932_v60 = vadd.f32 %v6865_v9, %v612_v1  ;;  %v581_v30 = vmul.f32 %v6751_v42, %v12220_v31  ;;  %v12222_v19 = vld [vmem:[#allocation23_spill] sm:$0xff] }
  0xdf   : > { %v1172_v17 = vmax.f32 %v916_v47, 0.0  ;;  %v7183_v15 = vpop.permute.xlu1 %693  ;;  %v918_v5 = vadd.f32 %v6849_v34, %v598_v38  ;;  %v934_v55 = vadd.f32 %v6865_v9, %v614_v39  ;;  %v567_v36 = vmul.f32 %v6755_v43, %v6870_v54 }
  0xe0   : > { %v885_v6 = vadd.f32 %v12221_v0, %v565_v40  ;;  %v769_v63 = vadd.f32 %v7183_v15, %v449_v23  ;;  %v771_v14 = vadd.f32 %v7183_v15, %v451_v12  ;;  %v768_v25 = vadd.f32 %v7183_v15, %v448_v7 }
  0xe1   : > { %v770_v28 = vadd.f32 %v7183_v15, %v450_v52  ;;  %v1188_v49 = vmax.f32 %v932_v60, 0.0  ;;  %v1174_v11 = vmax.f32 %v918_v5, 0.0  ;;  %v1190_v27 = vmax.f32 %v934_v55, 0.0 }
  0xe2   : > { %v901_v46 = vadd.f32 %v12222_v19, %v581_v30  ;;  %v1025_v1 = vmax.f32 %v769_v63, 0.0  ;;  %v1027_v47 = vmax.f32 %v771_v14, 0.0  ;;  %v1024_v38 = vmax.f32 %v768_v25, 0.0  ;;  %v12226_v25 = vld [vmem:[#allocation25_spill] sm:$0xff] }
  0xe3   : > { %v1026_v39 = vmax.f32 %v770_v28, 0.0  ;;  %v7195_v40 = vpack.c.bf16 %v1188_v49, %v1172_v17  ;;  %v7197_v18 = vpack.c.bf16 %v1190_v27, %v1174_v11  ;;  %v1141_v23 = vmax.f32 %v885_v6, 0.0 }
  0xe4   : > { %v1157_v61 = vmax.f32 %v901_v46, 0.0  ;;  %v12223_v12 = vmax.f32 %v7029_v13, 0.0  ;;  %v12224_v52 = vmax.f32 %v7032_v50, 0.0  ;;  %v12225_v5 = vmax.f32 %v7035_v29, 0.0  ;;  %v7215_v50 = vld [vmem:[%s11873_s2] sm:$0xff]  }
  0xe5   : > { %v1266_v30 = vpack.c.bf16 %v1026_v39, %v1010_v37  ;;  %v583_v17 = vmul.f32 %v6755_v43, %v12220_v31  ;;  %v887_v14 = vadd.f32 %v12221_v0, %v567_v36  ;;  %v564_v6 = vmul.f32 %v6759_v44, %v6870_v54 }
  0xe6   : > { %v1265_v7 = vpack.c.bf16 %v1025_v1, %v12223_v12  ;;  %v1267_v60 = vpack.c.bf16 %v1027_v47, %v12224_v52  ;;  %v1264_v55 = vpack.c.bf16 %v1024_v38, %v12225_v5  ;;  %v7205_v63 = vpack.c.bf16 %v1157_v61, %v1141_v23  ;;  %v12227_v38 = vld [vmem:[#allocation21_spill] sm:$0xff]  ;;  %v12228_v23 = vld [vmem:[#allocation27_spill] sm:$0xff]  ;;  %v12229_v5 = vld [vmem:[#allocation28_spill] sm:$0xff] }
  0xe7   : > { %v580_v13 = vmul.f32 %v6759_v44, %v12220_v31  ;;  %v566_v29 = vmul.f32 %v6763_v45, %v6870_v54  ;;  %v582_v61 = vmul.f32 %v6763_v45, %v12220_v31  ;;  %v903_v37 = vadd.f32 %v12222_v19, %v583_v17 }
  0xe8   : > { %1534 = vmatprep.subr.bf16.mxu0 %v1265_v7  ;;  %1647 = vmatprep.subr.bf16.mxu1 %v1267_v60  ;;  %v884_v36 = vadd.f32 %v12221_v0, %v564_v6  ;;  %v533_v28 = vmul.f32 %v6751_v42, %v12226_v25  ;;  %v1143_v49 = vmax.f32 %v887_v14, 0.0  ;;  %v549_v39 = vmul.f32 %v6751_v42, %v12227_v38 }
  0xe9   : > { %1535 = vmatpush1.bf16.msra.mxu0 %v1264_v55  ;;  %1648 = vmatpush1.bf16.msra.mxu1 %v1266_v30  ;;  %v900_v11 = vadd.f32 %v12222_v19, %v580_v13  ;;  %v886_v27 = vadd.f32 %v12221_v0, %v566_v29  ;;  %v902_v46 = vadd.f32 %v12222_v19, %v582_v61  ;;  %v1159_v1 = vmax.f32 %v903_v37, 0.0 }
  0xea   : > { %1746 = vmatprep.subr.bf16.mxu0 %v7051_v3  ;;  %1859 = vmatprep.subr.bf16.mxu1 %v7064_v10  ;;  %v1140_v47 = vmax.f32 %v884_v36, 0.0  ;;  %v853_v12 = vadd.f32 %v12228_v23, %v533_v28  ;;  %v535_v52 = vmul.f32 %v6755_v43, %v12226_v25  ;;  %v869_v55 = vadd.f32 %v12229_v5, %v549_v39 }
  0xeb   : > { %v1156_v3 = vmax.f32 %v900_v11, 0.0  ;;  %v1142_v10 = vmax.f32 %v886_v27, 0.0  ;;  %v1158_v7 = vmax.f32 %v902_v46, 0.0  ;;  %v1335_v60 = vpack.c.bf16 %v1159_v1, %v1143_v49  ;;  %v12231_v49 = vld [vmem:[#allocation22_spill] sm:$0xff] }
  0xec   : > { %1553 = vmatmul.mubr.bf16.vlgmr.msra.gmra.mxu0 %v7215_v50  ;;  %1666 = vmatmul.mubr.bf16.vlgmr.msra.gmra.mxu1 %v7215_v50  ;;  %v551_v30 = vmul.f32 %v6755_v43, %v12227_v38  ;;  %v1109_v6 = vmax.f32 %v853_v12, 0.0  ;;  %v855_v13 = vadd.f32 %v12228_v23, %v535_v52  ;;  %v12230_v29 = vmov 0  }
  0xed   : > { %1747 = vmatpush1.bf16.msra.mxu0 %v7081_v59  ;;  %1860 = vmatpush1.bf16.msra.mxu1 %v7083_v22  ;;  %v1332_v17 = vpack.c.bf16 %v1156_v3, %v1140_v47  ;;  %v1334_v14 = vpack.c.bf16 %v1158_v7, %v1142_v10  ;;  %v1125_v22 = vmax.f32 %v869_v55, 0.0  ;;  %v532_v61 = vmul.f32 %v6759_v44, %v12226_v25  ;;  %v12232_v7 = vld [vmem:[#allocation8_spill] sm:$0xff] }
  0xee   : > { %1748 = vmatprep.subr.bf16.mxu0 %v7104_v24  ;;  %1861 = vmatprep.subr.bf16.mxu1 %v7130_v16  ;;  %v871_v59 = vadd.f32 %v12229_v5, %v551_v30  ;;  %v548_v24 = vmul.f32 %v6759_v44, %v12227_v38  ;;  %v7257_v16 = vld [vmem:[%s11873_s2 + $0x8] sm:$0xff]   ;;  %v1111_v37 = vmax.f32 %v855_v13, 0.0  ;;  %v534_v36 = vmul.f32 %v6763_v45, %v12226_v25 }
  0xef   : > { %1562 = vmatprep.mubr.bf16.mxu0 %v12230_v29  ;;  %1675 = vmatprep.mubr.bf16.mxu1 %v12230_v29  ;;  %v550_v28 = vmul.f32 %v6763_v45, %v12227_v38  ;;  %v501_v11 = vmul.f32 %v6751_v42, %v12231_v49  ;;  %v1317_v27 = vpack.c.bf16 %v1125_v22, %v1109_v6 }
  0xf0   : > { %v1127_v46 = vmax.f32 %v871_v59, 0.0  ;;  %v852_v1 = vadd.f32 %v12228_v23, %v532_v61  ;;  %v868_v47 = vadd.f32 %v12229_v5, %v548_v24  ;;  %v854_v39 = vadd.f32 %v12228_v23, %v534_v36 }
  0xf1   : > { %1749 = vmatpush1.bf16.msra.mxu0 %v7134_v62  ;;  %1862 = vmatpush1.bf16.msra.mxu1 %v7136_v51  ;;  %v870_v12 = vadd.f32 %v12229_v5, %v550_v28  ;;  %v517_v3 = vmul.f32 %v6751_v42, %v7041_v8  ;;  %v821_v52 = vadd.f32 %v12232_v7, %v501_v11 }
  0xf2   : > { %1750 = vmatprep.subr.bf16.mxu0 %v7152_v41  ;;  %1863 = vmatprep.subr.bf16.mxu1 %v7178_v57  ;;  %v1319_v62 = vpack.c.bf16 %v1127_v46, %v1111_v37  ;;  %v1108_v10 = vmax.f32 %v852_v1, 0.0  ;;  %v1124_v51 = vmax.f32 %v868_v47, 0.0  ;;  %v1110_v55 = vmax.f32 %v854_v39, 0.0 }
  0xf3   : > { %v1126_v41 = vmax.f32 %v870_v12, 0.0  ;;  %v837_v57 = vadd.f32 %v7070_v58, %v517_v3  ;;  %v503_v30 = vmul.f32 %v6755_v43, %v12231_v49  ;;  %v1077_v13 = vmax.f32 %v821_v52, 0.0  ;;  %v12233_v52 = vld [vmem:[#allocation24_spill] sm:$0xff] }
  0xf4   : > { %1563 = vmatmul.mubr.bf16.gmra.mxu0 %v7257_v16  ;;  %1676 = vmatmul.mubr.bf16.gmra.mxu1 %v7257_v16  ;;  %v1316_v6 = vpack.c.bf16 %v1124_v51, %v1108_v10  ;;  %v519_v22 = vmul.f32 %v6755_v43, %v7041_v8  ;;  %v500_v59 = vmul.f32 %v6759_v44, %v12231_v49 }
  0xf5   : > { %1751 = vmatpush1.bf16.msra.mxu0 %v7195_v40  ;;  %1864 = vmatpush1.bf16.msra.mxu1 %v7197_v18  ;;  %v1318_v61 = vpack.c.bf16 %v1126_v41, %v1110_v55  ;;  %v1093_v24 = vmax.f32 %v837_v57, 0.0  ;;  %v823_v37 = vadd.f32 %v12232_v7, %v503_v30  ;;  %v516_v40 = vmul.f32 %v6759_v44, %v7041_v8 }
  0xf6   : > { %1752 = vmatprep.subr.bf16.mxu0 %v7205_v63  ;;  %1865 = vmatprep.subr.bf16.mxu1 %v1335_v60  ;;  %v839_v18 = vadd.f32 %v7070_v58, %v519_v22  ;;  %v820_v36 = vadd.f32 %v12232_v7, %v500_v59  ;;  %v502_v28 = vmul.f32 %v6763_v45, %v12231_v49  ;;  %v7300_v63 = vld [vmem:[%s11873_s2 + $0x10] sm:$0xff]  }
  0xf7   : > { %1572 = vmatprep.mubr.bf16.mxu0 %v12230_v29  ;;  %1685 = vmatprep.mubr.bf16.mxu1 %v12230_v29  ;;  %v1301_v60 = vpack.c.bf16 %v1093_v24, %v1077_v13  ;;  %v1079_v11 = vmax.f32 %v823_v37, 0.0  ;;  %v836_v46 = vadd.f32 %v7070_v58, %v516_v40  ;;  %v518_v1 = vmul.f32 %v6763_v45, %v7041_v8 }
  0xf8   : > { %v1095_v47 = vmax.f32 %v839_v18, 0.0  ;;  %v1076_v39 = vmax.f32 %v820_v36, 0.0  ;;  %v822_v12 = vadd.f32 %v12232_v7, %v502_v28  ;;  %v469_v3 = vmul.f32 %v6751_v42, %v7085_v2 }
  0xf9   : > { %1753 = vmatpush1.bf16.msra.mxu0 %v1332_v17  ;;  %1866 = vmatpush1.bf16.msra.mxu1 %v1334_v14  ;;  %v1092_v10 = vmax.f32 %v836_v46, 0.0  ;;  %v838_v51 = vadd.f32 %v7070_v58, %v518_v1  ;;  %v485_v55 = vmul.f32 %v6751_v42, %v12233_v52  ;;  %v471_v41 = vmul.f32 %v6755_v43, %v7085_v2 }
  0xfa   : > { %1754 = vmatprep.subr.bf16.mxu0 %v1317_v27  ;;  %1867 = vmatprep.subr.bf16.mxu1 %v1319_v62  ;;  %v1303_v17 = vpack.c.bf16 %v1095_v47, %v1079_v11  ;;  %v1078_v14 = vmax.f32 %v822_v12, 0.0  ;;  %v789_v57 = vadd.f32 %v7120_v33, %v469_v3  ;;  %v487_v30 = vmul.f32 %v6755_v43, %v12233_v52  ;;  %v7336_v47 = vld [vmem:[%s11873_s2 + $0x18] sm:$0xff]  }
  0xfb   : > { %v1300_v27 = vpack.c.bf16 %v1092_v10, %v1076_v39  ;;  %v1094_v62 = vmax.f32 %v838_v51, 0.0  ;;  %v805_v13 = vadd.f32 %v7132_v4, %v485_v55  ;;  %v791_v22 = vadd.f32 %v7120_v33, %v471_v41  ;;  %12234 = vst [vmem:[#allocation20_spill] sm:$0xff] %v7336_v47  ;;  %v12235_v12 = vld [vmem:[#allocation26_spill] sm:$0xff] }
  0xfc   : > { %1573 = vmatmul.mubr.bf16.gmra.mxu0 %v7300_v63  ;;  %1686 = vmatmul.mubr.bf16.gmra.mxu1 %v7300_v63  ;;  %v1045_v59 = vmax.f32 %v789_v57, 0.0  ;;  %v807_v24 = vadd.f32 %v7132_v4, %v487_v30  ;;  %v468_v37 = vmul.f32 %v6759_v44, %v7085_v2  ;;  %v484_v40 = vmul.f32 %v6759_v44, %v12233_v52 }
  0xfd   : > { %1755 = vmatpush1.bf16.msra.mxu0 %v1316_v6  ;;  %1868 = vmatpush1.bf16.msra.mxu1 %v1318_v61  ;;  %v1302_v18 = vpack.c.bf16 %v1094_v62, %v1078_v14  ;;  %v1061_v36 = vmax.f32 %v805_v13, 0.0  ;;  %v1047_v28 = vmax.f32 %v791_v22, 0.0  ;;  %v470_v11 = vmul.f32 %v6763_v45, %v7085_v2 }
  0xfe   : > { %1756 = vmatprep.subr.bf16.mxu0 %v1301_v60  ;;  %1869 = vmatprep.subr.bf16.mxu1 %v1303_v17  ;;  %v1063_v46 = vmax.f32 %v807_v24, 0.0  ;;  %v788_v6 = vadd.f32 %v7120_v33, %v468_v37  ;;  %v804_v61 = vadd.f32 %v7132_v4, %v484_v40  ;;  %v486_v1 = vmul.f32 %v6763_v45, %v12233_v52 }
  0xff   : > { %1582 = vmatprep.mubr.bf16.mxu0 %v12230_v29  ;;  %1695 = vmatprep.mubr.bf16.mxu1 %v12230_v29  ;;  %v1285_v60 = vpack.c.bf16 %v1061_v36, %v1045_v59  ;;  %v790_v39 = vadd.f32 %v7120_v33, %v470_v11  ;;  %v437_v3 = vmul.f32 %v6751_v42, %v12235_v12 }
 0x100   : > { %v453_v10 = vmul.f32 %v6751_v42, %v7158_v26  ;;  %v1287_v51 = vpack.c.bf16 %v1063_v46, %v1047_v28  ;;  %v1044_v55 = vmax.f32 %v788_v6, 0.0  ;;  %v1060_v41 = vmax.f32 %v804_v61, 0.0 }
 0x101   : > { %1757 = vmatpush1.bf16.msra.mxu0 %v1300_v27  ;;  %1870 = vmatpush1.bf16.msra.mxu1 %v1302_v18  ;;  %v806_v17 = vadd.f32 %v7132_v4, %v486_v1  ;;  %v1046_v14 = vmax.f32 %v790_v39, 0.0  ;;  %v757_v57 = vadd.f32 %v7015_v21, %v437_v3  ;;  %v439_v62 = vmul.f32 %v6755_v43, %v12235_v12  ;;  %v12236_v39 = vld [vmem:[#allocation11_spill] sm:$0xff] }
 0x102   : > { %1758 = vmatprep.subr.bf16.mxu0 %v1285_v60  ;;  %v773_v30 = vadd.f32 %v7183_v15, %v453_v10  ;;  %1871 = vmatprep.subr.bf16.mxu1 %v1287_v51  ;;  %v1284_v13 = vpack.c.bf16 %v1060_v41, %v1044_v55  ;;  %v455_v42 = vmul.f32 %v6755_v43, %v7158_v26  ;;  %v12237_v55 = vld [vmem:[#allocation14_spill] sm:$0xff]  ;;  %v12238_v41 = vld [vmem:[#allocation12_spill] sm:$0xff] }
 0x103   : > { %v1062_v22 = vmax.f32 %v806_v17, 0.0  ;;  %v436_v27 = vmul.f32 %v6759_v44, %v12235_v12  ;;  %v1013_v59 = vmax.f32 %v757_v57, 0.0  ;;  %v759_v37 = vadd.f32 %v7015_v21, %v439_v62  ;;  %v12240_v62 = vld [vmem:[#allocation3_spill] sm:$0xff] }
 0x104   : > { %1583 = vmatmul.mubr.bf16.gmra.mxu0 %v7336_v47  ;;  %1696 = vmatmul.mubr.bf16.gmra.mxu1 %v7336_v47  ;;  %v1029_v24 = vmax.f32 %v773_v30, 0.0  ;;  %v452_v40 = vmul.f32 %v6759_v44, %v7158_v26  ;;  %v775_v36 = vadd.f32 %v7183_v15, %v455_v42  ;;  %v438_v28 = vmul.f32 %v6763_v45, %v12235_v12 }
 0x105   : > { %1759 = vmatpush1.bf16.msra.mxu0 %v1284_v13  ;;  %v1286_v18 = vpack.c.bf16 %v1062_v22, %v1046_v14  ;;  %v756_v43 = vadd.f32 %v7015_v21, %v436_v27  ;;  %v1015_v46 = vmax.f32 %v759_v37, 0.0  ;;  %v454_v61 = vmul.f32 %v6763_v45, %v7158_v26  ;;  %1592 = vmatprep.mubr.bf16.mxu0 %v12230_v29  ;;  %v7377_v14 = vld [vmem:[%s11873_s2 + $0x20] sm:$0xff]  }
 0x106   : > { %v1269_v11 = vpack.c.bf16 %v1029_v24, %v1013_v59  ;;  %v772_v6 = vadd.f32 %v7183_v15, %v452_v40  ;;  %1705 = vmatprep.mubr.bf16.mxu1 %v12230_v29  ;;  %v1031_v44 = vmax.f32 %v775_v36, 0.0  ;;  %v758_v60 = vadd.f32 %v7015_v21, %v438_v28  ;;  %12239 = vst [vmem:[#allocation23_spill] sm:$0xff] %v7377_v14  ;;  %v12241_v59 = vld [vmem:[#allocation6_spill] sm:$0xff]  ;;  %v7385_v40 = vld [vmem:[%s6715_s12 + $0x8] sm:$0xff]  ;;  %s10613_s12 = sld [smem:[#allocation2]] }
 0x107   : > { %1872 = vmatpush1.bf16.msra.mxu1 %v1286_v18  ;;  %v1012_v1 = vmax.f32 %v756_v43, 0.0  ;;  %v665_v3 = vmul.f32 %v12236_v39, %v6771_v48  ;;  %v774_v51 = vadd.f32 %v7183_v15, %v454_v61  ;;  %v681_v45 = vmul.f32 %v12236_v39, %v12237_v55  ;;  %12242 = vst [vmem:[#allocation27_spill] sm:$0xff] %v7385_v40  ;;  %v12243_v18 = vld [vmem:[#allocation5_spill] sm:$0xff]  ;;  %v12245_v61 = vld [vmem:[#allocation10_spill] sm:$0xff] }
 0x108   : > { %1760 = vmatprep.subr.bf16.mxu0 %v1269_v11  ;;  %v1028_v10 = vmax.f32 %v772_v6, 0.0  ;;  %v667_v17 = vmul.f32 %v12238_v41, %v6771_v48  ;;  %v1271_v57 = vpack.c.bf16 %v1031_v44, %v1015_v46  ;;  %v1014_v30 = vmax.f32 %v758_v60, 0.0 }
 0x109   : > { %v985_v13 = vadd.f32 %v12240_v62, %v665_v3  ;;  %v683_v22 = vmul.f32 %v12238_v41, %v12237_v55  ;;  %v1030_v27 = vmax.f32 %v774_v51, 0.0  ;;  %v1001_v24 = vadd.f32 %v12241_v59, %v681_v45 }
 0x10a   : > { %v1268_v42 = vpack.c.bf16 %v1028_v10, %v1012_v1  ;;  %v987_v37 = vadd.f32 %v12240_v62, %v667_v17  ;;  %v12244_v36 = vsub.s32 2, %v12243_v18  ;;  %1873 = vmatprep.subr.bf16.mxu1 %v1271_v57  ;;  %v664_v44 = vmul.f32 %v12245_v61, %v6771_v48 }
 0x10b   : > { %v1241_v28 = vmax.f32 %v985_v13, 0.0  ;;  %v1003_v11 = vadd.f32 %v12241_v59, %v683_v22  ;;  %v1270_v46 = vpack.c.bf16 %v1030_v27, %v1014_v30  ;;  %v1257_v6 = vmax.f32 %v1001_v24, 0.0  ;;  %v7415_v22 = vld [vmem:[%s11873_s2 + $0x28] sm:$0xff]  }
 0x10c   : > { %v7390_v43 = vrot.slane %v7385_v40, %v12244_v36  ;;  %1761 = vmatpush1.bf16.msra.mxu0 %v1268_v42  ;;  %1706 = vmatmul.mubr.bf16.gmra.mxu1 %v7377_v14  ;;  %v680_v1 = vmul.f32 %v12245_v61, %v12237_v55  ;;  %v1243_v60 = vmax.f32 %v987_v37, 0.0  ;;  %v633_v17 = vmul.f32 %v12236_v39, %v6832_v56  ;;  %v12248_v36 = vld [vmem:[#allocation9_spill] sm:$0xff] }
 0x10d   : > { %v1259_v3 = vmax.f32 %v1003_v11, 0.0  ;;  %1593 = vmatmul.mubr.bf16.gmra.mxu0 %v7377_v14  ;;  %1715 = vmatprep.mubr.bf16.mxu1 %v12230_v29  ;;  %v1385_v51 = vpack.c.bf16 %v1257_v6, %v1241_v28  ;;  %v12246_v30 = vsub.s32 5, %v12243_v18  ;;  %12247 = vst [vmem:[#allocation28_spill] sm:$0xff] %v7415_v22  ;;  %v984_v42 = vadd.f32 %v12240_v62, %v664_v44 }
 0x10e   : > { %v682_v10 = vmul.f32 %v7390_v43, %v12237_v55  ;;  %1874 = vmatpush1.bf16.msra.mxu1 %v1270_v46  ;;  %1602 = vmatprep.mubr.bf16.mxu0 %v12230_v29  ;;  %v666_v45 = vmul.f32 %v7390_v43, %v6771_v48  ;;  %v1000_v27 = vadd.f32 %v12241_v59, %v680_v1 }
 0x10f   : > { %v1387_v57 = vpack.c.bf16 %v1259_v3, %v1243_v60  ;;  %v7410_v13 = vrot.slane %v7385_v40, %v12246_v30  ;;  %1972 = vmatprep.subr.bf16.mxu0 %v1385_v51  ;;  %v635_v37 = vmul.f32 %v12238_v41, %v6832_v56  ;;  %v649_v28 = vmul.f32 %v12236_v39, %v12248_v36 }
 0x110   : > { %v1002_v24 = vadd.f32 %v12241_v59, %v682_v10  ;;  %v953_v11 = vadd.f32 %v6707_v20, %v633_v17  ;;  %v651_v46 = vmul.f32 %v12238_v41, %v12248_v36  ;;  %v632_v6 = vmul.f32 %v12245_v61, %v6832_v56 }
 0x111   : > { %2085 = vmatprep.subr.bf16.mxu1 %v1387_v57  ;;  %v986_v44 = vadd.f32 %v12240_v62, %v666_v45  ;;  %v955_v1 = vadd.f32 %v6707_v20, %v635_v37  ;;  %v648_v60 = vmul.f32 %v12245_v61, %v12248_v36  ;;  %v650_v3 = vmul.f32 %v7390_v43, %v12248_v36 }
 0x112   : > { %v969_v10 = vadd.f32 %v6781_v53, %v649_v28  ;;  %v971_v51 = vadd.f32 %v6781_v53, %v651_v46  ;;  %v952_v17 = vadd.f32 %v6707_v20, %v632_v6  ;;  %v634_v57 = vmul.f32 %v7390_v43, %v6832_v56 }
 0x113   : > { %v1240_v45 = vmax.f32 %v984_v42, 0.0  ;;  %v1256_v30 = vmax.f32 %v1000_v27, 0.0  ;;  %v1258_v37 = vmax.f32 %v1002_v24, 0.0  ;;  %v968_v14 = vadd.f32 %v6781_v53, %v648_v60 }
 0x114   : > { %1716 = vmatmul.mubr.bf16.gmra.mxu1 %v7415_v22  ;;  %v1209_v36 = vmax.f32 %v953_v11, 0.0  ;;  %v954_v28 = vadd.f32 %v6707_v20, %v634_v57  ;;  %v970_v46 = vadd.f32 %v6781_v53, %v650_v3  ;;  %v617_v6 = vmul.f32 %v12236_v39, %v6854_v35  ;;  %v7456_v3 = vld [vmem:[%s11873_s2 + $0x30] sm:$0xff]  }
 0x115   : > { %1603 = vmatmul.mubr.bf16.gmra.mxu0 %v7415_v22  ;;  %1725 = vmatprep.mubr.bf16.mxu1 %v12230_v29  ;;  %v1211_v56 = vmax.f32 %v955_v1, 0.0  ;;  %v1208_v42 = vmax.f32 %v952_v17, 0.0  ;;  %v601_v27 = vmul.f32 %v12236_v39, %v6819_v32  ;;  %v619_v24 = vmul.f32 %v12238_v41, %v6854_v35  ;;  %12249 = vst [vmem:[#allocation22_spill] sm:$0xff] %v7456_v3 }
 0x116   : > { %1612 = vmatprep.mubr.bf16.mxu0 %v12230_v29  ;;  %v1242_v60 = vmax.f32 %v986_v44, 0.0  ;;  %v1225_v22 = vmax.f32 %v969_v10, 0.0  ;;  %v1227_v11 = vmax.f32 %v971_v51, 0.0  ;;  %v1210_v47 = vmax.f32 %v954_v28, 0.0 }
 0x117   : > { %v1224_v57 = vmax.f32 %v968_v14, 0.0  ;;  %v921_v53 = vadd.f32 %v6849_v34, %v601_v27  ;;  %v937_v1 = vadd.f32 %v6865_v9, %v617_v6  ;;  %v616_v17 = vmul.f32 %v12245_v61, %v6854_v35 }
 0x118   : > { %v7462_v20 = vpack.c.bf16 %v1256_v30, %v1240_v45  ;;  %v1226_v62 = vmax.f32 %v970_v46, 0.0  ;;  %v603_v44 = vmul.f32 %v12238_v41, %v6819_v32  ;;  %v939_v10 = vadd.f32 %v6865_v9, %v619_v24 }
 0x119   : > { %v7467_v51 = vpack.c.bf16 %v1258_v37, %v1242_v60  ;;  %v7469_v28 = vpack.c.bf16 %v1225_v22, %v1209_v36  ;;  %v7471_v14 = vpack.c.bf16 %v1227_v11, %v1211_v56  ;;  %v7473_v27 = vpack.c.bf16 %v1224_v57, %v1208_v42 }
 0x11a   : > { %v7475_v6 = vpack.c.bf16 %v1226_v62, %v1210_v47  ;;  %v923_v40 = vadd.f32 %v6849_v34, %v603_v44  ;;  %v600_v45 = vmul.f32 %v12245_v61, %v6819_v32  ;;  %v618_v30 = vmul.f32 %v7390_v43, %v6854_v35 }
 0x11b   : > { %v1177_v37 = vmax.f32 %v921_v53, 0.0  ;;  %v1193_v46 = vmax.f32 %v937_v1, 0.0  ;;  %v936_v22 = vadd.f32 %v6865_v9, %v616_v17  ;;  %v602_v56 = vmul.f32 %v7390_v43, %v6819_v32 }
 0x11c   : > { %1726 = vmatmul.mubr.bf16.gmra.mxu1 %v7456_v3  ;;  %v1195_v47 = vmax.f32 %v939_v10, 0.0  ;;  %v569_v62 = vmul.f32 %v12236_v39, %v6870_v54  ;;  %v585_v36 = vmul.f32 %v12236_v39, %v12220_v31  ;;  %v571_v53 = vmul.f32 %v12238_v41, %v6870_v54  ;;  %v7508_v10 = vld [vmem:[%s11873_s2 + $0x38] sm:$0xff]  }
 0x11d   : > { %1613 = vmatmul.mubr.bf16.gmra.mxu0 %v7456_v3  ;;  %1735 = vmatprep.mubr.bf16.mxu1 %v12230_v29  ;;  %v920_v42 = vadd.f32 %v6849_v34, %v600_v45  ;;  %v922_v24 = vadd.f32 %v6849_v34, %v602_v56  ;;  %v938_v60 = vadd.f32 %v6865_v9, %v618_v30  ;;  %v1179_v57 = vmax.f32 %v923_v40, 0.0 }
 0x11e   : > { %1622 = vmatprep.mubr.bf16.mxu0 %v12230_v29  ;;  %v587_v11 = vmul.f32 %v12238_v41, %v12220_v31  ;;  %v905_v1 = vadd.f32 %v12222_v19, %v585_v36  ;;  %v568_v17 = vmul.f32 %v12245_v61, %v6870_v54  ;;  %v584_v44 = vmul.f32 %v12245_v61, %v12220_v31 }
 0x11f   : > { %12250 = vst [vmem:[#allocation8_spill] sm:$0xff] %v7508_v10  ;;  %v7510_v45 = vpack.c.bf16 %v1193_v46, %v1177_v37  ;;  %v1192_v30 = vmax.f32 %v936_v22, 0.0  ;;  %v570_v40 = vmul.f32 %v7390_v43, %v6870_v54  ;;  %v889_v36 = vadd.f32 %v12221_v0, %v569_v62 }
 0x120   : > { %v907_v56 = vadd.f32 %v12222_v19, %v587_v11  ;;  %v891_v3 = vadd.f32 %v12221_v0, %v571_v53  ;;  %v904_v9 = vadd.f32 %v12222_v19, %v584_v44  ;;  %v586_v34 = vmul.f32 %v7390_v43, %v12220_v31 }
 0x121   : > { %v7520_v32 = vpack.c.bf16 %v1195_v47, %v1179_v57  ;;  %v1176_v35 = vmax.f32 %v920_v42, 0.0  ;;  %v1178_v37 = vmax.f32 %v922_v24, 0.0  ;;  %v1194_v46 = vmax.f32 %v938_v60, 0.0 }
 0x122   : > { %v1161_v22 = vmax.f32 %v905_v1, 0.0  ;;  %v888_v11 = vadd.f32 %v12221_v0, %v568_v17  ;;  %v906_v18 = vadd.f32 %v12222_v19, %v586_v34  ;;  %v553_v62 = vmul.f32 %v12236_v39, %v12227_v38 }
 0x123   : > { %v1163_v53 = vmax.f32 %v907_v56, 0.0  ;;  %v890_v44 = vadd.f32 %v12221_v0, %v570_v40  ;;  %v537_v47 = vmul.f32 %v12236_v39, %v12226_v25  ;;  %v555_v42 = vmul.f32 %v12238_v41, %v12227_v38 }
 0x124   : > { %1736 = vmatmul.mubr.bf16.gmra.mxu1 %v7508_v10  ;;  %v7534_v24 = vpack.c.bf16 %v1192_v30, %v1176_v35  ;;  %v1145_v34 = vmax.f32 %v889_v36, 0.0  ;;  %v1147_v60 = vmax.f32 %v891_v3, 0.0  ;;  %v1160_v57 = vmax.f32 %v904_v9, 0.0 }
 0x125   : > { %1623 = vmatmul.mubr.bf16.gmra.mxu0 %v7508_v10  ;;  %1891 = vmatprep.mubr.bf16.mxu1 %v12230_v29  ;;  %v1162_v1 = vmax.f32 %v906_v18, 0.0  ;;  %v857_v17 = vadd.f32 %v12228_v23, %v537_v47  ;;  %v873_v56 = vadd.f32 %v12229_v5, %v553_v62  ;;  %v539_v40 = vmul.f32 %v12238_v41, %v12226_v25 }
 0x126   : > { %1778 = vmatprep.mubr.bf16.mxu0 %v12230_v29  ;;  %v7541_v0 = vpack.c.bf16 %v1194_v46, %v1178_v37  ;;  %v7543_v10 = vpack.c.bf16 %v1161_v22, %v1145_v34  ;;  %v875_v35 = vadd.f32 %v12229_v5, %v555_v42  ;;  %v552_v3 = vmul.f32 %v12245_v61, %v12227_v38 }
 0x127   : > { %v7548_v9 = vpack.c.bf16 %v1163_v53, %v1147_v60  ;;  %v1144_v30 = vmax.f32 %v888_v11, 0.0  ;;  %v1146_v18 = vmax.f32 %v890_v44, 0.0  ;;  %v859_v36 = vadd.f32 %v12228_v23, %v539_v40 }
 0x128   : > { %v536_v62 = vmul.f32 %v12245_v61, %v12226_v25  ;;  %v538_v37 = vmul.f32 %v7390_v43, %v12226_v25  ;;  %v554_v46 = vmul.f32 %v7390_v43, %v12227_v38  ;;  %v505_v22 = vmul.f32 %v12236_v39, %v12231_v49 }
 0x129   : > { %v7559_v47 = vpack.c.bf16 %v1160_v57, %v1144_v30  ;;  %v7561_v53 = vpack.c.bf16 %v1162_v1, %v1146_v18  ;;  %v1113_v11 = vmax.f32 %v857_v17, 0.0  ;;  %v1129_v44 = vmax.f32 %v873_v56, 0.0 }
 0x12a   : > { %v1131_v42 = vmax.f32 %v875_v35, 0.0  ;;  %v856_v34 = vadd.f32 %v12228_v23, %v536_v62  ;;  %v872_v60 = vadd.f32 %v12229_v5, %v552_v3  ;;  %v858_v40 = vadd.f32 %v12228_v23, %v538_v37 }
 0x12b   : > { %v874_v25 = vadd.f32 %v12229_v5, %v554_v46  ;;  %v521_v38 = vmul.f32 %v12236_v39, %v7041_v8  ;;  %v507_v57 = vmul.f32 %v12238_v41, %v12231_v49  ;;  %v523_v1 = vmul.f32 %v12238_v41, %v7041_v8 }
 0x12c   : > { %1892 = vmatmul.mubr.bf16.vlgmr.msra.gmra.mxu1 %v7215_v50  ;;  %v1115_v17 = vmax.f32 %v859_v36, 0.0  ;;  %v825_v56 = vadd.f32 %v12232_v7, %v505_v22  ;;  %v504_v35 = vmul.f32 %v12245_v61, %v12231_v49  ;;  %v520_v3 = vmul.f32 %v12245_v61, %v7041_v8 }
 0x12d   : > { %1779 = vmatmul.mubr.bf16.vlgmr.msra.gmra.mxu0 %v7215_v50  ;;  %2086 = vmatpush1.bf16.msra.mxu1 %v7467_v51  ;;  %v7583_v30 = vpack.c.bf16 %v1129_v44, %v1113_v11  ;;  %v841_v18 = vadd.f32 %v7070_v58, %v521_v38  ;;  %v843_v50 = vadd.f32 %v7070_v58, %v523_v1  ;;  %v1114_v37 = vmax.f32 %v858_v40, 0.0 }
 0x12e   : > { %1973 = vmatpush1.bf16.msra.mxu0 %v7462_v20  ;;  %2087 = vmatprep.subr.bf16.mxu1 %v7471_v14  ;;  %v1323_v51 = vpack.c.bf16 %v1131_v42, %v1115_v17  ;;  %v840_v36 = vadd.f32 %v7070_v58, %v520_v3  ;;  %v506_v62 = vmul.f32 %v7390_v43, %v12231_v49  ;;  %v1112_v20 = vmax.f32 %v856_v34, 0.0 }
 0x12f   : > { %1974 = vmatprep.subr.bf16.mxu0 %v7469_v28  ;;  %1788 = vmatprep.mubr.bf16.mxu0 %v12230_v29  ;;  %v1128_v14 = vmax.f32 %v872_v60, 0.0  ;;  %v827_v46 = vadd.f32 %v12232_v7, %v507_v57  ;;  %v1130_v38 = vmax.f32 %v874_v25, 0.0  ;;  %v1081_v22 = vmax.f32 %v825_v56, 0.0 }
 0x130   : > { %1901 = vmatprep.mubr.bf16.mxu1 %v12230_v29  ;;  %v824_v28 = vadd.f32 %v12232_v7, %v504_v35  ;;  %v522_v11 = vmul.f32 %v7390_v43, %v7041_v8  ;;  %v1097_v44 = vmax.f32 %v841_v18, 0.0  ;;  %v1099_v42 = vmax.f32 %v843_v50, 0.0 }
 0x131   : > { %2088 = vmatpush1.bf16.msra.mxu1 %v7475_v6  ;;  %v489_v34 = vmul.f32 %v12236_v39, %v12233_v52  ;;  %v491_v60 = vmul.f32 %v12238_v41, %v12233_v52  ;;  %v1096_v25 = vmax.f32 %v840_v36, 0.0  ;;  %v826_v6 = vadd.f32 %v12232_v7, %v506_v62 }
 0x132   : > { %1975 = vmatpush1.bf16.msra.mxu0 %v7473_v27  ;;  %2089 = vmatprep.subr.bf16.mxu1 %v7520_v32  ;;  %v842_v40 = vadd.f32 %v7070_v58, %v522_v11  ;;  %v473_v27 = vmul.f32 %v12236_v39, %v7085_v2  ;;  %v1083_v32 = vmax.f32 %v827_v46, 0.0  ;;  %v475_v1 = vmul.f32 %v12238_v41, %v7085_v2 }
 0x133   : > { %1976 = vmatprep.subr.bf16.mxu0 %v7510_v45  ;;  %v809_v57 = vadd.f32 %v7132_v4, %v489_v34  ;;  %v811_v17 = vadd.f32 %v7132_v4, %v491_v60  ;;  %v1320_v45 = vpack.c.bf16 %v1128_v14, %v1112_v20  ;;  %v1322_v56 = vpack.c.bf16 %v1130_v38, %v1114_v37 }
 0x134   : > { %1902 = vmatmul.mubr.bf16.gmra.mxu1 %v7257_v16  ;;  %v1080_v35 = vmax.f32 %v824_v28, 0.0  ;;  %v793_v3 = vadd.f32 %v7120_v33, %v473_v27  ;;  %v1305_v18 = vpack.c.bf16 %v1097_v44, %v1081_v22  ;;  %v1307_v50 = vpack.c.bf16 %v1099_v42, %v1083_v32 }
 0x135   : > { %1789 = vmatmul.mubr.bf16.gmra.mxu0 %v7257_v16  ;;  %2090 = vmatpush1.bf16.msra.mxu1 %v7541_v0  ;;  %v795_v36 = vadd.f32 %v7120_v33, %v475_v1  ;;  %v1082_v62 = vmax.f32 %v826_v6, 0.0  ;;  %v1098_v0 = vmax.f32 %v842_v40, 0.0  ;;  %v472_v20 = vmul.f32 %v12245_v61, %v7085_v2 }
 0x136   : > { %1977 = vmatpush1.bf16.msra.mxu0 %v7534_v24  ;;  %2091 = vmatprep.subr.bf16.mxu1 %v7548_v9  ;;  %v1304_v16 = vpack.c.bf16 %v1096_v25, %v1080_v35  ;;  %v1065_v14 = vmax.f32 %v809_v57, 0.0  ;;  %v1067_v24 = vmax.f32 %v811_v17, 0.0  ;;  %v488_v9 = vmul.f32 %v12245_v61, %v12233_v52 }
 0x137   : > { %1978 = vmatprep.subr.bf16.mxu0 %v7543_v10  ;;  %1798 = vmatprep.mubr.bf16.mxu0 %v12230_v29  ;;  %v490_v37 = vmul.f32 %v7390_v43, %v12233_v52  ;;  %v1049_v10 = vmax.f32 %v793_v3, 0.0  ;;  %v474_v46 = vmul.f32 %v7390_v43, %v7085_v2  ;;  %v441_v38 = vmul.f32 %v12236_v39, %v12235_v12 }
 0x138   : > { %1911 = vmatprep.mubr.bf16.mxu1 %v12230_v29  ;;  %v443_v22 = vmul.f32 %v12238_v41, %v12235_v12  ;;  %v1051_v28 = vmax.f32 %v795_v36, 0.0  ;;  %v457_v44 = vmul.f32 %v12236_v39, %v7158_v26  ;;  %v1306_v42 = vpack.c.bf16 %v1098_v0, %v1082_v62  ;;  %v12251_v62 = vld [vmem:[#allocation5_spill] sm:$0xff] }
 0x139   : > { %2092 = vmatpush1.bf16.msra.mxu1 %v7561_v53  ;;  %v810_v11 = vadd.f32 %v7132_v4, %v490_v37  ;;  %v459_v53 = vmul.f32 %v12238_v41, %v7158_v26  ;;  %v792_v34 = vadd.f32 %v7120_v33, %v472_v20  ;;  %v808_v60 = vadd.f32 %v7132_v4, %v488_v9  ;;  %v12253_v20 = vld [vmem:[#allocation27_spill] sm:$0xff] }
 0x13a   : > { %1979 = vmatpush1.bf16.msra.mxu0 %v7559_v47  ;;  %2093 = vmatprep.subr.bf16.mxu1 %v1323_v51  ;;  %v794_v25 = vadd.f32 %v7120_v33, %v474_v46  ;;  %v1289_v47 = vpack.c.bf16 %v1065_v14, %v1049_v10  ;;  %v1291_v51 = vpack.c.bf16 %v1067_v24, %v1051_v28  ;;  %v12252_v0 = vsub.s32 7, %v12251_v62 }
 0x13b   : > { %1980 = vmatprep.subr.bf16.mxu0 %v7583_v30  ;;  %v777_v6 = vadd.f32 %v7183_v15, %v457_v44  ;;  %v779_v39 = vadd.f32 %v7183_v15, %v459_v53  ;;  %v761_v41 = vadd.f32 %v7015_v21, %v441_v38  ;;  %v763_v30 = vadd.f32 %v7015_v21, %v443_v22  ;;  %v12254_v38 = vld [vmem:[#allocation3_spill] sm:$0xff]  ;;  %v12255_v44 = vld [vmem:[#allocation20_spill] sm:$0xff] }
 0x13c   : > { %1912 = vmatmul.mubr.bf16.gmra.mxu1 %v7300_v63  ;;  %v442_v40 = vmul.f32 %v7390_v43, %v12235_v12  ;;  %v1066_v27 = vmax.f32 %v810_v11, 0.0  ;;  %v440_v32 = vmul.f32 %v12245_v61, %v12235_v12  ;;  %v456_v57 = vmul.f32 %v12245_v61, %v7158_v26 }
 0x13d   : > { %1799 = vmatmul.mubr.bf16.gmra.mxu0 %v7300_v63  ;;  %2094 = vmatpush1.bf16.msra.mxu1 %v1322_v56  ;;  %v458_v63 = vmul.f32 %v7390_v43, %v7158_v26  ;;  %v1064_v1 = vmax.f32 %v808_v60, 0.0  ;;  %v1050_v17 = vmax.f32 %v794_v25, 0.0  ;;  %v669_v56 = vmul.f32 %v7410_v13, %v6771_v48 }
 0x13e   : > { %1981 = vmatpush1.bf16.msra.mxu0 %v1320_v45  ;;  %2095 = vmatprep.subr.bf16.mxu1 %v1307_v50  ;;  %v685_v45 = vmul.f32 %v7410_v13, %v12237_v55  ;;  %v1033_v35 = vmax.f32 %v777_v6, 0.0  ;;  %v1035_v3 = vmax.f32 %v779_v39, 0.0  ;;  %v776_v61 = vadd.f32 %v7183_v15, %v456_v57 }
 0x13f   : > { %1982 = vmatprep.subr.bf16.mxu0 %v1305_v18  ;;  %1808 = vmatprep.mubr.bf16.mxu0 %v12230_v29  ;;  %v778_v50 = vadd.f32 %v7183_v15, %v458_v63  ;;  %v1048_v43 = vmax.f32 %v792_v34, 0.0  ;;  %v762_v18 = vadd.f32 %v7015_v21, %v442_v40  ;;  %v7673_v14 = vrot.slane %v12253_v20, %v12252_v0 }
 0x140   : > { %1921 = vmatprep.mubr.bf16.mxu1 %v12230_v29  ;;  %v1005_v36 = vadd.f32 %v12241_v59, %v685_v45  ;;  %v1290_v24 = vpack.c.bf16 %v1066_v27, %v1050_v17  ;;  %v1017_v9 = vmax.f32 %v761_v41, 0.0  ;;  %v1019_v37 = vmax.f32 %v763_v30, 0.0  ;;  %v12257_v17 = vld [vmem:[#allocation23_spill] sm:$0xff] }
 0x141   : > { %2096 = vmatpush1.bf16.msra.mxu1 %v1306_v42  ;;  %v760_v10 = vadd.f32 %v7015_v21, %v440_v32  ;;  %v1034_v46 = vmax.f32 %v778_v50, 0.0  ;;  %v989_v22 = vadd.f32 %v12254_v38, %v669_v56  ;;  %v671_v28 = vmul.f32 %v7673_v14, %v6771_v48 }
 0x142   : > { %1983 = vmatpush1.bf16.msra.mxu0 %v1304_v16  ;;  %2097 = vmatprep.subr.bf16.mxu1 %v1291_v51  ;;  %v687_v11 = vmul.f32 %v7673_v14, %v12237_v55  ;;  %v1288_v53 = vpack.c.bf16 %v1064_v1, %v1048_v43  ;;  %v1273_v16 = vpack.c.bf16 %v1033_v35, %v1017_v9  ;;  %v1032_v34 = vmax.f32 %v776_v61, 0.0  ;;  %v12259_v43 = vld [vmem:[#allocation16_spill] sm:$0xff] }
 0x143   : > { %1984 = vmatprep.subr.bf16.mxu0 %v1289_v47  ;;  %v1275_v42 = vpack.c.bf16 %v1035_v3, %v1019_v37  ;;  %v1018_v60 = vmax.f32 %v762_v18, 0.0  ;;  %v1261_v25 = vmax.f32 %v1005_v36, 0.0  ;;  %v991_v47 = vadd.f32 %v12254_v38, %v671_v28  ;;  %v12260_v37 = vld [vmem:[#allocation9_spill] sm:$0xff] }
 0x144   : > { %1922 = vmatmul.mubr.bf16.gmra.mxu1 %v12255_v44  ;;  %v1007_v51 = vadd.f32 %v12241_v59, %v687_v11  ;;  %v1016_v6 = vmax.f32 %v760_v10, 0.0  ;;  %v1245_v41 = vmax.f32 %v989_v22, 0.0  ;;  %v12256_v63 = vsub.s32 4, %v12251_v62  ;;  %v12261_v10 = vld [vmem:[#allocation4_spill] sm:$0xff] }
 0x145   : > { %1809 = vmatmul.mubr.bf16.gmra.mxu0 %v12255_v44  ;;  %2098 = vmatpush1.bf16.msra.mxu1 %v1290_v24  ;;  %v1274_v39 = vpack.c.bf16 %v1034_v46, %v1018_v60  ;;  %v1247_v30 = vmax.f32 %v991_v47, 0.0  ;;  %v12258_v45 = vsub.s32 6, %v12251_v62  ;;  %v637_v18 = vmul.f32 %v7410_v13, %v12259_v43  ;;  %v12262_v44 = vld [vmem:[#allocation28_spill] sm:$0xff]  ;;  %v12264_v47 = vld [vmem:[#allocation18_spill] sm:$0xff] }
 0x146   : > { %1985 = vmatpush1.bf16.msra.mxu0 %v1288_v53  ;;  %2099 = vmatprep.subr.bf16.mxu1 %v1275_v42  ;;  %v1263_v40 = vmax.f32 %v1007_v51, 0.0  ;;  %v1272_v27 = vpack.c.bf16 %v1032_v34, %v1016_v6  ;;  %v1389_v32 = vpack.c.bf16 %v1261_v25, %v1245_v41  ;;  %v7690_v1 = vrot.slane %v12253_v20, %v12256_v63 }
 0x147   : > { %1986 = vmatprep.subr.bf16.mxu0 %v1273_v16  ;;  %1818 = vmatprep.mubr.bf16.mxu0 %v12230_v29  ;;  %v7698_v35 = vrot.slane %v12253_v20, %v12258_v45  ;;  %v639_v36 = vmul.f32 %v7673_v14, %v12259_v43  ;;  %v957_v46 = vadd.f32 %v12261_v10, %v637_v18  ;;  %v12263_v16 = vld [vmem:[#allocation13_spill] sm:$0xff] }
 0x148   : > { %1931 = vmatprep.mubr.bf16.mxu1 %v12230_v29  ;;  %v1391_v57 = vpack.c.bf16 %v1263_v40, %v1247_v30  ;;  %v684_v56 = vmul.f32 %v7690_v1, %v12237_v55  ;;  %v668_v3 = vmul.f32 %v7690_v1, %v6771_v48  ;;  %v636_v20 = vmul.f32 %v7690_v1, %v12259_v43 }
 0x149   : > { %2100 = vmatpush1.bf16.msra.mxu1 %v1274_v39  ;;  %v670_v61 = vmul.f32 %v7698_v35, %v6771_v48  ;;  %v686_v50 = vmul.f32 %v7698_v35, %v12237_v55  ;;  %v653_v55 = vmul.f32 %v7410_v13, %v12260_v37  ;;  %v655_v22 = vmul.f32 %v7673_v14, %v12260_v37 }
 0x14a   : > { %1987 = vmatpush1.bf16.msra.mxu0 %v1272_v27  ;;  %2311 = vmatprep.subr.bf16.mxu1 %v1391_v57  ;;  %v1004_v0 = vadd.f32 %v12241_v59, %v684_v56  ;;  %v988_v24 = vadd.f32 %v12254_v38, %v668_v3  ;;  %v959_v28 = vadd.f32 %v12261_v10, %v639_v36  ;;  %v1213_v41 = vmax.f32 %v957_v46, 0.0  ;;  %v12265_v57 = vld [vmem:[#allocation15_spill] sm:$0xff] }
 0x14b   : > { %2198 = vmatprep.subr.bf16.mxu0 %v1389_v32  ;;  %v990_v9 = vadd.f32 %v12254_v38, %v670_v61  ;;  %v1006_v48 = vadd.f32 %v12241_v59, %v686_v50  ;;  %v638_v11 = vmul.f32 %v7698_v35, %v12259_v43  ;;  %v973_v38 = vadd.f32 %v12263_v16, %v653_v55  ;;  %v12266_v43 = vld [vmem:[#allocation17_spill] sm:$0xff]  ;;  %v12267_v36 = vld [vmem:[#allocation19_spill] sm:$0xff] }
 0x14c   : > { %1932 = vmatmul.mubr.bf16.gmra.mxu1 %v12257_v17  ;;  %v1260_v53 = vmax.f32 %v1004_v0, 0.0  ;;  %v652_v59 = vmul.f32 %v7690_v1, %v12260_v37  ;;  %v956_v42 = vadd.f32 %v12261_v10, %v636_v20  ;;  %v1244_v34 = vmax.f32 %v988_v24, 0.0 }
 0x14d   : > { %1819 = vmatmul.mubr.bf16.gmra.mxu0 %v12257_v17  ;;  %1941 = vmatprep.mubr.bf16.mxu1 %v12230_v29  ;;  %v975_v60 = vadd.f32 %v12263_v16, %v655_v22  ;;  %v654_v25 = vmul.f32 %v7698_v35, %v12260_v37  ;;  %v621_v51 = vmul.f32 %v7410_v13, %v12264_v47  ;;  %v1246_v6 = vmax.f32 %v990_v9, 0.0  ;;  %v12268_v22 = vld [vmem:[#allocation22_spill] sm:$0xff] }
 0x14e   : > { %1828 = vmatprep.mubr.bf16.mxu0 %v12230_v29  ;;  %v1262_v39 = vmax.f32 %v1006_v48, 0.0  ;;  %v972_v30 = vadd.f32 %v12263_v16, %v652_v59  ;;  %v1215_v40 = vmax.f32 %v959_v28, 0.0  ;;  %v958_v27 = vadd.f32 %v12261_v10, %v638_v11 }
 0x14f   : > { %v974_v32 = vadd.f32 %v12263_v16, %v654_v25  ;;  %v605_v63 = vmul.f32 %v7410_v13, %v12265_v57  ;;  %v7745_v17 = vpack.c.bf16 %v1260_v53, %v1244_v34  ;;  %v1212_v56 = vmax.f32 %v956_v42, 0.0 }
 0x150   : > { %v623_v45 = vmul.f32 %v7673_v14, %v12264_v47  ;;  %v620_v3 = vmul.f32 %v7690_v1, %v12264_v47  ;;  %v1229_v61 = vmax.f32 %v973_v38, 0.0  ;;  %v1231_v50 = vmax.f32 %v975_v60, 0.0 }
 0x151   : > { %v925_v18 = vadd.f32 %v12266_v43, %v605_v63  ;;  %v941_v0 = vadd.f32 %v12267_v36, %v621_v51  ;;  %v7753_v20 = vpack.c.bf16 %v1262_v39, %v1246_v6  ;;  %v1228_v24 = vmax.f32 %v972_v30, 0.0 }
 0x152   : > { %v607_v9 = vmul.f32 %v7673_v14, %v12265_v57  ;;  %v622_v48 = vmul.f32 %v7698_v35, %v12264_v47  ;;  %v7759_v37 = vpack.c.bf16 %v1229_v61, %v1213_v41  ;;  %v7761_v55 = vpack.c.bf16 %v1231_v50, %v1215_v40  ;;  %v12269_v50 = vld [vmem:[#allocation7_spill] sm:$0xff] }
 0x153   : > { %v1214_v10 = vmax.f32 %v958_v27, 0.0  ;;  %v1230_v46 = vmax.f32 %v974_v32, 0.0  ;;  %v7764_v28 = vpack.c.bf16 %v1228_v24, %v1212_v56  ;;  %v940_v53 = vadd.f32 %v12267_v36, %v620_v3 }
 0x154   : > { %1942 = vmatmul.mubr.bf16.gmra.mxu1 %v12262_v44  ;;  %v927_v11 = vadd.f32 %v12266_v43, %v607_v9  ;;  %v1181_v16 = vmax.f32 %v925_v18, 0.0  ;;  %v1197_v38 = vmax.f32 %v941_v0, 0.0  ;;  %v604_v59 = vmul.f32 %v7690_v1, %v12265_v57 }
 0x155   : > { %1829 = vmatmul.mubr.bf16.gmra.mxu0 %v12262_v44  ;;  %1951 = vmatprep.mubr.bf16.mxu1 %v12230_v29  ;;  %v943_v44 = vadd.f32 %v12267_v36, %v623_v45  ;;  %v606_v42 = vmul.f32 %v7698_v35, %v12265_v57  ;;  %v942_v34 = vadd.f32 %v12267_v36, %v622_v48  ;;  %v1196_v40 = vmax.f32 %v940_v53, 0.0  ;;  %v12270_v48 = vld [vmem:[#allocation8_spill] sm:$0xff] }
 0x156   : > { %1838 = vmatprep.mubr.bf16.mxu0 %v12230_v29  ;;  %v573_v60 = vmul.f32 %v7410_v13, %v6870_v54  ;;  %v589_v25 = vmul.f32 %v7410_v13, %v12220_v31  ;;  %v575_v47 = vmul.f32 %v7673_v14, %v6870_v54  ;;  %v924_v51 = vadd.f32 %v12266_v43, %v604_v59  ;;  %v12271_v59 = vld [vmem:[#allocation21_spill] sm:$0xff] }
 0x157   : > { %v591_v6 = vmul.f32 %v7673_v14, %v12220_v31  ;;  %v572_v39 = vmul.f32 %v7690_v1, %v6870_v54  ;;  %v588_v41 = vmul.f32 %v7690_v1, %v12220_v31  ;;  %v1199_v30 = vmax.f32 %v943_v44, 0.0 }
 0x158   : > { %v926_v27 = vadd.f32 %v12266_v43, %v606_v42  ;;  %v909_v32 = vadd.f32 %v12222_v19, %v589_v25  ;;  %v574_v56 = vmul.f32 %v7698_v35, %v6870_v54  ;;  %v590_v45 = vmul.f32 %v7698_v35, %v12220_v31  ;;  %v12272_v25 = vld [vmem:[#allocation25_spill] sm:$0xff] }
 0x159   : > { %v911_v57 = vadd.f32 %v12222_v19, %v591_v6  ;;  %v908_v63 = vadd.f32 %v12222_v19, %v588_v41  ;;  %v1183_v3 = vmax.f32 %v927_v11, 0.0  ;;  %v1198_v61 = vmax.f32 %v942_v34, 0.0 }
 0x15a   : > { %v893_v18 = vadd.f32 %v12269_v50, %v573_v60  ;;  %v895_v36 = vadd.f32 %v12269_v50, %v575_v47  ;;  %v7800_v0 = vpack.c.bf16 %v1230_v46, %v1214_v10  ;;  %v1180_v43 = vmax.f32 %v924_v51, 0.0 }
 0x15b   : > { %v892_v24 = vadd.f32 %v12269_v50, %v572_v39  ;;  %v910_v9 = vadd.f32 %v12222_v19, %v590_v45  ;;  %v7807_v54 = vpack.c.bf16 %v1199_v30, %v1183_v3  ;;  %v1182_v31 = vmax.f32 %v926_v27, 0.0 }
 0x15c   : > { %1952 = vmatmul.mubr.bf16.gmra.mxu1 %v12268_v22  ;;  %v1165_v11 = vmax.f32 %v909_v32, 0.0  ;;  %v7811_v44 = vpack.c.bf16 %v1196_v40, %v1180_v43  ;;  %v1167_v10 = vmax.f32 %v911_v57, 0.0  ;;  %v1164_v46 = vmax.f32 %v908_v63, 0.0  ;;  %v7852_v43 = vld [vmem:[%s11873_s2] sm:$0xff]  }
 0x15d   : > { %1839 = vmatmul.mubr.bf16.gmra.mxu0 %v12268_v22  ;;  %1961 = vmatprep.mubr.bf16.mxu1 %v12230_v29  ;;  %v7805_v22 = vpack.c.bf16 %v1197_v38, %v1181_v16  ;;  %v894_v53 = vadd.f32 %v12269_v50, %v574_v56  ;;  %v7815_v19 = vpack.c.bf16 %v1198_v61, %v1182_v31  ;;  %v1149_v16 = vmax.f32 %v893_v18, 0.0 }
 0x15e   : > { %1848 = vmatprep.mubr.bf16.mxu0 %v12230_v29  ;;  %v1151_v38 = vmax.f32 %v895_v36, 0.0  ;;  %v557_v42 = vmul.f32 %v7410_v13, %v12271_v59  ;;  %v1148_v34 = vmax.f32 %v892_v24, 0.0  ;;  %v1166_v60 = vmax.f32 %v910_v9, 0.0 }
 0x15f   : > { %v541_v47 = vmul.f32 %v7410_v13, %v12272_v25  ;;  %v559_v51 = vmul.f32 %v7673_v14, %v12271_v59  ;;  %v7823_v6 = vpack.c.bf16 %v1165_v11, %v1149_v16  ;;  %v543_v39 = vmul.f32 %v7673_v14, %v12272_v25 }
 0x160   : > { %v556_v41 = vmul.f32 %v7690_v1, %v12271_v59  ;;  %v558_v30 = vmul.f32 %v7698_v35, %v12271_v59  ;;  %v7831_v40 = vpack.c.bf16 %v1167_v10, %v1151_v38  ;;  %v7833_v27 = vpack.c.bf16 %v1164_v46, %v1148_v34 }
 0x161   : > { %v1150_v32 = vmax.f32 %v894_v53, 0.0  ;;  %v861_v57 = vadd.f32 %v12228_v23, %v541_v47  ;;  %v877_v63 = vadd.f32 %v12229_v5, %v557_v42  ;;  %v863_v56 = vadd.f32 %v12228_v23, %v543_v39 }
 0x162   : > { %v540_v45 = vmul.f32 %v7690_v1, %v12272_v25  ;;  %v525_v3 = vmul.f32 %v7410_v13, %v7041_v8  ;;  %v879_v50 = vadd.f32 %v12229_v5, %v559_v51  ;;  %v542_v18 = vmul.f32 %v7698_v35, %v12272_v25 }
 0x163   : > { %v7842_v61 = vpack.c.bf16 %v1166_v60, %v1150_v32  ;;  %v509_v36 = vmul.f32 %v7410_v13, %v12231_v49  ;;  %v876_v9 = vadd.f32 %v12229_v5, %v556_v41  ;;  %v878_v31 = vadd.f32 %v12229_v5, %v558_v30 }
 0x164   : > { %1962 = vmatmul.mubr.bf16.gmra.mxu1 %v12270_v48  ;;  %v860_v24 = vadd.f32 %v12228_v23, %v540_v45  ;;  %v845_v11 = vadd.f32 %v7070_v58, %v525_v3  ;;  %v511_v10 = vmul.f32 %v7673_v14, %v12231_v49  ;;  %v527_v46 = vmul.f32 %v7673_v14, %v7041_v8 }
 0x165   : > { %1849 = vmatmul.mubr.bf16.gmra.mxu0 %v12270_v48  ;;  %2117 = vmatprep.mubr.bf16.mxu1 %v12230_v29  ;;  %v508_v53 = vmul.f32 %v7690_v1, %v12231_v49  ;;  %v524_v5 = vmul.f32 %v7690_v1, %v7041_v8  ;;  %v510_v16 = vmul.f32 %v7698_v35, %v12231_v49  ;;  %v1133_v38 = vmax.f32 %v877_v63, 0.0 }
 0x166   : > { %2004 = vmatprep.mubr.bf16.mxu0 %v12230_v29  ;;  %v862_v59 = vadd.f32 %v12228_v23, %v542_v18  ;;  %v1135_v42 = vmax.f32 %v879_v50, 0.0  ;;  %v1132_v34 = vmax.f32 %v876_v9, 0.0  ;;  %v1101_v25 = vmax.f32 %v845_v11, 0.0 }
 0x167   : > { %v844_v49 = vadd.f32 %v7070_v58, %v524_v5  ;;  %v831_v47 = vadd.f32 %v12232_v7, %v511_v10  ;;  %v1119_v23 = vmax.f32 %v863_v56, 0.0  ;;  %v1116_v51 = vmax.f32 %v860_v24, 0.0 }
 0x168   : > { %v828_v39 = vadd.f32 %v12232_v7, %v508_v53  ;;  %v830_v41 = vadd.f32 %v12232_v7, %v510_v16  ;;  %v1118_v30 = vmax.f32 %v862_v59, 0.0  ;;  %v477_v3 = vmul.f32 %v7410_v13, %v7085_v2 }
 0x169   : > { %v1100_v63 = vmax.f32 %v844_v49, 0.0  ;;  %v1087_v45 = vmax.f32 %v831_v47, 0.0  ;;  %v495_v24 = vmul.f32 %v7673_v14, %v12233_v52  ;;  %v492_v53 = vmul.f32 %v7690_v1, %v12233_v52 }
 0x16a   : > { %v1084_v50 = vmax.f32 %v828_v39, 0.0  ;;  %v1086_v18 = vmax.f32 %v830_v41, 0.0  ;;  %v797_v9 = vadd.f32 %v7120_v33, %v477_v3  ;;  %v494_v5 = vmul.f32 %v7698_v35, %v12233_v52 }
 0x16b   : > { %v815_v10 = vadd.f32 %v7132_v4, %v495_v24  ;;  %v478_v16 = vmul.f32 %v7698_v35, %v7085_v2  ;;  %v446_v49 = vmul.f32 %v7698_v35, %v12235_v12 }
 0x16c   : > { %2118 = vmatmul.mubr.bf16.vlgmr.msra.gmra.mxu1 %v7852_v43  ;;  %v814_v59 = vadd.f32 %v7132_v4, %v494_v5  ;;  %v1053_v47 = vmax.f32 %v797_v9, 0.0 }
 0x16d   : > { %2005 = vmatmul.mubr.bf16.vlgmr.msra.gmra.mxu0 %v7852_v43  ;;  %2312 = vmatpush1.bf16.msra.mxu1 %v7753_v20  ;;  %v526_v20 = vmul.f32 %v7698_v35, %v7041_v8  ;;  %v1117_v8 = vmax.f32 %v861_v57, 0.0  ;;  %v7893_v57 = vld [vmem:[%s11873_s2 + $0x8] sm:$0xff]  }
 0x16e   : > { %2199 = vmatpush1.bf16.msra.mxu0 %v7745_v17  ;;  %2313 = vmatprep.subr.bf16.mxu1 %v7761_v55  ;;  %v829_v17 = vadd.f32 %v12232_v7, %v509_v36  ;;  %v847_v55 = vadd.f32 %v7070_v58, %v527_v46  ;;  %v493_v36 = vmul.f32 %v7410_v13, %v12233_v52 }
 0x16f   : > { %2200 = vmatprep.subr.bf16.mxu0 %v7759_v37  ;;  %2014 = vmatprep.mubr.bf16.mxu0 %v12230_v29  ;;  %v846_v60 = vadd.f32 %v7070_v58, %v526_v20  ;;  %v1134_v37 = vmax.f32 %v878_v31, 0.0  ;;  %v1325_v58 = vpack.c.bf16 %v1133_v38, %v1117_v8  ;;  %v476_v46 = vmul.f32 %v7690_v1, %v7085_v2  ;;  %v7950_v8 = vpop.permute.xlu1 %1465 }
 0x170   : > { %2127 = vmatprep.mubr.bf16.mxu1 %v12230_v29  ;;  %v1103_v32 = vmax.f32 %v847_v55, 0.0  ;;  %v813_v11 = vadd.f32 %v7132_v4, %v493_v36  ;;  %v463_v20 = vmul.f32 %v7673_v14, %v7158_v26  ;;  %v445_v52 = vmul.f32 %v7410_v13, %v12235_v12  ;;  %12273 = vst [vmem:[#allocation24_spill] sm:$0xff] %v7950_v8 }
 0x171   : > { %2314 = vmatpush1.bf16.msra.mxu1 %v7800_v0  ;;  %v1085_v0 = vmax.f32 %v829_v17, 0.0  ;;  %v1102_v56 = vmax.f32 %v846_v60, 0.0  ;;  %v1326_v7 = vpack.c.bf16 %v1134_v37, %v1118_v30  ;;  %v796_v38 = vadd.f32 %v7120_v33, %v476_v46 }
 0x172   : > { %2201 = vmatpush1.bf16.msra.mxu0 %v7764_v28  ;;  %2315 = vmatprep.subr.bf16.mxu1 %v7807_v54  ;;  %v1327_v28 = vpack.c.bf16 %v1135_v42, %v1119_v23  ;;  %v1324_v54 = vpack.c.bf16 %v1132_v34, %v1116_v51  ;;  %v1071_v17 = vmax.f32 %v815_v10, 0.0  ;;  %v798_v55 = vadd.f32 %v7120_v33, %v478_v16  ;;  %v8012_v16 = vld [vmem:[%s11873_s2 + $0x30] sm:$0xff]  }
 0x173   : > { %2202 = vmatprep.subr.bf16.mxu0 %v7805_v22  ;;  %v1309_v22 = vpack.c.bf16 %v1101_v25, %v1085_v0  ;;  %v1310_v31 = vpack.c.bf16 %v1102_v56, %v1086_v18  ;;  %v783_v42 = vadd.f32 %v7183_v15, %v463_v20  ;;  %v1069_v34 = vmax.f32 %v813_v11, 0.0 }
 0x174   : > { %2128 = vmatmul.mubr.bf16.gmra.mxu1 %v7893_v57  ;;  %v462_v60 = vmul.f32 %v7698_v35, %v7158_v26  ;;  %v444_v37 = vmul.f32 %v7690_v1, %v12235_v12  ;;  %v460_v25 = vmul.f32 %v7690_v1, %v7158_v26  ;;  %v1070_v23 = vmax.f32 %v814_v59, 0.0 }
 0x175   : > { %2015 = vmatmul.mubr.bf16.gmra.mxu0 %v7893_v57  ;;  %2316 = vmatpush1.bf16.msra.mxu1 %v7815_v19  ;;  %v1311_v19 = vpack.c.bf16 %v1103_v32, %v1087_v45  ;;  %v765_v35 = vadd.f32 %v7015_v21, %v445_v52  ;;  %v1054_v0 = vmax.f32 %v798_v55, 0.0  ;;  %v766_v1 = vadd.f32 %v7015_v21, %v446_v49 }
 0x176   : > { %2203 = vmatpush1.bf16.msra.mxu0 %v7811_v44  ;;  %2317 = vmatprep.subr.bf16.mxu1 %v7831_v40  ;;  %v479_v44 = vmul.f32 %v7673_v14, %v7085_v2  ;;  %v1308_v40 = vpack.c.bf16 %v1100_v63, %v1084_v50  ;;  %v7938_v2 = vld [vmem:[%s11873_s2 + $0x10] sm:$0xff]   ;;  %v782_v51 = vadd.f32 %v7183_v15, %v462_v60  ;;  %v1052_v32 = vmax.f32 %v796_v38, 0.0 }
 0x177   : > { %2204 = vmatprep.subr.bf16.mxu0 %v7823_v6  ;;  %2024 = vmatprep.mubr.bf16.mxu0 %v12230_v29  ;;  %v780_v30 = vadd.f32 %v7183_v15, %v460_v25  ;;  %v1294_v63 = vpack.c.bf16 %v1070_v23, %v1054_v0  ;;  %v1021_v56 = vmax.f32 %v765_v35, 0.0  ;;  %v1022_v18 = vmax.f32 %v766_v1, 0.0 }
 0x178   : > { %2137 = vmatprep.mubr.bf16.mxu1 %v12230_v29  ;;  %v799_v6 = vadd.f32 %v7120_v33, %v479_v44 }
 0x179   : > { %2318 = vmatpush1.bf16.msra.mxu1 %v7842_v61  ;;  %v447_v61 = vmul.f32 %v7673_v14, %v12235_v12  ;;  %v812_v14 = vadd.f32 %v7132_v4, %v492_v53  ;;  %v1293_v12 = vpack.c.bf16 %v1069_v34, %v1053_v47  ;;  %v1036_v50 = vmax.f32 %v780_v30, 0.0 }
 0x17a   : > { %2205 = vmatpush1.bf16.msra.mxu0 %v7833_v27  ;;  %2319 = vmatprep.subr.bf16.mxu1 %v1327_v28  ;;  %v461_v27 = vmul.f32 %v7410_v13, %v7158_v26  ;;  %v1055_v4 = vmax.f32 %v799_v6, 0.0  ;;  %v7997_v6 = vld [vmem:[%s11873_s2 + $0x28] sm:$0xff]  }
 0x17b   : > { %2206 = vmatprep.subr.bf16.mxu0 %v1325_v58  ;;  %v767_v33 = vadd.f32 %v7015_v21, %v447_v61  ;;  %v1068_v41 = vmax.f32 %v812_v14, 0.0  ;;  %v1039_v58 = vmax.f32 %v783_v42, 0.0 }
 0x17c   : > { %2138 = vmatmul.mubr.bf16.gmra.mxu1 %v7938_v2  ;;  %v781_v13 = vadd.f32 %v7183_v15, %v461_v27  ;;  %v1295_v39 = vpack.c.bf16 %v1071_v17, %v1055_v4  ;;  %v7969_v15 = vld [vmem:[%s11873_s2 + $0x18] sm:$0xff]  }
 0x17d   : > { %2025 = vmatmul.mubr.bf16.gmra.mxu0 %v7938_v2  ;;  %2320 = vmatpush1.bf16.msra.mxu1 %v1326_v7  ;;  %v1023_v28 = vmax.f32 %v767_v33, 0.0  ;;  %v1038_v7 = vmax.f32 %v782_v51, 0.0  ;;  %v1292_v45 = vpack.c.bf16 %v1068_v41, %v1052_v32 }
 0x17e   : > { %2207 = vmatpush1.bf16.msra.mxu0 %v1324_v54  ;;  %2321 = vmatprep.subr.bf16.mxu1 %v1311_v19  ;;  %v1037_v26 = vmax.f32 %v781_v13, 0.0  ;;  %v764_v54 = vadd.f32 %v7015_v21, %v444_v37  ;;  %v7974_v19 = vpop.permute.xlu0 %1469 }
 0x17f   : > { %2208 = vmatprep.subr.bf16.mxu0 %v1309_v22  ;;  %2034 = vmatprep.mubr.bf16.mxu0 %v12230_v29  ;;  %v7964_v22 = vpop.permute.xlu1 %1457  ;;  %v1279_v3 = vpack.c.bf16 %v1039_v58, %v1023_v28  ;;  %v1278_v24 = vpack.c.bf16 %v1038_v7, %v1022_v18  ;;  %12275 = vst [vmem:[#allocation11_spill] sm:$0xff] %v7974_v19 }
 0x180   : > { %2147 = vmatprep.mubr.bf16.mxu1 %v12230_v29  ;;  %12274 = vst [vmem:[#allocation26_spill] sm:$0xff] %v7964_v22  ;;  %v1277_v21 = vpack.c.bf16 %v1037_v26, %v1021_v56  ;;  %v1020_v36 = vmax.f32 %v764_v54, 0.0 }
 0x181   : > { %2322 = vmatpush1.bf16.msra.mxu1 %v1310_v31 }
 0x182   : > { %2209 = vmatpush1.bf16.msra.mxu0 %v1308_v40  ;;  %2323 = vmatprep.subr.bf16.mxu1 %v1295_v39  ;;  %v1276_v9 = vpack.c.bf16 %v1036_v50, %v1020_v36  ;;  %v7982_v40 = vld [vmem:[%s11873_s2 + $0x20] sm:$0xff]   ;;  %v7987_v31 = vpop.permute.xlu0 %1449 }
 0x183   : > { %2210 = vmatprep.subr.bf16.mxu0 %v1293_v12  ;;  %v7977_v44 = vpop.permute.xlu1 %1461  ;;  %12277 = vst [vmem:[#allocation12_spill] sm:$0xff] %v7987_v31 }
 0x184   : > { %2148 = vmatmul.mubr.bf16.gmra.mxu1 %v7969_v15  ;;  %12276 = vst [vmem:[#allocation14_spill] sm:$0xff] %v7977_v44 }
 0x185   : > { %2035 = vmatmul.mubr.bf16.gmra.mxu0 %v7969_v15  ;;  %2324 = vmatpush1.bf16.msra.mxu1 %v1294_v63 }
 0x186   : > { %2211 = vmatpush1.bf16.msra.mxu0 %v1292_v45  ;;  %2325 = vmatprep.subr.bf16.mxu1 %v1279_v3  ;;  %v7992_v10 = vpop.permute.xlu0 %1441 }
 0x187   : > { %2212 = vmatprep.subr.bf16.mxu0 %v1277_v21  ;;  %2044 = vmatprep.mubr.bf16.mxu0 %v12230_v29  ;;  %v7990_v11 = vpop.permute.xlu1 %1453  ;;  %12279 = vst [vmem:[#allocation10_spill] sm:$0xff] %v7992_v10 }
 0x188   : > { %2157 = vmatprep.mubr.bf16.mxu1 %v12230_v29  ;;  %12278 = vst [vmem:[#allocation6_spill] sm:$0xff] %v7990_v11 }
 0x189   : > { %2326 = vmatpush1.bf16.msra.mxu1 %v1278_v24 }
 0x18a   : > { %2213 = vmatpush1.bf16.msra.mxu0 %v1276_v9  ;;  %v8005_v53 = vpop.permute.xlu0 %1433 }
 0x18b   : > { %v8002_v46 = vpop.permute.xlu1 %1445  ;;  %12281 = vst [vmem:[#allocation3_spill] sm:$0xff] %v8005_v53 }
 0x18c   : > { %2158 = vmatmul.mubr.bf16.gmra.mxu1 %v7982_v40  ;;  %12280 = vst [vmem:[#allocation27_spill] sm:$0xff] %v8002_v46 }
 0x18d   : > { %2045 = vmatmul.mubr.bf16.gmra.mxu0 %v7982_v40  ;;  %2167 = vmatprep.mubr.bf16.mxu1 %v12230_v29 }
 0x18e   : > { %2054 = vmatprep.mubr.bf16.mxu0 %v12230_v29  ;;  %v8018_v61 = vpop.permute.xlu0 %1425 }
 0x18f   : > { %v8007_v5 = vpop.permute.xlu1 %1437 }
 0x190   : > { %12282 = vst [vmem:[#allocation20_spill] sm:$0xff] %v8007_v5 }
 0x192   : > { %v8024_v38 = vpop.permute.xlu0 %1417 }
 0x193   : > { %v8020_v20 = vpop.permute.xlu1 %1429 }
 0x194   : > { %2168 = vmatmul.mubr.bf16.gmra.mxu1 %v7997_v6  ;;  %12283 = vst [vmem:[#allocation23_spill] sm:$0xff] %v8020_v20 }
 0x195   : > { %2055 = vmatmul.mubr.bf16.gmra.mxu0 %v7997_v6  ;;  %2177 = vmatprep.mubr.bf16.mxu1 %v12230_v29 }
 0x196   : > { %2064 = vmatprep.mubr.bf16.mxu0 %v12230_v29  ;;  %v8030_v52 = vpop.permute.xlu0 %1409 }
 0x197   : > { %v8028_v59 = vpop.permute.xlu1 %1421 }
 0x19b   : > { %v8034_v14 = vpop.permute.xlu1 %1413 }
 0x19c   : > { %2178 = vmatmul.mubr.bf16.gmra.mxu1 %v8012_v16 }
 0x19d   : > { %2065 = vmatmul.mubr.bf16.gmra.mxu0 %v8012_v16  ;;  %2187 = vmatprep.mubr.bf16.mxu1 %v12230_v29 }
 0x19e   : > { %2074 = vmatprep.mubr.bf16.mxu0 %v12230_v29 }
 0x1a4   : > { %2188 = vmatmul.mubr.bf16.gmra.mxu1 %v12270_v48 }
 0x1a5   : > { %2075 = vmatmul.mubr.bf16.gmra.mxu0 %v12270_v48  ;;  %2343 = vmatprep.mubr.bf16.mxu1 %v12230_v29 }
 0x1a6   : > { %2230 = vmatprep.mubr.bf16.mxu0 %v12230_v29 }
 0x1ac   : > { %v1554_v27 = vpop.f32.mrf.mxu0  ;;  %v1667_v17 = vpop.f32.mrf.mxu1  ;;  %2344 = vmatmul.mubr.bf16.vlgmr.msra.gmra.mxu1 %v7852_v43 }
 0x1ad   : > { %2231 = vmatmul.mubr.bf16.vlgmr.msra.gmra.mxu0 %v7852_v43  ;;  %2353 = vmatprep.mubr.bf16.mxu1 %v12230_v29  ;;  %v1555_v48 = vadd.f32 %v1554_v27, %v8030_v52  ;;  %v1668_v55 = vadd.f32 %v1667_v17, %v8030_v52 }
 0x1ae   : > { %v1556_v42 = vpop.f32.mrf.mxu0  ;;  %v1669_v34 = vpop.f32.mrf.mxu1  ;;  %2240 = vmatprep.mubr.bf16.mxu0 %v12230_v29 }
 0x1af   : > { %v1557_v13 = vadd.f32 %v1556_v42, %v8030_v52  ;;  %v1670_v49 = vadd.f32 %v1669_v34, %v8030_v52  ;;  %v2424_v37 = vmax.f32 %v1555_v48, 0.0  ;;  %v2426_v25 = vmax.f32 %v1668_v55, 0.0 }
 0x1b0   : > { %v1558_v60 = vpop.f32.mrf.mxu0  ;;  %v1671_v4 = vpop.f32.mrf.mxu1 }
 0x1b1   : > { %v1559_v43 = vadd.f32 %v1558_v60, %v8034_v14  ;;  %v1672_v33 = vadd.f32 %v1671_v4, %v8034_v14  ;;  %v2425_v58 = vmax.f32 %v1557_v13, 0.0  ;;  %v2427_v30 = vmax.f32 %v1670_v49, 0.0 }
 0x1b2   : > { %v1560_v47 = vpop.f32.mrf.mxu0  ;;  %v1673_v23 = vpop.f32.mrf.mxu1 }
 0x1b3   : > { %v2440_v35 = vmax.f32 %v1559_v43, 0.0  ;;  %v2442_v51 = vmax.f32 %v1672_v33, 0.0  ;;  %v1561_v39 = vadd.f32 %v1560_v47, %v8034_v14  ;;  %v1674_v41 = vadd.f32 %v1673_v23, %v8034_v14 }
 0x1b4   : > { %v1564_v12 = vpop.f32.mrf.mxu0  ;;  %v1677_v0 = vpop.f32.mrf.mxu1  ;;  %2354 = vmatmul.mubr.bf16.gmra.mxu1 %v7893_v57 }
 0x1b5   : > { %v8047_v26 = vpack.c.bf16 %v2440_v35, %v2424_v37  ;;  %v8049_v1 = vpack.c.bf16 %v2442_v51, %v2426_v25  ;;  %v2441_v32 = vmax.f32 %v1561_v39, 0.0  ;;  %v2443_v28 = vmax.f32 %v1674_v41, 0.0  ;;  %2241 = vmatmul.mubr.bf16.gmra.mxu0 %v7893_v57  ;;  %2363 = vmatprep.mubr.bf16.mxu1 %v12230_v29 }
 0x1b6   : > { %v1565_v54 = vadd.f32 %v1564_v12, %v8024_v38  ;;  %v1678_v63 = vadd.f32 %v1677_v0, %v8024_v38  ;;  %v1566_v56 = vpop.f32.mrf.mxu0  ;;  %v1679_v7 = vpop.f32.mrf.mxu1  ;;  %2250 = vmatprep.mubr.bf16.mxu0 %v12230_v29  ;;  %v6519_v41 = vmov 3   ;;  %v6460_v12 = vld [vmem:[%s11872_s1 + $0x70] sm:$0xff] }
 0x1b7   : > { %12284 = vst [vmem:[#allocation16_spill] sm:$0xff] %v8047_v26  ;;  %12285 = vst [vmem:[#allocation9_spill] sm:$0xff] %v8049_v1  ;;  %v8056_v45 = vpack.c.bf16 %v2441_v32, %v2425_v58  ;;  %v8058_v3 = vpack.c.bf16 %v2443_v28, %v2427_v30  ;;  %v1567_v50 = vadd.f32 %v1566_v56, %v8024_v38  ;;  %6420 = vset.pattern.permute.xlu1 %v6519_v41 }
 0x1b8   : > { %v1680_v21 = vadd.f32 %v1679_v7, %v8024_v38  ;;  %v1568_v18 = vpop.f32.mrf.mxu0  ;;  %v1681_v57 = vpop.f32.mrf.mxu1  ;;  %v2456_v9 = vmax.f32 %v1565_v54, 0.0  ;;  %v2458_v27 = vmax.f32 %v1678_v63, 0.0  ;;  %6419 = vset.pattern.permute.xlu0 %v6519_v41  ;;  %v6461_v63 = vld [vmem:[%s11872_s1 + $0x60] sm:$0xff] }
 0x1b9   : > { %12286 = vst [vmem:[#allocation4_spill] sm:$0xff] %v8056_v45  ;;  %12287 = vst [vmem:[#allocation28_spill] sm:$0xff] %v8058_v3  ;;  %v1569_v36 = vadd.f32 %v1568_v18, %v8028_v59  ;;  %v1682_v24 = vadd.f32 %v1681_v57, %v8028_v59  ;;  %v2457_v49 = vmax.f32 %v1567_v50, 0.0  ;;  %2881 = vperm.xlu0 %6419, %v6460_v12   ;;  %v6462_v50 = vld [vmem:[%s11872_s1 + $0x68] sm:$0xff]  ;;  %v6463_v57 = vld [vmem:[%s11872_s1 + $0x50] sm:$0xff] }
 0x1ba   : > { %v1570_v17 = vpop.f32.mrf.mxu0  ;;  %v1683_v48 = vpop.f32.mrf.mxu1  ;;  %v2459_v60 = vmax.f32 %v1680_v21, 0.0  ;;  %v6469_v41 = vld [vmem:[%s11872_s1 + $0x20] sm:$0xff] }
 0x1bb   : > { %v2472_v55 = vmax.f32 %v1569_v36, 0.0  ;;  %v2474_v42 = vmax.f32 %v1682_v24, 0.0  ;;  %v1571_v34 = vadd.f32 %v1570_v17, %v8028_v59  ;;  %v1684_v13 = vadd.f32 %v1683_v48, %v8028_v59  ;;  %v6464_v24 = vld [vmem:[%s11872_s1 + $0x58] sm:$0xff] }
 0x1bc   : > { %v8066_v4 = vpop.f32.mrf.mxu0  ;;  %v8068_v43 = vpop.f32.mrf.mxu1  ;;  %2364 = vmatmul.mubr.bf16.gmra.mxu1 %v7938_v2 }
 0x1bd   : > { %v8071_v33 = vpack.c.bf16 %v2472_v55, %v2456_v9  ;;  %v8073_v37 = vpack.c.bf16 %v2474_v42, %v2458_v27  ;;  %v2473_v25 = vmax.f32 %v1571_v34, 0.0  ;;  %v2475_v47 = vmax.f32 %v1684_v13, 0.0  ;;  %2251 = vmatmul.mubr.bf16.gmra.mxu0 %v7938_v2  ;;  %2373 = vmatprep.mubr.bf16.mxu1 %v12230_v29  ;;  %v6459_v2 = vld [vmem:[%s11872_s1 + $0x78] sm:$0xff]  ;;  %v6465_v27 = vld [vmem:[%s11872_s1 + $0x40] sm:$0xff]  ;;  %v6466_v55 = vld [vmem:[%s11872_s1 + $0x48] sm:$0xff] }
 0x1be   : > { %v8077_v23 = vpop.f32.mrf.mxu0  ;;  %v8079_v35 = vpop.f32.mrf.mxu1  ;;  %2260 = vmatprep.mubr.bf16.mxu0 %v12230_v29  ;;  %2885 = vperm.xlu1 %6420, %v6459_v2   ;;  %v6467_v13 = vld [vmem:[%s11872_s1 + $0x30] sm:$0xff] }
 0x1bf   : > { %12288 = vst [vmem:[#allocation13_spill] sm:$0xff] %v8071_v33  ;;  %12289 = vst [vmem:[#allocation18_spill] sm:$0xff] %v8073_v37  ;;  %v8082_v51 = vpack.c.bf16 %v2473_v25, %v2457_v49  ;;  %v8084_v39 = vpack.c.bf16 %v2475_v47, %v2459_v60  ;;  %2877 = vperm.xlu0 %6419, %v6462_v50   ;;  %v6468_v60 = vld [vmem:[%s11872_s1 + $0x38] sm:$0xff] }
 0x1c0   : > { %v8086_v58 = vpop.f32.mrf.mxu0  ;;  %v8088_v30 = vpop.f32.mrf.mxu1 }
 0x1c1   : > { %12290 = vst [vmem:[#allocation15_spill] sm:$0xff] %v8082_v51  ;;  %12291 = vst [vmem:[#allocation17_spill] sm:$0xff] %v8084_v39 }
 0x1c2   : > { %v1580_v0 = vpop.f32.mrf.mxu0  ;;  %v1693_v32 = vpop.f32.mrf.mxu1  ;;  %2873 = vperm.xlu1 %6420, %v6461_v63   ;;  %v6470_v63 = vld [vmem:[%s11872_s1 + $0x28] sm:$0xff] }
 0x1c3   : > { %2869 = vperm.xlu0 %6419, %v6464_v24   ;;  %v6471_v24 = vld [vmem:[%s11872_s1 + $0x10] sm:$0xff] }
 0x1c4   : > { %v8096_v28 = vpop.f32.mrf.mxu0  ;;  %v1697_v54 = vpop.f32.mrf.mxu1  ;;  %2374 = vmatmul.mubr.bf16.gmra.mxu1 %v7969_v15 }
 0x1c5   : > { %2261 = vmatmul.mubr.bf16.gmra.mxu0 %v7969_v15  ;;  %2383 = vmatprep.mubr.bf16.mxu1 %v12230_v29 }
 0x1c6   : > { %v1586_v56 = vpop.f32.mrf.mxu0  ;;  %v1699_v7 = vpop.f32.mrf.mxu1  ;;  %2270 = vmatprep.mubr.bf16.mxu0 %v12230_v29  ;;  %2865 = vperm.xlu1 %6420, %v6463_v57  }
 0x1c7   : > { %2861 = vperm.xlu0 %6419, %v6466_v55   ;;  %v8168_v55 = vadd.f32 %v1580_v0, %v8020_v20  ;;  %v1700_v0 = vadd.f32 %v1699_v7, %v8005_v53 }
 0x1c8   : > { %v1588_v21 = vpop.f32.mrf.mxu0  ;;  %v1701_v18 = vpop.f32.mrf.mxu1 }
 0x1c9   : > { %12293 = vst [vmem:[#allocation22_spill] sm:$0xff] %v8168_v55  ;;  %v8188_v62 = vadd.f32 %v1588_v21, %v8007_v5  ;;  %v8191_v26 = vadd.f32 %v1701_v18, %v8007_v5  ;;  %v8215_v18 = vadd.f32 %v8086_v58, %v8020_v20  ;;  %v8229_v58 = vadd.f32 %v8096_v28, %v8005_v53 }
 0x1ca   : > { %v1590_v36 = vpop.f32.mrf.mxu0  ;;  %v1703_v15 = vpop.f32.mrf.mxu1  ;;  %2857 = vperm.xlu1 %6420, %v6465_v27  }
 0x1cb   : > { %2853 = vperm.xlu0 %6419, %v6468_v60   ;;  %12296 = vst [vmem:[#allocation21_spill] sm:$0xff] %v8188_v62  ;;  %12297 = vst [vmem:[#allocation25_spill] sm:$0xff] %v8191_v26  ;;  %v8209_v7 = vadd.f32 %v1590_v36, %v8007_v5 }
 0x1cc   : > { %v8114_v9 = vpop.f32.mrf.mxu1  ;;  %2384 = vmatmul.mubr.bf16.gmra.mxu1 %v7982_v40  ;;  %12298 = vst [vmem:[#allocation29_spill] sm:$0xff] %v8215_v18 }
 0x1cd   : > { %v8120_v17 = vpop.f32.mrf.mxu0  ;;  %2271 = vmatmul.mubr.bf16.gmra.mxu0 %v7982_v40  ;;  %2393 = vmatprep.mubr.bf16.mxu1 %v12230_v29 }
 0x1ce   : > { %v8124_v48 = vpop.f32.mrf.mxu1  ;;  %2280 = vmatprep.mubr.bf16.mxu0 %v12230_v29  ;;  %2849 = vperm.xlu1 %6420, %v6467_v13   ;;  %v8171_v13 = vadd.f32 %v1693_v32, %v8020_v20 }
 0x1cf   : > { %v8130_v42 = vpop.f32.mrf.mxu0  ;;  %2845 = vperm.xlu0 %6419, %v6470_v63   ;;  %v8178_v63 = vadd.f32 %v8068_v43, %v8018_v61  ;;  %v6473_v43 = vld [vmem:[%s11872_s1] sm:$0xff]  ;;  %v8237_v33 = vadd.f32 %v8124_v48, %v7992_v10 }
 0x1d0   : > { %v8132_v34 = vpop.f32.mrf.mxu1  ;;  %12294 = vst [vmem:[#allocation7_spill] sm:$0xff] %v8171_v13  ;;  %v8242_v28 = vadd.f32 %v8130_v42, %v7992_v10 }
 0x1d1   : > { %v8137_v40 = vpop.f32.mrf.mxu0  ;;  %12295 = vst [vmem:[#allocation8_spill] sm:$0xff] %v8178_v63 }
 0x1d2   : > { %v8139_v49 = vpop.f32.mrf.mxu1  ;;  %2841 = vperm.xlu1 %6420, %v6469_v41   ;;  %v6472_v41 = vld [vmem:[%s11872_s1 + $0x18] sm:$0xff] }
 0x1d3   : > { %v8144_v25 = vpop.f32.mrf.mxu0  ;;  %2837 = vperm.xlu0 %6419, %v6472_v41   ;;  %v1704_v41 = vadd.f32 %v1703_v15, %v8007_v5  ;;  %v2523_v5 = vmax.f32 %v1700_v0, 0.0  ;;  %v8246_v0 = vadd.f32 %v8139_v49, %v8002_v46  ;;  %v8264_v49 = vadd.f32 %v8114_v9, %v7992_v10 }
 0x1d4   : > { %v8146_v47 = vpop.f32.mrf.mxu1  ;;  %2394 = vmatmul.mubr.bf16.gmra.mxu1 %v7997_v6  ;;  %v8255_v48 = vadd.f32 %v8144_v25, %v8002_v46 }
 0x1d5   : > { %v8152_v2 = vpop.f32.mrf.mxu0  ;;  %2281 = vmatmul.mubr.bf16.gmra.mxu0 %v7997_v6  ;;  %2403 = vmatprep.mubr.bf16.mxu1 %v12230_v29  ;;  %v8165_v6 = vadd.f32 %v8066_v4, %v8018_v61  ;;  %v8184_v4 = vadd.f32 %v1586_v56, %v8005_v53  ;;  %v8206_v56 = vadd.f32 %v8079_v35, %v8018_v61  ;;  %v2539_v3 = vmax.f32 %v1704_v41, 0.0 }
 0x1d6   : > { %v1719_v12 = vpop.f32.mrf.mxu1  ;;  %2290 = vmatprep.mubr.bf16.mxu0 %v12230_v29  ;;  %2833 = vperm.xlu1 %6420, %v6471_v24   ;;  %v8181_v24 = vadd.f32 %v1697_v54, %v8005_v53  ;;  %v8202_v54 = vadd.f32 %v8077_v23, %v8018_v61  ;;  %v8219_v23 = vadd.f32 %v8088_v30, %v8020_v20 }
 0x1d7   : > { %v1606_v50 = vpop.f32.mrf.mxu0  ;;  %12292 = vst [vmem:[#allocation19_spill] sm:$0xff] %v8165_v6  ;;  %v8251_v41 = vadd.f32 %v8120_v17, %v7992_v10  ;;  %v8259_v45 = vadd.f32 %v8146_v47, %v7987_v31  ;;  %v1720_v42 = vadd.f32 %v1719_v12, %v7987_v31  ;;  %v8278_v12 = vadd.f32 %v8132_v34, %v8002_v46 }
 0x1d8   : > { %v1721_v57 = vpop.f32.mrf.mxu1  ;;  %v8291_v47 = vadd.f32 %v8137_v40, %v8002_v46 }
 0x1d9   : > { %v1608_v27 = vpop.f32.mrf.mxu0  ;;  %v8273_v25 = vadd.f32 %v1721_v57, %v7990_v11 }
 0x1da   : > { %v1723_v60 = vpop.f32.mrf.mxu1  ;;  %2825 = vperm.xlu1 %6420, %v6473_v43   ;;  %v8270_v17 = vadd.f32 %v1608_v27, %v7990_v11  ;;  %v8286_v27 = vpack.c.bf16 %v2539_v3, %v2523_v5  ;;  %v2587_v3 = vmax.f32 %v1720_v42, 0.0 }
 0x1db   : > { %v1610_v32 = vpop.f32.mrf.mxu0  ;;  %v1724_v35 = vadd.f32 %v1723_v60, %v7990_v11  ;;  %v8267_v60 = vadd.f32 %v1606_v50, %v7987_v31  ;;  %v6475_v50 = vld [vmem:[%s11873_s2 + $0x38] sm:$0xff]  }
 0x1dc   : > { %v8194_v1 = vpop.f32.mrf.mxu1  ;;  %2404 = vmatmul.mubr.bf16.gmra.mxu1 %v8012_v16  ;;  %v8281_v53 = vadd.f32 %v1610_v32, %v7990_v11  ;;  %v8298_v11 = vadd.f32 %v8152_v2, %v7987_v31 }
 0x1dd   : > { %v1614_v21 = vpop.f32.mrf.mxu0  ;;  %2291 = vmatmul.mubr.bf16.gmra.mxu0 %v8012_v16  ;;  %2413 = vmatprep.mubr.bf16.mxu1 %v12230_v29  ;;  %v6474_v16 = vld [vmem:[%s11872_s1 + $0x8] sm:$0xff]  ;;  %v2603_v10 = vmax.f32 %v1724_v35, 0.0  ;;  %v8312_v42 = vadd.f32 %v8194_v1, %v7964_v22 }
 0x1de   : > { %v1729_v43 = vpop.f32.mrf.mxu1  ;;  %2300 = vmatprep.mubr.bf16.mxu0 %v12230_v29  ;;  %2829 = vperm.xlu0 %6419, %v6474_v16   ;;  %v8308_v2 = vadd.f32 %v1614_v21, %v7964_v22 }
 0x1df   : > { %v1616_v15 = vpop.f32.mrf.mxu0  ;;  %v1730_v34 = vadd.f32 %v1729_v43, %v7964_v22 }
 0x1e0   : > { %v1731_v16 = vpop.f32.mrf.mxu1  ;;  %v1617_v5 = vadd.f32 %v1616_v15, %v7964_v22 }
 0x1e1   : > { %v1618_v36 = vpop.f32.mrf.mxu0  ;;  %v2619_v15 = vmax.f32 %v1730_v34, 0.0  ;;  %v1732_v22 = vadd.f32 %v1731_v16, %v7977_v44 }
 0x1e2   : > { %v1733_v37 = vpop.f32.mrf.mxu1 }
 0x1e3   : > { %v1620_v30 = vpop.f32.mrf.mxu0  ;;  %v1734_v40 = vadd.f32 %v1733_v37, %v7977_v44 }
 0x1e4   : > { %v1737_v9 = vpop.f32.mrf.mxu1  ;;  %2414 = vmatmul.mubr.bf16.gmra.mxu1 %v6475_v50  ;;  %v1621_v32 = vadd.f32 %v1620_v30, %v7977_v44 }
 0x1e5   : > { %v1624_v51 = vpop.f32.mrf.mxu0  ;;  %2301 = vmatmul.mubr.bf16.gmra.mxu0 %v6475_v50  ;;  %3081 = vmatprep.mubr.bf16.mxu1 %v12230_v29  ;;  %v1738_v21 = vadd.f32 %v1737_v9, %v7950_v8  ;;  %v2635_v63 = vmax.f32 %v1734_v40, 0.0 }
 0x1e6   : > { %v1739_v57 = vpop.f32.mrf.mxu1  ;;  %2968 = vmatprep.mubr.bf16.mxu0 %v12230_v29  ;;  %v8318_v29 = vpack.c.bf16 %v2603_v10, %v2587_v3  ;;  %v1625_v37 = vadd.f32 %v1624_v51, %v7950_v8  ;;  %v1619_v10 = vadd.f32 %v1618_v36, %v7977_v44  ;;  %v2633_v34 = vmax.f32 %v1621_v32, 0.0 }
 0x1e7   : > { %v1626_v46 = vpop.f32.mrf.mxu0  ;;  %v1740_v35 = vadd.f32 %v1739_v57, %v7950_v8  ;;  %v2650_v62 = vmax.f32 %v1738_v21, 0.0  ;;  %v2779_v21 = vpack.c.bf16 %v2635_v63, %v2619_v15 }
 0x1e8   : > { %v1741_v31 = vpop.f32.mrf.mxu1  ;;  %v1627_v39 = vadd.f32 %v1626_v46, %v7950_v8  ;;  %v2634_v8 = vmax.f32 %v1732_v22, 0.0  ;;  %v2648_v26 = vmax.f32 %v1625_v37, 0.0  ;;  %v2618_v22 = vmax.f32 %v8312_v42, 0.0 }
 0x1e9   : > { %v1628_v50 = vpop.f32.mrf.mxu0  ;;  %v1742_v43 = vadd.f32 %v1741_v31, %v7974_v19  ;;  %v2617_v31 = vmax.f32 %v1617_v5, 0.0  ;;  %v2651_v46 = vmax.f32 %v1740_v35, 0.0 }
 0x1ea   : > { %v1629_v1 = vadd.f32 %v1628_v50, %v7974_v19  ;;  %v1743_v6 = vpop.f32.mrf.mxu1  ;;  %v2649_v16 = vmax.f32 %v1627_v39, 0.0  ;;  %v2778_v63 = vpack.c.bf16 %v2634_v8, %v2618_v22  ;;  %v12301_v8 = vmax.f32 %v8267_v60, 0.0 }
 0x1eb   : > { %v1630_v57 = vpop.f32.mrf.mxu0  ;;  %v1744_v55 = vadd.f32 %v1743_v6, %v7974_v19  ;;  %v2666_v3 = vmax.f32 %v1742_v43, 0.0  ;;  %v2632_v43 = vmax.f32 %v1619_v10, 0.0  ;;  %v12305_v60 = vmax.f32 %v8273_v25, 0.0 }
 0x1ec   : > { %v1631_v30 = vadd.f32 %v1630_v57, %v7974_v19  ;;  %v1893_v9 = vpop.f32.mrf.mxu1  ;;  %v2664_v13 = vmax.f32 %v1629_v1, 0.0  ;;  %v12307_v22 = vmax.f32 %v8270_v17, 0.0  ;;  %v12310_v17 = vmax.f32 %v8242_v28, 0.0 }
 0x1ed   : > { %v2667_v50 = vmax.f32 %v1744_v55, 0.0  ;;  %v1780_v20 = vpop.f32.mrf.mxu0  ;;  %v1894_v6 = vadd.f32 %v1893_v9, %v8030_v52  ;;  %v2794_v44 = vpack.c.bf16 %v2666_v3, %v2650_v62 }
 0x1ee   : > { %v2665_v18 = vmax.f32 %v1631_v30, 0.0  ;;  %v1895_v51 = vpop.f32.mrf.mxu1  ;;  %v1781_v57 = vadd.f32 %v1780_v20, %v8030_v52  ;;  %v2792_v1 = vpack.c.bf16 %v2664_v13, %v2648_v26  ;;  %v2777_v20 = vpack.c.bf16 %v2633_v34, %v2617_v31 }
 0x1ef   : > { %v1782_v5 = vpop.f32.mrf.mxu0  ;;  %v2795_v36 = vpack.c.bf16 %v2667_v50, %v2651_v46  ;;  %v1896_v55 = vadd.f32 %v1895_v51, %v8030_v52  ;;  %v2430_v26 = vmax.f32 %v1894_v6, 0.0 }
 0x1f0   : > { %v1897_v40 = vpop.f32.mrf.mxu1  ;;  %v2793_v35 = vpack.c.bf16 %v2665_v18, %v2649_v16  ;;  %v1783_v37 = vadd.f32 %v1782_v5, %v8030_v52  ;;  %v2616_v18 = vmax.f32 %v8308_v2, 0.0  ;;  %v2428_v15 = vmax.f32 %v1781_v57, 0.0 }
 0x1f1   : > { %v1784_v32 = vpop.f32.mrf.mxu0  ;;  %v1898_v39 = vadd.f32 %v1897_v40, %v8034_v14  ;;  %3049 = vmatprep.subr.bf16.mxu1 %v2795_v36  ;;  %v2431_v16 = vmax.f32 %v1896_v55, 0.0  ;;  %v12302_v36 = vmax.f32 %v8281_v53, 0.0  ;;  %v2570_v40 = vmax.f32 %v8278_v12, 0.0 }
 0x1f2   : > { %v1785_v30 = vadd.f32 %v1784_v32, %v8034_v14  ;;  %2936 = vmatprep.subr.bf16.mxu0 %v2793_v35  ;;  %v1899_v62 = vpop.f32.mrf.mxu1  ;;  %3050 = vmatpush1.bf16.msra.mxu1 %v2794_v44  ;;  %v2776_v50 = vpack.c.bf16 %v2632_v43, %v2616_v18  ;;  %v2429_v34 = vmax.f32 %v1783_v37, 0.0  ;;  %v2584_v43 = vmax.f32 %v8298_v11, 0.0 }
 0x1f3   : > { %v2446_v13 = vmax.f32 %v1898_v39, 0.0  ;;  %v1786_v10 = vpop.f32.mrf.mxu0  ;;  %v1900_v3 = vadd.f32 %v1899_v62, %v8034_v14  ;;  %2937 = vmatpush1.bf16.msra.mxu0 %v2792_v1  ;;  %3051 = vmatprep.subr.bf16.mxu1 %v2779_v21  ;;  %v2761_v57 = vpack.c.bf16 %v12302_v36, %v12301_v8  ;;  %v2568_v32 = vmax.f32 %v8291_v47, 0.0 }
 0x1f4   : > { %v2444_v42 = vmax.f32 %v1785_v30, 0.0  ;;  %v1787_v9 = vadd.f32 %v1786_v10, %v8034_v14  ;;  %2938 = vmatprep.subr.bf16.mxu0 %v2777_v20  ;;  %v1903_v46 = vpop.f32.mrf.mxu1  ;;  %v12304_v39 = vmax.f32 %v8259_v45, 0.0  ;;  %v2760_v37 = vpack.c.bf16 %v12307_v22, %v2584_v43  ;;  %v12321_v22 = vld [vmem:[#allocation29_spill] sm:$0xff] }
 0x1f5   : > { %v8339_v44 = vpack.c.bf16 %v2446_v13, %v2430_v26  ;;  %v2447_v31 = vmax.f32 %v1900_v3, 0.0  ;;  %v1790_v2 = vpop.f32.mrf.mxu0  ;;  %v1904_v35 = vadd.f32 %v1903_v46, %v8024_v38  ;;  %v12308_v47 = vmax.f32 %v8237_v33, 0.0 }
 0x1f6   : > { %v8341_v51 = vpack.c.bf16 %v2444_v42, %v2428_v15  ;;  %v2445_v6 = vmax.f32 %v1787_v9, 0.0  ;;  %v1905_v5 = vpop.f32.mrf.mxu1  ;;  %3052 = vmatpush1.bf16.msra.mxu1 %v2778_v63  ;;  %v2762_v53 = vpack.c.bf16 %v12305_v60, %v12304_v39  ;;  %v1791_v21 = vadd.f32 %v1790_v2, %v8024_v38 }
 0x1f7   : > { %12299 = vst [vmem:[#allocation30_spill] sm:$0xff] %v8339_v44  ;;  %v1792_v1 = vpop.f32.mrf.mxu0  ;;  %2939 = vmatpush1.bf16.msra.mxu0 %v2776_v50  ;;  %3053 = vmatprep.subr.bf16.mxu1 %v8318_v29  ;;  %v8351_v55 = vpack.c.bf16 %v2447_v31, %v2431_v16  ;;  %v1906_v29 = vadd.f32 %v1905_v5, %v8024_v38  ;;  %v12309_v45 = vmax.f32 %v8246_v0, 0.0  ;;  %v2554_v20 = vmax.f32 %v8264_v49, 0.0 }
 0x1f8   : > { %12300 = vst [vmem:[#allocation31_spill] sm:$0xff] %v8341_v51  ;;  %2940 = vmatprep.subr.bf16.mxu0 %v2761_v57  ;;  %v1907_v12 = vpop.f32.mrf.mxu1  ;;  %v8359_v11 = vpack.c.bf16 %v2445_v6, %v2429_v34  ;;  %v1793_v18 = vadd.f32 %v1792_v1, %v8024_v38  ;;  %v12311_v10 = vmax.f32 %v8255_v48, 0.0  ;;  %v2552_v63 = vmax.f32 %v8251_v41, 0.0 }
 0x1f9   : > { %12303 = vst [vmem:[#allocation32_spill] sm:$0xff] %v8351_v55  ;;  %v1794_v30 = vpop.f32.mrf.mxu0  ;;  %v1908_v62 = vadd.f32 %v1907_v12, %v8028_v59  ;;  %v2747_v25 = vpack.c.bf16 %v12309_v45, %v12308_v47  ;;  %v2462_v15 = vmax.f32 %v1904_v35, 0.0  ;;  %v2746_v49 = vpack.c.bf16 %v2570_v40, %v2554_v20  ;;  %v12324_v47 = vld [vmem:[#allocation23_spill] sm:$0xff] }
 0x1fa   : > { %12306 = vst [vmem:[#allocation33_spill] sm:$0xff] %v8359_v11  ;;  %v1795_v26 = vadd.f32 %v1794_v30, %v8028_v59  ;;  %v1909_v13 = vpop.f32.mrf.mxu1  ;;  %3054 = vmatpush1.bf16.msra.mxu1 %v2762_v53  ;;  %v2745_v3 = vpack.c.bf16 %v12311_v10, %v12310_v17  ;;  %v2460_v9 = vmax.f32 %v1791_v21, 0.0  ;;  %v2744_v28 = vpack.c.bf16 %v2568_v32, %v2552_v63  ;;  %v12318_v53 = vld [vmem:[#allocation25_spill] sm:$0xff]  ;;  %v12325_v45 = vld [vmem:[#allocation7_spill] sm:$0xff] }
 0x1fb   : > { %v2478_v33 = vmax.f32 %v1908_v62, 0.0  ;;  %v1796_v42 = vpop.f32.mrf.mxu0  ;;  %v1910_v0 = vadd.f32 %v1909_v13, %v8028_v59  ;;  %2941 = vmatpush1.bf16.msra.mxu0 %v2760_v37  ;;  %3055 = vmatprep.subr.bf16.mxu1 %v2747_v25  ;;  %v2463_v31 = vmax.f32 %v1906_v29, 0.0  ;;  %v2461_v34 = vmax.f32 %v1793_v18, 0.0  ;;  %v12322_v29 = vld [vmem:[#allocation21_spill] sm:$0xff]  ;;  %v12330_v10 = vld [vmem:[#allocation19_spill] sm:$0xff] }
 0x1fc   : > { %v2476_v46 = vmax.f32 %v1795_v26, 0.0  ;;  %v1797_v50 = vadd.f32 %v1796_v42, %v8028_v59  ;;  %2942 = vmatprep.subr.bf16.mxu0 %v2745_v3  ;;  %v1913_v16 = vpop.f32.mrf.mxu1  ;;  %v12314_v36 = vmax.f32 %v8184_v4, 0.0  ;;  %v12315_v57 = vmax.f32 %v8209_v7, 0.0  ;;  %v12328_v26 = vld [vmem:[#allocation22_spill] sm:$0xff] }
 0x1fd   : > { %v8379_v48 = vpack.c.bf16 %v2478_v33, %v2462_v15  ;;  %v2479_v2 = vmax.f32 %v1910_v0, 0.0  ;;  %v8381_v41 = vpop.f32.mrf.mxu0  ;;  %v2491_v43 = vmax.f32 %v8206_v56, 0.0  ;;  %v2520_v35 = vmax.f32 %v8229_v58, 0.0 }
 0x1fe   : > { %v8383_v6 = vpack.c.bf16 %v2476_v46, %v2460_v9  ;;  %v2477_v5 = vmax.f32 %v1797_v50, 0.0  ;;  %v8385_v8 = vpop.f32.mrf.mxu1  ;;  %3056 = vmatpush1.bf16.msra.mxu1 %v2746_v49  ;;  %v2729_v40 = vpack.c.bf16 %v12315_v57, %v12314_v36  ;;  %v1914_v1 = vadd.f32 %v1913_v16, %v8018_v61  ;;  %v12334_v36 = vld [vmem:[#allocation18_spill] sm:$0xff] }
 0x1ff   : > { %12312 = vst [vmem:[#allocation34_spill] sm:$0xff] %v8379_v48  ;;  %v8394_v32 = vpop.f32.mrf.mxu0  ;;  %2943 = vmatpush1.bf16.msra.mxu0 %v2744_v28  ;;  %3057 = vmatprep.subr.bf16.mxu1 %v8286_v27  ;;  %v8397_v39 = vpack.c.bf16 %v2479_v2, %v2463_v31  ;;  %v2489_v60 = vmax.f32 %v8202_v54, 0.0  ;;  %v2506_v4 = vmax.f32 %v8219_v23, 0.0  ;;  %v12317_v7 = vmax.f32 %v8181_v24, 0.0  ;;  %v12327_v24 = vld [vmem:[#allocation8_spill] sm:$0xff]  ;;  %v12332_v28 = vld [vmem:[#allocation17_spill] sm:$0xff] }
 0x200   : > { %12313 = vst [vmem:[#allocation35_spill] sm:$0xff] %v8383_v6  ;;  %v12319_v21 = vmax.f32 %v12318_v53, 0.0  ;;  %2944 = vmatprep.subr.bf16.mxu0 %v2729_v40  ;;  %v1917_v58 = vpop.f32.mrf.mxu1  ;;  %v8405_v12 = vpack.c.bf16 %v2477_v5, %v2461_v34  ;;  %v2504_v37 = vmax.f32 %v12321_v22, 0.0  ;;  %v12323_v30 = vmax.f32 %v12322_v29, 0.0  ;;  %v12333_v31 = vld [vmem:[#allocation15_spill] sm:$0xff]  ;;  %v12335_v40 = vld [vmem:[#allocation13_spill] sm:$0xff] }
 0x201   : > { %12316 = vst [vmem:[#allocation36_spill] sm:$0xff] %v8397_v39  ;;  %v8410_v62 = vpop.f32.mrf.mxu0  ;;  %v1918_v54 = vadd.f32 %v1917_v58, %v12324_v47  ;;  %v12326_v23 = vmax.f32 %v12325_v45, 0.0  ;;  %v2490_v20 = vmax.f32 %v12327_v24, 0.0  ;;  %v12329_v13 = vmax.f32 %v12328_v26, 0.0  ;;  %v12339_v53 = vld [vmem:[#allocation9_spill] sm:$0xff]  ;;  %v8451_v45 = vld [vmem:[%s11874_s3 + $0x8] sm:$0xff]  }
 0x202   : > { %v2730_v56 = vpack.c.bf16 %v12319_v21, %v12317_v7  ;;  %12320 = vst [vmem:[#allocation25_spill] sm:$0xff] %v8405_v12  ;;  %v2728_v27 = vpack.c.bf16 %v12323_v30, %v2520_v35  ;;  %v1919_v18 = vpop.f32.mrf.mxu1  ;;  %v2488_v3 = vmax.f32 %v12330_v10, 0.0  ;;  %v2494_v63 = vmax.f32 %v1914_v1, 0.0  ;;  %v12337_v35 = vld [vmem:[#allocation4_spill] sm:$0xff]  ;;  %12342 = vst [vmem:[#allocation7_spill] sm:$0xff] %v8451_v45  ;;  %v12345_v10 = vld [vmem:[#allocation3_spill] sm:$0xff] }
 0x203   : > { %v2715_v25 = vpack.c.bf16 %v12326_v23, %v2491_v43  ;;  %v2713_v17 = vpack.c.bf16 %v12329_v13, %v2489_v60  ;;  %v2510_v15 = vmax.f32 %v1918_v54, 0.0  ;;  %v1806_v33 = vpop.f32.mrf.mxu0  ;;  %v2714_v42 = vpack.c.bf16 %v2506_v4, %v2490_v20  ;;  %v12336_v43 = vld [vmem:[#allocation28_spill] sm:$0xff]  ;;  %v8434_v4 = vld [vmem:[%s11874_s3] sm:$0xff]  }
 0x204   : > { %3058 = vmatpush1.bf16.msra.mxu1 %v2730_v56  ;;  %2945 = vmatpush1.bf16.msra.mxu0 %v2728_v27  ;;  %v1923_v0 = vpop.f32.mrf.mxu1  ;;  %v2712_v49 = vpack.c.bf16 %v2504_v37, %v2488_v3  ;;  %12338 = vst [vmem:[#allocation21_spill] sm:$0xff] %v8434_v4  ;;  %v12340_v56 = vld [vmem:[#allocation16_spill] sm:$0xff]  ;;  %v12341_v29 = vmov 0   ;;  %v8455_v26 = vadd.f32 %v1919_v18, %v12324_v47 }
 0x205   : > { %3059 = vmatprep.subr.bf16.mxu1 %v2715_v25  ;;  %2946 = vmatprep.subr.bf16.mxu0 %v2713_v17  ;;  %v8419_v9 = vpack.c.bf16 %v2510_v15, %v2494_v63  ;;  %v1810_v46 = vpop.f32.mrf.mxu0  ;;  %v8460_v17 = vadd.f32 %v1806_v33, %v12324_v47  ;;  %v8479_v33 = vadd.f32 %v8394_v32, %v8018_v61  ;;  %v12352_v32 = vld [vmem:[#allocation10_spill] sm:$0xff] }
 0x206   : > { %v1925_v50 = vpop.f32.mrf.mxu1  ;;  %12343 = vst [vmem:[#allocation8_spill] sm:$0xff] %v8455_v26 }
 0x207   : > { %12331 = vst [vmem:[#allocation29_spill] sm:$0xff] %v8419_v9  ;;  %v1812_v16 = vpop.f32.mrf.mxu0  ;;  %12344 = vst [vmem:[#allocation22_spill] sm:$0xff] %v8460_v17  ;;  %v1926_v63 = vadd.f32 %v1925_v50, %v12345_v10  ;;  %v8483_v50 = vadd.f32 %v8385_v8, %v8018_v61 }
 0x208   : > { %3060 = vmatpush1.bf16.msra.mxu1 %v2714_v42  ;;  %2947 = vmatpush1.bf16.msra.mxu0 %v2712_v49  ;;  %v1927_v2 = vpop.f32.mrf.mxu1  ;;  %v8463_v3 = vadd.f32 %v1812_v16, %v12345_v10  ;;  %v12346_v42 = vld [vmem:[#allocation20_spill] sm:$0xff] }
 0x209   : > { %3061 = vmatprep.subr.bf16.mxu1 %v12332_v28  ;;  %2948 = vmatprep.subr.bf16.mxu0 %v12333_v31  ;;  %v1814_v34 = vpop.f32.mrf.mxu0  ;;  %v8468_v49 = vadd.f32 %v1927_v2, %v12346_v42  ;;  %v8475_v31 = vadd.f32 %v8381_v41, %v8018_v61  ;;  %v8495_v41 = vadd.f32 %v8410_v62, %v12324_v47 }
 0x20a   : > { %v1929_v5 = vpop.f32.mrf.mxu1  ;;  %v8486_v16 = vadd.f32 %v1814_v34, %v12346_v42 }
 0x20b   : > { %v1816_v57 = vpop.f32.mrf.mxu0  ;;  %12347 = vst [vmem:[#allocation19_spill] sm:$0xff] %v8468_v49  ;;  %v1930_v18 = vadd.f32 %v1929_v5, %v12346_v42  ;;  %12348 = vst [vmem:[#allocation17_spill] sm:$0xff] %v8475_v31  ;;  %v8491_v5 = vld [vmem:[%s11874_s3 + $0x10] sm:$0xff]  }
 0x20c   : > { %3062 = vmatpush1.bf16.msra.mxu1 %v12334_v36  ;;  %2949 = vmatpush1.bf16.msra.mxu0 %v12335_v40  ;;  %v8427_v1 = vpop.f32.mrf.mxu1  ;;  %12349 = vst [vmem:[#allocation15_spill] sm:$0xff] %v8486_v16  ;;  %12350 = vst [vmem:[#allocation18_spill] sm:$0xff] %v8491_v5  ;;  %v8499_v36 = vadd.f32 %v1923_v0, %v12345_v10  ;;  %v8502_v8 = vadd.f32 %v1816_v57, %v12346_v42  ;;  %v12353_v40 = vld [vmem:[#allocation27_spill] sm:$0xff] }
 0x20d   : > { %3063 = vmatprep.subr.bf16.mxu1 %v12336_v43  ;;  %2950 = vmatprep.subr.bf16.mxu0 %v12337_v35  ;;  %v8429_v60 = vpop.f32.mrf.mxu0  ;;  %12351 = vst [vmem:[#allocation13_spill] sm:$0xff] %v8495_v41  ;;  %v8506_v43 = vadd.f32 %v1810_v46, %v12345_v10 }
 0x20e   : > { %v1935_v7 = vpop.f32.mrf.mxu1 }
 0x20f   : > { %v1822_v21 = vpop.f32.mrf.mxu0  ;;  %v8514_v0 = vadd.f32 %v1935_v7, %v12352_v32  ;;  %v8530_v7 = vadd.f32 %v8427_v1, %v12352_v32 }
 0x210   : > { %3064 = vmatpush1.bf16.msra.mxu1 %v12339_v53  ;;  %2951 = vmatpush1.bf16.msra.mxu0 %v12340_v56  ;;  %v1937_v58 = vpop.f32.mrf.mxu1  ;;  %v2527_v53 = vmax.f32 %v1926_v63, 0.0  ;;  %v12354_v63 = vld [vmem:[#allocation6_spill] sm:$0xff] }
 0x211   : > { %v8438_v22 = vpop.f32.mrf.mxu0  ;;  %v8518_v44 = vadd.f32 %v1937_v58, %v12353_v40  ;;  %v12355_v58 = vld [vmem:[#allocation12_spill] sm:$0xff] }
 0x212   : > { %v1939_v37 = vpop.f32.mrf.mxu1 }
 0x213   : > { %3082 = vmatmul.mubr.bf16.vlgmr.msra.gmra.mxu1 %v8434_v4  ;;  %2969 = vmatmul.mubr.bf16.vlgmr.msra.gmra.mxu0 %v8434_v4  ;;  %v1826_v30 = vpop.f32.mrf.mxu0  ;;  %v8511_v4 = vadd.f32 %v1822_v21, %v12352_v32  ;;  %v8521_v46 = vadd.f32 %v1939_v37, %v12353_v40 }
 0x214   : > { %3091 = vmatprep.mubr.bf16.mxu1 %v12341_v29  ;;  %2978 = vmatprep.mubr.bf16.mxu0 %v12341_v29  ;;  %v8444_v27 = vpop.f32.mrf.mxu1 }
 0x215   : > { %v8446_v54 = vpop.f32.mrf.mxu0 }
 0x216   : > { %v1945_v23 = vpop.f32.mrf.mxu1 }
 0x217   : > { %v1832_v25 = vpop.f32.mrf.mxu0  ;;  %v1946_v62 = vadd.f32 %v1945_v23, %v12355_v58  ;;  %v8569_v23 = vld [vmem:[%s11874_s3 + $0x18] sm:$0xff]  }
 0x218   : > { %v1947_v24 = vpop.f32.mrf.mxu1  ;;  %v8543_v42 = vadd.f32 %v1832_v25, %v12355_v58  ;;  %12356 = vst [vmem:[#allocation28_spill] sm:$0xff] %v8569_v23 }
 0x219   : > { %v1834_v20 = vpop.f32.mrf.mxu0 }
 0x21a   : > { %v1949_v13 = vpop.f32.mrf.mxu1  ;;  %v8546_v1 = vadd.f32 %v1834_v20, %v12354_v63 }
 0x21b   : > { %3092 = vmatmul.mubr.bf16.gmra.mxu1 %v8451_v45  ;;  %2979 = vmatmul.mubr.bf16.gmra.mxu0 %v8451_v45  ;;  %v1836_v15 = vpop.f32.mrf.mxu0  ;;  %v2543_v45 = vmax.f32 %v1930_v18, 0.0  ;;  %v1950_v35 = vadd.f32 %v1949_v13, %v12354_v63  ;;  %v8533_v18 = vadd.f32 %v1826_v30, %v12353_v40  ;;  %v8540_v13 = vadd.f32 %v8429_v60, %v12352_v32 }
 0x21c   : > { %3101 = vmatprep.mubr.bf16.mxu1 %v12341_v29  ;;  %2988 = vmatprep.mubr.bf16.mxu0 %v12341_v29  ;;  %v8471_v28 = vpop.f32.mrf.mxu1  ;;  %v8549_v30 = vadd.f32 %v1947_v24, %v12354_v63  ;;  %v8556_v60 = vadd.f32 %v8438_v22, %v12353_v40  ;;  %v8564_v24 = vadd.f32 %v8444_v27, %v12355_v58  ;;  %v12357_v40 = vld [vmem:[#allocation26_spill] sm:$0xff] }
 0x21d   : > { %v1840_v2 = vpop.f32.mrf.mxu0  ;;  %v8558_v25 = vpack.c.bf16 %v2543_v45, %v2527_v53  ;;  %v2607_v55 = vmax.f32 %v1950_v35, 0.0  ;;  %v8574_v45 = vadd.f32 %v8446_v54, %v12355_v58  ;;  %v2591_v53 = vmax.f32 %v1946_v62, 0.0  ;;  %v12358_v62 = vld [vmem:[#allocation14_spill] sm:$0xff]  ;;  %v12359_v35 = vld [vmem:[#allocation24_spill] sm:$0xff] }
 0x21e   : > { %v1955_v34 = vpop.f32.mrf.mxu1  ;;  %v8577_v20 = vadd.f32 %v1836_v15, %v12354_v63  ;;  %v8584_v22 = vadd.f32 %v1840_v2, %v12357_v40  ;;  %v8588_v54 = vadd.f32 %v8471_v28, %v12357_v40 }
 0x21f   : > { %v1842_v56 = vpop.f32.mrf.mxu0  ;;  %v1956_v48 = vadd.f32 %v1955_v34, %v12357_v40  ;;  %v8596_v2 = vpack.c.bf16 %v2607_v55, %v2591_v53 }
 0x220   : > { %v1957_v57 = vpop.f32.mrf.mxu1  ;;  %v1843_v15 = vadd.f32 %v1842_v56, %v12357_v40 }
 0x221   : > { %v8524_v10 = vpop.f32.mrf.mxu0 }
 0x222   : > { %v1959_v37 = vpop.f32.mrf.mxu1 }
 0x223   : > { %3102 = vmatmul.mubr.bf16.gmra.mxu1 %v8491_v5  ;;  %2989 = vmatmul.mubr.bf16.gmra.mxu0 %v8491_v5  ;;  %v1846_v21 = vpop.f32.mrf.mxu0  ;;  %v1960_v58 = vadd.f32 %v1959_v37, %v12358_v62 }
 0x224   : > { %3111 = vmatprep.mubr.bf16.mxu1 %v12341_v29  ;;  %2998 = vmatprep.mubr.bf16.mxu0 %v12341_v29  ;;  %v1963_v32 = vpop.f32.mrf.mxu1  ;;  %v1847_v27 = vadd.f32 %v1846_v21, %v12358_v62 }
 0x225   : > { %v1850_v11 = vpop.f32.mrf.mxu0  ;;  %v1964_v28 = vadd.f32 %v1963_v32, %v12359_v35  ;;  %v2621_v32 = vmax.f32 %v1843_v15, 0.0  ;;  %v2639_v12 = vmax.f32 %v1960_v58, 0.0 }
 0x226   : > { %v1965_v51 = vpop.f32.mrf.mxu1  ;;  %v1851_v40 = vadd.f32 %v1850_v11, %v12359_v35  ;;  %v8614_v11 = vld [vmem:[%s11874_s3 + $0x20] sm:$0xff]  }
 0x227   : > { %v1852_v6 = vpop.f32.mrf.mxu0  ;;  %v1966_v39 = vadd.f32 %v1965_v51, %v12359_v35  ;;  %v2623_v51 = vmax.f32 %v1956_v48, 0.0 }
 0x228   : > { %v1967_v63 = vpop.f32.mrf.mxu1  ;;  %v1853_v56 = vadd.f32 %v1852_v6, %v12359_v35  ;;  %v2654_v35 = vmax.f32 %v1964_v28, 0.0 }
 0x229   : > { %v1854_v5 = vpop.f32.mrf.mxu0  ;;  %v1968_v34 = vadd.f32 %v1967_v63, %v7974_v19  ;;  %v1958_v63 = vadd.f32 %v1957_v57, %v12358_v62  ;;  %v2655_v31 = vmax.f32 %v1966_v39, 0.0  ;;  %v2783_v49 = vpack.c.bf16 %v2639_v12, %v2623_v51 }
 0x22a   : > { %v1855_v37 = vadd.f32 %v1854_v5, %v7974_v19  ;;  %v1969_v21 = vpop.f32.mrf.mxu1  ;;  %v2653_v15 = vmax.f32 %v1853_v56, 0.0 }
 0x22b   : > { %3112 = vmatmul.mubr.bf16.gmra.mxu1 %v8569_v23  ;;  %2999 = vmatmul.mubr.bf16.gmra.mxu0 %v8569_v23  ;;  %v1856_v55 = vpop.f32.mrf.mxu0  ;;  %v1970_v53 = vadd.f32 %v1969_v21, %v7974_v19  ;;  %v2670_v6 = vmax.f32 %v1968_v34, 0.0  ;;  %v1845_v23 = vadd.f32 %v8524_v10, %v12358_v62  ;;  %v2637_v21 = vmax.f32 %v1847_v27, 0.0 }
 0x22c   : > { %3121 = vmatprep.mubr.bf16.mxu1 %v12341_v29  ;;  %3008 = vmatprep.mubr.bf16.mxu0 %v12341_v29  ;;  %v1857_v5 = vadd.f32 %v1856_v55, %v7974_v19  ;;  %v2119_v9 = vpop.f32.mrf.mxu1  ;;  %v2668_v48 = vmax.f32 %v1855_v37, 0.0  ;;  %v2638_v17 = vmax.f32 %v1958_v63, 0.0  ;;  %v2652_v55 = vmax.f32 %v1851_v40, 0.0 }
 0x22d   : > { %v2671_v26 = vmax.f32 %v1970_v53, 0.0  ;;  %v2006_v57 = vpop.f32.mrf.mxu0  ;;  %v2120_v19 = vadd.f32 %v2119_v9, %v8030_v52  ;;  %v2798_v39 = vpack.c.bf16 %v2670_v6, %v2654_v35  ;;  %v2636_v16 = vmax.f32 %v1845_v23, 0.0 }
 0x22e   : > { %v2669_v58 = vmax.f32 %v1857_v5, 0.0  ;;  %v2121_v34 = vpop.f32.mrf.mxu1  ;;  %v2007_v37 = vadd.f32 %v2006_v57, %v8030_v52  ;;  %v2796_v41 = vpack.c.bf16 %v2668_v48, %v2652_v55  ;;  %v2622_v9 = vmax.f32 %v8588_v54, 0.0 }
 0x22f   : > { %v2008_v47 = vpop.f32.mrf.mxu0  ;;  %v2799_v10 = vpack.c.bf16 %v2671_v26, %v2655_v31  ;;  %v2122_v27 = vadd.f32 %v2121_v34, %v8030_v52  ;;  %v2781_v40 = vpack.c.bf16 %v2637_v21, %v2621_v32  ;;  %v2620_v23 = vmax.f32 %v8584_v22, 0.0 }
 0x230   : > { %v2123_v53 = vpop.f32.mrf.mxu1  ;;  %v2797_v62 = vpack.c.bf16 %v2669_v58, %v2653_v15  ;;  %v2009_v26 = vadd.f32 %v2008_v47, %v8030_v52  ;;  %v2434_v35 = vmax.f32 %v2120_v19, 0.0  ;;  %v2782_v5 = vpack.c.bf16 %v2638_v17, %v2622_v9  ;;  %v8635_v17 = vld [vmem:[%s11874_s3 + $0x28] sm:$0xff]  }
 0x231   : > { %v2010_v28 = vpop.f32.mrf.mxu0  ;;  %v2124_v56 = vadd.f32 %v2123_v53, %v8034_v14  ;;  %3275 = vmatprep.subr.bf16.mxu1 %v2799_v10  ;;  %v2432_v54 = vmax.f32 %v2007_v37, 0.0  ;;  %v2435_v15 = vmax.f32 %v2122_v27, 0.0  ;;  %v12363_v34 = vmax.f32 %v8577_v20, 0.0 }
 0x232   : > { %v2011_v31 = vadd.f32 %v2010_v28, %v8034_v14  ;;  %3162 = vmatprep.subr.bf16.mxu0 %v2797_v62  ;;  %v2125_v12 = vpop.f32.mrf.mxu1  ;;  %3276 = vmatpush1.bf16.msra.mxu1 %v2798_v39  ;;  %v2780_v62 = vpack.c.bf16 %v2636_v16, %v2620_v23  ;;  %v12362_v16 = vmax.f32 %v8543_v42, 0.0  ;;  %v2588_v10 = vmax.f32 %v8574_v45, 0.0 }
 0x233   : > { %3122 = vmatmul.mubr.bf16.gmra.mxu1 %v8614_v11  ;;  %3009 = vmatmul.mubr.bf16.gmra.mxu0 %v8614_v11  ;;  %v2450_v51 = vmax.f32 %v2124_v56, 0.0  ;;  %v2012_v63 = vpop.f32.mrf.mxu0  ;;  %v2126_v6 = vadd.f32 %v2125_v12, %v8034_v14  ;;  %v2590_v39 = vmax.f32 %v8564_v24, 0.0  ;;  %v2572_v28 = vmax.f32 %v8556_v60, 0.0 }
 0x234   : > { %3163 = vmatpush1.bf16.msra.mxu0 %v2796_v41  ;;  %v2448_v48 = vmax.f32 %v2011_v31, 0.0  ;;  %v2013_v47 = vadd.f32 %v2012_v63, %v8034_v14  ;;  %3277 = vmatprep.subr.bf16.mxu1 %v2783_v49  ;;  %v2129_v57 = vpop.f32.mrf.mxu1  ;;  %v2433_v41 = vmax.f32 %v2009_v26, 0.0  ;;  %v2765_v55 = vpack.c.bf16 %v12363_v34, %v12362_v16 }
 0x235   : > { %3164 = vmatprep.subr.bf16.mxu0 %v2781_v40  ;;  %v8628_v32 = vpack.c.bf16 %v2450_v51, %v2434_v35  ;;  %v2451_v22 = vmax.f32 %v2126_v6, 0.0  ;;  %v2016_v19 = vpop.f32.mrf.mxu0  ;;  %3018 = vmatprep.mubr.bf16.mxu0 %v12341_v29  ;;  %v2130_v37 = vadd.f32 %v2129_v57, %v8024_v38  ;;  %v12365_v20 = vmax.f32 %v8514_v0, 0.0 }
 0x236   : > { %3131 = vmatprep.mubr.bf16.mxu1 %v12341_v29  ;;  %v8637_v21 = vpack.c.bf16 %v2448_v48, %v2432_v54  ;;  %v2449_v49 = vmax.f32 %v2013_v47, 0.0  ;;  %v2131_v58 = vpop.f32.mrf.mxu1  ;;  %3278 = vmatpush1.bf16.msra.mxu1 %v2782_v5  ;;  %v2017_v56 = vadd.f32 %v2016_v19, %v8024_v38  ;;  %v12366_v45 = vmax.f32 %v8521_v46, 0.0 }
 0x237   : > { %12360 = vst [vmem:[#allocation4_spill] sm:$0xff] %v8628_v32  ;;  %v2018_v53 = vpop.f32.mrf.mxu0  ;;  %v8646_v27 = vpack.c.bf16 %v2451_v22, %v2435_v15  ;;  %3279 = vmatprep.subr.bf16.mxu1 %v8596_v2  ;;  %v12368_v26 = vmax.f32 %v8546_v1, 0.0  ;;  %v12369_v12 = vmax.f32 %v8549_v30, 0.0  ;;  %v2132_v60 = vadd.f32 %v2131_v58, %v8024_v38  ;;  %v12415_v32 = vld [vmem:[#allocation18_spill] sm:$0xff] }
 0x238   : > { %12361 = vst [vmem:[#allocation9_spill] sm:$0xff] %v8637_v21  ;;  %3165 = vmatpush1.bf16.msra.mxu0 %v2780_v62  ;;  %v2133_v42 = vpop.f32.mrf.mxu1  ;;  %v2751_v24 = vpack.c.bf16 %v12366_v45, %v12365_v20  ;;  %v8655_v9 = vpack.c.bf16 %v2449_v49, %v2433_v41  ;;  %v2558_v0 = vmax.f32 %v8530_v7, 0.0  ;;  %v2019_v46 = vadd.f32 %v2018_v53, %v8024_v38 }
 0x239   : > { %12364 = vst [vmem:[#allocation16_spill] sm:$0xff] %v8646_v27  ;;  %3166 = vmatprep.subr.bf16.mxu0 %v2765_v55  ;;  %v2764_v31 = vpack.c.bf16 %v12368_v26, %v2588_v10  ;;  %v2766_v40 = vpack.c.bf16 %v12369_v12, %v2590_v39  ;;  %v2020_v23 = vpop.f32.mrf.mxu0  ;;  %v2134_v35 = vadd.f32 %v2133_v42, %v8028_v59  ;;  %v12370_v51 = vmax.f32 %v8511_v4, 0.0 }
 0x23a   : > { %12367 = vst [vmem:[#allocation37_spill] sm:$0xff] %v8655_v9  ;;  %v2021_v2 = vadd.f32 %v2020_v23, %v8028_v59  ;;  %v2135_v1 = vpop.f32.mrf.mxu1  ;;  %v12371_v30 = vmax.f32 %v8533_v18, 0.0  ;;  %v2556_v6 = vmax.f32 %v8540_v13, 0.0  ;;  %v2466_v5 = vmax.f32 %v2130_v37, 0.0 }
 0x23b   : > { %3132 = vmatmul.mubr.bf16.gmra.mxu1 %v8635_v17  ;;  %3019 = vmatmul.mubr.bf16.gmra.mxu0 %v8635_v17  ;;  %v2482_v54 = vmax.f32 %v2134_v35, 0.0  ;;  %v2022_v48 = vpop.f32.mrf.mxu0  ;;  %v2136_v7 = vadd.f32 %v2135_v1, %v8028_v59  ;;  %v12372_v47 = vmax.f32 %v8518_v44, 0.0  ;;  %v2464_v62 = vmax.f32 %v2017_v56, 0.0  ;;  %v8684_v44 = vld [vmem:[%s11874_s3 + $0x30] sm:$0xff]  }
 0x23c   : > { %v2749_v63 = vpack.c.bf16 %v12371_v30, %v12370_v51  ;;  %3141 = vmatprep.mubr.bf16.mxu1 %v12341_v29  ;;  %3167 = vmatpush1.bf16.msra.mxu0 %v2764_v31  ;;  %v2480_v15 = vmax.f32 %v2021_v2, 0.0  ;;  %v2023_v4 = vadd.f32 %v2022_v48, %v8028_v59  ;;  %v2139_v18 = vpop.f32.mrf.mxu1  ;;  %v2748_v22 = vpack.c.bf16 %v2572_v28, %v2556_v6  ;;  %v12381_v31 = vld [vmem:[#allocation15_spill] sm:$0xff]  ;;  %v12386_v2 = vld [vmem:[#allocation22_spill] sm:$0xff]  ;;  %v12388_v30 = vld [vmem:[#allocation8_spill] sm:$0xff] }
 0x23d   : > { %3280 = vmatpush1.bf16.msra.mxu1 %v2766_v40  ;;  %v2750_v57 = vpack.c.bf16 %v12372_v47, %v2558_v0  ;;  %v2467_v19 = vmax.f32 %v2132_v60, 0.0  ;;  %v8678_v13 = vpack.c.bf16 %v2482_v54, %v2466_v5  ;;  %v2483_v41 = vmax.f32 %v2136_v7, 0.0  ;;  %v2026_v49 = vpop.f32.mrf.mxu0  ;;  %3028 = vmatprep.mubr.bf16.mxu0 %v12341_v29  ;;  %12374 = vst [vmem:[#allocation39_spill] sm:$0xff] %v8684_v44  ;;  %v12383_v60 = vld [vmem:[#allocation19_spill] sm:$0xff]  ;;  %v12390_v5 = vld [vmem:[#allocation17_spill] sm:$0xff] }
 0x23e   : > { %3168 = vmatprep.subr.bf16.mxu0 %v2749_v63  ;;  %3281 = vmatprep.subr.bf16.mxu1 %v2751_v24  ;;  %v2465_v58 = vmax.f32 %v2019_v46, 0.0  ;;  %v8686_v16 = vpack.c.bf16 %v2480_v15, %v2464_v62  ;;  %v2481_v34 = vmax.f32 %v2023_v4, 0.0  ;;  %v8688_v55 = vpop.f32.mrf.mxu1  ;;  %v12376_v10 = vmax.f32 %v8463_v3, 0.0 }
 0x23f   : > { %12373 = vst [vmem:[#allocation38_spill] sm:$0xff] %v8678_v13  ;;  %v12377_v39 = vmax.f32 %v8502_v8, 0.0  ;;  %v2524_v53 = vmax.f32 %v8506_v43, 0.0  ;;  %v2526_v28 = vmax.f32 %v8499_v36, 0.0  ;;  %v2140_v56 = vadd.f32 %v2139_v18, %v8018_v61  ;;  %v8697_v42 = vpop.f32.mrf.mxu0  ;;  %v12380_v36 = vld [vmem:[#allocation13_spill] sm:$0xff] }
 0x240   : > { %12375 = vst [vmem:[#allocation40_spill] sm:$0xff] %v8686_v16  ;;  %3169 = vmatpush1.bf16.msra.mxu0 %v2748_v22  ;;  %v8699_v20 = vpack.c.bf16 %v2483_v41, %v2467_v19  ;;  %v2493_v45 = vmax.f32 %v8479_v33, 0.0  ;;  %v2495_v24 = vmax.f32 %v8483_v50, 0.0  ;;  %v2027_v3 = vadd.f32 %v2026_v49, %v8018_v61  ;;  %v2143_v8 = vpop.f32.mrf.mxu1  ;;  %v12385_v33 = vld [vmem:[#allocation23_spill] sm:$0xff]  ;;  %v8732_v19 = vld [vmem:[%s11874_s3 + $0x38] sm:$0xff]  }
 0x241   : > { %v2733_v37 = vpack.c.bf16 %v12377_v39, %v12376_v10  ;;  %3282 = vmatpush1.bf16.msra.mxu1 %v2750_v57  ;;  %v8705_v43 = vpack.c.bf16 %v2481_v34, %v2465_v58  ;;  %v2508_v26 = vmax.f32 %v12380_v36, 0.0  ;;  %v12382_v12 = vmax.f32 %v12381_v31, 0.0  ;;  %v2030_v0 = vpop.f32.mrf.mxu0  ;;  %12392 = vst [vmem:[#allocation15_spill] sm:$0xff] %v8732_v19  ;;  %v12394_v34 = vld [vmem:[#allocation29_spill] sm:$0xff]  ;;  %v12396_v39 = vld [vmem:[#allocation36_spill] sm:$0xff] }
 0x242   : > { %12378 = vst [vmem:[#allocation41_spill] sm:$0xff] %v8699_v20  ;;  %3283 = vmatprep.subr.bf16.mxu1 %v8558_v25  ;;  %v12384_v23 = vmax.f32 %v12383_v60, 0.0  ;;  %v2144_v46 = vadd.f32 %v2143_v8, %v12385_v33  ;;  %v2031_v50 = vadd.f32 %v2030_v0, %v12385_v33  ;;  %v2145_v25 = vpop.f32.mrf.mxu1  ;;  %v12387_v1 = vmax.f32 %v12386_v2, 0.0  ;;  %v12395_v10 = vld [vmem:[#allocation25_spill] sm:$0xff]  ;;  %v12400_v8 = vld [vmem:[#allocation32_spill] sm:$0xff]  ;;  %v12402_v60 = vld [vmem:[#allocation30_spill] sm:$0xff] }
 0x243   : > { %3170 = vmatprep.subr.bf16.mxu0 %v2733_v37  ;;  %12379 = vst [vmem:[#allocation42_spill] sm:$0xff] %v8705_v43  ;;  %v2732_v40 = vpack.c.bf16 %v12382_v12, %v2524_v53  ;;  %3142 = vmatmul.mubr.bf16.gmra.mxu1 %v8684_v44  ;;  %v12389_v63 = vmax.f32 %v12388_v30, 0.0  ;;  %v2492_v54 = vmax.f32 %v12390_v5, 0.0  ;;  %v2498_v48 = vmax.f32 %v2140_v56, 0.0  ;;  %v2032_v47 = vpop.f32.mrf.mxu0  ;;  %v12403_v0 = vld [vmem:[#allocation21_spill] sm:$0xff] }
 0x244   : > { %v2734_v35 = vpack.c.bf16 %v12384_v23, %v2526_v28  ;;  %3029 = vmatmul.mubr.bf16.gmra.mxu0 %v8684_v44  ;;  %v2717_v51 = vpack.c.bf16 %v12387_v1, %v2493_v45  ;;  %3151 = vmatprep.mubr.bf16.mxu1 %v12341_v29  ;;  %v2514_v7 = vmax.f32 %v2144_v46, 0.0  ;;  %v2496_v57 = vmax.f32 %v2027_v3, 0.0  ;;  %v8722_v15 = vpop.f32.mrf.mxu1  ;;  %v12397_v45 = vld [vmem:[#allocation35_spill] sm:$0xff]  ;;  %v12399_v3 = vld [vmem:[#allocation33_spill] sm:$0xff] }
 0x245   : > { %v2719_v6 = vpack.c.bf16 %v12389_v63, %v2495_v24  ;;  %3171 = vmatpush1.bf16.msra.mxu0 %v2732_v40  ;;  %v2512_v62 = vmax.f32 %v2031_v50, 0.0  ;;  %v2716_v4 = vpack.c.bf16 %v2508_v26, %v2492_v54  ;;  %v8726_v22 = vpop.f32.mrf.mxu0  ;;  %3038 = vmatprep.mubr.bf16.mxu0 %v12341_v29  ;;  %v12398_v24 = vld [vmem:[#allocation34_spill] sm:$0xff]  ;;  %v12401_v40 = vld [vmem:[#allocation31_spill] sm:$0xff]  ;;  %v8762_v5 = vadd.f32 %v2145_v25, %v12385_v33 }
 0x246   : > { %3284 = vmatpush1.bf16.msra.mxu1 %v2734_v35  ;;  %3172 = vmatprep.subr.bf16.mxu0 %v2717_v51  ;;  %v8724_v18 = vpack.c.bf16 %v2514_v7, %v2498_v48  ;;  %v2151_v49 = vpop.f32.mrf.mxu1  ;;  %v12405_v54 = vld [vmem:[#allocation7_spill] sm:$0xff]  ;;  %v8767_v7 = vadd.f32 %v2032_v47, %v12385_v33 }
 0x247   : > { %3285 = vmatprep.subr.bf16.mxu1 %v2719_v6  ;;  %v8734_v41 = vpack.c.bf16 %v2512_v62, %v2496_v57  ;;  %v2038_v58 = vpop.f32.mrf.mxu0  ;;  %12404 = vst [vmem:[#allocation22_spill] sm:$0xff] %v8762_v5  ;;  %v12407_v57 = vld [vmem:[#allocation20_spill] sm:$0xff] }
 0x248   : > { %12391 = vst [vmem:[#allocation13_spill] sm:$0xff] %v8724_v18  ;;  %v2153_v37 = vpop.f32.mrf.mxu1  ;;  %12406 = vst [vmem:[#allocation8_spill] sm:$0xff] %v8767_v7  ;;  %v12422_v18 = vld [vmem:[#allocation28_spill] sm:$0xff] }
 0x249   : > { %12393 = vst [vmem:[#allocation19_spill] sm:$0xff] %v8734_v41  ;;  %3173 = vmatpush1.bf16.msra.mxu0 %v2716_v4  ;;  %v2040_v53 = vpop.f32.mrf.mxu0 }
 0x24a   : > { %3286 = vmatpush1.bf16.msra.mxu1 %v12394_v34  ;;  %3174 = vmatprep.subr.bf16.mxu0 %v12395_v10  ;;  %v2155_v28 = vpop.f32.mrf.mxu1  ;;  %v12408_v34 = vld [vmem:[#allocation3_spill] sm:$0xff] }
 0x24b   : > { %3287 = vmatprep.subr.bf16.mxu1 %v12396_v39  ;;  %3152 = vmatmul.mubr.bf16.gmra.mxu1 %v8732_v19  ;;  %v2042_v56 = vpop.f32.mrf.mxu0  ;;  %v2156_v62 = vadd.f32 %v2155_v28, %v12407_v57  ;;  %v8773_v10 = vadd.f32 %v2038_v58, %v12408_v34  ;;  %v2152_v25 = vadd.f32 %v2151_v49, %v12408_v34 }
 0x24c   : > { %3039 = vmatmul.mubr.bf16.gmra.mxu0 %v8732_v19  ;;  %3307 = vmatprep.mubr.bf16.mxu1 %v12341_v29  ;;  %v2159_v36 = vpop.f32.mrf.mxu1  ;;  %v8784_v28 = vadd.f32 %v8697_v42, %v8018_v61  ;;  %v8792_v49 = vadd.f32 %v2042_v56, %v12407_v57 }
 0x24d   : > { %3175 = vmatpush1.bf16.msra.mxu0 %v12397_v45  ;;  %v2046_v26 = vpop.f32.mrf.mxu0  ;;  %3194 = vmatprep.mubr.bf16.mxu0 %v12341_v29  ;;  %v8777_v45 = vadd.f32 %v2040_v53, %v12407_v57  ;;  %v2531_v56 = vmax.f32 %v2152_v25, 0.0 }
 0x24e   : > { %3288 = vmatpush1.bf16.msra.mxu1 %v12398_v24  ;;  %3176 = vmatprep.subr.bf16.mxu0 %v12399_v3  ;;  %v2161_v31 = vpop.f32.mrf.mxu1  ;;  %v8780_v24 = vadd.f32 %v2153_v37, %v12407_v57  ;;  %12411 = vst [vmem:[#allocation25_spill] sm:$0xff] %v8784_v28  ;;  %v8788_v3 = vadd.f32 %v8688_v55, %v8018_v61  ;;  %v12413_v57 = vld [vmem:[#allocation27_spill] sm:$0xff] }
 0x24f   : > { %3289 = vmatprep.subr.bf16.mxu1 %v12400_v8  ;;  %v2048_v12 = vpop.f32.mrf.mxu0  ;;  %12409 = vst [vmem:[#allocation17_spill] sm:$0xff] %v8777_v45  ;;  %v8797_v37 = vadd.f32 %v8722_v15, %v12408_v34  ;;  %v8804_v55 = vadd.f32 %v8726_v22, %v12408_v34  ;;  %v12414_v34 = vld [vmem:[#allocation6_spill] sm:$0xff] }
 0x250   : > { %v8749_v23 = vpop.f32.mrf.mxu1  ;;  %12410 = vst [vmem:[#allocation29_spill] sm:$0xff] %v8780_v24 }
 0x251   : > { %3177 = vmatpush1.bf16.msra.mxu0 %v12401_v40  ;;  %v8751_v35 = vpop.f32.mrf.mxu0  ;;  %v2547_v40 = vmax.f32 %v2156_v62, 0.0  ;;  %v12416_v62 = vld [vmem:[#allocation12_spill] sm:$0xff] }
 0x252   : > { %3290 = vmatpush1.bf16.msra.mxu1 %v12402_v60  ;;  %v2165_v46 = vpop.f32.mrf.mxu1  ;;  %v12412_v60 = vld [vmem:[#allocation10_spill] sm:$0xff] }
 0x253   : > { %v2052_v50 = vpop.f32.mrf.mxu0  ;;  %v8800_v42 = vadd.f32 %v2159_v36, %v12412_v60  ;;  %v8808_v58 = vadd.f32 %v2161_v31, %v12412_v60  ;;  %v8815_v36 = vadd.f32 %v2048_v12, %v12412_v60  ;;  %v8818_v21 = vadd.f32 %v2165_v46, %v12413_v57 }
 0x254   : > { %3195 = vmatmul.mubr.bf16.vlgmr.msra.gmra.mxu0 %v12403_v0  ;;  %v8757_v2 = vpop.f32.mrf.mxu1  ;;  %v8824_v25 = vadd.f32 %v2046_v26, %v12412_v60  ;;  %v8827_v31 = vadd.f32 %v2052_v50, %v12413_v57  ;;  %v8839_v26 = vpack.c.bf16 %v2547_v40, %v2531_v56  ;;  %v8854_v60 = vadd.f32 %v8751_v35, %v12413_v57 }
 0x255   : > { %3308 = vmatmul.mubr.bf16.vlgmr.msra.gmra.mxu1 %v12403_v0  ;;  %3204 = vmatprep.mubr.bf16.mxu0 %v12341_v29  ;;  %v8759_v1 = vpop.f32.mrf.mxu0  ;;  %v8858_v40 = vadd.f32 %v8749_v23, %v12413_v57  ;;  %v12420_v23 = vld [vmem:[#allocation24_spill] sm:$0xff] }
 0x256   : > { %3317 = vmatprep.mubr.bf16.mxu1 %v12341_v29  ;;  %v2171_v51 = vpop.f32.mrf.mxu1  ;;  %12417 = vst [vmem:[#allocation36_spill] sm:$0xff] %v8839_v26  ;;  %v8871_v35 = vadd.f32 %v8759_v1, %v12416_v62  ;;  %v12419_v1 = vld [vmem:[#allocation14_spill] sm:$0xff] }
 0x257   : > { %v2058_v30 = vpop.f32.mrf.mxu0 }
 0x258   : > { %v2173_v63 = vpop.f32.mrf.mxu1  ;;  %v8834_v9 = vadd.f32 %v2058_v30, %v12416_v62 }
 0x259   : > { %v2060_v6 = vpop.f32.mrf.mxu0 }
 0x25a   : > { %v2175_v48 = vpop.f32.mrf.mxu1 }
 0x25b   : > { %v2062_v4 = vpop.f32.mrf.mxu0  ;;  %v2176_v15 = vadd.f32 %v2175_v48, %v12414_v34  ;;  %v8843_v48 = vadd.f32 %v2060_v6, %v12414_v34 }
 0x25c   : > { %3205 = vmatmul.mubr.bf16.gmra.mxu0 %v12405_v54  ;;  %v2179_v39 = vpop.f32.mrf.mxu1  ;;  %v8849_v30 = vadd.f32 %v2062_v4, %v12414_v34  ;;  %v8864_v4 = vadd.f32 %v8757_v2, %v12416_v62 }
 0x25d   : > { %3318 = vmatmul.mubr.bf16.gmra.mxu1 %v12405_v54  ;;  %3214 = vmatprep.mubr.bf16.mxu0 %v12341_v29  ;;  %v2066_v47 = vpop.f32.mrf.mxu0  ;;  %v2172_v54 = vadd.f32 %v2171_v51, %v12416_v62  ;;  %v2611_v50 = vmax.f32 %v2176_v15, 0.0 }
 0x25e   : > { %3327 = vmatprep.mubr.bf16.mxu1 %v12341_v29  ;;  %v2181_v8 = vpop.f32.mrf.mxu1 }
 0x25f   : > { %v2068_v0 = vpop.f32.mrf.mxu0  ;;  %v2595_v57 = vmax.f32 %v2172_v54, 0.0 }
 0x260   : > { %v8810_v53 = vpop.f32.mrf.mxu1 }
 0x261   : > { %v8820_v22 = vpop.f32.mrf.mxu0 }
 0x262   : > { %v2185_v12 = vpop.f32.mrf.mxu1 }
 0x263   : > { %v2072_v27 = vpop.f32.mrf.mxu0  ;;  %v2186_v62 = vadd.f32 %v2185_v12, %v12419_v1 }
 0x264   : > { %3215 = vmatmul.mubr.bf16.gmra.mxu0 %v12415_v32  ;;  %v2189_v46 = vpop.f32.mrf.mxu1  ;;  %v2073_v12 = vadd.f32 %v2072_v27, %v12419_v1 }
 0x265   : > { %3328 = vmatmul.mubr.bf16.gmra.mxu1 %v12415_v32  ;;  %3224 = vmatprep.mubr.bf16.mxu0 %v12341_v29  ;;  %v8846_v32 = vadd.f32 %v2173_v63, %v12414_v34  ;;  %v2076_v56 = vpop.f32.mrf.mxu0  ;;  %v12418_v34 = vld [vmem:[#allocation26_spill] sm:$0xff]  ;;  %v2643_v27 = vmax.f32 %v2186_v62, 0.0 }
 0x266   : > { %3337 = vmatprep.mubr.bf16.mxu1 %v12341_v29  ;;  %v8867_v51 = vadd.f32 %v2179_v39, %v12418_v34  ;;  %v2191_v16 = vpop.f32.mrf.mxu1  ;;  %v2182_v6 = vadd.f32 %v2181_v8, %v12418_v34  ;;  %v8879_v39 = vadd.f32 %v2068_v0, %v12418_v34  ;;  %v8882_v43 = vadd.f32 %v2066_v47, %v12418_v34  ;;  %v12421_v8 = vld [vmem:[#allocation11_spill] sm:$0xff] }
 0x267   : > { %v2078_v13 = vpop.f32.mrf.mxu0  ;;  %v2192_v54 = vadd.f32 %v2191_v16, %v12420_v23  ;;  %v8892_v47 = vpack.c.bf16 %v2611_v50, %v2595_v57  ;;  %v2190_v16 = vadd.f32 %v2189_v46, %v12420_v23  ;;  %v2641_v24 = vmax.f32 %v2073_v12, 0.0 }
 0x268   : > { %v2193_v19 = vpop.f32.mrf.mxu1  ;;  %v2079_v2 = vadd.f32 %v2078_v13, %v12420_v23  ;;  %v2627_v34 = vmax.f32 %v2182_v6, 0.0  ;;  %v2625_v13 = vmax.f32 %v8879_v39, 0.0 }
 0x269   : > { %v2080_v20 = vpop.f32.mrf.mxu0  ;;  %v2194_v41 = vadd.f32 %v2193_v19, %v12421_v8  ;;  %v2659_v6 = vmax.f32 %v2192_v54, 0.0  ;;  %v2658_v28 = vmax.f32 %v2190_v16, 0.0 }
 0x26a   : > { %v2081_v15 = vadd.f32 %v2080_v20, %v12421_v8  ;;  %v2195_v0 = vpop.f32.mrf.mxu1  ;;  %v2184_v20 = vadd.f32 %v8810_v53, %v12419_v1  ;;  %v2657_v44 = vmax.f32 %v2079_v2, 0.0 }
 0x26b   : > { %v2082_v7 = vpop.f32.mrf.mxu0  ;;  %v2196_v19 = vadd.f32 %v2195_v0, %v12421_v8  ;;  %v2674_v46 = vmax.f32 %v2194_v41, 0.0  ;;  %v2071_v0 = vadd.f32 %v8820_v22, %v12419_v1 }
 0x26c   : > { %3225 = vmatmul.mubr.bf16.gmra.mxu0 %v12422_v18  ;;  %v2083_v57 = vadd.f32 %v2082_v7, %v12421_v8  ;;  %v2345_v50 = vpop.f32.mrf.mxu1  ;;  %v2672_v45 = vmax.f32 %v2081_v15, 0.0  ;;  %v2642_v7 = vmax.f32 %v2184_v20, 0.0  ;;  %v2787_v15 = vpack.c.bf16 %v2643_v27, %v2627_v34 }
 0x26d   : > { %3338 = vmatmul.mubr.bf16.gmra.mxu1 %v12422_v18  ;;  %3234 = vmatprep.mubr.bf16.mxu0 %v12341_v29  ;;  %v2077_v18 = vadd.f32 %v2076_v56, %v12420_v23  ;;  %v2675_v63 = vmax.f32 %v2196_v19, 0.0  ;;  %v2232_v5 = vpop.f32.mrf.mxu0  ;;  %v2346_v53 = vadd.f32 %v2345_v50, %v8030_v52  ;;  %v2802_v19 = vpack.c.bf16 %v2674_v46, %v2658_v28 }
 0x26e   : > { %3347 = vmatprep.mubr.bf16.mxu1 %v12341_v29  ;;  %v2673_v33 = vmax.f32 %v2083_v57, 0.0  ;;  %v2347_v39 = vpop.f32.mrf.mxu1  ;;  %v2233_v62 = vadd.f32 %v2232_v5, %v8030_v52  ;;  %v2640_v12 = vmax.f32 %v2071_v0, 0.0  ;;  %v2624_v34 = vmax.f32 %v8882_v43, 0.0 }
 0x26f   : > { %v2234_v56 = vpop.f32.mrf.mxu0  ;;  %v2803_v23 = vpack.c.bf16 %v2675_v63, %v2659_v6  ;;  %v2656_v8 = vmax.f32 %v2077_v18, 0.0  ;;  %v2348_v26 = vadd.f32 %v2347_v39, %v8030_v52 }
 0x270   : > { %v2349_v41 = vpop.f32.mrf.mxu1  ;;  %v2801_v54 = vpack.c.bf16 %v2673_v33, %v2657_v44  ;;  %v2235_v57 = vadd.f32 %v2234_v56, %v8030_v52  ;;  %v2438_v44 = vmax.f32 %v2346_v53, 0.0  ;;  %v2594_v53 = vmax.f32 %v8864_v4, 0.0 }
 0x271   : > { %v2236_v22 = vpop.f32.mrf.mxu0  ;;  %v2350_v2 = vadd.f32 %v2349_v41, %v8034_v14  ;;  %3501 = vmatprep.subr.bf16.mxu1 %v2803_v23  ;;  %v2800_v16 = vpack.c.bf16 %v2672_v45, %v2656_v8  ;;  %v2785_v23 = vpack.c.bf16 %v2641_v24, %v2625_v13  ;;  %v2436_v45 = vmax.f32 %v2233_v62, 0.0 }
 0x272   : > { %v2237_v63 = vadd.f32 %v2236_v22, %v8034_v14  ;;  %v2351_v5 = vpop.f32.mrf.mxu1  ;;  %3388 = vmatprep.subr.bf16.mxu0 %v2801_v54  ;;  %3502 = vmatpush1.bf16.msra.mxu1 %v2802_v19  ;;  %v2439_v27 = vmax.f32 %v2348_v26, 0.0  ;;  %v2784_v24 = vpack.c.bf16 %v2640_v12, %v2624_v34  ;;  %v2437_v43 = vmax.f32 %v2235_v57, 0.0 }
 0x273   : > { %v2454_v33 = vmax.f32 %v2350_v2, 0.0  ;;  %v2238_v28 = vpop.f32.mrf.mxu0  ;;  %v2352_v20 = vadd.f32 %v2351_v5, %v8034_v14  ;;  %3389 = vmatpush1.bf16.msra.mxu0 %v2800_v16  ;;  %3503 = vmatprep.subr.bf16.mxu1 %v2787_v15  ;;  %v12426_v56 = vmax.f32 %v8834_v9, 0.0  ;;  %v2578_v54 = vmax.f32 %v8858_v40, 0.0 }
 0x274   : > { %3235 = vmatmul.mubr.bf16.gmra.mxu0 %v8614_v11  ;;  %v2452_v8 = vmax.f32 %v2237_v63, 0.0  ;;  %v2239_v52 = vadd.f32 %v2238_v28, %v8034_v14  ;;  %v2355_v18 = vpop.f32.mrf.mxu1  ;;  %3390 = vmatprep.subr.bf16.mxu0 %v2785_v23  ;;  %v2592_v19 = vmax.f32 %v8871_v35, 0.0  ;;  %v12430_v15 = vmax.f32 %v8846_v32, 0.0 }
 0x275   : > { %3348 = vmatmul.mubr.bf16.gmra.mxu1 %v8614_v11  ;;  %v12423_v11 = vmax.f32 %v8867_v51, 0.0  ;;  %v8919_v6 = vpack.c.bf16 %v2454_v33, %v2438_v44  ;;  %v2455_v46 = vmax.f32 %v2352_v20, 0.0  ;;  %v2242_v0 = vpop.f32.mrf.mxu0  ;;  %3244 = vmatprep.mubr.bf16.mxu0 %v12341_v29  ;;  %v2356_v51 = vadd.f32 %v2355_v18, %v8024_v38 }
 0x276   : > { %v8922_v13 = vpack.c.bf16 %v2452_v8, %v2436_v45  ;;  %v2453_v39 = vmax.f32 %v2239_v52, 0.0  ;;  %v2357_v14 = vpop.f32.mrf.mxu1  ;;  %3357 = vmatprep.mubr.bf16.mxu1 %v12341_v29  ;;  %v2243_v22 = vadd.f32 %v2242_v0, %v8024_v38  ;;  %v2770_v9 = vpack.c.bf16 %v12430_v15, %v2594_v53 }
 0x277   : > { %v2786_v50 = vpack.c.bf16 %v2642_v7, %v12423_v11  ;;  %12424 = vst [vmem:[#allocation35_spill] sm:$0xff] %v8919_v6  ;;  %v2244_v26 = vpop.f32.mrf.mxu0  ;;  %v12427_v7 = vmax.f32 %v8849_v30, 0.0  ;;  %v8931_v41 = vpack.c.bf16 %v2455_v46, %v2439_v27  ;;  %3391 = vmatpush1.bf16.msra.mxu0 %v2784_v24  ;;  %v2358_v30 = vadd.f32 %v2357_v14, %v8024_v38 }
 0x278   : > { %12425 = vst [vmem:[#allocation34_spill] sm:$0xff] %v8922_v13  ;;  %v2359_v4 = vpop.f32.mrf.mxu1  ;;  %v8937_v2 = vpack.c.bf16 %v2453_v39, %v2437_v43  ;;  %v12431_v40 = vmax.f32 %v8808_v58, 0.0  ;;  %v12432_v35 = vmax.f32 %v8818_v21, 0.0  ;;  %v2576_v63 = vmax.f32 %v8854_v60, 0.0 }
 0x279   : > { %3504 = vmatpush1.bf16.msra.mxu1 %v2786_v50  ;;  %v2769_v62 = vpack.c.bf16 %v12427_v7, %v12426_v56  ;;  %12428 = vst [vmem:[#allocation33_spill] sm:$0xff] %v8931_v41  ;;  %v2246_v12 = vpop.f32.mrf.mxu0  ;;  %v2360_v16 = vadd.f32 %v2359_v4, %v8028_v59  ;;  %v2245_v44 = vadd.f32 %v2244_v26, %v8024_v38  ;;  %v2470_v28 = vmax.f32 %v2356_v51, 0.0 }
 0x27a   : > { %3505 = vmatprep.subr.bf16.mxu1 %v8892_v47  ;;  %12429 = vst [vmem:[#allocation32_spill] sm:$0xff] %v8937_v2  ;;  %v2755_v57 = vpack.c.bf16 %v12432_v35, %v12431_v40  ;;  %v12433_v47 = vmax.f32 %v8843_v48, 0.0  ;;  %v2247_v32 = vadd.f32 %v2246_v12, %v8028_v59  ;;  %v2361_v33 = vpop.f32.mrf.mxu1  ;;  %v12434_v60 = vmax.f32 %v8815_v36, 0.0  ;;  %v12451_v40 = vld [vmem:[#allocation39_spill] sm:$0xff] }
 0x27b   : > { %3392 = vmatprep.subr.bf16.mxu0 %v2769_v62  ;;  %v2486_v20 = vmax.f32 %v2360_v16, 0.0  ;;  %v2248_v58 = vpop.f32.mrf.mxu0  ;;  %v2362_v21 = vadd.f32 %v2361_v33, %v8028_v59  ;;  %v12435_v48 = vmax.f32 %v8827_v31, 0.0  ;;  %v2560_v38 = vmax.f32 %v8824_v25, 0.0  ;;  %v12454_v33 = vld [vmem:[#allocation8_spill] sm:$0xff] }
 0x27c   : > { %v2768_v5 = vpack.c.bf16 %v12433_v47, %v2592_v19  ;;  %3245 = vmatmul.mubr.bf16.gmra.mxu0 %v8635_v17  ;;  %v2468_v34 = vmax.f32 %v2243_v22, 0.0  ;;  %v2484_v45 = vmax.f32 %v2247_v32, 0.0  ;;  %v2365_v8 = vpop.f32.mrf.mxu1  ;;  %v12436_v52 = vmax.f32 %v8800_v42, 0.0  ;;  %v12445_v19 = vld [vmem:[#allocation25_spill] sm:$0xff] }
 0x27d   : > { %3358 = vmatmul.mubr.bf16.gmra.mxu1 %v8635_v17  ;;  %v2753_v23 = vpack.c.bf16 %v12435_v48, %v12434_v60  ;;  %3254 = vmatprep.mubr.bf16.mxu0 %v12341_v29  ;;  %v2249_v17 = vadd.f32 %v2248_v58, %v8028_v59  ;;  %v2471_v11 = vmax.f32 %v2358_v30, 0.0  ;;  %v8964_v50 = vpack.c.bf16 %v2486_v20, %v2470_v28  ;;  %v2252_v31 = vpop.f32.mrf.mxu0 }
 0x27e   : > { %3506 = vmatpush1.bf16.msra.mxu1 %v2770_v9  ;;  %3393 = vmatpush1.bf16.msra.mxu0 %v2768_v5  ;;  %v2754_v18 = vpack.c.bf16 %v2578_v54, %v12436_v52  ;;  %v2487_v36 = vmax.f32 %v2362_v21, 0.0  ;;  %v2752_v27 = vpack.c.bf16 %v2576_v63, %v2560_v38  ;;  %v2469_v25 = vmax.f32 %v2245_v44, 0.0  ;;  %v8969_v59 = vpop.f32.mrf.mxu1  ;;  %v12448_v9 = vld [vmem:[#allocation23_spill] sm:$0xff]  ;;  %v12460_v52 = vld [vmem:[#allocation41_spill] sm:$0xff] }
 0x27f   : > { %3507 = vmatprep.subr.bf16.mxu1 %v2755_v57  ;;  %12437 = vst [vmem:[#allocation31_spill] sm:$0xff] %v8964_v50  ;;  %3394 = vmatprep.subr.bf16.mxu0 %v2753_v23  ;;  %v8967_v46 = vpack.c.bf16 %v2484_v45, %v2468_v34  ;;  %v2485_v0 = vmax.f32 %v2249_v17, 0.0  ;;  %v2530_v24 = vmax.f32 %v8797_v37, 0.0  ;;  %v2366_v42 = vadd.f32 %v2365_v8, %v8018_v61  ;;  %v8973_v43 = vpop.f32.mrf.mxu0  ;;  %v12443_v37 = vld [vmem:[#allocation36_spill] sm:$0xff]  ;;  %v12452_v57 = vld [vmem:[#allocation22_spill] sm:$0xff]  ;;  %v12458_v17 = vld [vmem:[#allocation13_spill] sm:$0xff] }
 0x280   : > { %3367 = vmatprep.mubr.bf16.mxu1 %v12341_v29  ;;  %12439 = vst [vmem:[#allocation21_spill] sm:$0xff] %v8973_v43  ;;  %v12440_v39 = vmax.f32 %v8773_v10, 0.0  ;;  %v12441_v14 = vmax.f32 %v8792_v49, 0.0  ;;  %v8979_v51 = vpack.c.bf16 %v2487_v36, %v2471_v11  ;;  %v2499_v26 = vmax.f32 %v8788_v3, 0.0  ;;  %v2369_v62 = vpop.f32.mrf.mxu1  ;;  %v12446_v10 = vld [vmem:[#allocation29_spill] sm:$0xff]  ;;  %v12459_v8 = vld [vmem:[#allocation19_spill] sm:$0xff] }
 0x281   : > { %12438 = vst [vmem:[#allocation30_spill] sm:$0xff] %v8967_v46  ;;  %v2528_v56 = vmax.f32 %v8804_v55, 0.0  ;;  %v2253_v7 = vadd.f32 %v2252_v31, %v8018_v61  ;;  %v8985_v54 = vpack.c.bf16 %v2485_v0, %v2469_v25  ;;  %v2497_v22 = vmax.f32 %v12445_v19, 0.0  ;;  %v2256_v15 = vpop.f32.mrf.mxu0  ;;  %v12449_v3 = vld [vmem:[#allocation17_spill] sm:$0xff]  ;;  %v12461_v11 = vld [vmem:[#allocation42_spill] sm:$0xff]  ;;  %v12462_v31 = vld [vmem:[#allocation15_spill] sm:$0xff] }
 0x282   : > { %3508 = vmatpush1.bf16.msra.mxu1 %v2754_v18  ;;  %v2737_v53 = vpack.c.bf16 %v12441_v14, %v12440_v39  ;;  %12442 = vst [vmem:[#allocation7_spill] sm:$0xff] %v8979_v51  ;;  %3395 = vmatpush1.bf16.msra.mxu0 %v2752_v27  ;;  %v12447_v4 = vmax.f32 %v12446_v10, 0.0  ;;  %v2370_v30 = vadd.f32 %v2369_v62, %v12448_v9  ;;  %v12450_v12 = vmax.f32 %v12449_v3, 0.0  ;;  %v8996_v35 = vpop.f32.mrf.mxu1  ;;  %v12463_v0 = vld [vmem:[#allocation38_spill] sm:$0xff]  ;;  %v12466_v14 = vld [vmem:[#allocation37_spill] sm:$0xff]  ;;  %v12484_v46 = vld [vmem:[#allocation11_spill] sm:$0xff] }
 0x283   : > { %3509 = vmatprep.subr.bf16.mxu1 %v12443_v37  ;;  %12444 = vst [vmem:[#allocation18_spill] sm:$0xff] %v8985_v54  ;;  %v2257_v16 = vadd.f32 %v2256_v15, %v12448_v9  ;;  %v12453_v63 = vmax.f32 %v12452_v57, 0.0  ;;  %v2502_v5 = vmax.f32 %v2366_v42, 0.0  ;;  %v9000_v32 = vpop.f32.mrf.mxu0  ;;  %v12455_v28 = vmax.f32 %v12454_v33, 0.0  ;;  %v12465_v42 = vld [vmem:[#allocation16_spill] sm:$0xff]  ;;  %v12468_v37 = vld [vmem:[#allocation9_spill] sm:$0xff] }
 0x284   : > { %v2738_v49 = vpack.c.bf16 %v12447_v4, %v2530_v24  ;;  %3396 = vmatprep.subr.bf16.mxu0 %v2737_v53  ;;  %v2736_v55 = vpack.c.bf16 %v12450_v12, %v2528_v56  ;;  %3255 = vmatmul.mubr.bf16.gmra.mxu0 %v12451_v40  ;;  %v2518_v44 = vmax.f32 %v2370_v30, 0.0  ;;  %v2500_v58 = vmax.f32 %v2253_v7, 0.0  ;;  %v9005_v60 = vpop.f32.mrf.mxu1  ;;  %v12464_v24 = vld [vmem:[#allocation40_spill] sm:$0xff]  ;;  %v12486_v54 = vld [vmem:[#allocation26_spill] sm:$0xff] }
 0x285   : > { %3368 = vmatmul.mubr.bf16.gmra.mxu1 %v12451_v40  ;;  %v2723_v47 = vpack.c.bf16 %v12453_v63, %v2499_v26  ;;  %v2721_v20 = vpack.c.bf16 %v12455_v28, %v2497_v22  ;;  %3264 = vmatprep.mubr.bf16.mxu0 %v12341_v29  ;;  %v2516_v21 = vmax.f32 %v2257_v16, 0.0  ;;  %v9009_v23 = vpop.f32.mrf.mxu0  ;;  %v12467_v7 = vld [vmem:[#allocation4_spill] sm:$0xff]  ;;  %v9045_v22 = vld [vmem:[%s11874_s3] sm:$0xff]  }
 0x286   : > { %3510 = vmatpush1.bf16.msra.mxu1 %v2738_v49  ;;  %3397 = vmatpush1.bf16.msra.mxu0 %v2736_v55  ;;  %v9007_v48 = vpack.c.bf16 %v2518_v44, %v2502_v5  ;;  %v9014_v34 = vpop.f32.mrf.mxu1  ;;  %12469 = vst [vmem:[#allocation36_spill] sm:$0xff] %v9045_v22  ;;  %v9060_v16 = vld [vmem:[%s11874_s3 + $0x8] sm:$0xff]  }
 0x287   : > { %3511 = vmatprep.subr.bf16.mxu1 %v2723_v47  ;;  %3398 = vmatprep.subr.bf16.mxu0 %v2721_v20  ;;  %v9012_v38 = vpack.c.bf16 %v2516_v21, %v2500_v58  ;;  %v2264_v45 = vpop.f32.mrf.mxu0  ;;  %12470 = vst [vmem:[#allocation25_spill] sm:$0xff] %v9060_v16  ;;  %v9073_v20 = vld [vmem:[%s11874_s3 + $0x10] sm:$0xff]  }
 0x288   : > { %12456 = vst [vmem:[#allocation14_spill] sm:$0xff] %v9007_v48  ;;  %3377 = vmatprep.mubr.bf16.mxu1 %v12341_v29  ;;  %v9019_v18 = vpop.f32.mrf.mxu1  ;;  %12471 = vst [vmem:[#allocation29_spill] sm:$0xff] %v9073_v20 }
 0x289   : > { %12457 = vst [vmem:[#allocation28_spill] sm:$0xff] %v9012_v38  ;;  %v9022_v36 = vpop.f32.mrf.mxu0 }
 0x28a   : > { %3512 = vmatpush1.bf16.msra.mxu1 %v12458_v17  ;;  %3399 = vmatpush1.bf16.msra.mxu0 %v12459_v8  ;;  %v2381_v27 = vpop.f32.mrf.mxu1  ;;  %v9081_v8 = vadd.f32 %v8996_v35, %v12448_v9  ;;  %v12478_v35 = vld [vmem:[#allocation10_spill] sm:$0xff] }
 0x28b   : > { %3513 = vmatprep.subr.bf16.mxu1 %v12460_v52  ;;  %3400 = vmatprep.subr.bf16.mxu0 %v12461_v11  ;;  %v2268_v25 = vpop.f32.mrf.mxu0  ;;  %v9085_v11 = vadd.f32 %v9000_v32, %v12448_v9  ;;  %v12479_v32 = vld [vmem:[#allocation27_spill] sm:$0xff] }
 0x28c   : > { %3265 = vmatmul.mubr.bf16.gmra.mxu0 %v12462_v31  ;;  %v9030_v39 = vpop.f32.mrf.mxu1  ;;  %12472 = vst [vmem:[#allocation23_spill] sm:$0xff] %v9081_v8 }
 0x28d   : > { %3378 = vmatmul.mubr.bf16.gmra.mxu1 %v12462_v31  ;;  %3420 = vmatprep.mubr.bf16.mxu0 %v12341_v29  ;;  %v9033_v53 = vpop.f32.mrf.mxu0  ;;  %12473 = vst [vmem:[#allocation17_spill] sm:$0xff] %v9085_v11  ;;  %v12474_v31 = vld [vmem:[#allocation3_spill] sm:$0xff] }
 0x28e   : > { %3514 = vmatpush1.bf16.msra.mxu1 %v12463_v0  ;;  %3401 = vmatpush1.bf16.msra.mxu0 %v12464_v24  ;;  %v2387_v26 = vpop.f32.mrf.mxu1  ;;  %v9088_v0 = vadd.f32 %v2264_v45, %v12474_v31  ;;  %v9092_v24 = vadd.f32 %v9014_v34, %v12474_v31 }
 0x28f   : > { %3515 = vmatprep.subr.bf16.mxu1 %v12465_v42  ;;  %3402 = vmatprep.subr.bf16.mxu0 %v12466_v14  ;;  %v2274_v56 = vpop.f32.mrf.mxu0  ;;  %v12477_v42 = vld [vmem:[#allocation20_spill] sm:$0xff]  ;;  %v9104_v9 = vadd.f32 %v2387_v26, %v12478_v35 }
 0x290   : > { %3533 = vmatprep.mubr.bf16.mxu1 %v12341_v29  ;;  %v9038_v62 = vpop.f32.mrf.mxu1  ;;  %12475 = vst [vmem:[#allocation39_spill] sm:$0xff] %v9088_v0  ;;  %12476 = vst [vmem:[#allocation22_spill] sm:$0xff] %v9092_v24  ;;  %v9095_v14 = vadd.f32 %v2381_v27, %v12477_v42  ;;  %v12481_v27 = vld [vmem:[#allocation12_spill] sm:$0xff] }
 0x291   : > { %v9040_v19 = vpop.f32.mrf.mxu0 }
 0x292   : > { %3516 = vmatpush1.bf16.msra.mxu1 %v12467_v7  ;;  %3403 = vmatpush1.bf16.msra.mxu0 %v12468_v37  ;;  %v2391_v10 = vpop.f32.mrf.mxu1  ;;  %v9098_v37 = vadd.f32 %v2268_v25, %v12477_v42 }
 0x293   : > { %v2278_v4 = vpop.f32.mrf.mxu0  ;;  %v9107_v45 = vadd.f32 %v2391_v10, %v12479_v32 }
 0x294   : > { %v9050_v49 = vpop.f32.mrf.mxu1  ;;  %v9112_v34 = vadd.f32 %v2278_v4, %v12479_v32 }
 0x295   : > { %3534 = vmatmul.mubr.bf16.vlgmr.msra.gmra.mxu1 %v9045_v22  ;;  %3421 = vmatmul.mubr.bf16.vlgmr.msra.gmra.mxu0 %v9045_v22  ;;  %v9053_v15 = vpop.f32.mrf.mxu0  ;;  %v9109_v22 = vpop.permute.xlu1 %2885 }
 0x296   : > { %3543 = vmatprep.mubr.bf16.mxu1 %v12341_v29  ;;  %3430 = vmatprep.mubr.bf16.mxu0 %v12341_v29  ;;  %v2397_v30 = vpop.f32.mrf.mxu1  ;;  %12480 = vst [vmem:[#allocation8_spill] sm:$0xff] %v9109_v22  ;;  %v12483_v22 = vld [vmem:[#allocation24_spill] sm:$0xff] }
 0x297   : > { %v2284_v3 = vpop.f32.mrf.mxu0  ;;  %v9118_v25 = vadd.f32 %v2397_v30, %v12481_v27 }
 0x298   : > { %v2399_v12 = vpop.f32.mrf.mxu1  ;;  %v9115_v13 = vadd.f32 %v2284_v3, %v12481_v27  ;;  %v9131_v3 = vpop.permute.xlu0 %2881 }
 0x299   : > { %v9055_v55 = vpop.f32.mrf.mxu0  ;;  %12485 = vst [vmem:[#allocation13_spill] sm:$0xff] %v9131_v3  ;;  %v9154_v8 = vpop.permute.xlu1 %2873 }
 0x29a   : > { %v2401_v40 = vpop.f32.mrf.mxu1  ;;  %12488 = vst [vmem:[#allocation41_spill] sm:$0xff] %v9154_v8 }
 0x29b   : > { %v2288_v57 = vpop.f32.mrf.mxu0 }
 0x29c   : > { %v9065_v63 = vpop.f32.mrf.mxu1 }
 0x29d   : > { %3544 = vmatmul.mubr.bf16.gmra.mxu1 %v9060_v16  ;;  %3431 = vmatmul.mubr.bf16.gmra.mxu0 %v9060_v16  ;;  %v9068_v47 = vpop.f32.mrf.mxu0 }
 0x29e   : > { %3553 = vmatprep.mubr.bf16.mxu1 %v12341_v29  ;;  %3440 = vmatprep.mubr.bf16.mxu0 %v12341_v29  ;;  %v2407_v5 = vpop.f32.mrf.mxu1 }
 0x29f   : > { %v2294_v44 = vpop.f32.mrf.mxu0  ;;  %v2408_v30 = vadd.f32 %v2407_v5, %v12486_v54 }
 0x2a0   : > { %v2409_v33 = vpop.f32.mrf.mxu1 }
 0x2a1   : > { %v2296_v28 = vpop.f32.mrf.mxu0 }
 0x2a2   : > { %v2411_v58 = vpop.f32.mrf.mxu1 }
 0x2a3   : > { %v2298_v21 = vpop.f32.mrf.mxu0  ;;  %v2412_v51 = vadd.f32 %v2411_v58, %v12419_v1 }
 0x2a4   : > { %v2415_v17 = vpop.f32.mrf.mxu1 }
 0x2a5   : > { %3554 = vmatmul.mubr.bf16.gmra.mxu1 %v9073_v20  ;;  %3441 = vmatmul.mubr.bf16.gmra.mxu0 %v9073_v20  ;;  %v2302_v52 = vpop.f32.mrf.mxu0  ;;  %v9101_v20 = vadd.f32 %v2274_v56, %v12478_v35  ;;  %v12482_v56 = vld [vmem:[#allocation6_spill] sm:$0xff] }
 0x2a6   : > { %3563 = vmatprep.mubr.bf16.mxu1 %v12341_v29  ;;  %3450 = vmatprep.mubr.bf16.mxu0 %v12341_v29  ;;  %v2417_v7 = vpop.f32.mrf.mxu1  ;;  %v9121_v6 = vadd.f32 %v2399_v12, %v12482_v56  ;;  %v9124_v2 = vadd.f32 %v2288_v57, %v12482_v56  ;;  %v9127_v10 = vadd.f32 %v2401_v40, %v12482_v56  ;;  %v9140_v40 = vld [vmem:[%s11874_s3 + $0x18] sm:$0xff]  }
 0x2a7   : > { %v2304_v16 = vpop.f32.mrf.mxu0  ;;  %v2418_v41 = vadd.f32 %v2417_v7, %v12483_v22  ;;  %12487 = vst [vmem:[#allocation19_spill] sm:$0xff] %v9140_v40  ;;  %v2299_v7 = vadd.f32 %v2298_v21, %v12419_v1  ;;  %v2303_v3 = vadd.f32 %v2302_v52, %v12483_v22  ;;  %v2297_v21 = vadd.f32 %v2296_v28, %v12419_v1 }
 0x2a8   : > { %v2419_v26 = vpop.f32.mrf.mxu1  ;;  %v2305_v12 = vadd.f32 %v2304_v16, %v12483_v22  ;;  %v2295_v16 = vadd.f32 %v2294_v44, %v12486_v54  ;;  %v2406_v44 = vadd.f32 %v9065_v63, %v12486_v54  ;;  %v2615_v63 = vmax.f32 %v9127_v10, 0.0 }
 0x2a9   : > { %v2306_v4 = vpop.f32.mrf.mxu0  ;;  %v2420_v50 = vadd.f32 %v2419_v26, %v12484_v46  ;;  %v2416_v26 = vadd.f32 %v2415_v17, %v12483_v22  ;;  %v2663_v17 = vmax.f32 %v2418_v41, 0.0  ;;  %v2631_v41 = vmax.f32 %v2408_v30, 0.0 }
 0x2aa   : > { %v2307_v38 = vadd.f32 %v2306_v4, %v12484_v46  ;;  %v2421_v57 = vpop.f32.mrf.mxu1  ;;  %v2410_v4 = vadd.f32 %v2409_v33, %v12419_v1  ;;  %v2661_v0 = vmax.f32 %v2305_v12, 0.0  ;;  %v2645_v33 = vmax.f32 %v2299_v7, 0.0 }
 0x2ab   : > { %v2308_v5 = vpop.f32.mrf.mxu0  ;;  %v2422_v58 = vadd.f32 %v2421_v57, %v12484_v46  ;;  %v2678_v11 = vmax.f32 %v2420_v50, 0.0  ;;  %v2647_v57 = vmax.f32 %v2412_v51, 0.0  ;;  %v2662_v22 = vmax.f32 %v2416_v26, 0.0 }
 0x2ac   : > { %v2309_v48 = vadd.f32 %v2308_v5, %v12484_v46  ;;  %v2676_v43 = vmax.f32 %v2307_v38, 0.0  ;;  %v9158_v46 = vpop.permute.xlu0 %2877  ;;  %v2293_v1 = vadd.f32 %v9068_v47, %v12486_v54  ;;  %v2660_v50 = vmax.f32 %v2303_v3, 0.0 }
 0x2ad   : > { %3564 = vmatmul.mubr.bf16.gmra.mxu1 %v9140_v40  ;;  %3451 = vmatmul.mubr.bf16.gmra.mxu0 %v9140_v40  ;;  %v2679_v40 = vmax.f32 %v2422_v58, 0.0  ;;  %12489 = vst [vmem:[#allocation42_spill] sm:$0xff] %v9158_v46  ;;  %v2287_v51 = vadd.f32 %v9055_v55, %v12482_v56  ;;  %v2629_v12 = vmax.f32 %v2295_v16, 0.0  ;;  %v2646_v38 = vmax.f32 %v2410_v4, 0.0 }
 0x2ae   : > { %3573 = vmatprep.mubr.bf16.mxu1 %v12341_v29  ;;  %3460 = vmatprep.mubr.bf16.mxu0 %v12341_v29  ;;  %v2677_v24 = vmax.f32 %v2309_v48, 0.0  ;;  %v2806_v48 = vpack.c.bf16 %v2678_v11, %v2662_v22  ;;  %v2644_v7 = vmax.f32 %v2297_v21, 0.0  ;;  %v2804_v26 = vpack.c.bf16 %v2676_v43, %v2660_v50  ;;  %v9175_v43 = vpop.permute.xlu1 %2865 }
 0x2af   : > { %v2807_v52 = vpack.c.bf16 %v2679_v40, %v2663_v17  ;;  %v9168_v40 = vld [vmem:[%s11874_s3 + $0x20] sm:$0xff]   ;;  %v2791_v54 = vpack.c.bf16 %v2647_v57, %v2631_v41  ;;  %v2396_v55 = vadd.f32 %v9050_v49, %v12481_v27  ;;  %v2613_v47 = vmax.f32 %v9124_v2, 0.0  ;;  %12490 = vst [vmem:[#allocation15_spill] sm:$0xff] %v9175_v43  ;;  %v12494_v41 = vld [vmem:[#allocation22_spill] sm:$0xff] }
 0x2b0   : > { %v2805_v28 = vpack.c.bf16 %v2677_v24, %v2661_v0  ;;  %v2630_v11 = vmax.f32 %v2406_v44, 0.0  ;;  %v2789_v0 = vpack.c.bf16 %v2645_v33, %v2629_v12  ;;  %v2390_v24 = vadd.f32 %v9038_v62, %v12479_v32  ;;  %v9187_v62 = vpop.permute.xlu0 %2869 }
 0x2b1   : > { %3727 = vmatprep.subr.bf16.mxu1 %v2807_v52  ;;  %v2283_v56 = vadd.f32 %v9053_v15, %v12481_v27  ;;  %v2599_v10 = vmax.f32 %v9118_v25, 0.0  ;;  %v2628_v3 = vmax.f32 %v2293_v1, 0.0  ;;  %v2277_v2 = vadd.f32 %v9040_v19, %v12479_v32  ;;  %12491 = vst [vmem:[#allocation38_spill] sm:$0xff] %v9187_v62 }
 0x2b2   : > { %3614 = vmatprep.subr.bf16.mxu0 %v2805_v28  ;;  %3728 = vmatpush1.bf16.msra.mxu1 %v2806_v48  ;;  %v2597_v49 = vmax.f32 %v9115_v13, 0.0  ;;  %v2614_v30 = vmax.f32 %v9121_v6, 0.0  ;;  %v2790_v5 = vpack.c.bf16 %v2646_v38, %v2630_v11  ;;  %v2583_v15 = vmax.f32 %v9107_v45, 0.0  ;;  %v9202_v44 = vpop.permute.xlu1 %2857 }
 0x2b3   : > { %3615 = vmatpush1.bf16.msra.mxu0 %v2804_v26  ;;  %3729 = vmatprep.subr.bf16.mxu1 %v2791_v54  ;;  %v2612_v27 = vmax.f32 %v2287_v51, 0.0  ;;  %v2788_v25 = vpack.c.bf16 %v2644_v7, %v2628_v3  ;;  %v2775_v58 = vpack.c.bf16 %v2615_v63, %v2599_v10  ;;  %v2386_v19 = vadd.f32 %v9030_v39, %v12478_v35  ;;  %v12496_v51 = vld [vmem:[#allocation39_spill] sm:$0xff] }
 0x2b4   : > { %3616 = vmatprep.subr.bf16.mxu0 %v2789_v0  ;;  %v2581_v13 = vmax.f32 %v9112_v34, 0.0  ;;  %v2598_v32 = vmax.f32 %v2396_v55, 0.0  ;;  %v2773_v6 = vpack.c.bf16 %v2613_v47, %v2597_v49  ;;  %v2380_v16 = vadd.f32 %v9019_v18, %v12477_v42  ;;  %12492 = vst [vmem:[#allocation40_spill] sm:$0xff] %v9202_v44  ;;  %v12497_v63 = vld [vmem:[#allocation23_spill] sm:$0xff] }
 0x2b5   : > { %3574 = vmatmul.mubr.bf16.gmra.mxu1 %v9168_v40  ;;  %3461 = vmatmul.mubr.bf16.gmra.mxu0 %v9168_v40  ;;  %v2273_v4 = vadd.f32 %v9033_v53, %v12478_v35  ;;  %v2567_v45 = vmax.f32 %v9104_v9, 0.0  ;;  %v2596_v21 = vmax.f32 %v2283_v56, 0.0  ;;  %v2267_v17 = vadd.f32 %v9022_v36, %v12477_v42  ;;  %v9208_v53 = vld [vmem:[%s11874_s3 + $0x28] sm:$0xff]   ;;  %v9215_v9 = vpop.permute.xlu0 %2861 }
 0x2b6   : > { %3470 = vmatprep.mubr.bf16.mxu0 %v12341_v29  ;;  %3583 = vmatprep.mubr.bf16.mxu1 %v12341_v29  ;;  %v2565_v39 = vmax.f32 %v9101_v20, 0.0  ;;  %v2582_v34 = vmax.f32 %v2390_v24, 0.0  ;;  %v2774_v57 = vpack.c.bf16 %v2614_v30, %v2598_v32  ;;  %v2551_v18 = vmax.f32 %v9095_v14, 0.0  ;;  %12493 = vst [vmem:[#allocation16_spill] sm:$0xff] %v9215_v9  ;;  %v12507_v32 = vld [vmem:[#allocation31_spill] sm:$0xff] }
 0x2b7   : > { %3730 = vmatpush1.bf16.msra.mxu1 %v2790_v5  ;;  %3617 = vmatpush1.bf16.msra.mxu0 %v2788_v25  ;;  %v2580_v33 = vmax.f32 %v2277_v2, 0.0  ;;  %v2772_v22 = vpack.c.bf16 %v2612_v27, %v2596_v21  ;;  %v2759_v35 = vpack.c.bf16 %v2583_v15, %v2567_v45  ;;  %v2376_v36 = vadd.f32 %v9005_v60, %v12474_v31  ;;  %v12495_v60 = vld [vmem:[#allocation21_spill] sm:$0xff]  ;;  %v12502_v15 = vld [vmem:[#allocation14_spill] sm:$0xff]  ;;  %v12504_v25 = vld [vmem:[#allocation28_spill] sm:$0xff] }
 0x2b8   : > { %3731 = vmatprep.subr.bf16.mxu1 %v2775_v58  ;;  %3618 = vmatprep.subr.bf16.mxu0 %v2773_v6  ;;  %v2549_v20 = vmax.f32 %v9098_v37, 0.0  ;;  %v2566_v42 = vmax.f32 %v2386_v19, 0.0  ;;  %v2757_v14 = vpack.c.bf16 %v2581_v13, %v2565_v39  ;;  %v2368_v52 = vadd.f32 %v8969_v59, %v8018_v61  ;;  %v9236_v2 = vld [vmem:[%s11874_s3 + $0x30] sm:$0xff]   ;;  %v12505_v58 = vld [vmem:[#allocation7_spill] sm:$0xff]  ;;  %v12506_v19 = vld [vmem:[#allocation18_spill] sm:$0xff] }
 0x2b9   : > { %v2263_v1 = vadd.f32 %v9009_v23, %v12474_v31  ;;  %v2535_v50 = vmax.f32 %v12494_v41, 0.0  ;;  %v2564_v28 = vmax.f32 %v2273_v4, 0.0  ;;  %v2255_v37 = vadd.f32 %v12495_v60, %v8018_v61  ;;  %v12498_v31 = vld [vmem:[#allocation17_spill] sm:$0xff]  ;;  %v9229_v61 = vpop.permute.xlu1 %2849  ;;  %v9231_v10 = vpop.permute.xlu0 %2853  ;;  %v9253_v13 = vld [vmem:[%s11874_s3 + $0x38] sm:$0xff]   ;;  %v12510_v45 = vld [vmem:[#allocation32_spill] sm:$0xff] }
 0x2ba   : > { %v2533_v12 = vmax.f32 %v12496_v51, 0.0  ;;  %v2550_v38 = vmax.f32 %v2380_v16, 0.0  ;;  %v2758_v48 = vpack.c.bf16 %v2582_v34, %v2566_v42  ;;  %v2519_v59 = vmax.f32 %v12497_v63, 0.0  ;;  %12499 = vst [vmem:[#allocation37_spill] sm:$0xff] %v9229_v61  ;;  %12500 = vst [vmem:[#allocation4_spill] sm:$0xff] %v9231_v10  ;;  %v12508_v16 = vld [vmem:[#allocation30_spill] sm:$0xff] }
 0x2bb   : > { %3732 = vmatpush1.bf16.msra.mxu1 %v2774_v57  ;;  %3619 = vmatpush1.bf16.msra.mxu0 %v2772_v22  ;;  %v2548_v7 = vmax.f32 %v2267_v17, 0.0  ;;  %v2756_v26 = vpack.c.bf16 %v2580_v33, %v2564_v28  ;;  %v2743_v23 = vpack.c.bf16 %v2551_v18, %v2535_v50  ;;  %v2517_v54 = vmax.f32 %v12498_v31, 0.0  ;;  %v12509_v4 = vld [vmem:[#allocation33_spill] sm:$0xff]  ;;  %v12511_v17 = vld [vmem:[#allocation35_spill] sm:$0xff]  ;;  %v12512_v39 = vld [vmem:[#allocation34_spill] sm:$0xff] }
 0x2bc   : > { %3733 = vmatprep.subr.bf16.mxu1 %v2759_v35  ;;  %3620 = vmatprep.subr.bf16.mxu0 %v2757_v14  ;;  %v2534_v55 = vmax.f32 %v2376_v36, 0.0  ;;  %v2741_v47 = vpack.c.bf16 %v2549_v20, %v2533_v12  ;;  %v2503_v11 = vmax.f32 %v2368_v52, 0.0  ;;  %v2532_v0 = vmax.f32 %v2263_v1, 0.0  ;;  %v12513_v33 = vld [vmem:[#allocation36_spill] sm:$0xff] }
 0x2bd   : > { %3584 = vmatmul.mubr.bf16.gmra.mxu1 %v9208_v53  ;;  %3471 = vmatmul.mubr.bf16.gmra.mxu0 %v9208_v53  ;;  %v2501_v24 = vmax.f32 %v2255_v37, 0.0  ;;  %v9241_v5 = vpop.permute.xlu1 %2841  ;;  %v9245_v27 = vpop.permute.xlu0 %2845 }
 0x2be   : > { %3480 = vmatprep.mubr.bf16.mxu0 %v12341_v29  ;;  %3593 = vmatprep.mubr.bf16.mxu1 %v12341_v29  ;;  %v2742_v56 = vpack.c.bf16 %v2550_v38, %v2534_v55  ;;  %v2740_v3 = vpack.c.bf16 %v2548_v7, %v2532_v0  ;;  %v2727_v49 = vpack.c.bf16 %v2519_v59, %v2503_v11  ;;  %v12515_v55 = vld [vmem:[#allocation25_spill] sm:$0xff] }
 0x2bf   : > { %3734 = vmatpush1.bf16.msra.mxu1 %v2758_v48  ;;  %3621 = vmatpush1.bf16.msra.mxu0 %v2756_v26  ;;  %v2725_v30 = vpack.c.bf16 %v2517_v54, %v2501_v24  ;;  %12501 = vst [vmem:[#allocation9_spill] sm:$0xff] %v9241_v5  ;;  %12503 = vst [vmem:[#allocation3_spill] sm:$0xff] %v9245_v27 }
 0x2c0   : > { %3735 = vmatprep.subr.bf16.mxu1 %v2743_v23  ;;  %3622 = vmatprep.subr.bf16.mxu0 %v2741_v47 }
 0x2c1   : > { %v9258_v6 = vpop.permute.xlu1 %2833  ;;  %v9264_v21 = vpop.permute.xlu0 %2837 }
 0x2c3   : > { %3736 = vmatpush1.bf16.msra.mxu1 %v2742_v56  ;;  %3623 = vmatpush1.bf16.msra.mxu0 %v2740_v3 }
 0x2c4   : > { %3737 = vmatprep.subr.bf16.mxu1 %v2727_v49  ;;  %3624 = vmatprep.subr.bf16.mxu0 %v2725_v30 }
 0x2c5   : > { %3594 = vmatmul.mubr.bf16.gmra.mxu1 %v9236_v2  ;;  %3481 = vmatmul.mubr.bf16.gmra.mxu0 %v9236_v2  ;;  %v9269_v34 = vpop.permute.xlu1 %2825  ;;  %v9273_v35 = vpop.permute.xlu0 %2829 }
 0x2c6   : > { %3490 = vmatprep.mubr.bf16.mxu0 %v12341_v29  ;;  %3603 = vmatprep.mubr.bf16.mxu1 %v12341_v29 }
 0x2c7   : > { %3738 = vmatpush1.bf16.msra.mxu1 %v12502_v15  ;;  %3625 = vmatpush1.bf16.msra.mxu0 %v12504_v25 }
 0x2c8   : > { %3739 = vmatprep.subr.bf16.mxu1 %v12505_v58  ;;  %3626 = vmatprep.subr.bf16.mxu0 %v12506_v19 }
 0x2cb   : > { %3740 = vmatpush1.bf16.msra.mxu1 %v12507_v32  ;;  %3627 = vmatpush1.bf16.msra.mxu0 %v12508_v16 }
 0x2cc   : > { %3741 = vmatprep.subr.bf16.mxu1 %v12509_v4  ;;  %3628 = vmatprep.subr.bf16.mxu0 %v12510_v45 }
 0x2cd   : > { %3604 = vmatmul.mubr.bf16.gmra.mxu1 %v9253_v13  ;;  %3491 = vmatmul.mubr.bf16.gmra.mxu0 %v9253_v13 }
 0x2ce   : > { %3646 = vmatprep.mubr.bf16.mxu0 %v12341_v29  ;;  %3759 = vmatprep.mubr.bf16.mxu1 %v12341_v29 }
 0x2cf   : > { %3742 = vmatpush1.bf16.msra.mxu1 %v12511_v17  ;;  %3629 = vmatpush1.bf16.msra.mxu0 %v12512_v39 }
 0x2d3   : > { %v3083_v57 = vpop.f32.mrf.mxu1  ;;  %v2970_v18 = vpop.f32.mrf.mxu0 }
 0x2d4   : > { %v3084_v36 = vadd.f32 %v3083_v57, %v9269_v34  ;;  %v2971_v42 = vadd.f32 %v2970_v18, %v9269_v34 }
 0x2d5   : > { %3760 = vmatmul.mubr.bf16.vlgmr.msra.gmra.mxu1 %v12513_v33  ;;  %3647 = vmatmul.mubr.bf16.vlgmr.msra.gmra.mxu0 %v12513_v33  ;;  %v3085_v22 = vpop.f32.mrf.mxu1  ;;  %v2972_v20 = vpop.f32.mrf.mxu0 }
 0x2d6   : > { %3769 = vmatprep.mubr.bf16.mxu1 %v12341_v29  ;;  %3656 = vmatprep.mubr.bf16.mxu0 %v12341_v29  ;;  %v3086_v52 = vadd.f32 %v3085_v22, %v9269_v34  ;;  %v2973_v50 = vadd.f32 %v2972_v20, %v9269_v34  ;;  %v3842_v37 = vmax.f32 %v3084_v36, 0.0  ;;  %v3840_v48 = vmax.f32 %v2971_v42, 0.0 }
 0x2d7   : > { %v3087_v14 = vpop.f32.mrf.mxu1  ;;  %v2974_v1 = vpop.f32.mrf.mxu0 }
 0x2d8   : > { %v3088_v41 = vadd.f32 %v3087_v14, %v9273_v35  ;;  %v2975_v28 = vadd.f32 %v2974_v1, %v9273_v35  ;;  %v3843_v26 = vmax.f32 %v3086_v52, 0.0  ;;  %v3841_v47 = vmax.f32 %v2973_v50, 0.0 }
 0x2d9   : > { %v3089_v60 = vpop.f32.mrf.mxu1  ;;  %v2976_v12 = vpop.f32.mrf.mxu0 }
 0x2da   : > { %v3858_v51 = vmax.f32 %v3088_v41, 0.0  ;;  %v3090_v38 = vadd.f32 %v3089_v60, %v9273_v35  ;;  %v3856_v63 = vmax.f32 %v2975_v28, 0.0  ;;  %v2977_v59 = vadd.f32 %v2976_v12, %v9273_v35  ;;  %v12520_v41 = vld [vmem:[#allocation29_spill] sm:$0xff] }
 0x2db   : > { %v3093_v7 = vpop.f32.mrf.mxu1  ;;  %v2980_v54 = vpop.f32.mrf.mxu0 }
 0x2dc   : > { %v9285_v23 = vpack.c.bf16 %v3858_v51, %v3842_v37  ;;  %v3859_v31 = vmax.f32 %v3090_v38, 0.0  ;;  %v9288_v11 = vpack.c.bf16 %v3856_v63, %v3840_v48  ;;  %v3857_v0 = vmax.f32 %v2977_v59, 0.0 }
 0x2dd   : > { %3770 = vmatmul.mubr.bf16.gmra.mxu1 %v12515_v55  ;;  %3657 = vmatmul.mubr.bf16.gmra.mxu0 %v12515_v55  ;;  %v3095_v24 = vpop.f32.mrf.mxu1  ;;  %v3094_v56 = vadd.f32 %v3093_v7, %v9258_v6  ;;  %v2982_v3 = vpop.f32.mrf.mxu0  ;;  %v2981_v30 = vadd.f32 %v2980_v54, %v9258_v6 }
 0x2de   : > { %12514 = vst [vmem:[#allocation20_spill] sm:$0xff] %v9285_v23  ;;  %12516 = vst [vmem:[#allocation10_spill] sm:$0xff] %v9288_v11  ;;  %3779 = vmatprep.mubr.bf16.mxu1 %v12341_v29  ;;  %3666 = vmatprep.mubr.bf16.mxu0 %v12341_v29  ;;  %v9294_v49 = vpack.c.bf16 %v3859_v31, %v3843_v26  ;;  %v9297_v25 = vpack.c.bf16 %v3857_v0, %v3841_v47 }
 0x2df   : > { %v3097_v15 = vpop.f32.mrf.mxu1  ;;  %v3096_v58 = vadd.f32 %v3095_v24, %v9258_v6  ;;  %v2984_v19 = vpop.f32.mrf.mxu0  ;;  %v2983_v16 = vadd.f32 %v2982_v3, %v9258_v6  ;;  %v3874_v17 = vmax.f32 %v3094_v56, 0.0  ;;  %v3872_v33 = vmax.f32 %v2981_v30, 0.0  ;;  %v12524_v24 = vld [vmem:[#allocation19_spill] sm:$0xff] }
 0x2e0   : > { %12517 = vst [vmem:[#allocation27_spill] sm:$0xff] %v9294_v49  ;;  %12518 = vst [vmem:[#allocation12_spill] sm:$0xff] %v9297_v25  ;;  %v3098_v32 = vadd.f32 %v3097_v15, %v9264_v21  ;;  %v2985_v4 = vadd.f32 %v2984_v19, %v9264_v21 }
 0x2e1   : > { %v3099_v45 = vpop.f32.mrf.mxu1  ;;  %v2986_v57 = vpop.f32.mrf.mxu0  ;;  %v3875_v42 = vmax.f32 %v3096_v58, 0.0  ;;  %v3873_v50 = vmax.f32 %v2983_v16, 0.0 }
 0x2e2   : > { %v3890_v39 = vmax.f32 %v3098_v32, 0.0  ;;  %v3100_v18 = vadd.f32 %v3099_v45, %v9264_v21  ;;  %v3888_v22 = vmax.f32 %v2985_v4, 0.0  ;;  %v2987_v36 = vadd.f32 %v2986_v57, %v9264_v21 }
 0x2e3   : > { %v9305_v20 = vpop.f32.mrf.mxu1  ;;  %v2990_v1 = vpop.f32.mrf.mxu0 }
 0x2e4   : > { %v9307_v14 = vpack.c.bf16 %v3890_v39, %v3874_v17  ;;  %v3891_v52 = vmax.f32 %v3100_v18, 0.0  ;;  %v9310_v28 = vpack.c.bf16 %v3888_v22, %v3872_v33  ;;  %v3889_v60 = vmax.f32 %v2987_v36, 0.0 }
 0x2e5   : > { %3780 = vmatmul.mubr.bf16.gmra.mxu1 %v12520_v41  ;;  %3667 = vmatmul.mubr.bf16.gmra.mxu0 %v12520_v41  ;;  %v3105_v37 = vpop.f32.mrf.mxu1  ;;  %v9314_v51 = vpop.f32.mrf.mxu0  ;;  %v2991_v38 = vadd.f32 %v2990_v1, %v9241_v5  ;;  %v12030_v36 = vmov 4   ;;  %v6485_v41 = vld [vmem:[%s11872_s1 + $0x8] sm:$0xff] }
 0x2e6   : > { %12519 = vst [vmem:[#allocation6_spill] sm:$0xff] %v9307_v14  ;;  %12521 = vst [vmem:[#allocation24_spill] sm:$0xff] %v9310_v28  ;;  %3789 = vmatprep.mubr.bf16.mxu1 %v12341_v29  ;;  %3676 = vmatprep.mubr.bf16.mxu0 %v12341_v29  ;;  %v9317_v12 = vpack.c.bf16 %v3891_v52, %v3875_v42  ;;  %v9322_v63 = vpack.c.bf16 %v3889_v60, %v3873_v50  ;;  %v9355_v42 = vld [vmem:[%s11872_s1] sm:$0xff] }
 0x2e7   : > { %v9320_v48 = vpop.f32.mrf.mxu1  ;;  %v2994_v59 = vpop.f32.mrf.mxu0  ;;  %v3904_v54 = vmax.f32 %v2991_v38, 0.0  ;;  %6421 = vset.pattern.permute.xlu1 %v12030_v36  ;;  %6422 = vset.pattern.permute.xlu0 %v12030_v36  ;;  %v9365_v60 = vadd.f32 %v3105_v37, %v9241_v5 }
 0x2e8   : > { %12522 = vst [vmem:[#allocation11_spill] sm:$0xff] %v9317_v12  ;;  %12523 = vst [vmem:[#allocation26_spill] sm:$0xff] %v9322_v63  ;;  %v2995_v7 = vadd.f32 %v2994_v59, %v9245_v27  ;;  %4241 = vperm.xlu1 %6421, %v9355_v42   ;;  %4245 = vperm.xlu0 %6422, %v6485_v41  }
 0x2e9   : > { %v3109_v26 = vpop.f32.mrf.mxu1  ;;  %v9325_v31 = vpop.f32.mrf.mxu0  ;;  %12526 = vst [vmem:[#allocation21_spill] sm:$0xff] %v9365_v60 }
 0x2ea   : > { %v3920_v55 = vmax.f32 %v2995_v7, 0.0  ;;  %v9374_v59 = vadd.f32 %v3109_v26, %v9245_v27  ;;  %v9393_v26 = vadd.f32 %v9305_v20, %v9241_v5  ;;  %v9414_v20 = vadd.f32 %v9320_v48, %v9245_v27 }
 0x2eb   : > { %v3113_v47 = vpop.f32.mrf.mxu1  ;;  %v9327_v0 = vpop.f32.mrf.mxu0  ;;  %v12037_v48 = vmov 5  }
 0x2ec   : > { %v9330_v56 = vpack.c.bf16 %v3920_v55, %v3904_v54  ;;  %12527 = vst [vmem:[#allocation39_spill] sm:$0xff] %v9374_v59  ;;  %v9377_v54 = vadd.f32 %v3113_v47, %v9229_v61  ;;  %12530 = vst [vmem:[#allocation14_spill] sm:$0xff] %v9393_v26  ;;  %v9397_v47 = vadd.f32 %v9314_v51, %v9241_v5  ;;  %6423 = vset.pattern.permute.xlu0 %v12037_v48 }
 0x2ed   : > { %3790 = vmatmul.mubr.bf16.gmra.mxu1 %v12524_v24  ;;  %3677 = vmatmul.mubr.bf16.gmra.mxu0 %v12524_v24  ;;  %v3115_v3 = vpop.f32.mrf.mxu1  ;;  %v3002_v30 = vpop.f32.mrf.mxu0  ;;  %v9418_v51 = vadd.f32 %v9325_v31, %v9245_v27  ;;  %v9428_v28 = vadd.f32 %v9327_v0, %v9229_v61 }
 0x2ee   : > { %12525 = vst [vmem:[#allocation22_spill] sm:$0xff] %v9330_v56  ;;  %3799 = vmatprep.mubr.bf16.mxu1 %v12341_v29  ;;  %3686 = vmatprep.mubr.bf16.mxu0 %v12341_v29  ;;  %v9380_v55 = vadd.f32 %v3115_v3, %v9229_v61  ;;  %v9383_v24 = vadd.f32 %v3002_v30, %v9229_v61  ;;  %12531 = vst [vmem:[#allocation28_spill] sm:$0xff] %v9397_v47 }
 0x2ef   : > { %v3117_v15 = vpop.f32.mrf.mxu1  ;;  %v3004_v58 = vpop.f32.mrf.mxu0  ;;  %5513 = vperm.xlu0 %6423, %v9355_v42  }
 0x2f0   : > { %v9386_v36 = vadd.f32 %v3004_v58, %v9231_v10  ;;  %v9389_v11 = vadd.f32 %v3117_v15, %v9231_v10  ;;  %v9409_v15 = vld [vmem:[%s11872_s1 + $0x18] sm:$0xff] }
 0x2f1   : > { %v3119_v19 = vpop.f32.mrf.mxu1  ;;  %v3006_v32 = vpop.f32.mrf.mxu0 }
 0x2f2   : > { %12528 = vst [vmem:[#allocation23_spill] sm:$0xff] %v9386_v36  ;;  %12529 = vst [vmem:[#allocation17_spill] sm:$0xff] %v9389_v11  ;;  %v9401_v30 = vadd.f32 %v3119_v19, %v9231_v10  ;;  %v9422_v19 = vadd.f32 %v3006_v32, %v9231_v10 }
 0x2f3   : > { %v3123_v16 = vpop.f32.mrf.mxu1  ;;  %v9335_v4 = vpop.f32.mrf.mxu0 }
 0x2f4   : > { %v9433_v31 = vadd.f32 %v3123_v16, %v9202_v44  ;;  %v9456_v32 = vadd.f32 %v9335_v4, %v9202_v44 }
 0x2f5   : > { %3800 = vmatmul.mubr.bf16.gmra.mxu1 %v9168_v40  ;;  %3687 = vmatmul.mubr.bf16.gmra.mxu0 %v9168_v40  ;;  %v3125_v45 = vpop.f32.mrf.mxu1  ;;  %v3012_v17 = vpop.f32.mrf.mxu0 }
 0x2f6   : > { %3809 = vmatprep.mubr.bf16.mxu1 %v12341_v29  ;;  %3696 = vmatprep.mubr.bf16.mxu0 %v12341_v29  ;;  %v9442_v0 = vadd.f32 %v3125_v45, %v9202_v44  ;;  %v9446_v49 = vadd.f32 %v3012_v17, %v9202_v44 }
 0x2f7   : > { %v3127_v39 = vpop.f32.mrf.mxu1  ;;  %v9341_v57 = vpop.f32.mrf.mxu0 }
 0x2f8   : > { %v9449_v16 = vadd.f32 %v3127_v39, %v9215_v9  ;;  %v12532_v39 = vmov 4  }
 0x2f9   : > { %v9343_v18 = vpop.f32.mrf.mxu1  ;;  %v9345_v33 = vpop.f32.mrf.mxu0 }
 0x2fa   : > { %v9460_v45 = vadd.f32 %v9343_v18, %v9215_v9 }
 0x2fb   : > { %v3133_v22 = vpop.f32.mrf.mxu1  ;;  %v9349_v40 = vpop.f32.mrf.mxu0 }
 0x2fc   : > { %v9463_v10 = vadd.f32 %v3133_v22, %v9175_v43 }
 0x2fd   : > { %3810 = vmatmul.mubr.bf16.gmra.mxu1 %v9208_v53  ;;  %3697 = vmatmul.mubr.bf16.gmra.mxu0 %v9208_v53  ;;  %v3135_v52 = vpop.f32.mrf.mxu1  ;;  %v3022_v1 = vpop.f32.mrf.mxu0  ;;  %v9370_v53 = vld [vmem:[%s11872_s1 + $0x10] sm:$0xff] }
 0x2fe   : > { %3819 = vmatprep.mubr.bf16.mxu1 %v12341_v29  ;;  %3706 = vmatprep.mubr.bf16.mxu0 %v12341_v29  ;;  %v9472_v4 = vadd.f32 %v3135_v52, %v9175_v43 }
 0x2ff   : > { %v3137_v50 = vpop.f32.mrf.mxu1  ;;  %v3024_v38 = vpop.f32.mrf.mxu0  ;;  %4249 = vperm.xlu1 %6421, %v9370_v53   ;;  %5521 = vperm.xlu0 %6423, %v9370_v53  }
 0x300   : > { %v9475_v18 = vadd.f32 %v3137_v50, %v9187_v62  ;;  %v9480_v63 = vadd.f32 %v3024_v38, %v9187_v62  ;;  %v9491_v50 = vadd.f32 %v9341_v57, %v9215_v9 }
 0x301   : > { %v3139_v7 = vpop.f32.mrf.mxu1  ;;  %v3026_v37 = vpop.f32.mrf.mxu0 }
 0x303   : > { %v3143_v23 = vpop.f32.mrf.mxu1  ;;  %4253 = vperm.xlu1 %6421, %v9409_v15   ;;  %5525 = vperm.xlu0 %6423, %v9409_v15  }
 0x304   : > { %v9403_v25 = vpop.f32.mrf.mxu0  ;;  %v9506_v57 = vadd.f32 %v3143_v23, %v9154_v8 }
 0x305   : > { %3820 = vmatmul.mubr.bf16.gmra.mxu1 %v9236_v2  ;;  %3707 = vmatmul.mubr.bf16.gmra.mxu0 %v9236_v2  ;;  %v3145_v3 = vpop.f32.mrf.mxu1  ;;  %v9469_v2 = vadd.f32 %v3022_v1, %v9175_v43  ;;  %v9486_v1 = vadd.f32 %v3139_v7, %v9187_v62  ;;  %v9502_v7 = vadd.f32 %v9349_v40, %v9175_v43  ;;  %v12534_v43 = vld [vmem:[#allocation8_spill] sm:$0xff] }
 0x306   : > { %3829 = vmatprep.mubr.bf16.mxu1 %v12341_v29  ;;  %v9435_v58 = vpop.f32.mrf.mxu0  ;;  %3716 = vmatprep.mubr.bf16.mxu0 %v12341_v29 }
 0x307   : > { %v3147_v61 = vpop.f32.mrf.mxu1  ;;  %6424 = vset.pattern.permute.xlu1 %v12037_v48  ;;  %v9483_v48 = vadd.f32 %v3026_v37, %v9187_v62  ;;  %v9514_v62 = vadd.f32 %v3145_v3, %v9154_v8  ;;  %v6488_v3 = vld [vmem:[%s11872_s1 + $0x20] sm:$0xff]  ;;  %v12533_v37 = vld [vmem:[#allocation13_spill] sm:$0xff]  ;;  %v3033_v53 = vadd.f32 %v9435_v58, %v9154_v8 }
 0x308   : > { %v9451_v14 = vpop.f32.mrf.mxu0  ;;  %5517 = vperm.xlu1 %6424, %v6485_v41   ;;  %v9496_v41 = vadd.f32 %v9345_v33, %v9215_v9  ;;  %v9523_v33 = vadd.f32 %v9403_v25, %v9154_v8  ;;  %v4034_v25 = vmax.f32 %v9506_v57, 0.0  ;;  %5529 = vperm.xlu0 %6423, %v6488_v3  }
 0x309   : > { %v3149_v17 = vpop.f32.mrf.mxu1  ;;  %v4033_v11 = vmax.f32 %v3033_v53, 0.0 }
 0x30a   : > { %v3036_v44 = vpop.f32.mrf.mxu0  ;;  %v3150_v23 = vadd.f32 %v3149_v17, %v9158_v46  ;;  %v4032_v53 = vmax.f32 %v9523_v33, 0.0 }
 0x30b   : > { %v3153_v52 = vpop.f32.mrf.mxu1  ;;  %v3037_v56 = vadd.f32 %v3036_v44, %v9158_v46 }
 0x30c   : > { %v3040_v38 = vpop.f32.mrf.mxu0  ;;  %6425 = vset.pattern.permute.xlu1 %v12532_v39  ;;  %v3148_v39 = vadd.f32 %v3147_v61, %v9158_v46  ;;  %v3154_v12 = vadd.f32 %v3153_v52, %v12533_v37  ;;  %v4035_v61 = vmax.f32 %v9514_v62, 0.0  ;;  %v4051_v58 = vmax.f32 %v3150_v23, 0.0 }
 0x30d   : > { %3830 = vmatmul.mubr.bf16.gmra.mxu1 %v9253_v13  ;;  %3717 = vmatmul.mubr.bf16.gmra.mxu0 %v9253_v13  ;;  %v3155_v42 = vpop.f32.mrf.mxu1  ;;  %v3041_v44 = vadd.f32 %v3040_v38, %v12533_v37  ;;  %v4049_v60 = vmax.f32 %v3037_v56, 0.0 }
 0x30e   : > { %4497 = vmatprep.mubr.bf16.mxu1 %v12341_v29  ;;  %v3042_v40 = vpop.f32.mrf.mxu0  ;;  %4384 = vmatprep.mubr.bf16.mxu0 %v12341_v29  ;;  %v3156_v13 = vadd.f32 %v3155_v42, %v12533_v37  ;;  %v4050_v62 = vmax.f32 %v3148_v39, 0.0 }
 0x30f   : > { %v3157_v22 = vpop.f32.mrf.mxu1  ;;  %4257 = vperm.xlu1 %6425, %v6488_v3   ;;  %v3043_v17 = vadd.f32 %v3042_v40, %v12533_v37  ;;  %v4064_v39 = vmax.f32 %v3041_v44, 0.0 }
 0x310   : > { %v3044_v9 = vpop.f32.mrf.mxu0  ;;  %v3158_v29 = vadd.f32 %v3157_v22, %v12534_v43  ;;  %v3035_v22 = vadd.f32 %v9451_v14, %v9158_v46  ;;  %v4067_v40 = vmax.f32 %v3156_v13, 0.0  ;;  %v4066_v14 = vmax.f32 %v3154_v12, 0.0 }
 0x311   : > { %v3045_v27 = vadd.f32 %v3044_v9, %v12534_v43  ;;  %v3159_v36 = vpop.f32.mrf.mxu1  ;;  %v6489_v9 = vld [vmem:[%s11872_s1 + $0x28] sm:$0xff] }
 0x312   : > { %v3046_v42 = vpop.f32.mrf.mxu0  ;;  %v3160_v26 = vadd.f32 %v3159_v36, %v12534_v43  ;;  %v4082_v57 = vmax.f32 %v3158_v29, 0.0  ;;  %v4065_v29 = vmax.f32 %v3043_v17, 0.0  ;;  %v4048_v15 = vmax.f32 %v3035_v22, 0.0  ;;  %5533 = vperm.xlu0 %6423, %v6489_v9  }
 0x313   : > { %v3047_v52 = vadd.f32 %v3046_v42, %v12534_v43  ;;  %4261 = vperm.xlu1 %6425, %v6489_v9   ;;  %v4080_v46 = vmax.f32 %v3045_v27, 0.0 }
 0x314   : > { %v4083_v8 = vmax.f32 %v3160_v26, 0.0  ;;  %v3196_v36 = vpop.f32.mrf.mxu0  ;;  %v4210_v23 = vpack.c.bf16 %v4082_v57, %v4066_v14  ;;  %v9555_v26 = vld [vmem:[%s11872_s1 + $0x30] sm:$0xff]  ;;  %v4194_v57 = vpack.c.bf16 %v4050_v62, %v4034_v25  ;;  %v12535_v62 = vmax.f32 %v9472_v4, 0.0 }
 0x315   : > { %v3309_v59 = vpop.f32.mrf.mxu1  ;;  %v4081_v38 = vmax.f32 %v3047_v52, 0.0  ;;  %v3197_v42 = vadd.f32 %v3196_v36, %v9269_v34  ;;  %v4208_v17 = vpack.c.bf16 %v4080_v46, %v4064_v39  ;;  %v9568_v46 = vld [vmem:[%s11872_s1 + $0x38] sm:$0xff]  ;;  %v12539_v4 = vmax.f32 %v9469_v2, 0.0 }
 0x316   : > { %v3310_v43 = vadd.f32 %v3309_v59, %v9269_v34  ;;  %v3198_v37 = vpop.f32.mrf.mxu0  ;;  %v4211_v5 = vpack.c.bf16 %v4083_v8, %v4067_v40  ;;  %v4195_v8 = vpack.c.bf16 %v4051_v58, %v4035_v61  ;;  %v12536_v58 = vmax.f32 %v9486_v1, 0.0  ;;  %5537 = vperm.xlu0 %6423, %v9555_v26  }
 0x317   : > { %v3311_v47 = vpop.f32.mrf.mxu1  ;;  %4265 = vperm.xlu1 %6425, %v9555_v26   ;;  %v3199_v27 = vadd.f32 %v3198_v37, %v9269_v34  ;;  %v4209_v13 = vpack.c.bf16 %v4081_v38, %v4065_v29  ;;  %v3844_v52 = vmax.f32 %v3197_v42, 0.0  ;;  %v12540_v1 = vmax.f32 %v9483_v48, 0.0 }
 0x318   : > { %v3312_v12 = vadd.f32 %v3311_v47, %v9269_v34  ;;  %v3200_v56 = vpop.f32.mrf.mxu0  ;;  %4465 = vmatprep.subr.bf16.mxu1 %v4211_v5  ;;  %v3846_v3 = vmax.f32 %v3310_v43, 0.0  ;;  %v4193_v47 = vpack.c.bf16 %v4049_v60, %v4033_v11  ;;  %v4192_v43 = vpack.c.bf16 %v4048_v15, %v4032_v53 }
 0x319   : > { %v3313_v59 = vpop.f32.mrf.mxu1  ;;  %v3201_v22 = vadd.f32 %v3200_v56, %v9273_v35  ;;  %4466 = vmatpush1.bf16.msra.mxu1 %v4210_v23  ;;  %4352 = vmatprep.subr.bf16.mxu0 %v4209_v13  ;;  %v3845_v25 = vmax.f32 %v3199_v27, 0.0  ;;  %v4179_v38 = vpack.c.bf16 %v12536_v58, %v12535_v62  ;;  %v3985_v15 = vmax.f32 %v9496_v41, 0.0 }
 0x31a   : > { %v3314_v44 = vadd.f32 %v3313_v59, %v9273_v35  ;;  %v3202_v37 = vpop.f32.mrf.mxu0  ;;  %4467 = vmatprep.subr.bf16.mxu1 %v4195_v8  ;;  %4353 = vmatpush1.bf16.msra.mxu0 %v4208_v17  ;;  %v3847_v61 = vmax.f32 %v3312_v12, 0.0  ;;  %v4177_v9 = vpack.c.bf16 %v12540_v1, %v12539_v4  ;;  %v4000_v13 = vmax.f32 %v9502_v7, 0.0 }
 0x31b   : > { %v3315_v40 = vpop.f32.mrf.mxu1  ;;  %v3860_v36 = vmax.f32 %v3201_v22, 0.0  ;;  %v3203_v5 = vadd.f32 %v3202_v37, %v9273_v35  ;;  %4269 = vperm.xlu1 %6425, %v9568_v46   ;;  %4354 = vmatprep.subr.bf16.mxu0 %v4193_v47  ;;  %v12541_v8 = vmax.f32 %v9463_v10, 0.0  ;;  %v12542_v53 = vmax.f32 %v9475_v18, 0.0 }
 0x31c   : > { %v3862_v14 = vmax.f32 %v3314_v44, 0.0  ;;  %v3316_v33 = vadd.f32 %v3315_v40, %v9273_v35  ;;  %v3206_v11 = vpop.f32.mrf.mxu0  ;;  %v3984_v44 = vmax.f32 %v9491_v50, 0.0  ;;  %v12545_v7 = vmax.f32 %v9442_v0, 0.0  ;;  %5541 = vperm.xlu0 %6423, %v9568_v46  }
 0x31d   : > { %v3319_v60 = vpop.f32.mrf.mxu1  ;;  %v9575_v29 = vpack.c.bf16 %v3860_v36, %v3844_v52  ;;  %v3861_v39 = vmax.f32 %v3203_v5, 0.0  ;;  %4468 = vmatpush1.bf16.msra.mxu1 %v4194_v57  ;;  %v3207_v27 = vadd.f32 %v3206_v11, %v9258_v6  ;;  %v4178_v17 = vpack.c.bf16 %v12542_v53, %v12541_v8 }
 0x31e   : > { %v9577_v42 = vpack.c.bf16 %v3862_v14, %v3846_v3  ;;  %v3863_v23 = vmax.f32 %v3316_v33, 0.0  ;;  %v3320_v12 = vadd.f32 %v3319_v60, %v9258_v6  ;;  %v3208_v56 = vpop.f32.mrf.mxu0  ;;  %4469 = vmatprep.subr.bf16.mxu1 %v4179_v38  ;;  %4355 = vmatpush1.bf16.msra.mxu0 %v4192_v43  ;;  %v12546_v10 = vmax.f32 %v9460_v45, 0.0  ;;  %v6492_v3 = vld [vmem:[%s11872_s1 + $0x40] sm:$0xff] }
 0x31f   : > { %12537 = vst [vmem:[#allocation7_spill] sm:$0xff] %v9575_v29  ;;  %v3321_v59 = vpop.f32.mrf.mxu1  ;;  %v9591_v41 = vpack.c.bf16 %v3861_v39, %v3845_v25  ;;  %v3209_v2 = vadd.f32 %v3208_v56, %v9258_v6  ;;  %4356 = vmatprep.subr.bf16.mxu0 %v4177_v9  ;;  %4273 = vperm.xlu1 %6425, %v6492_v3   ;;  %v3968_v37 = vmax.f32 %v9456_v32, 0.0  ;;  %v12547_v50 = vmax.f32 %v9480_v63, 0.0 }
 0x320   : > { %12538 = vst [vmem:[#allocation18_spill] sm:$0xff] %v9577_v42  ;;  %v9593_v22 = vpack.c.bf16 %v3863_v23, %v3847_v61  ;;  %v3322_v48 = vadd.f32 %v3321_v59, %v9258_v6  ;;  %v3210_v57 = vpop.f32.mrf.mxu0  ;;  %v4163_v18 = vpack.c.bf16 %v12546_v10, %v12545_v7  ;;  %v12548_v0 = vmax.f32 %v9433_v31, 0.0  ;;  %5545 = vperm.xlu0 %6423, %v6492_v3  }
 0x321   : > { %12543 = vst [vmem:[#allocation31_spill] sm:$0xff] %v9591_v41  ;;  %v3323_v52 = vpop.f32.mrf.mxu1  ;;  %v4176_v40 = vpack.c.bf16 %v12547_v50, %v4000_v13  ;;  %v3211_v47 = vadd.f32 %v3210_v57, %v9264_v21  ;;  %4470 = vmatpush1.bf16.msra.mxu1 %v4178_v17  ;;  %v12549_v45 = vmax.f32 %v9449_v16, 0.0  ;;  %v3876_v5 = vmax.f32 %v3207_v27, 0.0  ;;  %v12563_v57 = vld [vmem:[#allocation28_spill] sm:$0xff]  ;;  %v6494_v50 = vld [vmem:[%s11872_s1 + $0x50] sm:$0xff] }
 0x322   : > { %12544 = vst [vmem:[#allocation30_spill] sm:$0xff] %v9593_v22  ;;  %v3324_v36 = vadd.f32 %v3323_v52, %v9264_v21  ;;  %v3878_v33 = vmax.f32 %v3320_v12, 0.0  ;;  %v3212_v43 = vpop.f32.mrf.mxu0  ;;  %v12550_v32 = vmax.f32 %v9446_v49, 0.0  ;;  %4471 = vmatprep.subr.bf16.mxu1 %v4163_v18  ;;  %v4160_v26 = vpack.c.bf16 %v3984_v44, %v3968_v37  ;;  %v12558_v44 = vld [vmem:[#allocation17_spill] sm:$0xff]  ;;  %v12566_v18 = vld [vmem:[#allocation39_spill] sm:$0xff] }
 0x323   : > { %v4162_v14 = vpack.c.bf16 %v12549_v45, %v12548_v0  ;;  %v3325_v25 = vpop.f32.mrf.mxu1  ;;  %v3892_v61 = vmax.f32 %v3211_v47, 0.0  ;;  %v3213_v60 = vadd.f32 %v3212_v43, %v9264_v21  ;;  %4357 = vmatpush1.bf16.msra.mxu0 %v4176_v40  ;;  %v3877_v31 = vmax.f32 %v3209_v2, 0.0  ;;  %v12568_v40 = vld [vmem:[#allocation14_spill] sm:$0xff] }
 0x324   : > { %v4161_v63 = vpack.c.bf16 %v3985_v15, %v12550_v32  ;;  %v3894_v11 = vmax.f32 %v3324_v36, 0.0  ;;  %v3326_v62 = vadd.f32 %v3325_v25, %v9264_v21  ;;  %v3879_v58 = vmax.f32 %v3322_v48, 0.0  ;;  %v3216_v16 = vpop.f32.mrf.mxu0  ;;  %v6493_v15 = vld [vmem:[%s11872_s1 + $0x48] sm:$0xff]  ;;  %v12569_v36 = vld [vmem:[#allocation23_spill] sm:$0xff] }
 0x325   : > { %v9619_v38 = vpop.f32.mrf.mxu1  ;;  %v12551_v39 = vmax.f32 %v9380_v55, 0.0  ;;  %v12552_v49 = vmax.f32 %v9401_v30, 0.0  ;;  %4277 = vperm.xlu1 %6425, %v6493_v15   ;;  %v9628_v27 = vpack.c.bf16 %v3892_v61, %v3876_v5  ;;  %v3893_v56 = vmax.f32 %v3213_v60, 0.0  ;;  %4472 = vmatpush1.bf16.msra.mxu1 %v4162_v14  ;;  %v12571_v14 = vld [vmem:[#allocation3_spill] sm:$0xff] }
 0x326   : > { %4358 = vmatprep.subr.bf16.mxu0 %v4161_v63  ;;  %v9630_v12 = vpack.c.bf16 %v3894_v11, %v3878_v33  ;;  %v3895_v59 = vmax.f32 %v3326_v62, 0.0  ;;  %v3922_v4 = vmax.f32 %v9414_v20, 0.0  ;;  %v3921_v55 = vmax.f32 %v9418_v51, 0.0  ;;  %v9636_v1 = vpop.f32.mrf.mxu0  ;;  %v12560_v20 = vld [vmem:[#allocation9_spill] sm:$0xff]  ;;  %v6495_v62 = vld [vmem:[%s11872_s1 + $0x58] sm:$0xff]  ;;  %5549 = vperm.xlu0 %6423, %v6493_v15  }
 0x327   : > { %v4147_v23 = vpack.c.bf16 %v12552_v49, %v12551_v39  ;;  %12553 = vst [vmem:[#allocation33_spill] sm:$0xff] %v9628_v27  ;;  %v3936_v30 = vmax.f32 %v9428_v28, 0.0  ;;  %v9638_v9 = vpop.f32.mrf.mxu1  ;;  %v12555_v13 = vmax.f32 %v9383_v24, 0.0  ;;  %v12556_v8 = vmax.f32 %v9422_v19, 0.0  ;;  %4359 = vmatpush1.bf16.msra.mxu0 %v4160_v26  ;;  %v12564_v19 = vld [vmem:[#allocation21_spill] sm:$0xff]  ;;  %v12575_v39 = vld [vmem:[#allocation26_spill] sm:$0xff] }
 0x328   : > { %12554 = vst [vmem:[#allocation32_spill] sm:$0xff] %v9630_v12  ;;  %v12557_v17 = vmax.f32 %v9377_v54, 0.0  ;;  %v12559_v46 = vmax.f32 %v12558_v44, 0.0  ;;  %v3217_v48 = vadd.f32 %v3216_v16, %v12560_v20  ;;  %v9649_v51 = vpack.c.bf16 %v3893_v56, %v3877_v31  ;;  %v3220_v24 = vpop.f32.mrf.mxu0  ;;  %v12574_v16 = vld [vmem:[#allocation22_spill] sm:$0xff]  ;;  %v6496_v56 = vld [vmem:[%s11872_s1 + $0x60] sm:$0xff]  ;;  %v6497_v44 = vld [vmem:[%s11872_s1 + $0x68] sm:$0xff] }
 0x329   : > { %v4145_v53 = vpack.c.bf16 %v12556_v8, %v12555_v13  ;;  %4473 = vmatprep.subr.bf16.mxu1 %v4147_v23  ;;  %v9651_v28 = vpack.c.bf16 %v3895_v59, %v3879_v58  ;;  %v3905_v52 = vmax.f32 %v12563_v57, 0.0  ;;  %v9654_v7 = vpop.f32.mrf.mxu1  ;;  %v12565_v10 = vmax.f32 %v12564_v19, 0.0  ;;  %4281 = vperm.xlu1 %6425, %v6494_v50   ;;  %v12573_v58 = vld [vmem:[#allocation11_spill] sm:$0xff]  ;;  %v12576_v59 = vld [vmem:[#allocation6_spill] sm:$0xff]  ;;  %v12579_v13 = vld [vmem:[#allocation12_spill] sm:$0xff] }
 0x32a   : > { %v4146_v2 = vpack.c.bf16 %v12559_v46, %v12557_v17  ;;  %12561 = vst [vmem:[#allocation35_spill] sm:$0xff] %v9649_v51  ;;  %v12567_v54 = vmax.f32 %v12566_v18, 0.0  ;;  %v3906_v47 = vmax.f32 %v12568_v40, 0.0  ;;  %v12570_v0 = vmax.f32 %v12569_v36, 0.0  ;;  %v9667_v33 = vpop.f32.mrf.mxu0  ;;  %5553 = vperm.xlu0 %6423, %v6494_v50   ;;  %v9697_v17 = vld [vmem:[%s11875_s4] sm:$0xff]   ;;  %v12581_v46 = vld [vmem:[#allocation20_spill] sm:$0xff] }
 0x32b   : > { %12562 = vst [vmem:[#allocation34_spill] sm:$0xff] %v9651_v28  ;;  %4360 = vmatprep.subr.bf16.mxu0 %v4145_v53  ;;  %v3221_v5 = vadd.f32 %v3220_v24, %v12571_v14  ;;  %v9669_v43 = vpop.f32.mrf.mxu1  ;;  %v4129_v25 = vpack.c.bf16 %v3921_v55, %v3905_v52  ;;  %v3908_v63 = vmax.f32 %v3217_v48, 0.0  ;;  %v12577_v55 = vld [vmem:[#allocation27_spill] sm:$0xff]  ;;  %12580 = vst [vmem:[#allocation25_spill] sm:$0xff] %v9697_v17  ;;  %v12582_v57 = vld [vmem:[#allocation10_spill] sm:$0xff] }
 0x32c   : > { %v4131_v37 = vpack.c.bf16 %v12567_v54, %v12565_v10  ;;  %v4144_v45 = vpack.c.bf16 %v12570_v0, %v3936_v30  ;;  %4474 = vmatpush1.bf16.msra.mxu1 %v4146_v2  ;;  %v4130_v32 = vpack.c.bf16 %v3922_v4, %v3906_v47  ;;  %v9671_v11 = vpop.f32.mrf.mxu0  ;;  %v12578_v30 = vld [vmem:[#allocation24_spill] sm:$0xff]  ;;  %v6498_v19 = vld [vmem:[%s11872_s1 + $0x70] sm:$0xff]  ;;  %v12583_v10 = vmov 0   ;;  %v6499_v47 = vld [vmem:[%s11872_s1 + $0x78] sm:$0xff] }
 0x32d   : > { %v3924_v61 = vmax.f32 %v3221_v5, 0.0  ;;  %v9673_v60 = vpop.f32.mrf.mxu1  ;;  %4285 = vperm.xlu1 %6425, %v6495_v62   ;;  %v9720_v40 = vld [vmem:[%s11875_s4 + $0x8] sm:$0xff]   ;;  %v12602_v12 = vld [vmem:[#allocation13_spill] sm:$0xff] }
 0x32e   : > { %4475 = vmatprep.subr.bf16.mxu1 %v4131_v37  ;;  %4361 = vmatpush1.bf16.msra.mxu0 %v4144_v45  ;;  %v3228_v26 = vpop.f32.mrf.mxu0  ;;  %12584 = vst [vmem:[#allocation29_spill] sm:$0xff] %v9720_v40 }
 0x32f   : > { %4362 = vmatprep.subr.bf16.mxu0 %v4129_v25  ;;  %v9678_v3 = vpack.c.bf16 %v3924_v61, %v3908_v63  ;;  %v3341_v31 = vpop.f32.mrf.mxu1  ;;  %5557 = vperm.xlu0 %6423, %v6495_v62   ;;  %v12585_v25 = vmov 5   ;;  %v9734_v63 = vadd.f32 %v9669_v43, %v12571_v14 }
 0x330   : > { %4476 = vmatpush1.bf16.msra.mxu1 %v4130_v32  ;;  %v3230_v49 = vpop.f32.mrf.mxu0  ;;  %v9730_v32 = vadd.f32 %v9667_v33, %v12571_v14  ;;  %v12590_v33 = vld [vmem:[#allocation4_spill] sm:$0xff] }
 0x331   : > { %12572 = vst [vmem:[#allocation36_spill] sm:$0xff] %v9678_v3  ;;  %4477 = vmatprep.subr.bf16.mxu1 %v12573_v58  ;;  %v3343_v23 = vpop.f32.mrf.mxu1  ;;  %4289 = vperm.xlu1 %6425, %v6496_v56   ;;  %12587 = vst [vmem:[#allocation17_spill] sm:$0xff] %v9734_v63  ;;  %v12588_v58 = vld [vmem:[#allocation37_spill] sm:$0xff] }
 0x332   : > { %4363 = vmatpush1.bf16.msra.mxu0 %v12574_v16  ;;  %v3232_v4 = vpop.f32.mrf.mxu0  ;;  %12586 = vst [vmem:[#allocation19_spill] sm:$0xff] %v9730_v32  ;;  %v9739_v16 = vadd.f32 %v9673_v60, %v12588_v58  ;;  %v9757_v60 = vadd.f32 %v9619_v38, %v12560_v20 }
 0x333   : > { %4364 = vmatprep.subr.bf16.mxu0 %v12575_v39  ;;  %v3345_v15 = vpop.f32.mrf.mxu1  ;;  %5561 = vperm.xlu0 %6423, %v6496_v56   ;;  %v9742_v39 = vadd.f32 %v3228_v26, %v12588_v58  ;;  %v3342_v56 = vadd.f32 %v3341_v31, %v12588_v58  ;;  %v9761_v26 = vadd.f32 %v9636_v1, %v12560_v20 }
 0x334   : > { %4478 = vmatpush1.bf16.msra.mxu1 %v12576_v59  ;;  %v9690_v8 = vpop.f32.mrf.mxu0  ;;  %12589 = vst [vmem:[#allocation9_spill] sm:$0xff] %v9739_v16  ;;  %v9747_v59 = vadd.f32 %v3230_v49, %v12590_v33  ;;  %v3346_v43 = vadd.f32 %v3345_v15, %v12590_v33  ;;  %12593 = vst [vmem:[#allocation39_spill] sm:$0xff] %v9757_v60  ;;  %v9764_v31 = vadd.f32 %v3343_v23, %v12590_v33 }
 0x335   : > { %4479 = vmatprep.subr.bf16.mxu1 %v12577_v55  ;;  %v9692_v53 = vpop.f32.mrf.mxu1  ;;  %4293 = vperm.xlu1 %6425, %v6497_v44   ;;  %v9767_v49 = vadd.f32 %v3232_v4, %v12590_v33  ;;  %v9771_v15 = vadd.f32 %v9638_v9, %v12560_v20  ;;  %v9781_v23 = vadd.f32 %v9671_v11, %v12588_v58  ;;  %v3943_v9 = vmax.f32 %v3342_v56, 0.0  ;;  %v12598_v11 = vld [vmem:[#allocation38_spill] sm:$0xff] }
 0x336   : > { %4365 = vmatpush1.bf16.msra.mxu0 %v12578_v30  ;;  %v3238_v2 = vpop.f32.mrf.mxu0  ;;  %12591 = vst [vmem:[#allocation28_spill] sm:$0xff] %v9747_v59  ;;  %12594 = vst [vmem:[#allocation14_spill] sm:$0xff] %v9764_v31 }
 0x337   : > { %4366 = vmatprep.subr.bf16.mxu0 %v12579_v13  ;;  %v3351_v48 = vpop.f32.mrf.mxu1  ;;  %5565 = vperm.xlu0 %6423, %v6497_v44   ;;  %v9753_v13 = vld [vmem:[%s11875_s4 + $0x10] sm:$0xff]   ;;  %v9775_v44 = vadd.f32 %v9654_v7, %v12571_v14  ;;  %v12595_v7 = vld [vmem:[#allocation40_spill] sm:$0xff] }
 0x338   : > { %4480 = vmatpush1.bf16.msra.mxu1 %v12581_v46  ;;  %v9704_v52 = vpop.f32.mrf.mxu0  ;;  %12592 = vst [vmem:[#allocation21_spill] sm:$0xff] %v9753_v13  ;;  %v9787_v33 = vadd.f32 %v3238_v2, %v12595_v7  ;;  %v9790_v38 = vadd.f32 %v3351_v48, %v12595_v7  ;;  %v9806_v2 = vadd.f32 %v9690_v8, %v12595_v7  ;;  %v12597_v48 = vld [vmem:[#allocation15_spill] sm:$0xff] }
 0x339   : > { %v9706_v24 = vpop.f32.mrf.mxu1  ;;  %4297 = vperm.xlu1 %6425, %v6498_v19  }
 0x33a   : > { %4367 = vmatpush1.bf16.msra.mxu0 %v12582_v57  ;;  %v3242_v18 = vpop.f32.mrf.mxu0 }
 0x33b   : > { %4498 = vmatmul.mubr.bf16.vlgmr.msra.gmra.mxu1 %v9697_v17  ;;  %v3355_v54 = vpop.f32.mrf.mxu1  ;;  %5573 = vperm.xlu0 %6423, %v6499_v47  }
 0x33c   : > { %4507 = vmatprep.mubr.bf16.mxu1 %v12583_v10  ;;  %v9715_v37 = vpop.f32.mrf.mxu0 }
 0x33d   : > { %4385 = vmatmul.mubr.bf16.vlgmr.msra.gmra.mxu0 %v9697_v17  ;;  %v3359_v50 = vpop.f32.mrf.mxu1  ;;  %4301 = vperm.xlu1 %6425, %v6499_v47  }
 0x33e   : > { %4394 = vmatprep.mubr.bf16.mxu0 %v12583_v10  ;;  %v3248_v36 = vpop.f32.mrf.mxu0  ;;  %v9809_v47 = vadd.f32 %v3359_v50, %v12597_v48 }
 0x33f   : > { %v3361_v0 = vpop.f32.mrf.mxu1  ;;  %v9812_v58 = vadd.f32 %v3248_v36, %v12597_v48  ;;  %v9829_v36 = vadd.f32 %v9692_v53, %v12595_v7 }
 0x340   : > { %v3250_v45 = vpop.f32.mrf.mxu0 }
 0x341   : > { %v3363_v5 = vpop.f32.mrf.mxu1  ;;  %6426 = vset.pattern.permute.xlu1 %v12585_v25  ;;  %v3959_v25 = vmax.f32 %v3346_v43, 0.0  ;;  %v9818_v29 = vadd.f32 %v3250_v45, %v12598_v11  ;;  %v9836_v45 = vld [vmem:[%s11875_s4 + $0x18] sm:$0xff]  }
 0x342   : > { %5569 = vperm.xlu1 %6426, %v6498_v19   ;;  %v3252_v61 = vpop.f32.mrf.mxu0  ;;  %v12596_v19 = vld [vmem:[#allocation16_spill] sm:$0xff]  ;;  %v9821_v8 = vadd.f32 %v3363_v5, %v12598_v11  ;;  %12599 = vst [vmem:[#allocation23_spill] sm:$0xff] %v9836_v45 }
 0x343   : > { %4508 = vmatmul.mubr.bf16.gmra.mxu1 %v9720_v40  ;;  %v3365_v62 = vpop.f32.mrf.mxu1  ;;  %v9798_v56 = vadd.f32 %v3242_v18, %v12596_v19  ;;  %v9801_v43 = vadd.f32 %v3355_v54, %v12596_v19  ;;  %v3362_v54 = vadd.f32 %v3361_v0, %v12597_v48  ;;  %v9824_v50 = vadd.f32 %v3252_v61, %v12598_v11 }
 0x344   : > { %4517 = vmatprep.mubr.bf16.mxu1 %v12583_v10  ;;  %v3256_v55 = vpop.f32.mrf.mxu0  ;;  %v3366_v4 = vadd.f32 %v3365_v62, %v12598_v11  ;;  %v9838_v5 = vpack.c.bf16 %v3959_v25, %v3943_v9  ;;  %v9842_v61 = vadd.f32 %v9704_v52, %v12596_v19  ;;  %v9846_v53 = vadd.f32 %v9706_v24, %v12596_v19  ;;  %v12600_v19 = vld [vmem:[#allocation41_spill] sm:$0xff]  ;;  %v12603_v24 = vld [vmem:[#allocation8_spill] sm:$0xff] }
 0x345   : > { %4395 = vmatmul.mubr.bf16.gmra.mxu0 %v9720_v40  ;;  %v3369_v30 = vpop.f32.mrf.mxu1  ;;  %v9852_v11 = vadd.f32 %v9715_v37, %v12597_v48  ;;  %v4007_v22 = vmax.f32 %v3362_v54, 0.0  ;;  %v12601_v48 = vld [vmem:[#allocation42_spill] sm:$0xff] }
 0x346   : > { %4404 = vmatprep.mubr.bf16.mxu0 %v12583_v10  ;;  %v3258_v1 = vpop.f32.mrf.mxu0  ;;  %v4023_v25 = vmax.f32 %v3366_v4, 0.0  ;;  %v9863_v37 = vadd.f32 %v3369_v30, %v12600_v19 }
 0x347   : > { %v3371_v57 = vpop.f32.mrf.mxu1  ;;  %v3259_v54 = vadd.f32 %v3258_v1, %v12600_v19 }
 0x348   : > { %v3260_v46 = vpop.f32.mrf.mxu0  ;;  %v3372_v30 = vadd.f32 %v3371_v57, %v12600_v19  ;;  %v9877_v32 = vpack.c.bf16 %v4023_v25, %v4007_v22  ;;  %v9889_v22 = vld [vmem:[%s11875_s4 + $0x20] sm:$0xff]  }
 0x349   : > { %v9792_v40 = vpop.f32.mrf.mxu1  ;;  %v3261_v1 = vadd.f32 %v3260_v46, %v12601_v48 }
 0x34a   : > { %v3262_v18 = vpop.f32.mrf.mxu0  ;;  %v3374_v57 = vadd.f32 %v9792_v40, %v12601_v48 }
 0x34b   : > { %4518 = vmatmul.mubr.bf16.gmra.mxu1 %v9753_v13  ;;  %v3375_v17 = vpop.f32.mrf.mxu1 }
 0x34c   : > { %4527 = vmatprep.mubr.bf16.mxu1 %v12583_v10  ;;  %v3266_v0 = vpop.f32.mrf.mxu0  ;;  %v3376_v7 = vadd.f32 %v3375_v17, %v12601_v48  ;;  %v3263_v17 = vadd.f32 %v3262_v18, %v12601_v48  ;;  %v4054_v59 = vmax.f32 %v3374_v57, 0.0 }
 0x34d   : > { %4405 = vmatmul.mubr.bf16.gmra.mxu0 %v9753_v13  ;;  %v3379_v42 = vpop.f32.mrf.mxu1  ;;  %v9860_v13 = vadd.f32 %v3256_v55, %v12600_v19 }
 0x34e   : > { %4414 = vmatprep.mubr.bf16.mxu0 %v12583_v10  ;;  %v3268_v41 = vpop.f32.mrf.mxu0  ;;  %v4053_v60 = vmax.f32 %v3263_v17, 0.0 }
 0x34f   : > { %v3381_v52 = vpop.f32.mrf.mxu1  ;;  %v3269_v9 = vadd.f32 %v3268_v41, %v12602_v12  ;;  %v3380_v41 = vadd.f32 %v3379_v42, %v12602_v12  ;;  %v4055_v42 = vmax.f32 %v3376_v7, 0.0 }
 0x350   : > { %v3270_v4 = vpop.f32.mrf.mxu0  ;;  %v3382_v27 = vadd.f32 %v3381_v52, %v12602_v12  ;;  %v3267_v52 = vadd.f32 %v3266_v0, %v12602_v12 }
 0x351   : > { %v3383_v51 = vpop.f32.mrf.mxu1  ;;  %v3271_v62 = vadd.f32 %v3270_v4, %v12603_v24  ;;  %v4069_v18 = vmax.f32 %v3269_v9, 0.0  ;;  %v4070_v63 = vmax.f32 %v3380_v41, 0.0 }
 0x352   : > { %v3384_v55 = vadd.f32 %v3383_v51, %v12603_v24  ;;  %v3272_v28 = vpop.f32.mrf.mxu0  ;;  %v4071_v46 = vmax.f32 %v3382_v27, 0.0  ;;  %v4068_v40 = vmax.f32 %v3267_v52, 0.0 }
 0x353   : > { %4528 = vmatmul.mubr.bf16.gmra.mxu1 %v9836_v45  ;;  %v3385_v3 = vpop.f32.mrf.mxu1  ;;  %v3273_v51 = vadd.f32 %v3272_v28, %v12603_v24  ;;  %v4084_v0 = vmax.f32 %v3271_v62, 0.0 }
 0x354   : > { %4537 = vmatprep.mubr.bf16.mxu1 %v12583_v10  ;;  %v3386_v4 = vadd.f32 %v3385_v3, %v12603_v24  ;;  %v4037_v3 = vmax.f32 %v3259_v54, 0.0  ;;  %v4039_v24 = vmax.f32 %v3372_v30, 0.0 }
 0x355   : > { %4415 = vmatmul.mubr.bf16.gmra.mxu0 %v9836_v45  ;;  %v4086_v45 = vmax.f32 %v3384_v55, 0.0  ;;  %v3535_v19 = vpop.f32.mrf.mxu1  ;;  %v4085_v25 = vmax.f32 %v3273_v51, 0.0  ;;  %v3422_v12 = vpop.f32.mrf.mxu0  ;;  %v4052_v51 = vmax.f32 %v3261_v1, 0.0  ;;  %v4212_v54 = vpack.c.bf16 %v4084_v0, %v4068_v40 }
 0x356   : > { %4424 = vmatprep.mubr.bf16.mxu0 %v12583_v10  ;;  %v4087_v28 = vmax.f32 %v3386_v4, 0.0  ;;  %v3536_v7 = vadd.f32 %v3535_v19, %v9269_v34  ;;  %v3423_v16 = vadd.f32 %v3422_v12, %v9269_v34  ;;  %v4199_v62 = vpack.c.bf16 %v4055_v42, %v4039_v24 }
 0x357   : > { %v3537_v14 = vpop.f32.mrf.mxu1  ;;  %v3424_v9 = vpop.f32.mrf.mxu0  ;;  %v4213_v55 = vpack.c.bf16 %v4085_v25, %v4069_v18  ;;  %v4214_v31 = vpack.c.bf16 %v4086_v45, %v4070_v63  ;;  %v4038_v19 = vmax.f32 %v9863_v37, 0.0  ;;  %v4197_v45 = vpack.c.bf16 %v4053_v60, %v4037_v3 }
 0x358   : > { %v4215_v48 = vpack.c.bf16 %v4087_v28, %v4071_v46  ;;  %v3538_v30 = vadd.f32 %v3537_v14, %v9269_v34  ;;  %v3425_v52 = vadd.f32 %v3424_v9, %v9269_v34  ;;  %v4036_v24 = vmax.f32 %v9860_v13, 0.0  ;;  %v9907_v13 = vld [vmem:[%s11875_s4 + $0x28] sm:$0xff]  }
 0x359   : > { %v3539_v27 = vpop.f32.mrf.mxu1  ;;  %v3426_v17 = vpop.f32.mrf.mxu0  ;;  %4578 = vmatprep.subr.bf16.mxu0 %v4213_v55  ;;  %v3850_v1 = vmax.f32 %v3536_v7, 0.0  ;;  %v3848_v37 = vmax.f32 %v3423_v16, 0.0  ;;  %v12606_v7 = vmax.f32 %v9812_v58, 0.0  ;;  %v12607_v9 = vmax.f32 %v9824_v50, 0.0 }
 0x35a   : > { %v3540_v41 = vadd.f32 %v3539_v27, %v9273_v35  ;;  %4691 = vmatprep.subr.bf16.mxu1 %v4215_v48  ;;  %v3427_v63 = vadd.f32 %v3426_v17, %v9273_v35  ;;  %4579 = vmatpush1.bf16.msra.mxu0 %v4212_v54  ;;  %v4198_v48 = vpack.c.bf16 %v4054_v59, %v4038_v19  ;;  %v3849_v16 = vmax.f32 %v3425_v52, 0.0 }
 0x35b   : > { %4538 = vmatmul.mubr.bf16.gmra.mxu1 %v9889_v22  ;;  %v3541_v12 = vpop.f32.mrf.mxu1  ;;  %v3428_v4 = vpop.f32.mrf.mxu0  ;;  %4580 = vmatprep.subr.bf16.mxu0 %v4197_v45  ;;  %v4196_v60 = vpack.c.bf16 %v4052_v51, %v4036_v24  ;;  %v4181_v55 = vpack.c.bf16 %v12607_v9, %v12606_v7  ;;  %v3988_v27 = vmax.f32 %v9842_v61, 0.0  ;;  %v3990_v17 = vmax.f32 %v9846_v53, 0.0 }
 0x35c   : > { %4692 = vmatpush1.bf16.msra.mxu1 %v4214_v31  ;;  %v3866_v14 = vmax.f32 %v3540_v41, 0.0  ;;  %v3542_v57 = vadd.f32 %v3541_v12, %v9273_v35  ;;  %v3864_v42 = vmax.f32 %v3427_v63, 0.0  ;;  %v3429_v18 = vadd.f32 %v3428_v4, %v9273_v35  ;;  %4547 = vmatprep.mubr.bf16.mxu1 %v12583_v10 }
 0x35d   : > { %4425 = vmatmul.mubr.bf16.gmra.mxu0 %v9889_v22  ;;  %4693 = vmatprep.subr.bf16.mxu1 %v4199_v62  ;;  %v3545_v46 = vpop.f32.mrf.mxu1  ;;  %v3851_v31 = vmax.f32 %v3538_v30, 0.0  ;;  %v3432_v28 = vpop.f32.mrf.mxu0  ;;  %v4004_v62 = vmax.f32 %v9852_v11, 0.0  ;;  %v12609_v41 = vmax.f32 %v9809_v47, 0.0  ;;  %v12610_v58 = vmax.f32 %v9821_v8, 0.0 }
 0x35e   : > { %4434 = vmatprep.mubr.bf16.mxu0 %v12583_v10  ;;  %v9909_v0 = vpack.c.bf16 %v3866_v14, %v3850_v1  ;;  %v3867_v25 = vmax.f32 %v3542_v57, 0.0  ;;  %v9912_v59 = vpack.c.bf16 %v3864_v42, %v3848_v37  ;;  %v3865_v3 = vmax.f32 %v3429_v18, 0.0  ;;  %4581 = vmatpush1.bf16.msra.mxu0 %v4196_v60 }
 0x35f   : > { %v3547_v40 = vpop.f32.mrf.mxu1  ;;  %v3546_v51 = vadd.f32 %v3545_v46, %v9258_v6  ;;  %v3434_v54 = vpop.f32.mrf.mxu0  ;;  %v4182_v50 = vpack.c.bf16 %v12610_v58, %v12609_v41  ;;  %v3433_v19 = vadd.f32 %v3432_v28, %v9258_v6  ;;  %4582 = vmatprep.subr.bf16.mxu0 %v4181_v55  ;;  %v12612_v52 = vmax.f32 %v9818_v29, 0.0 }
 0x360   : > { %12604 = vst [vmem:[#allocation11_spill] sm:$0xff] %v9909_v0  ;;  %12605 = vst [vmem:[#allocation22_spill] sm:$0xff] %v9912_v59  ;;  %4694 = vmatpush1.bf16.msra.mxu1 %v4198_v48  ;;  %v9922_v30 = vpack.c.bf16 %v3867_v25, %v3851_v31  ;;  %v9931_v11 = vpack.c.bf16 %v3865_v3, %v3849_v16  ;;  %v3548_v63 = vadd.f32 %v3547_v40, %v9258_v6  ;;  %v12658_v0 = vld [vmem:[#allocation40_spill] sm:$0xff] }
 0x361   : > { %4695 = vmatprep.subr.bf16.mxu1 %v9877_v32  ;;  %v3549_v61 = vpop.f32.mrf.mxu1  ;;  %v4180_v32 = vpack.c.bf16 %v12612_v52, %v4004_v62  ;;  %v3436_v12 = vpop.f32.mrf.mxu0  ;;  %v12613_v47 = vmax.f32 %v9790_v38, 0.0  ;;  %v12614_v8 = vmax.f32 %v9801_v43, 0.0  ;;  %v3974_v24 = vmax.f32 %v9829_v36, 0.0  ;;  %v12625_v52 = vld [vmem:[#allocation14_spill] sm:$0xff]  ;;  %v12659_v59 = vld [vmem:[#allocation16_spill] sm:$0xff] }
 0x362   : > { %12608 = vst [vmem:[#allocation26_spill] sm:$0xff] %v9922_v30  ;;  %12611 = vst [vmem:[#allocation6_spill] sm:$0xff] %v9931_v11  ;;  %v3550_v53 = vadd.f32 %v3549_v61, %v9264_v21  ;;  %v3435_v1 = vadd.f32 %v3434_v54, %v9258_v6  ;;  %v3437_v14 = vadd.f32 %v3436_v12, %v9264_v21  ;;  %v12615_v4 = vmax.f32 %v9787_v33, 0.0  ;;  %v9957_v33 = vld [vmem:[%s11875_s4 + $0x30] sm:$0xff]   ;;  %v12628_v12 = vld [vmem:[#allocation28_spill] sm:$0xff] }
 0x363   : > { %4548 = vmatmul.mubr.bf16.gmra.mxu1 %v9907_v13  ;;  %v4167_v45 = vpack.c.bf16 %v12614_v8, %v12613_v47  ;;  %v3551_v29 = vpop.f32.mrf.mxu1  ;;  %v12616_v57 = vmax.f32 %v9798_v56, 0.0  ;;  %v3972_v43 = vmax.f32 %v9806_v2, 0.0  ;;  %v3882_v48 = vmax.f32 %v3546_v51, 0.0  ;;  %v3438_v42 = vpop.f32.mrf.mxu0  ;;  %4583 = vmatpush1.bf16.msra.mxu0 %v4180_v32  ;;  %12617 = vst [vmem:[#allocation27_spill] sm:$0xff] %v9957_v33  ;;  %v12623_v61 = vld [vmem:[#allocation9_spill] sm:$0xff]  ;;  %v12630_v8 = vld [vmem:[#allocation3_spill] sm:$0xff] }
 0x364   : > { %4557 = vmatprep.mubr.bf16.mxu1 %v12583_v10  ;;  %4696 = vmatpush1.bf16.msra.mxu1 %v4182_v50  ;;  %v3898_v37 = vmax.f32 %v3550_v53, 0.0  ;;  %v3552_v36 = vadd.f32 %v3551_v29, %v9264_v21  ;;  %v4166_v18 = vpack.c.bf16 %v3990_v17, %v3974_v24  ;;  %v3880_v46 = vmax.f32 %v3433_v19, 0.0 }
 0x365   : > { %4435 = vmatmul.mubr.bf16.gmra.mxu0 %v9907_v13  ;;  %v4165_v38 = vpack.c.bf16 %v12616_v57, %v12615_v4  ;;  %4697 = vmatprep.subr.bf16.mxu1 %v4167_v45  ;;  %v3896_v60 = vmax.f32 %v3437_v14, 0.0  ;;  %v3439_v31 = vadd.f32 %v3438_v42, %v9264_v21  ;;  %v3555_v25 = vpop.f32.mrf.mxu1  ;;  %v4164_v56 = vpack.c.bf16 %v3988_v27, %v3972_v43  ;;  %v9961_v3 = vpop.f32.mrf.mxu0  ;;  %v12631_v45 = vld [vmem:[#allocation17_spill] sm:$0xff]  ;;  %v12634_v4 = vld [vmem:[#allocation19_spill] sm:$0xff] }
 0x366   : > { %4444 = vmatprep.mubr.bf16.mxu0 %v12583_v10  ;;  %v3883_v2 = vmax.f32 %v3548_v63, 0.0  ;;  %v9959_v28 = vpack.c.bf16 %v3898_v37, %v3882_v48  ;;  %v3899_v16 = vmax.f32 %v3552_v36, 0.0  ;;  %v3881_v40 = vmax.f32 %v3435_v1, 0.0  ;;  %v12633_v1 = vld [vmem:[#allocation39_spill] sm:$0xff] }
 0x367   : > { %4584 = vmatprep.subr.bf16.mxu0 %v4165_v38  ;;  %v9963_v7 = vpack.c.bf16 %v3896_v60, %v3880_v46  ;;  %v3897_v9 = vmax.f32 %v3439_v31, 0.0  ;;  %v9965_v55 = vpop.f32.mrf.mxu1  ;;  %v12620_v62 = vmax.f32 %v9742_v39, 0.0  ;;  %v12621_v51 = vmax.f32 %v9767_v49, 0.0  ;;  %v9974_v58 = vpop.f32.mrf.mxu0 }
 0x368   : > { %12618 = vst [vmem:[#allocation24_spill] sm:$0xff] %v9959_v28  ;;  %4698 = vmatpush1.bf16.msra.mxu1 %v4166_v18  ;;  %v3911_v27 = vmax.f32 %v9771_v15, 0.0  ;;  %v3940_v17 = vmax.f32 %v9781_v23, 0.0  ;;  %v3556_v41 = vadd.f32 %v3555_v25, %v12560_v20  ;;  %4585 = vmatpush1.bf16.msra.mxu0 %v4164_v56  ;;  %v9977_v50 = vpack.c.bf16 %v3899_v16, %v3883_v2  ;;  %v10006_v18 = vld [vmem:[%s11875_s4 + $0x38] sm:$0xff]   ;;  %v12638_v56 = vld [vmem:[#allocation36_spill] sm:$0xff]  ;;  %v12640_v16 = vld [vmem:[#allocation35_spill] sm:$0xff] }
 0x369   : > { %12619 = vst [vmem:[#allocation12_spill] sm:$0xff] %v9963_v7  ;;  %v4149_v54 = vpack.c.bf16 %v12621_v51, %v12620_v62  ;;  %4699 = vmatprep.subr.bf16.mxu1 %v9838_v5  ;;  %v3909_v19 = vmax.f32 %v9761_v26, 0.0  ;;  %v3926_v39 = vmax.f32 %v9775_v44, 0.0  ;;  %v12624_v49 = vmax.f32 %v12623_v61, 0.0  ;;  %v3559_v23 = vpop.f32.mrf.mxu1  ;;  %v9990_v47 = vpop.f32.mrf.mxu0  ;;  %12636 = vst [vmem:[#allocation9_spill] sm:$0xff] %v10006_v18  ;;  %v12639_v2 = vld [vmem:[#allocation34_spill] sm:$0xff] }
 0x36a   : > { %12622 = vst [vmem:[#allocation20_spill] sm:$0xff] %v9977_v50  ;;  %v12626_v32 = vmax.f32 %v12625_v52, 0.0  ;;  %v9986_v63 = vpack.c.bf16 %v3897_v9, %v3881_v40  ;;  %v12629_v53 = vmax.f32 %v12628_v12, 0.0  ;;  %v3560_v26 = vadd.f32 %v3559_v23, %v12630_v8  ;;  %v12641_v51 = vld [vmem:[#allocation32_spill] sm:$0xff]  ;;  %v12647_v12 = vld [vmem:[#allocation25_spill] sm:$0xff] }
 0x36b   : > { %4586 = vmatprep.subr.bf16.mxu0 %v4149_v54  ;;  %4558 = vmatmul.mubr.bf16.gmra.mxu1 %v9957_v33  ;;  %v12632_v44 = vmax.f32 %v12631_v45, 0.0  ;;  %v3910_v14 = vmax.f32 %v12633_v1, 0.0  ;;  %v3561_v29 = vpop.f32.mrf.mxu1  ;;  %v12635_v57 = vmax.f32 %v12634_v4, 0.0  ;;  %v3914_v43 = vmax.f32 %v3556_v41, 0.0  ;;  %v3448_v37 = vpop.f32.mrf.mxu0  ;;  %v12644_v41 = vld [vmem:[#allocation31_spill] sm:$0xff]  ;;  %v12648_v4 = vld [vmem:[#allocation29_spill] sm:$0xff] }
 0x36c   : > { %v4150_v15 = vpack.c.bf16 %v12626_v32, %v12624_v49  ;;  %12627 = vst [vmem:[#allocation10_spill] sm:$0xff] %v9986_v63  ;;  %v4148_v5 = vpack.c.bf16 %v12629_v53, %v3940_v17  ;;  %4567 = vmatprep.mubr.bf16.mxu1 %v12583_v10  ;;  %v3930_v48 = vmax.f32 %v3560_v26, 0.0  ;;  %v12643_v17 = vld [vmem:[#allocation30_spill] sm:$0xff]  ;;  %v12646_v32 = vld [vmem:[#allocation7_spill] sm:$0xff]  ;;  %v12666_v63 = vld [vmem:[#allocation13_spill] sm:$0xff] }
 0x36d   : > { %v4135_v24 = vpack.c.bf16 %v12632_v44, %v3911_v27  ;;  %4445 = vmatmul.mubr.bf16.gmra.mxu0 %v9957_v33  ;;  %v4133_v38 = vpack.c.bf16 %v12635_v57, %v3909_v19  ;;  %v4134_v42 = vpack.c.bf16 %v3926_v39, %v3910_v14  ;;  %v10000_v36 = vpop.f32.mrf.mxu1  ;;  %v10010_v60 = vpop.f32.mrf.mxu0  ;;  %v12642_v27 = vld [vmem:[#allocation33_spill] sm:$0xff]  ;;  %v12645_v49 = vld [vmem:[#allocation18_spill] sm:$0xff]  ;;  %v10039_v57 = vadd.f32 %v3561_v29, %v12630_v8 }
 0x36e   : > { %4700 = vmatpush1.bf16.msra.mxu1 %v4150_v15  ;;  %4587 = vmatpush1.bf16.msra.mxu0 %v4148_v5  ;;  %v10008_v46 = vpack.c.bf16 %v3930_v48, %v3914_v43  ;;  %v10044_v43 = vadd.f32 %v3448_v37, %v12630_v8  ;;  %v12651_v48 = vld [vmem:[#allocation37_spill] sm:$0xff]  ;;  %v10061_v37 = vadd.f32 %v9974_v58, %v12560_v20 }
 0x36f   : > { %4701 = vmatprep.subr.bf16.mxu1 %v4135_v24  ;;  %4588 = vmatprep.subr.bf16.mxu0 %v4133_v38  ;;  %v3567_v31 = vpop.f32.mrf.mxu1  ;;  %v3454_v25 = vpop.f32.mrf.mxu0  ;;  %12649 = vst [vmem:[#allocation28_spill] sm:$0xff] %v10039_v57 }
 0x370   : > { %4454 = vmatprep.mubr.bf16.mxu0 %v12583_v10  ;;  %12637 = vst [vmem:[#allocation14_spill] sm:$0xff] %v10008_v46  ;;  %12650 = vst [vmem:[#allocation17_spill] sm:$0xff] %v10044_v43 }
 0x371   : > { %v3569_v40 = vpop.f32.mrf.mxu1  ;;  %v3456_v9 = vpop.f32.mrf.mxu0 }
 0x372   : > { %4702 = vmatpush1.bf16.msra.mxu1 %v4134_v42  ;;  %4589 = vmatpush1.bf16.msra.mxu0 %v12638_v56  ;;  %v10047_v42 = vadd.f32 %v3454_v25, %v12651_v48  ;;  %v3568_v56 = vadd.f32 %v3567_v31, %v12651_v48  ;;  %v10065_v31 = vadd.f32 %v9965_v55, %v12560_v20  ;;  %v12662_v55 = vld [vmem:[#allocation15_spill] sm:$0xff] }
 0x373   : > { %4703 = vmatprep.subr.bf16.mxu1 %v12639_v2  ;;  %4590 = vmatprep.subr.bf16.mxu0 %v12640_v16  ;;  %v3571_v62 = vpop.f32.mrf.mxu1  ;;  %v3458_v54 = vpop.f32.mrf.mxu0  ;;  %v12652_v16 = vld [vmem:[#allocation4_spill] sm:$0xff] }
 0x374   : > { %4568 = vmatmul.mubr.bf16.gmra.mxu1 %v10006_v18  ;;  %v3572_v29 = vadd.f32 %v3571_v62, %v12652_v16  ;;  %12655 = vst [vmem:[#allocation36_spill] sm:$0xff] %v10065_v31  ;;  %v10068_v25 = vadd.f32 %v3456_v9, %v12652_v16  ;;  %v10072_v62 = vadd.f32 %v9990_v47, %v12630_v8  ;;  %v3947_v47 = vmax.f32 %v3568_v56, 0.0  ;;  %v12660_v56 = vld [vmem:[#allocation38_spill] sm:$0xff] }
 0x375   : > { %4723 = vmatprep.mubr.bf16.mxu1 %v12583_v10  ;;  %4455 = vmatmul.mubr.bf16.gmra.mxu0 %v10006_v18  ;;  %v3575_v19 = vpop.f32.mrf.mxu1  ;;  %v10023_v39 = vpop.f32.mrf.mxu0  ;;  %v10080_v58 = vadd.f32 %v3458_v54, %v12652_v16  ;;  %v10085_v9 = vadd.f32 %v10010_v60, %v12651_v48 }
 0x376   : > { %4704 = vmatpush1.bf16.msra.mxu1 %v12641_v51  ;;  %4591 = vmatpush1.bf16.msra.mxu0 %v12642_v27  ;;  %v10052_v51 = vadd.f32 %v3569_v40, %v12652_v16  ;;  %12656 = vst [vmem:[#allocation34_spill] sm:$0xff] %v10068_v25  ;;  %12657 = vst [vmem:[#allocation35_spill] sm:$0xff] %v10072_v62 }
 0x377   : > { %4705 = vmatprep.subr.bf16.mxu1 %v12643_v17  ;;  %4592 = vmatprep.subr.bf16.mxu0 %v12644_v41  ;;  %v3577_v61 = vpop.f32.mrf.mxu1  ;;  %v3464_v52 = vpop.f32.mrf.mxu0  ;;  %v10057_v17 = vadd.f32 %v9961_v3, %v12560_v20  ;;  %v10077_v3 = vadd.f32 %v10000_v36, %v12651_v48  ;;  %v3963_v41 = vmax.f32 %v3572_v29, 0.0  ;;  %v12661_v29 = vld [vmem:[#allocation21_spill] sm:$0xff] }
 0x378   : > { %4610 = vmatprep.mubr.bf16.mxu0 %v12583_v10  ;;  %12653 = vst [vmem:[#allocation39_spill] sm:$0xff] %v10052_v51  ;;  %v10090_v36 = vadd.f32 %v3464_v52, %v12658_v0  ;;  %v10093_v54 = vadd.f32 %v3577_v61, %v12658_v0  ;;  %v10108_v61 = vadd.f32 %v3575_v19, %v12658_v0 }
 0x379   : > { %v3579_v15 = vpop.f32.mrf.mxu1  ;;  %v10027_v23 = vpop.f32.mrf.mxu0  ;;  %12654 = vst [vmem:[#allocation19_spill] sm:$0xff] %v10057_v17 }
 0x37a   : > { %4706 = vmatpush1.bf16.msra.mxu1 %v12645_v49  ;;  %4593 = vmatpush1.bf16.msra.mxu0 %v12646_v32  ;;  %v10097_v30 = vadd.f32 %v3579_v15, %v12659_v59 }
 0x37b   : > { %v3581_v53 = vpop.f32.mrf.mxu1  ;;  %v3468_v5 = vpop.f32.mrf.mxu0 }
 0x37c   : > { %v10100_v60 = vadd.f32 %v3581_v53, %v12659_v59 }
 0x37d   : > { %4724 = vmatmul.mubr.bf16.vlgmr.msra.gmra.mxu1 %v12647_v12  ;;  %4611 = vmatmul.mubr.bf16.vlgmr.msra.gmra.mxu0 %v12647_v12  ;;  %v10033_v26 = vpop.f32.mrf.mxu1  ;;  %v10035_v45 = vpop.f32.mrf.mxu0 }
 0x37e   : > { %4733 = vmatprep.mubr.bf16.mxu1 %v12583_v10  ;;  %4620 = vmatprep.mubr.bf16.mxu0 %v12583_v10 }
 0x37f   : > { %v3587_v44 = vpop.f32.mrf.mxu1  ;;  %v3474_v24 = vpop.f32.mrf.mxu0 }
 0x380   : > { %v3588_v15 = vadd.f32 %v3587_v44, %v12662_v55  ;;  %v10121_v11 = vadd.f32 %v3474_v24, %v12662_v55  ;;  %v10136_v24 = vpack.c.bf16 %v3963_v41, %v3947_v47 }
 0x381   : > { %v3589_v1 = vpop.f32.mrf.mxu1  ;;  %v3476_v14 = vpop.f32.mrf.mxu0 }
 0x382   : > { %v10124_v19 = vadd.f32 %v3476_v14, %v12660_v56  ;;  %12663 = vst [vmem:[#allocation32_spill] sm:$0xff] %v10136_v24 }
 0x383   : > { %v3591_v38 = vpop.f32.mrf.mxu1  ;;  %v3478_v2 = vpop.f32.mrf.mxu0 }
 0x384   : > { %v3592_v32 = vadd.f32 %v3591_v38, %v12660_v56  ;;  %v10118_v38 = vadd.f32 %v10023_v39, %v12658_v0  ;;  %v10134_v39 = vadd.f32 %v10027_v23, %v12659_v59  ;;  %v4011_v23 = vmax.f32 %v3588_v15, 0.0 }
 0x385   : > { %4734 = vmatmul.mubr.bf16.gmra.mxu1 %v12648_v4  ;;  %4621 = vmatmul.mubr.bf16.gmra.mxu0 %v12648_v4  ;;  %v3595_v27 = vpop.f32.mrf.mxu1  ;;  %v3482_v40 = vpop.f32.mrf.mxu0  ;;  %v10111_v4 = vadd.f32 %v3468_v5, %v12659_v59  ;;  %v10127_v5 = vadd.f32 %v3589_v1, %v12660_v56  ;;  %v10142_v1 = vadd.f32 %v10033_v26, %v12662_v55  ;;  %v12664_v59 = vld [vmem:[#allocation41_spill] sm:$0xff]  ;;  %v12667_v26 = vld [vmem:[#allocation8_spill] sm:$0xff] }
 0x386   : > { %4743 = vmatprep.mubr.bf16.mxu1 %v12583_v10  ;;  %4630 = vmatprep.mubr.bf16.mxu0 %v12583_v10  ;;  %v4027_v7 = vmax.f32 %v3592_v32, 0.0  ;;  %v10150_v41 = vadd.f32 %v3478_v2, %v12660_v56  ;;  %v10157_v44 = vadd.f32 %v3482_v40, %v12664_v59  ;;  %v12665_v2 = vld [vmem:[#allocation42_spill] sm:$0xff] }
 0x387   : > { %v3597_v49 = vpop.f32.mrf.mxu1  ;;  %v3484_v12 = vpop.f32.mrf.mxu0 }
 0x388   : > { %v3598_v32 = vadd.f32 %v3597_v49, %v12664_v59  ;;  %v3485_v15 = vadd.f32 %v3484_v12, %v12664_v59  ;;  %v12668_v49 = vld [vmem:[#allocation23_spill] sm:$0xff]  ;;  %v10168_v57 = vpack.c.bf16 %v4027_v7, %v4011_v23 }
 0x389   : > { %v3599_v16 = vpop.f32.mrf.mxu1  ;;  %v10103_v48 = vpop.f32.mrf.mxu0 }
 0x38b   : > { %v3601_v53 = vpop.f32.mrf.mxu1  ;;  %v3488_v52 = vpop.f32.mrf.mxu0 }
 0x38c   : > { %v3602_v56 = vadd.f32 %v3601_v53, %v12665_v2  ;;  %v3489_v14 = vadd.f32 %v3488_v52, %v12665_v2 }
 0x38d   : > { %4744 = vmatmul.mubr.bf16.gmra.mxu1 %v12661_v29  ;;  %4631 = vmatmul.mubr.bf16.gmra.mxu0 %v12661_v29  ;;  %v3605_v0 = vpop.f32.mrf.mxu1  ;;  %v3492_v18 = vpop.f32.mrf.mxu0  ;;  %v10147_v29 = vadd.f32 %v10035_v45, %v12662_v55  ;;  %v10160_v45 = vadd.f32 %v3595_v27, %v12664_v59 }
 0x38e   : > { %4753 = vmatprep.mubr.bf16.mxu1 %v12583_v10  ;;  %4640 = vmatprep.mubr.bf16.mxu0 %v12583_v10  ;;  %v3606_v27 = vadd.f32 %v3605_v0, %v12666_v63  ;;  %v3493_v59 = vadd.f32 %v3492_v18, %v12666_v63  ;;  %v4041_v0 = vmax.f32 %v3485_v15, 0.0  ;;  %v4059_v40 = vmax.f32 %v3602_v56, 0.0 }
 0x38f   : > { %v3607_v47 = vpop.f32.mrf.mxu1  ;;  %v3494_v50 = vpop.f32.mrf.mxu0  ;;  %v4057_v51 = vmax.f32 %v3489_v14, 0.0 }
 0x390   : > { %v3608_v28 = vadd.f32 %v3607_v47, %v12666_v63  ;;  %v3495_v12 = vadd.f32 %v3494_v50, %v12666_v63  ;;  %v4043_v47 = vmax.f32 %v3598_v32, 0.0  ;;  %v4074_v18 = vmax.f32 %v3606_v27, 0.0 }
 0x391   : > { %v3609_v55 = vpop.f32.mrf.mxu1  ;;  %v3496_v46 = vpop.f32.mrf.mxu0  ;;  %v4072_v24 = vmax.f32 %v3493_v59, 0.0  ;;  %v4042_v59 = vmax.f32 %v10160_v45, 0.0 }
 0x392   : > { %v3610_v17 = vadd.f32 %v3609_v55, %v12667_v26  ;;  %v3497_v53 = vadd.f32 %v3496_v46, %v12667_v26  ;;  %v3600_v55 = vadd.f32 %v3599_v16, %v12665_v2  ;;  %v4075_v33 = vmax.f32 %v3608_v28, 0.0 }
 0x393   : > { %v3611_v52 = vpop.f32.mrf.mxu1  ;;  %v3498_v7 = vpop.f32.mrf.mxu0  ;;  %v4073_v63 = vmax.f32 %v3495_v12, 0.0  ;;  %v4203_v28 = vpack.c.bf16 %v4059_v40, %v4043_v47 }
 0x394   : > { %v3612_v23 = vadd.f32 %v3611_v52, %v12667_v26  ;;  %v4090_v50 = vmax.f32 %v3610_v17, 0.0  ;;  %v3499_v46 = vadd.f32 %v3498_v7, %v12667_v26  ;;  %v4088_v32 = vmax.f32 %v3497_v53, 0.0 }
 0x395   : > { %4754 = vmatmul.mubr.bf16.gmra.mxu1 %v12668_v49  ;;  %4641 = vmatmul.mubr.bf16.gmra.mxu0 %v12668_v49  ;;  %v3761_v43 = vpop.f32.mrf.mxu1  ;;  %v3487_v49 = vadd.f32 %v10103_v48, %v12665_v2  ;;  %v3648_v16 = vpop.f32.mrf.mxu0  ;;  %v4058_v62 = vmax.f32 %v3600_v55, 0.0 }
 0x396   : > { %4763 = vmatprep.mubr.bf16.mxu1 %v12583_v10  ;;  %4650 = vmatprep.mubr.bf16.mxu0 %v12583_v10  ;;  %v4091_v8 = vmax.f32 %v3612_v23, 0.0  ;;  %v4089_v25 = vmax.f32 %v3499_v46, 0.0  ;;  %v3762_v56 = vadd.f32 %v3761_v43, %v9269_v34  ;;  %v4218_v7 = vpack.c.bf16 %v4090_v50, %v4074_v18 }
 0x397   : > { %v3763_v52 = vpop.f32.mrf.mxu1  ;;  %v3650_v17 = vpop.f32.mrf.mxu0  ;;  %v3649_v26 = vadd.f32 %v3648_v16, %v9269_v34  ;;  %v4056_v53 = vmax.f32 %v3487_v49, 0.0  ;;  %v4216_v23 = vpack.c.bf16 %v4088_v32, %v4072_v24  ;;  %v4201_v43 = vpack.c.bf16 %v4057_v51, %v4041_v0 }
 0x398   : > { %v4219_v15 = vpack.c.bf16 %v4091_v8, %v4075_v33  ;;  %v4217_v48 = vpack.c.bf16 %v4089_v25, %v4073_v63  ;;  %v3764_v14 = vadd.f32 %v3763_v52, %v9269_v34  ;;  %v3651_v33 = vadd.f32 %v3650_v17, %v9269_v34 }
 0x399   : > { %v3765_v31 = vpop.f32.mrf.mxu1  ;;  %v3652_v27 = vpop.f32.mrf.mxu0  ;;  %v4040_v25 = vmax.f32 %v10157_v44, 0.0  ;;  %v3854_v24 = vmax.f32 %v3762_v56, 0.0  ;;  %v4202_v55 = vpack.c.bf16 %v4058_v62, %v4042_v59  ;;  %v3852_v45 = vmax.f32 %v3649_v26, 0.0 }
 0x39a   : > { %v3766_v12 = vadd.f32 %v3765_v31, %v9273_v35  ;;  %4917 = vmatprep.subr.bf16.mxu1 %v4219_v15  ;;  %v3653_v8 = vadd.f32 %v3652_v27, %v9273_v35  ;;  %4804 = vmatprep.subr.bf16.mxu0 %v4217_v48  ;;  %v3855_v49 = vmax.f32 %v3764_v14, 0.0  ;;  %v3853_v32 = vmax.f32 %v3651_v33, 0.0 }
 0x39b   : > { %v3767_v63 = vpop.f32.mrf.mxu1  ;;  %v3654_v47 = vpop.f32.mrf.mxu0  ;;  %4805 = vmatpush1.bf16.msra.mxu0 %v4216_v23  ;;  %4918 = vmatpush1.bf16.msra.mxu1 %v4218_v7  ;;  %v4200_v46 = vpack.c.bf16 %v4056_v53, %v4040_v25  ;;  %v12672_v18 = vmax.f32 %v10150_v41, 0.0  ;;  %v4008_v56 = vmax.f32 %v10147_v29, 0.0  ;;  %v4010_v17 = vmax.f32 %v10142_v1, 0.0 }
 0x39c   : > { %v3870_v40 = vmax.f32 %v3766_v12, 0.0  ;;  %v3768_v31 = vadd.f32 %v3767_v63, %v9273_v35  ;;  %v3868_v50 = vmax.f32 %v3653_v8, 0.0  ;;  %v3655_v34 = vadd.f32 %v3654_v47, %v9273_v35  ;;  %4806 = vmatprep.subr.bf16.mxu0 %v4201_v43  ;;  %4919 = vmatprep.subr.bf16.mxu1 %v4203_v28 }
 0x39d   : > { %4764 = vmatmul.mubr.bf16.gmra.mxu1 %v9889_v22  ;;  %4651 = vmatmul.mubr.bf16.gmra.mxu0 %v9889_v22  ;;  %v3771_v22 = vpop.f32.mrf.mxu1  ;;  %v3658_v0 = vpop.f32.mrf.mxu0  ;;  %v12671_v35 = vmax.f32 %v10121_v11, 0.0  ;;  %v3992_v28 = vmax.f32 %v10134_v39, 0.0  ;;  %v12674_v41 = vmax.f32 %v10093_v54, 0.0  ;;  %v12675_v29 = vmax.f32 %v10100_v60, 0.0 }
 0x39e   : > { %v10195_v51 = vpack.c.bf16 %v3870_v40, %v3854_v24  ;;  %v3871_v44 = vmax.f32 %v3768_v31, 0.0  ;;  %4660 = vmatprep.mubr.bf16.mxu0 %v12583_v10  ;;  %4773 = vmatprep.mubr.bf16.mxu1 %v12583_v10  ;;  %v10199_v16 = vpack.c.bf16 %v3868_v50, %v3852_v45  ;;  %v3869_v62 = vmax.f32 %v3655_v34, 0.0 }
 0x39f   : > { %v3773_v26 = vpop.f32.mrf.mxu1  ;;  %v4185_v52 = vpack.c.bf16 %v12672_v18, %v12671_v35  ;;  %v3772_v15 = vadd.f32 %v3771_v22, %v9258_v6  ;;  %v3660_v7 = vpop.f32.mrf.mxu0  ;;  %4807 = vmatpush1.bf16.msra.mxu0 %v4200_v46  ;;  %4920 = vmatpush1.bf16.msra.mxu1 %v4202_v55  ;;  %v3659_v53 = vadd.f32 %v3658_v0, %v9258_v6  ;;  %v12677_v14 = vmax.f32 %v10124_v19, 0.0 }
 0x3a0   : > { %12669 = vst [vmem:[#allocation33_spill] sm:$0xff] %v10195_v51  ;;  %12670 = vst [vmem:[#allocation30_spill] sm:$0xff] %v10199_v16  ;;  %v10208_v48 = vpack.c.bf16 %v3871_v44, %v3855_v49  ;;  %4921 = vmatprep.subr.bf16.mxu1 %v10168_v57  ;;  %v4171_v1 = vpack.c.bf16 %v12675_v29, %v12674_v41  ;;  %v10217_v23 = vpack.c.bf16 %v3869_v62, %v3853_v32  ;;  %v12695_v41 = vld [vmem:[#allocation39_spill] sm:$0xff] }
 0x3a1   : > { %4808 = vmatprep.subr.bf16.mxu0 %v4185_v52  ;;  %v3775_v11 = vpop.f32.mrf.mxu1  ;;  %v4184_v27 = vpack.c.bf16 %v12677_v14, %v4008_v56  ;;  %v12678_v12 = vmax.f32 %v10127_v5, 0.0  ;;  %v3774_v39 = vadd.f32 %v3773_v26, %v9258_v6  ;;  %v3662_v33 = vpop.f32.mrf.mxu0  ;;  %v3978_v57 = vmax.f32 %v10108_v61, 0.0  ;;  %v12729_v51 = vld [vmem:[#allocation15_spill] sm:$0xff] }
 0x3a2   : > { %12673 = vst [vmem:[#allocation31_spill] sm:$0xff] %v10208_v48  ;;  %12676 = vst [vmem:[#allocation18_spill] sm:$0xff] %v10217_v23  ;;  %v3776_v8 = vadd.f32 %v3775_v11, %v9264_v21  ;;  %v3661_v54 = vadd.f32 %v3660_v7, %v9258_v6  ;;  %v3663_v60 = vadd.f32 %v3662_v33, %v9264_v21  ;;  %v12679_v63 = vmax.f32 %v10090_v36, 0.0  ;;  %v12730_v23 = vld [vmem:[#allocation38_spill] sm:$0xff] }
 0x3a3   : > { %v4186_v59 = vpack.c.bf16 %v12678_v12, %v4010_v17  ;;  %v3777_v19 = vpop.f32.mrf.mxu1  ;;  %v12680_v5 = vmax.f32 %v10111_v4, 0.0  ;;  %v3976_v25 = vmax.f32 %v10118_v38, 0.0  ;;  %v3886_v24 = vmax.f32 %v3772_v15, 0.0  ;;  %v3664_v47 = vpop.f32.mrf.mxu0  ;;  %4809 = vmatpush1.bf16.msra.mxu0 %v4184_v27  ;;  %v12689_v17 = vld [vmem:[#allocation36_spill] sm:$0xff]  ;;  %v12698_v27 = vld [vmem:[#allocation3_spill] sm:$0xff] }
 0x3a4   : > { %v3902_v40 = vmax.f32 %v3776_v8, 0.0  ;;  %v3778_v61 = vadd.f32 %v3777_v19, %v9264_v21  ;;  %v12681_v6 = vmax.f32 %v10097_v30, 0.0  ;;  %v3884_v31 = vmax.f32 %v3659_v53, 0.0  ;;  %v12699_v12 = vld [vmem:[#allocation27_spill] sm:$0xff] }
 0x3a5   : > { %4774 = vmatmul.mubr.bf16.gmra.mxu1 %v9907_v13  ;;  %4661 = vmatmul.mubr.bf16.gmra.mxu0 %v9907_v13  ;;  %v4169_v43 = vpack.c.bf16 %v12680_v5, %v12679_v63  ;;  %v3900_v55 = vmax.f32 %v3663_v60, 0.0  ;;  %v3665_v36 = vadd.f32 %v3664_v47, %v9264_v21  ;;  %v3781_v4 = vpop.f32.mrf.mxu1  ;;  %v4168_v45 = vpack.c.bf16 %v3992_v28, %v3976_v25  ;;  %v10242_v22 = vpop.f32.mrf.mxu0  ;;  %v12693_v28 = vld [vmem:[#allocation34_spill] sm:$0xff]  ;;  %v12704_v19 = vld [vmem:[#allocation19_spill] sm:$0xff] }
 0x3a6   : > { %4783 = vmatprep.mubr.bf16.mxu1 %v12583_v10  ;;  %4922 = vmatpush1.bf16.msra.mxu1 %v4186_v59  ;;  %v4170_v13 = vpack.c.bf16 %v12681_v6, %v3978_v57  ;;  %v3887_v50 = vmax.f32 %v3774_v39, 0.0  ;;  %v10240_v38 = vpack.c.bf16 %v3902_v40, %v3886_v24  ;;  %v3903_v34 = vmax.f32 %v3778_v61, 0.0  ;;  %12683 = vst [vmem:[#allocation25_spill] sm:$0xff] %v10242_v22  ;;  %v12700_v39 = vld [vmem:[#allocation17_spill] sm:$0xff]  ;;  %v12702_v57 = vld [vmem:[#allocation28_spill] sm:$0xff] }
 0x3a7   : > { %4810 = vmatprep.subr.bf16.mxu0 %v4169_v43  ;;  %4923 = vmatprep.subr.bf16.mxu1 %v4171_v1  ;;  %v3885_v46 = vmax.f32 %v3661_v54, 0.0  ;;  %v10245_v49 = vpack.c.bf16 %v3900_v55, %v3884_v31  ;;  %v3901_v30 = vmax.f32 %v3665_v36, 0.0  ;;  %v10247_v44 = vpop.f32.mrf.mxu1  ;;  %v12685_v21 = vmax.f32 %v10047_v42, 0.0  ;;  %v10256_v18 = vpop.f32.mrf.mxu0  ;;  %v12690_v42 = vld [vmem:[#allocation32_spill] sm:$0xff]  ;;  %v12707_v31 = vld [vmem:[#allocation14_spill] sm:$0xff] }
 0x3a8   : > { %12682 = vst [vmem:[#allocation7_spill] sm:$0xff] %v10240_v38  ;;  %4670 = vmatprep.mubr.bf16.mxu0 %v12583_v10  ;;  %v12686_v0 = vmax.f32 %v10080_v58, 0.0  ;;  %v3944_v62 = vmax.f32 %v10085_v9, 0.0  ;;  %v3946_v26 = vmax.f32 %v10077_v3, 0.0  ;;  %v3782_v35 = vadd.f32 %v3781_v4, %v12560_v20  ;;  %12687 = vst [vmem:[#allocation21_spill] sm:$0xff] %v10256_v18  ;;  %4811 = vmatpush1.bf16.msra.mxu0 %v4168_v45  ;;  %v12692_v9 = vld [vmem:[#allocation35_spill] sm:$0xff] }
 0x3a9   : > { %12684 = vst [vmem:[#allocation29_spill] sm:$0xff] %v10245_v49  ;;  %v10258_v52 = vpack.c.bf16 %v3903_v34, %v3887_v50  ;;  %v3913_v56 = vmax.f32 %v10061_v37, 0.0  ;;  %v3915_v15 = vmax.f32 %v12689_v17, 0.0  ;;  %v3785_v58 = vpop.f32.mrf.mxu1  ;;  %v10263_v7 = vpack.c.bf16 %v3901_v30, %v3885_v46  ;;  %v10270_v14 = vpop.f32.mrf.mxu0  ;;  %v12708_v55 = vld [vmem:[#allocation10_spill] sm:$0xff]  ;;  %v12709_v36 = vld [vmem:[#allocation20_spill] sm:$0xff]  ;;  %v12710_v50 = vld [vmem:[#allocation9_spill] sm:$0xff] }
 0x3aa   : > { %v4153_v32 = vpack.c.bf16 %v12686_v0, %v12685_v21  ;;  %4924 = vmatpush1.bf16.msra.mxu1 %v4170_v13  ;;  %v3928_v3 = vmax.f32 %v12692_v9, 0.0  ;;  %v12694_v53 = vmax.f32 %v12693_v28, 0.0  ;;  %v12696_v29 = vmax.f32 %v12695_v41, 0.0  ;;  %12697 = vst [vmem:[#allocation36_spill] sm:$0xff] %v10270_v14  ;;  %v12711_v30 = vld [vmem:[#allocation12_spill] sm:$0xff]  ;;  %v12713_v0 = vld [vmem:[#allocation6_spill] sm:$0xff] }
 0x3ab   : > { %12688 = vst [vmem:[#allocation42_spill] sm:$0xff] %v10258_v52  ;;  %4925 = vmatprep.subr.bf16.mxu1 %v12690_v42  ;;  %12691 = vst [vmem:[#allocation23_spill] sm:$0xff] %v10263_v7  ;;  %v3786_v37 = vadd.f32 %v3785_v58, %v12698_v27  ;;  %v10275_v59 = vpop.f32.mrf.mxu1  ;;  %v12701_v33 = vmax.f32 %v12700_v39, 0.0  ;;  %v12703_v54 = vmax.f32 %v12702_v57, 0.0  ;;  %v3912_v63 = vmax.f32 %v12704_v19, 0.0  ;;  %v10283_v25 = vpop.f32.mrf.mxu0  ;;  %v12712_v21 = vld [vmem:[#allocation24_spill] sm:$0xff] }
 0x3ac   : > { %4812 = vmatprep.subr.bf16.mxu0 %v4153_v32  ;;  %v4152_v11 = vpack.c.bf16 %v12694_v53, %v3944_v62  ;;  %v4154_v1 = vpack.c.bf16 %v12696_v29, %v3946_v26  ;;  %v3918_v5 = vmax.f32 %v3782_v35, 0.0  ;;  %v12714_v32 = vld [vmem:[#allocation26_spill] sm:$0xff]  ;;  %v10324_v9 = vld [vmem:[%s11875_s4] sm:$0xff]   ;;  %v12731_v49 = vld [vmem:[#allocation41_spill] sm:$0xff] }
 0x3ad   : > { %4784 = vmatmul.mubr.bf16.gmra.mxu1 %v12699_v12  ;;  %4671 = vmatmul.mubr.bf16.gmra.mxu0 %v12699_v12  ;;  %v4137_v8 = vpack.c.bf16 %v12701_v33, %v3913_v56  ;;  %v4139_v60 = vpack.c.bf16 %v12703_v54, %v3915_v15  ;;  %v3934_v43 = vmax.f32 %v3786_v37, 0.0  ;;  %v10285_v24 = vpop.f32.mrf.mxu1  ;;  %v4136_v40 = vpack.c.bf16 %v3928_v3, %v3912_v63  ;;  %v10289_v61 = vpop.f32.mrf.mxu0  ;;  %v12715_v17 = vld [vmem:[#allocation22_spill] sm:$0xff]  ;;  %v12716_v15 = vld [vmem:[#allocation11_spill] sm:$0xff]  ;;  %v10339_v12 = vld [vmem:[%s11875_s4 + $0x8] sm:$0xff]  }
 0x3ae   : > { %4793 = vmatprep.mubr.bf16.mxu1 %v12583_v10  ;;  %4813 = vmatpush1.bf16.msra.mxu0 %v4152_v11  ;;  %12706 = vst [vmem:[#allocation35_spill] sm:$0xff] %v10289_v61  ;;  %12717 = vst [vmem:[#allocation34_spill] sm:$0xff] %v10324_v9  ;;  %v12732_v38 = vld [vmem:[#allocation13_spill] sm:$0xff] }
 0x3af   : > { %4926 = vmatpush1.bf16.msra.mxu1 %v4154_v1  ;;  %4814 = vmatprep.subr.bf16.mxu0 %v4137_v8  ;;  %v10287_v47 = vpack.c.bf16 %v3934_v43, %v3918_v5  ;;  %v10292_v6 = vpop.f32.mrf.mxu1  ;;  %v10294_v13 = vpop.f32.mrf.mxu0  ;;  %12718 = vst [vmem:[#allocation39_spill] sm:$0xff] %v10339_v12  ;;  %v10352_v5 = vld [vmem:[%s11875_s4 + $0x10] sm:$0xff]  }
 0x3b0   : > { %4927 = vmatprep.subr.bf16.mxu1 %v4139_v60  ;;  %4680 = vmatprep.mubr.bf16.mxu0 %v12583_v10  ;;  %12719 = vst [vmem:[#allocation27_spill] sm:$0xff] %v10352_v5 }
 0x3b1   : > { %12705 = vst [vmem:[#allocation32_spill] sm:$0xff] %v10287_v47  ;;  %v10299_v4 = vpop.f32.mrf.mxu1  ;;  %v10301_v45 = vpop.f32.mrf.mxu0 }
 0x3b2   : > { %4815 = vmatpush1.bf16.msra.mxu0 %v4136_v40 }
 0x3b3   : > { %4928 = vmatpush1.bf16.msra.mxu1 %v12707_v31  ;;  %4816 = vmatprep.subr.bf16.mxu0 %v12708_v55  ;;  %v3797_v34 = vpop.f32.mrf.mxu1  ;;  %v3684_v46 = vpop.f32.mrf.mxu0  ;;  %v10360_v55 = vadd.f32 %v10247_v44, %v12560_v20 }
 0x3b4   : > { %4929 = vmatprep.subr.bf16.mxu1 %v12709_v36  ;;  %v10364_v36 = vadd.f32 %v10283_v25, %v12698_v27 }
 0x3b5   : > { %4794 = vmatmul.mubr.bf16.gmra.mxu1 %v12710_v50  ;;  %4681 = vmatmul.mubr.bf16.gmra.mxu0 %v12710_v50  ;;  %v10310_v62 = vpop.f32.mrf.mxu1  ;;  %v10312_v26 = vpop.f32.mrf.mxu0  ;;  %12720 = vst [vmem:[#allocation17_spill] sm:$0xff] %v10360_v55  ;;  %v10368_v50 = vadd.f32 %v10275_v59, %v12698_v27 }
 0x3b6   : > { %4949 = vmatprep.mubr.bf16.mxu1 %v12583_v10  ;;  %4817 = vmatpush1.bf16.msra.mxu0 %v12711_v30  ;;  %12721 = vst [vmem:[#allocation28_spill] sm:$0xff] %v10364_v36 }
 0x3b7   : > { %4930 = vmatpush1.bf16.msra.mxu1 %v12712_v21  ;;  %4818 = vmatprep.subr.bf16.mxu0 %v12713_v0  ;;  %v3803_v35 = vpop.f32.mrf.mxu1  ;;  %v3690_v56 = vpop.f32.mrf.mxu0  ;;  %12722 = vst [vmem:[#allocation19_spill] sm:$0xff] %v10368_v50  ;;  %v12723_v21 = vld [vmem:[#allocation37_spill] sm:$0xff] }
 0x3b8   : > { %4931 = vmatprep.subr.bf16.mxu1 %v12714_v32  ;;  %4836 = vmatprep.mubr.bf16.mxu0 %v12583_v10  ;;  %v10372_v0 = vadd.f32 %v10294_v13, %v12723_v21  ;;  %v10376_v32 = vadd.f32 %v10292_v6, %v12723_v21 }
 0x3b9   : > { %v10317_v42 = vpop.f32.mrf.mxu1  ;;  %v10319_v58 = vpop.f32.mrf.mxu0 }
 0x3ba   : > { %4819 = vmatpush1.bf16.msra.mxu0 %v12715_v17  ;;  %12724 = vst [vmem:[#allocation14_spill] sm:$0xff] %v10372_v0  ;;  %12725 = vst [vmem:[#allocation10_spill] sm:$0xff] %v10376_v32  ;;  %v12726_v17 = vld [vmem:[#allocation4_spill] sm:$0xff] }
 0x3bb   : > { %4932 = vmatpush1.bf16.msra.mxu1 %v12716_v15  ;;  %v3807_v3 = vpop.f32.mrf.mxu1  ;;  %v3694_v28 = vpop.f32.mrf.mxu0  ;;  %v10379_v44 = vadd.f32 %v3684_v46, %v12726_v17  ;;  %v10382_v15 = vadd.f32 %v3797_v34, %v12726_v17 }
 0x3bd   : > { %4837 = vmatmul.mubr.bf16.vlgmr.msra.gmra.mxu0 %v10324_v9  ;;  %v10330_v53 = vpop.f32.mrf.mxu1  ;;  %v10332_v11 = vpop.f32.mrf.mxu0 }
 0x3be   : > { %4950 = vmatmul.mubr.bf16.vlgmr.msra.gmra.mxu1 %v10324_v9  ;;  %4846 = vmatprep.mubr.bf16.mxu0 %v12583_v10  ;;  %v12728_v9 = vld [vmem:[#allocation16_spill] sm:$0xff] }
 0x3bf   : > { %4959 = vmatprep.mubr.bf16.mxu1 %v12583_v10  ;;  %v3813_v41 = vpop.f32.mrf.mxu1  ;;  %v3700_v29 = vpop.f32.mrf.mxu0  ;;  %v10391_v13 = vadd.f32 %v3694_v28, %v12728_v9  ;;  %v10394_v16 = vadd.f32 %v3807_v3, %v12728_v9 }
 0x3c0   : > { %v10397_v46 = vadd.f32 %v3700_v29, %v12729_v51  ;;  %v10400_v34 = vadd.f32 %v3813_v41, %v12729_v51  ;;  %v12733_v29 = vld [vmem:[#allocation8_spill] sm:$0xff] }
 0x3c1   : > { %v3815_v1 = vpop.f32.mrf.mxu1  ;;  %v10334_v37 = vpop.f32.mrf.mxu0 }
 0x3c2   : > { %v10403_v48 = vadd.f32 %v3815_v1, %v12730_v23 }
 0x3c3   : > { %v3817_v39 = vpop.f32.mrf.mxu1  ;;  %v3704_v33 = vpop.f32.mrf.mxu0 }
 0x3c4   : > { %v10409_v28 = vadd.f32 %v3704_v33, %v12730_v23 }
 0x3c5   : > { %4847 = vmatmul.mubr.bf16.gmra.mxu0 %v10339_v12  ;;  %v10345_v8 = vpop.f32.mrf.mxu1  ;;  %v10347_v57 = vpop.f32.mrf.mxu0 }
 0x3c6   : > { %4960 = vmatmul.mubr.bf16.gmra.mxu1 %v10339_v12  ;;  %4856 = vmatprep.mubr.bf16.mxu0 %v12583_v10 }
 0x3c7   : > { %4969 = vmatprep.mubr.bf16.mxu1 %v12583_v10  ;;  %v3823_v54 = vpop.f32.mrf.mxu1  ;;  %v3710_v60 = vpop.f32.mrf.mxu0 }
 0x3c8   : > { %v3824_v3 = vadd.f32 %v3823_v54, %v12731_v49 }
 0x3c9   : > { %v3825_v19 = vpop.f32.mrf.mxu1  ;;  %v3712_v63 = vpop.f32.mrf.mxu0 }
 0x3ca   : > { %v3826_v22 = vadd.f32 %v3825_v19, %v12665_v2  ;;  %v4047_v19 = vmax.f32 %v3824_v3, 0.0  ;;  %v3796_v3 = vadd.f32 %v10299_v4, %v12726_v17 }
 0x3cb   : > { %v3827_v43 = vpop.f32.mrf.mxu1  ;;  %v3714_v40 = vpop.f32.mrf.mxu0 }
 0x3cc   : > { %v3828_v41 = vadd.f32 %v3827_v43, %v12665_v2  ;;  %v3715_v54 = vadd.f32 %v3714_v40, %v12665_v2  ;;  %v3713_v40 = vadd.f32 %v3712_v63, %v12665_v2  ;;  %v3703_v2 = vadd.f32 %v10334_v37, %v12730_v23 }
 0x3cd   : > { %4857 = vmatmul.mubr.bf16.gmra.mxu0 %v10352_v5  ;;  %v3831_v31 = vpop.f32.mrf.mxu1  ;;  %v3718_v30 = vpop.f32.mrf.mxu0 }
 0x3ce   : > { %4970 = vmatmul.mubr.bf16.gmra.mxu1 %v10352_v5  ;;  %4866 = vmatprep.mubr.bf16.mxu0 %v12583_v10  ;;  %v12727_v5 = vld [vmem:[#allocation40_spill] sm:$0xff]  ;;  %v4061_v61 = vmax.f32 %v3715_v54, 0.0 }
 0x3cf   : > { %4979 = vmatprep.mubr.bf16.mxu1 %v12583_v10  ;;  %v3833_v25 = vpop.f32.mrf.mxu1  ;;  %v10385_v12 = vadd.f32 %v3690_v56, %v12727_v5  ;;  %v10388_v59 = vadd.f32 %v3803_v35, %v12727_v5  ;;  %v3720_v6 = vpop.f32.mrf.mxu0  ;;  %v10406_v56 = vadd.f32 %v3817_v39, %v12730_v23  ;;  %v10420_v39 = vld [vmem:[%s11875_s4 + $0x18] sm:$0xff]  }
 0x3d0   : > { %v3834_v7 = vadd.f32 %v3833_v25, %v12732_v38  ;;  %v3721_v55 = vadd.f32 %v3720_v6, %v12732_v38  ;;  %12734 = vst [vmem:[#allocation20_spill] sm:$0xff] %v10420_v39  ;;  %v3832_v25 = vadd.f32 %v3831_v31, %v12732_v38  ;;  %v3711_v6 = vadd.f32 %v3710_v60, %v12731_v49 }
 0x3d1   : > { %v3835_v35 = vpop.f32.mrf.mxu1  ;;  %v3722_v52 = vpop.f32.mrf.mxu0 }
 0x3d2   : > { %v3836_v47 = vadd.f32 %v3835_v35, %v12733_v29  ;;  %v3723_v1 = vadd.f32 %v3722_v52, %v12733_v29  ;;  %v10429_v52 = vpop.permute.xlu1 %4241  ;;  %v4079_v31 = vmax.f32 %v3834_v7, 0.0  ;;  %v4077_v14 = vmax.f32 %v3721_v55, 0.0 }
 0x3d3   : > { %v3837_v33 = vpop.f32.mrf.mxu1  ;;  %v3724_v35 = vpop.f32.mrf.mxu0  ;;  %12735 = vst [vmem:[#allocation9_spill] sm:$0xff] %v10429_v52  ;;  %v3822_v52 = vadd.f32 %v10345_v8, %v12731_v49  ;;  %v4078_v60 = vmax.f32 %v3832_v25, 0.0  ;;  %v4045_v7 = vmax.f32 %v3711_v6, 0.0  ;;  %v4031_v8 = vmax.f32 %v10406_v56, 0.0 }
 0x3d4   : > { %v3838_v43 = vadd.f32 %v3837_v33, %v12733_v29  ;;  %v3725_v36 = vadd.f32 %v3724_v35, %v12733_v29  ;;  %v4094_v50 = vmax.f32 %v3836_v47, 0.0  ;;  %v4063_v33 = vmax.f32 %v3828_v41, 0.0 }
 0x3d5   : > { %4867 = vmatmul.mubr.bf16.gmra.mxu0 %v10420_v39  ;;  %v4092_v27 = vmax.f32 %v3723_v1, 0.0  ;;  %v4062_v47 = vmax.f32 %v3826_v22, 0.0  ;;  %v3812_v22 = vadd.f32 %v10330_v53, %v12729_v51  ;;  %v4205_v37 = vpack.c.bf16 %v4061_v61, %v4045_v7 }
 0x3d6   : > { %4980 = vmatmul.mubr.bf16.gmra.mxu1 %v10420_v39  ;;  %4876 = vmatprep.mubr.bf16.mxu0 %v12583_v10  ;;  %v3719_v39 = vadd.f32 %v3718_v30, %v12732_v38  ;;  %v4095_v0 = vmax.f32 %v3838_v43, 0.0  ;;  %v4093_v32 = vmax.f32 %v3725_v36, 0.0  ;;  %v3709_v38 = vadd.f32 %v10347_v57, %v12731_v49  ;;  %v10442_v55 = vpop.permute.xlu1 %4249  ;;  %v10448_v49 = vld [vmem:[%s11875_s4 + $0x20] sm:$0xff]  }
 0x3d7   : > { %4989 = vmatprep.mubr.bf16.mxu1 %v12583_v10  ;;  %v4222_v63 = vpack.c.bf16 %v4094_v50, %v4078_v60  ;;  %12736 = vst [vmem:[#allocation12_spill] sm:$0xff] %v10442_v55  ;;  %v4060_v36 = vmax.f32 %v3713_v40, 0.0  ;;  %v4207_v23 = vpack.c.bf16 %v4063_v33, %v4047_v19  ;;  %v3699_v57 = vadd.f32 %v10332_v11, %v12729_v51  ;;  %v12739_v40 = vld [vmem:[#allocation35_spill] sm:$0xff]  ;;  %v12740_v33 = vld [vmem:[#allocation10_spill] sm:$0xff] }
 0x3d8   : > { %v4223_v18 = vpack.c.bf16 %v4095_v0, %v4079_v31  ;;  %v4076_v30 = vmax.f32 %v3719_v39, 0.0  ;;  %v4221_v29 = vpack.c.bf16 %v4093_v32, %v4077_v14  ;;  %v4046_v14 = vmax.f32 %v3822_v52, 0.0  ;;  %v12738_v52 = vld [vmem:[#allocation21_spill] sm:$0xff] }
 0x3d9   : > { %v4015_v50 = vmax.f32 %v10400_v34, 0.0  ;;  %v4044_v0 = vmax.f32 %v3709_v38, 0.0  ;;  %v3693_v53 = vadd.f32 %v10319_v58, %v12728_v9  ;;  %v4013_v32 = vmax.f32 %v10397_v46, 0.0 }
 0x3da   : > { %5143 = vmatprep.subr.bf16.mxu1 %v4223_v18  ;;  %v4220_v41 = vpack.c.bf16 %v4092_v27, %v4076_v30  ;;  %v4029_v18 = vmax.f32 %v10409_v28, 0.0  ;;  %5030 = vmatprep.subr.bf16.mxu0 %v4221_v29  ;;  %v3806_v27 = vadd.f32 %v10317_v42, %v12728_v9  ;;  %v4030_v56 = vmax.f32 %v10403_v48, 0.0  ;;  %v10470_v48 = vpop.permute.xlu1 %4253  ;;  %v12743_v30 = vld [vmem:[#allocation14_spill] sm:$0xff] }
 0x3db   : > { %5144 = vmatpush1.bf16.msra.mxu1 %v4222_v63  ;;  %v4206_v28 = vpack.c.bf16 %v4062_v47, %v4046_v14  ;;  %v3999_v61 = vmax.f32 %v10394_v16, 0.0  ;;  %v4028_v42 = vmax.f32 %v3703_v2, 0.0  ;;  %v4204_v51 = vpack.c.bf16 %v4060_v36, %v4044_v0  ;;  %12737 = vst [vmem:[#allocation24_spill] sm:$0xff] %v10470_v48  ;;  %v12745_v63 = vld [vmem:[#allocation19_spill] sm:$0xff] }
 0x3dc   : > { %5031 = vmatpush1.bf16.msra.mxu0 %v4220_v41  ;;  %5145 = vmatprep.subr.bf16.mxu1 %v4207_v23  ;;  %v4191_v11 = vpack.c.bf16 %v4031_v8, %v4015_v50  ;;  %v3802_v34 = vadd.f32 %v10310_v62, %v12727_v5  ;;  %v3997_v58 = vmax.f32 %v10391_v13, 0.0  ;;  %v4014_v9 = vmax.f32 %v3812_v22, 0.0  ;;  %v12746_v23 = vld [vmem:[#allocation28_spill] sm:$0xff] }
 0x3dd   : > { %4877 = vmatmul.mubr.bf16.gmra.mxu0 %v10448_v49  ;;  %5032 = vmatprep.subr.bf16.mxu0 %v4205_v37  ;;  %v4189_v46 = vpack.c.bf16 %v4029_v18, %v4013_v32  ;;  %v3689_v16 = vadd.f32 %v10312_v26, %v12727_v5  ;;  %v3983_v1 = vmax.f32 %v10388_v59, 0.0  ;;  %v4012_v39 = vmax.f32 %v3699_v57, 0.0  ;;  %v10484_v26 = vld [vmem:[%s11875_s4 + $0x28] sm:$0xff]   ;;  %v10492_v59 = vpop.permute.xlu0 %4245  ;;  %v12747_v37 = vld [vmem:[#allocation25_spill] sm:$0xff] }
 0x3de   : > { %4990 = vmatmul.mubr.bf16.gmra.mxu1 %v10448_v49  ;;  %4886 = vmatprep.mubr.bf16.mxu0 %v12583_v10  ;;  %v3683_v62 = vadd.f32 %v10301_v45, %v12726_v17  ;;  %v3981_v13 = vmax.f32 %v10385_v12, 0.0  ;;  %v3998_v54 = vmax.f32 %v3806_v27, 0.0  ;;  %v4190_v25 = vpack.c.bf16 %v4030_v56, %v4014_v9  ;;  %v10503_v47 = vpop.permute.xlu1 %5517  ;;  %v12748_v57 = vld [vmem:[#allocation17_spill] sm:$0xff] }
 0x3df   : > { %4999 = vmatprep.mubr.bf16.mxu1 %v12583_v10  ;;  %5146 = vmatpush1.bf16.msra.mxu1 %v4206_v28  ;;  %v3967_v35 = vmax.f32 %v10382_v15, 0.0  ;;  %v3996_v43 = vmax.f32 %v3693_v53, 0.0  ;;  %v4188_v4 = vpack.c.bf16 %v4028_v42, %v4012_v39  ;;  %v4175_v5 = vpack.c.bf16 %v3999_v61, %v3983_v1  ;;  %12744 = vst [vmem:[#allocation6_spill] sm:$0xff] %v10503_v47  ;;  %v10515_v42 = vld [vmem:[%s11875_s4 + $0x30] sm:$0xff]   ;;  %v10533_v39 = vld [vmem:[%s11875_s4 + $0x38] sm:$0xff]  }
 0x3e0   : > { %5033 = vmatpush1.bf16.msra.mxu0 %v4204_v51  ;;  %5147 = vmatprep.subr.bf16.mxu1 %v4191_v11  ;;  %v3792_v45 = vadd.f32 %v10285_v24, %v12723_v21  ;;  %v3965_v12 = vmax.f32 %v10379_v44, 0.0  ;;  %v3982_v17 = vmax.f32 %v3802_v34, 0.0  ;;  %v4173_v15 = vpack.c.bf16 %v3997_v58, %v3981_v13  ;;  %v12741_v24 = vld [vmem:[#allocation3_spill] sm:$0xff]  ;;  %v12742_v44 = vld [vmem:[#allocation36_spill] sm:$0xff] }
 0x3e1   : > { %5034 = vmatprep.subr.bf16.mxu0 %v4189_v46  ;;  %v3671_v6 = vadd.f32 %v12738_v52, %v12560_v20  ;;  %v3679_v31 = vadd.f32 %v12739_v40, %v12723_v21  ;;  %v3951_v60 = vmax.f32 %v12740_v33, 0.0  ;;  %v3980_v38 = vmax.f32 %v3689_v16, 0.0  ;;  %v10510_v56 = vpop.permute.xlu0 %5513  ;;  %v12752_v46 = vld [vmem:[#allocation32_spill] sm:$0xff]  ;;  %v12754_v16 = vld [vmem:[#allocation23_spill] sm:$0xff] }
 0x3e2   : > { %v3673_v19 = vadd.f32 %v12742_v44, %v12741_v24  ;;  %v3949_v29 = vmax.f32 %v12743_v30, 0.0  ;;  %v3966_v2 = vmax.f32 %v3796_v3, 0.0  ;;  %v4174_v7 = vpack.c.bf16 %v3998_v54, %v3982_v17  ;;  %12749 = vst [vmem:[#allocation26_spill] sm:$0xff] %v10510_v56  ;;  %v10520_v11 = vpop.permute.xlu1 %4257  ;;  %v12753_v3 = vld [vmem:[#allocation42_spill] sm:$0xff]  ;;  %v12758_v54 = vld [vmem:[#allocation29_spill] sm:$0xff] }
 0x3e3   : > { %5148 = vmatpush1.bf16.msra.mxu1 %v4190_v25  ;;  %v3935_v8 = vmax.f32 %v12745_v63, 0.0  ;;  %v3964_v21 = vmax.f32 %v3683_v62, 0.0  ;;  %v4172_v36 = vpack.c.bf16 %v3996_v43, %v3980_v38  ;;  %v4159_v41 = vpack.c.bf16 %v3967_v35, %v3951_v60  ;;  %12750 = vst [vmem:[#allocation22_spill] sm:$0xff] %v10520_v11  ;;  %v12756_v62 = vld [vmem:[#allocation7_spill] sm:$0xff]  ;;  %v12760_v35 = vld [vmem:[#allocation18_spill] sm:$0xff]  ;;  %v12761_v43 = vld [vmem:[#allocation33_spill] sm:$0xff] }
 0x3e4   : > { %5035 = vmatpush1.bf16.msra.mxu0 %v4188_v4  ;;  %5149 = vmatprep.subr.bf16.mxu1 %v4175_v5  ;;  %v3933_v22 = vmax.f32 %v12746_v23, 0.0  ;;  %v3950_v18 = vmax.f32 %v3792_v45, 0.0  ;;  %v4157_v14 = vpack.c.bf16 %v3965_v12, %v3949_v29  ;;  %v3669_v27 = vadd.f32 %v12747_v37, %v12560_v20  ;;  %v12759_v25 = vld [vmem:[#allocation31_spill] sm:$0xff]  ;;  %v12763_v5 = vld [vmem:[#allocation30_spill] sm:$0xff] }
 0x3e5   : > { %4887 = vmatmul.mubr.bf16.gmra.mxu0 %v10484_v26  ;;  %5036 = vmatprep.subr.bf16.mxu0 %v4173_v15  ;;  %v3919_v50 = vmax.f32 %v12748_v57, 0.0  ;;  %v3948_v0 = vmax.f32 %v3679_v31, 0.0  ;;  %v3917_v53 = vmax.f32 %v3671_v6, 0.0  ;;  %v3932_v28 = vmax.f32 %v3673_v19, 0.0  ;;  %v10523_v58 = vpop.permute.xlu0 %5521  ;;  %v12765_v15 = vld [vmem:[#allocation34_spill] sm:$0xff]  ;;  %v12767_v19 = vld [vmem:[#allocation9_spill] sm:$0xff] }
 0x3e6   : > { %5000 = vmatmul.mubr.bf16.gmra.mxu1 %v10484_v26  ;;  %4896 = vmatprep.mubr.bf16.mxu0 %v12583_v10  ;;  %v4158_v32 = vpack.c.bf16 %v3966_v2, %v3950_v18  ;;  %v3916_v34 = vmax.f32 %v3669_v27, 0.0  ;;  %12751 = vst [vmem:[#allocation11_spill] sm:$0xff] %v10523_v58  ;;  %v10528_v1 = vpop.permute.xlu1 %4261  ;;  %v12768_v2 = vld [vmem:[#allocation39_spill] sm:$0xff] }
 0x3e7   : > { %5009 = vmatprep.mubr.bf16.mxu1 %v12583_v10  ;;  %5150 = vmatpush1.bf16.msra.mxu1 %v4174_v7  ;;  %v4156_v61 = vpack.c.bf16 %v3964_v21, %v3948_v0  ;;  %v4143_v20 = vpack.c.bf16 %v3935_v8, %v3919_v50  ;;  %v4141_v51 = vpack.c.bf16 %v3933_v22, %v3917_v53 }
 0x3e8   : > { %5037 = vmatpush1.bf16.msra.mxu0 %v4172_v36  ;;  %5151 = vmatprep.subr.bf16.mxu1 %v4159_v41  ;;  %v4140_v9 = vpack.c.bf16 %v3932_v28, %v3916_v34  ;;  %12755 = vst [vmem:[#allocation37_spill] sm:$0xff] %v10528_v1 }
 0x3e9   : > { %5038 = vmatprep.subr.bf16.mxu0 %v4157_v14  ;;  %v10539_v13 = vpop.permute.xlu0 %5525 }
 0x3ea   : > { %12757 = vst [vmem:[#allocation4_spill] sm:$0xff] %v10539_v13  ;;  %v10546_v4 = vpop.permute.xlu1 %4265 }
 0x3eb   : > { %5152 = vmatpush1.bf16.msra.mxu1 %v4158_v32  ;;  %12762 = vst [vmem:[#allocation40_spill] sm:$0xff] %v10546_v4 }
 0x3ec   : > { %5039 = vmatpush1.bf16.msra.mxu0 %v4156_v61  ;;  %5153 = vmatprep.subr.bf16.mxu1 %v4143_v20 }
 0x3ed   : > { %4897 = vmatmul.mubr.bf16.gmra.mxu0 %v10515_v42  ;;  %5040 = vmatprep.subr.bf16.mxu0 %v4141_v51  ;;  %v10549_v12 = vpop.permute.xlu0 %5529 }
 0x3ee   : > { %5010 = vmatmul.mubr.bf16.gmra.mxu1 %v10515_v42  ;;  %4906 = vmatprep.mubr.bf16.mxu0 %v12583_v10  ;;  %12764 = vst [vmem:[#allocation16_spill] sm:$0xff] %v10549_v12  ;;  %v10555_v31 = vpop.permute.xlu1 %4269 }
 0x3ef   : > { %5019 = vmatprep.mubr.bf16.mxu1 %v12583_v10  ;;  %5154 = vmatpush1.bf16.msra.mxu1 %v12752_v46  ;;  %12766 = vst [vmem:[#allocation15_spill] sm:$0xff] %v10555_v31 }
 0x3f0   : > { %5041 = vmatpush1.bf16.msra.mxu0 %v4140_v9  ;;  %5155 = vmatprep.subr.bf16.mxu1 %v12753_v3 }
 0x3f1   : > { %5042 = vmatprep.subr.bf16.mxu0 %v12754_v16  ;;  %v10557_v38 = vpop.permute.xlu0 %5533 }
 0x3f2   : > { %v10571_v21 = vpop.permute.xlu1 %4273 }
 0x3f3   : > { %5156 = vmatpush1.bf16.msra.mxu1 %v12756_v62  ;;  %12769 = vst [vmem:[#allocation38_spill] sm:$0xff] %v10571_v21 }
 0x3f4   : > { %5043 = vmatpush1.bf16.msra.mxu0 %v12758_v54  ;;  %5157 = vmatprep.subr.bf16.mxu1 %v12759_v25 }
 0x3f5   : > { %4907 = vmatmul.mubr.bf16.gmra.mxu0 %v10533_v39  ;;  %5044 = vmatprep.subr.bf16.mxu0 %v12760_v35  ;;  %v10580_v18 = vpop.permute.xlu0 %5537 }
 0x3f6   : > { %5020 = vmatmul.mubr.bf16.gmra.mxu1 %v10533_v39  ;;  %5062 = vmatprep.mubr.bf16.mxu0 %v12583_v10  ;;  %v10611_v62 = vpop.permute.xlu1 %4277 }
 0x3f7   : > { %5175 = vmatprep.mubr.bf16.mxu1 %v12583_v10  ;;  %5158 = vmatpush1.bf16.msra.mxu1 %v12761_v43  ;;  %12770 = vst [vmem:[#allocation41_spill] sm:$0xff] %v10611_v62 }
 0x3f8   : > { %5045 = vmatpush1.bf16.msra.mxu0 %v12763_v5 }
 0x3fb   : > { %v4499_v45 = vpop.f32.mrf.mxu1 }
 0x3fc   : > { %v10560_v30 = vadd.f32 %v4499_v45, %v12767_v19  ;;  %v12771_v45 = vld [vmem:[#allocation27_spill] sm:$0xff] }
 0x3fd   : > { %v4386_v17 = vpop.f32.mrf.mxu0  ;;  %v4501_v52 = vpop.f32.mrf.mxu1  ;;  %5063 = vmatmul.mubr.bf16.vlgmr.msra.gmra.mxu0 %v12765_v15 }
 0x3fe   : > { %5176 = vmatmul.mubr.bf16.vlgmr.msra.gmra.mxu1 %v12765_v15  ;;  %5072 = vmatprep.mubr.bf16.mxu0 %v12583_v10  ;;  %v10564_v63 = vadd.f32 %v4386_v17, %v12767_v19  ;;  %v10567_v8 = vadd.f32 %v4501_v52, %v12767_v19  ;;  %v5258_v14 = vmax.f32 %v10560_v30, 0.0 }
 0x3ff   : > { %5185 = vmatprep.mubr.bf16.mxu1 %v12583_v10  ;;  %v4388_v6 = vpop.f32.mrf.mxu0  ;;  %v4503_v40 = vpop.f32.mrf.mxu1 }
 0x400   : > { %v10575_v23 = vadd.f32 %v4388_v6, %v12767_v19  ;;  %v10578_v22 = vadd.f32 %v4503_v40, %v10492_v59  ;;  %v5256_v57 = vmax.f32 %v10564_v63, 0.0  ;;  %v5259_v50 = vmax.f32 %v10567_v8, 0.0 }
 0x401   : > { %v4390_v33 = vpop.f32.mrf.mxu0  ;;  %v4505_v60 = vpop.f32.mrf.mxu1 }
 0x402   : > { %v10586_v0 = vadd.f32 %v4390_v33, %v10492_v59  ;;  %v10589_v53 = vadd.f32 %v4505_v60, %v10492_v59  ;;  %v5257_v9 = vmax.f32 %v10575_v23, 0.0  ;;  %v10638_v33 = vpop.permute.xlu0 %5541 }
 0x403   : > { %v4392_v24 = vpop.f32.mrf.mxu0  ;;  %v4509_v44 = vpop.f32.mrf.mxu1  ;;  %12772 = vst [vmem:[#allocation13_spill] sm:$0xff] %v10638_v33 }
 0x404   : > { %v10592_v32 = vadd.f32 %v4392_v24, %v10492_v59  ;;  %v10598_v61 = vadd.f32 %v4509_v44, %v10442_v55  ;;  %v5272_v15 = vmax.f32 %v10586_v0, 0.0 }
 0x405   : > { %v4396_v29 = vpop.f32.mrf.mxu0  ;;  %v4511_v7 = vpop.f32.mrf.mxu1  ;;  %5073 = vmatmul.mubr.bf16.gmra.mxu0 %v12768_v2 }
 0x406   : > { %5186 = vmatmul.mubr.bf16.gmra.mxu1 %v12768_v2  ;;  %5082 = vmatprep.mubr.bf16.mxu0 %v12583_v10  ;;  %v10595_v28 = vadd.f32 %v4396_v29, %v10442_v55  ;;  %v10601_v20 = vadd.f32 %v4511_v7, %v10442_v55  ;;  %v5273_v60 = vmax.f32 %v10592_v32, 0.0  ;;  %v10680_v29 = vpop.permute.xlu0 %5545 }
 0x407   : > { %5195 = vmatprep.mubr.bf16.mxu1 %v12583_v10  ;;  %v4398_v36 = vpop.f32.mrf.mxu0  ;;  %v4513_v41 = vpop.f32.mrf.mxu1  ;;  %12775 = vst [vmem:[#allocation35_spill] sm:$0xff] %v10680_v29 }
 0x408   : > { %v10606_v3 = vadd.f32 %v4398_v36, %v10442_v55  ;;  %v10609_v16 = vadd.f32 %v4513_v41, %v10470_v48  ;;  %v5288_v24 = vmax.f32 %v10595_v28, 0.0  ;;  %v12776_v41 = vld [vmem:[#allocation20_spill] sm:$0xff]  ;;  %v6522_v36 = vmov 1966171168  }
 0x409   : > { %v4400_v37 = vpop.f32.mrf.mxu0  ;;  %v4515_v27 = vpop.f32.mrf.mxu1  ;;  %v6207_v52 = vunpack.c.l.s4 %v6522_v36 }
 0x40a   : > { %v10616_v54 = vadd.f32 %v4400_v37, %v10470_v48  ;;  %v10622_v35 = vadd.f32 %v4515_v27, %v10470_v48  ;;  %v10670_v27 = vstv %s10613_s12 }
 0x40b   : > { %v4402_v51 = vpop.f32.mrf.mxu0  ;;  %v4519_v34 = vpop.f32.mrf.mxu1  ;;  %12774 = vst [vmem:[#allocation21_spill] sm:$0xff] %v10670_v27  ;;  %v6208_v30 = vunpack.c.0.s8 %v6207_v52 }
 0x40c   : > { %v10619_v25 = vadd.f32 %v4402_v51, %v10470_v48  ;;  %v10625_v5 = vadd.f32 %v4519_v34, %v10520_v11 }
 0x40d   : > { %v4406_v43 = vpop.f32.mrf.mxu0  ;;  %v4521_v17 = vpop.f32.mrf.mxu1  ;;  %5083 = vmatmul.mubr.bf16.gmra.mxu0 %v12771_v45 }
 0x40e   : > { %5196 = vmatmul.mubr.bf16.gmra.mxu1 %v12771_v45  ;;  %v10631_v6 = vadd.f32 %v4406_v43, %v10520_v11  ;;  %v10635_v40 = vadd.f32 %v4521_v17, %v10520_v11  ;;  %5092 = vmatprep.mubr.bf16.mxu0 %v12583_v10  ;;  %v10686_v43 = vmul.f32 %v10510_v56, %v5256_v57 }
 0x40f   : > { %5205 = vmatprep.mubr.bf16.mxu1 %v12583_v10  ;;  %v4408_v2 = vpop.f32.mrf.mxu0  ;;  %v4523_v7 = vpop.f32.mrf.mxu1 }
 0x410   : > { %v10648_v23 = vadd.f32 %v4408_v2, %v10520_v11  ;;  %v10651_v37 = vadd.f32 %v4523_v7, %v10528_v1  ;;  %v10665_v7 = vpop.permute.xlu1 %4281 }
 0x411   : > { %v4410_v51 = vpop.f32.mrf.mxu0  ;;  %v4525_v34 = vpop.f32.mrf.mxu1  ;;  %12773 = vst [vmem:[#allocation8_spill] sm:$0xff] %v10665_v7 }
 0x412   : > { %v10660_v17 = vadd.f32 %v4410_v51, %v10528_v1  ;;  %v10663_v2 = vadd.f32 %v4525_v34, %v10528_v1 }
 0x413   : > { %v4412_v0 = vpop.f32.mrf.mxu0  ;;  %v4529_v28 = vpop.f32.mrf.mxu1 }
 0x414   : > { %v10674_v45 = vadd.f32 %v4412_v0, %v10528_v1  ;;  %v10678_v34 = vadd.f32 %v4529_v28, %v10546_v4  ;;  %v10689_v0 = vmul.f32 %v10510_v56, %v5257_v9  ;;  %v10694_v28 = vmul.f32 %v10510_v56, %v5258_v14  ;;  %v10726_v8 = vpop.permute.xlu1 %4285 }
 0x415   : > { %v4416_v44 = vpop.f32.mrf.mxu0  ;;  %v4531_v32 = vpop.f32.mrf.mxu1  ;;  %5093 = vmatmul.mubr.bf16.gmra.mxu0 %v12776_v41  ;;  %v10710_v14 = vmul.f32 %v10510_v56, %v5259_v50  ;;  %12778 = vst [vmem:[#allocation3_spill] sm:$0xff] %v10726_v8 }
 0x416   : > { %5206 = vmatmul.mubr.bf16.gmra.mxu1 %v12776_v41  ;;  %v10698_v46 = vadd.f32 %v4416_v44, %v10546_v4  ;;  %v10703_v63 = vadd.f32 %v4531_v32, %v10546_v4  ;;  %5102 = vmatprep.mubr.bf16.mxu0 %v12583_v10  ;;  %v10713_v44 = vmul.f32 %v10503_v47, %v5272_v15 }
 0x417   : > { %5215 = vmatprep.mubr.bf16.mxu1 %v12583_v10  ;;  %v4418_v57 = vpop.f32.mrf.mxu0  ;;  %v4533_v9 = vpop.f32.mrf.mxu1  ;;  %12777 = vst [vmem:[#allocation10_spill] sm:$0xff] %v10710_v14  ;;  %v10716_v41 = vmul.f32 %v10503_v47, %v5273_v60  ;;  %v12779_v14 = vld [vmem:[#allocation5_spill] sm:$0xff]  ;;  %v12781_v60 = vmax.f32 %v10578_v22, 0.0 }
 0x418   : > { %v5352_v32 = vmax.f32 %v10698_v46, 0.0  ;;  %v10720_v36 = vadd.f32 %v4418_v57, %v10546_v4  ;;  %v10724_v52 = vadd.f32 %v4533_v9, %v10555_v31  ;;  %v10729_v15 = vsub.s32 %v6208_v30, %v12779_v14  ;;  %v10750_v22 = vpop.permute.xlu0 %5549 }
 0x419   : > { %v4420_v50 = vpop.f32.mrf.mxu0  ;;  %v4535_v27 = vpop.f32.mrf.mxu1  ;;  %v10734_v1 = vmul.f32 %v10503_v47, %v12781_v60  ;;  %v12782_v46 = vmax.f32 %v10589_v53, 0.0  ;;  %v10742_v9 = vmul.f32 %v10523_v58, %v5288_v24  ;;  %12784 = vst [vmem:[#allocation19_spill] sm:$0xff] %v10750_v22  ;;  %v12785_v53 = vmax.f32 %v10606_v3, 0.0 }
 0x41a   : > { %12780 = vst [vmem:[#allocation36_spill] sm:$0xff] %v10729_v15  ;;  %v5353_v51 = vmax.f32 %v10720_v36, 0.0  ;;  %v4421_v4 = vadd.f32 %v4420_v50, %v10555_v31  ;;  %v10748_v14 = vadd.f32 %v4535_v27, %v10555_v31  ;;  %v12786_v24 = vmax.f32 %v10598_v61, 0.0 }
 0x41b   : > { %v10739_v57 = vmul.f32 %v10503_v47, %v12782_v46  ;;  %v4422_v60 = vpop.f32.mrf.mxu0  ;;  %v4539_v15 = vpop.f32.mrf.mxu1  ;;  %v10755_v46 = vmul.f32 %v10523_v58, %v12785_v53  ;;  %v12788_v50 = vmax.f32 %v10601_v20, 0.0  ;;  %v12790_v27 = vmax.f32 %v10616_v54, 0.0 }
 0x41c   : > { %v10760_v36 = vmul.f32 %v10523_v58, %v12786_v24  ;;  %v5368_v11 = vmax.f32 %v4421_v4, 0.0  ;;  %v4423_v3 = vadd.f32 %v4422_v60, %v10555_v31  ;;  %v5371_v53 = vmax.f32 %v10748_v14, 0.0 }
 0x41d   : > { %12783 = vst [vmem:[#allocation14_spill] sm:$0xff] %v10739_v57  ;;  %v10765_v30 = vmul.f32 %v10523_v58, %v12788_v50  ;;  %v10770_v57 = vmul.f32 %v10539_v13, %v12790_v27  ;;  %v10775_v61 = vadd.f32 %v4539_v15, %v10571_v21  ;;  %v4426_v24 = vpop.f32.mrf.mxu0  ;;  %v4541_v20 = vpop.f32.mrf.mxu1  ;;  %v12791_v50 = vmax.f32 %v10619_v25, 0.0  ;;  %5103 = vmatmul.mubr.bf16.gmra.mxu0 %v10448_v49 }
 0x41e   : > { %12787 = vst [vmem:[#allocation28_spill] sm:$0xff] %v10760_v36  ;;  %5216 = vmatmul.mubr.bf16.gmra.mxu1 %v10448_v49  ;;  %v12792_v54 = vmax.f32 %v10609_v16, 0.0  ;;  %v12794_v60 = vmax.f32 %v10622_v35, 0.0  ;;  %v12796_v15 = vmax.f32 %v10631_v6, 0.0  ;;  %v5369_v36 = vmax.f32 %v4423_v3, 0.0  ;;  %v10803_v35 = vpop.permute.xlu1 %4289  ;;  %5112 = vmatprep.mubr.bf16.mxu0 %v12583_v10 }
 0x41f   : > { %12789 = vst [vmem:[#allocation25_spill] sm:$0xff] %v10765_v30  ;;  %v10781_v30 = vmul.f32 %v10539_v13, %v12791_v50  ;;  %v4427_v25 = vadd.f32 %v4426_v24, %v10571_v21  ;;  %v5386_v50 = vmax.f32 %v10775_v61, 0.0  ;;  %v4542_v16 = vadd.f32 %v4541_v20, %v10571_v21  ;;  %5225 = vmatprep.mubr.bf16.mxu1 %v12583_v10 }
 0x420   : > { %v10786_v4 = vmul.f32 %v10539_v13, %v12792_v54  ;;  %v10791_v14 = vmul.f32 %v10539_v13, %v12794_v60  ;;  %v10796_v27 = vmul.f32 %v10549_v12, %v12796_v15  ;;  %12797 = vst [vmem:[#allocation42_spill] sm:$0xff] %v10803_v35  ;;  %v4428_v54 = vpop.f32.mrf.mxu0  ;;  %v4543_v60 = vpop.f32.mrf.mxu1  ;;  %v12798_v6 = vmax.f32 %v10648_v23, 0.0 }
 0x421   : > { %v12799_v24 = vmax.f32 %v10625_v5, 0.0  ;;  %v12801_v49 = vmax.f32 %v10635_v40, 0.0  ;;  %v12803_v15 = vmax.f32 %v10660_v17, 0.0  ;;  %v4429_v23 = vadd.f32 %v4428_v54, %v10571_v21  ;;  %v10828_v5 = vpop.permute.xlu0 %5553 }
 0x422   : > { %12793 = vst [vmem:[#allocation17_spill] sm:$0xff] %v10786_v4  ;;  %12795 = vst [vmem:[#allocation32_spill] sm:$0xff] %v10791_v14  ;;  %v10809_v3 = vmul.f32 %v10549_v12, %v12798_v6  ;;  %v5384_v4 = vmax.f32 %v4427_v25, 0.0  ;;  %v5387_v6 = vmax.f32 %v4542_v16, 0.0  ;;  %v4544_v31 = vadd.f32 %v4543_v60, %v10611_v62 }
 0x423   : > { %v10814_v61 = vmul.f32 %v10549_v12, %v12799_v24  ;;  %v10819_v20 = vmul.f32 %v10549_v12, %v12801_v49  ;;  %v10824_v14 = vmul.f32 %v10557_v38, %v12803_v15  ;;  %12804 = vst [vmem:[#allocation29_spill] sm:$0xff] %v10828_v5  ;;  %v4430_v24 = vpop.f32.mrf.mxu0  ;;  %v12805_v40 = vmax.f32 %v10674_v45, 0.0 }
 0x424   : > { %v12806_v17 = vmax.f32 %v10651_v37, 0.0  ;;  %v12808_v25 = vmax.f32 %v10663_v2, 0.0  ;;  %v10846_v54 = vmul.f32 %v10580_v18, %v5352_v32  ;;  %v5385_v60 = vmax.f32 %v4429_v23, 0.0 }
 0x425   : > { %12800 = vst [vmem:[#allocation23_spill] sm:$0xff] %v10814_v61  ;;  %12802 = vst [vmem:[#allocation7_spill] sm:$0xff] %v10819_v20  ;;  %v4545_v61 = vpop.f32.mrf.mxu1  ;;  %v10833_v49 = vmul.f32 %v10557_v38, %v12805_v40  ;;  %v4431_v20 = vadd.f32 %v4430_v24, %v10611_v62  ;;  %v5402_v45 = vmax.f32 %v4544_v31, 0.0  ;;  %v4432_v21 = vpop.f32.mrf.mxu0  ;;  %v10851_v37 = vmul.f32 %v10580_v18, %v5353_v51 }
 0x426   : > { %v10838_v15 = vmul.f32 %v10557_v38, %v12806_v17  ;;  %v10843_v16 = vmul.f32 %v10557_v38, %v12808_v25  ;;  %v4546_v40 = vadd.f32 %v4545_v61, %v10611_v62  ;;  %v12810_v17 = vmax.f32 %v10678_v34, 0.0  ;;  %5226 = vmatmul.mubr.bf16.gmra.mxu1 %v10484_v26  ;;  %5113 = vmatmul.mubr.bf16.gmra.mxu0 %v10484_v26 }
 0x427   : > { %v4549_v12 = vpop.f32.mrf.mxu1  ;;  %v12812_v25 = vmax.f32 %v10703_v63, 0.0  ;;  %v10864_v23 = vmul.f32 %v10638_v33, %v5368_v11  ;;  %v5400_v31 = vmax.f32 %v4431_v20, 0.0  ;;  %v4433_v61 = vadd.f32 %v4432_v21, %v10611_v62  ;;  %v4436_v34 = vpop.f32.mrf.mxu0  ;;  %5235 = vmatprep.mubr.bf16.mxu1 %v12583_v10  ;;  %5122 = vmatprep.mubr.bf16.mxu0 %v12583_v10 }
 0x428   : > { %12807 = vst [vmem:[#allocation31_spill] sm:$0xff] %v10838_v15  ;;  %12809 = vst [vmem:[#allocation18_spill] sm:$0xff] %v10843_v16  ;;  %v10856_v2 = vmul.f32 %v10580_v18, %v12810_v17  ;;  %v5403_v24 = vmax.f32 %v4546_v40, 0.0  ;;  %v4550_v51 = vadd.f32 %v4549_v12, %v10665_v7  ;;  %v10868_v16 = vpop.permute.xlu1 %4293  ;;  %v10872_v63 = vmul.f32 %v10638_v33, %v5369_v36 }
 0x429   : > { %v10861_v32 = vmul.f32 %v10580_v18, %v12812_v25  ;;  %12814 = vst [vmem:[#allocation34_spill] sm:$0xff] %v10868_v16  ;;  %v4551_v17 = vpop.f32.mrf.mxu1  ;;  %v12815_v25 = vmax.f32 %v10724_v52, 0.0  ;;  %v10880_v20 = vmul.f32 %v10638_v33, %v5371_v53  ;;  %v10883_v21 = vmul.f32 %v10680_v29, %v5384_v4  ;;  %v10889_v52 = vpop.permute.xlu0 %5557 }
 0x42a   : > { %12811 = vst [vmem:[#allocation33_spill] sm:$0xff] %v10856_v2  ;;  %v5401_v12 = vmax.f32 %v4433_v61, 0.0  ;;  %v4437_v40 = vadd.f32 %v4436_v34, %v10665_v7  ;;  %v4552_v36 = vadd.f32 %v4551_v17, %v10665_v7  ;;  %12818 = vst [vmem:[#allocation27_spill] sm:$0xff] %v10889_v52  ;;  %v10893_v53 = vmul.f32 %v10680_v29, %v5385_v60 }
 0x42b   : > { %12813 = vst [vmem:[#allocation30_spill] sm:$0xff] %v10861_v32  ;;  %v10877_v11 = vmul.f32 %v10638_v33, %v12815_v25  ;;  %12817 = vst [vmem:[#allocation39_spill] sm:$0xff] %v10880_v20  ;;  %v5418_v32 = vmax.f32 %v4550_v51, 0.0  ;;  %v4438_v25 = vpop.f32.mrf.mxu0  ;;  %v10896_v4 = vmul.f32 %v10680_v29, %v5386_v50  ;;  %v10899_v61 = vmul.f32 %v10680_v29, %v5387_v6 }
 0x42c   : > { %v10902_v26 = vmul.f32 %v10750_v22, %v5400_v31  ;;  %v5416_v51 = vmax.f32 %v4437_v40, 0.0  ;;  %v4439_v34 = vadd.f32 %v4438_v25, %v10665_v7  ;;  %v5419_v17 = vmax.f32 %v4552_v36, 0.0 }
 0x42d   : > { %12816 = vst [vmem:[#allocation9_spill] sm:$0xff] %v10877_v11  ;;  %v4553_v11 = vpop.f32.mrf.mxu1  ;;  %12819 = vst [vmem:[#allocation20_spill] sm:$0xff] %v10896_v4  ;;  %v4440_v2 = vpop.f32.mrf.mxu0  ;;  %v10907_v60 = vmul.f32 %v10750_v22, %v5401_v12  ;;  %v10910_v50 = vmul.f32 %v10750_v22, %v5402_v45  ;;  %v10913_v6 = vmul.f32 %v10750_v22, %v5403_v24 }
 0x42e   : > { %12820 = vst [vmem:[#allocation5_spill] sm:$0xff] %v10899_v61  ;;  %v4554_v20 = vadd.f32 %v4553_v11, %v10726_v8  ;;  %v10916_v31 = vmul.f32 %v10828_v5, %v5418_v32  ;;  %v5417_v40 = vmax.f32 %v4439_v34, 0.0  ;;  %v4441_v25 = vadd.f32 %v4440_v2, %v10726_v8  ;;  %v10920_v61 = vpop.permute.xlu1 %4297  ;;  %5236 = vmatmul.mubr.bf16.gmra.mxu1 %v10515_v42 }
 0x42f   : > { %v4555_v15 = vpop.f32.mrf.mxu1  ;;  %12821 = vst [vmem:[#allocation43_spill] sm:$0xff] %v10913_v6  ;;  %12823 = vst [vmem:[#allocation45_spill] sm:$0xff] %v10920_v61  ;;  %v4442_v4 = vpop.f32.mrf.mxu0  ;;  %v10923_v7 = vmul.f32 %v10828_v5, %v5416_v51  ;;  %v10926_v45 = vmul.f32 %v10828_v5, %v5419_v17  ;;  %v5832_v32 = vadd.f32 %v10713_v44, %v10686_v43  ;;  %5123 = vmatmul.mubr.bf16.gmra.mxu0 %v10515_v42 }
 0x430   : > { %12822 = vst [vmem:[#allocation44_spill] sm:$0xff] %v10916_v31  ;;  %v5434_v36 = vmax.f32 %v4554_v20, 0.0  ;;  %v4556_v11 = vadd.f32 %v4555_v15, %v10726_v8  ;;  %v5853_v24 = vadd.f32 %v10716_v41, %v10689_v0  ;;  %v5432_v2 = vmax.f32 %v4441_v25, 0.0  ;;  %v10934_v6 = vpop.permute.xlu0 %5561  ;;  %5245 = vmatprep.mubr.bf16.mxu1 %v12583_v10  ;;  %5132 = vmatprep.mubr.bf16.mxu0 %v12583_v10 }
 0x431   : > { %v4559_v12 = vpop.f32.mrf.mxu1  ;;  %v4443_v20 = vadd.f32 %v4442_v4, %v10726_v8  ;;  %12824 = vst [vmem:[#allocation46_spill] sm:$0xff] %v10934_v6  ;;  %v4446_v31 = vpop.f32.mrf.mxu0  ;;  %v10938_v17 = vmul.f32 %v10828_v5, %v5417_v40  ;;  %v5833_v0 = vadd.f32 %v5832_v32, %v10742_v9 }
 0x432   : > { %v5435_v15 = vmax.f32 %v4556_v11, 0.0  ;;  %v4560_v34 = vadd.f32 %v4559_v12, %v10803_v35  ;;  %v10941_v43 = vmul.f32 %v10889_v52, %v5434_v36  ;;  %v5854_v44 = vadd.f32 %v5853_v24, %v10755_v46 }
 0x433   : > { %v4561_v51 = vpop.f32.mrf.mxu1  ;;  %v5433_v41 = vmax.f32 %v4443_v20, 0.0  ;;  %v4447_v4 = vadd.f32 %v4446_v31, %v10803_v35  ;;  %v4448_v12 = vpop.f32.mrf.mxu0  ;;  %v10951_v36 = vmul.f32 %v10889_v52, %v5432_v2  ;;  %v5834_v46 = vadd.f32 %v5833_v0, %v10770_v57 }
 0x434   : > { %v5450_v25 = vmax.f32 %v4560_v34, 0.0  ;;  %v4562_v11 = vadd.f32 %v4561_v51, %v10803_v35  ;;  %v10954_v9 = vmul.f32 %v10889_v52, %v5435_v15  ;;  %v5855_v31 = vadd.f32 %v5854_v44, %v10781_v30  ;;  %v10960_v34 = vpop.permute.xlu1 %4301 }
 0x435   : > { %v4563_v40 = vpop.f32.mrf.mxu1  ;;  %v5448_v32 = vmax.f32 %v4447_v4, 0.0  ;;  %v4449_v42 = vadd.f32 %v4448_v12, %v10803_v35  ;;  %12826 = vst [vmem:[#allocation48_spill] sm:$0xff] %v10960_v34  ;;  %v4450_v51 = vpop.f32.mrf.mxu0  ;;  %v10963_v2 = vmul.f32 %v10889_v52, %v5433_v41  ;;  %v5835_v57 = vadd.f32 %v5834_v46, %v10796_v27 }
 0x436   : > { %12825 = vst [vmem:[#allocation47_spill] sm:$0xff] %v10954_v9  ;;  %v5451_v24 = vmax.f32 %v4562_v11, 0.0  ;;  %v4564_v20 = vadd.f32 %v4563_v40, %v10868_v16  ;;  %v10966_v15 = vmul.f32 %v10934_v6, %v5450_v25  ;;  %v5856_v30 = vadd.f32 %v5855_v31, %v10809_v3  ;;  %v10972_v12 = vpop.permute.xlu0 %5565  ;;  %5246 = vmatmul.mubr.bf16.gmra.mxu1 %v10533_v39 }
 0x437   : > { %v4565_v10 = vpop.f32.mrf.mxu1  ;;  %v5449_v0 = vmax.f32 %v4449_v42, 0.0  ;;  %v4451_v44 = vadd.f32 %v4450_v51, %v10868_v16  ;;  %12827 = vst [vmem:[#allocation49_spill] sm:$0xff] %v10972_v12  ;;  %v4452_v40 = vpop.f32.mrf.mxu0  ;;  %v10975_v41 = vmul.f32 %v10934_v6, %v5448_v32  ;;  %v5836_v27 = vadd.f32 %v5835_v57, %v10824_v14  ;;  %5133 = vmatmul.mubr.bf16.gmra.mxu0 %v10533_v39 }
 0x438   : > { %v5466_v4 = vmax.f32 %v4564_v20, 0.0  ;;  %v4566_v11 = vadd.f32 %v4565_v10, %v10868_v16  ;;  %v10978_v25 = vmul.f32 %v10934_v6, %v5451_v24  ;;  %v5857_v3 = vadd.f32 %v5856_v30, %v10833_v49 }
 0x439   : > { %v4569_v9 = vpop.f32.mrf.mxu1  ;;  %v5464_v46 = vmax.f32 %v4451_v44, 0.0  ;;  %v4453_v31 = vadd.f32 %v4452_v40, %v10868_v16  ;;  %v4456_v51 = vpop.f32.mrf.mxu0  ;;  %v10986_v32 = vmul.f32 %v10934_v6, %v5449_v0  ;;  %v5837_v14 = vadd.f32 %v5836_v27, %v10846_v54 }
 0x43a   : > { %12828 = vst [vmem:[#allocation50_spill] sm:$0xff] %v10978_v25  ;;  %v5467_v42 = vmax.f32 %v4566_v11, 0.0  ;;  %v4570_v20 = vadd.f32 %v4569_v9, %v10920_v61  ;;  %v10989_v24 = vmul.f32 %v10972_v12, %v5466_v4  ;;  %v5858_v49 = vadd.f32 %v5857_v3, %v10851_v37  ;;  %v10996_v11 = vpop.permute.xlu1 %5569 }
 0x43b   : > { %v4571_v10 = vpop.f32.mrf.mxu1  ;;  %v5465_v57 = vmax.f32 %v4453_v31, 0.0  ;;  %v4457_v30 = vadd.f32 %v4456_v51, %v10920_v61  ;;  %12829 = vst [vmem:[#allocation51_spill] sm:$0xff] %v10996_v11  ;;  %v4458_v40 = vpop.f32.mrf.mxu0  ;;  %v10999_v25 = vmul.f32 %v10972_v12, %v5464_v46  ;;  %v5838_v54 = vadd.f32 %v5837_v14, %v10864_v23 }
 0x43c   : > { %v5482_v44 = vmax.f32 %v4570_v20, 0.0  ;;  %v4572_v9 = vadd.f32 %v4571_v10, %v10920_v61  ;;  %v11002_v4 = vmul.f32 %v10972_v12, %v5467_v42  ;;  %v5859_v37 = vadd.f32 %v5858_v49, %v10872_v63 }
 0x43d   : > { %v4573_v0 = vpop.f32.mrf.mxu1  ;;  %v5480_v27 = vmax.f32 %v4457_v30, 0.0  ;;  %v4459_v3 = vadd.f32 %v4458_v40, %v10920_v61  ;;  %v4460_v20 = vpop.f32.mrf.mxu0  ;;  %v5785_v10 = vmul.f32 %v10972_v12, %v5465_v57  ;;  %v5839_v42 = vadd.f32 %v5838_v54, %v10883_v21 }
 0x43e   : > { %12830 = vst [vmem:[#allocation52_spill] sm:$0xff] %v11002_v4  ;;  %v5483_v39 = vmax.f32 %v4572_v9, 0.0  ;;  %v4574_v31 = vadd.f32 %v4573_v0, %v10960_v34  ;;  %v11010_v46 = vmul.f32 %v10996_v11, %v5482_v44  ;;  %v5860_v4 = vadd.f32 %v5859_v37, %v10893_v53  ;;  %v11016_v30 = vpop.permute.xlu0 %5573 }
 0x43f   : > { %v4575_v51 = vpop.f32.mrf.mxu1  ;;  %v5481_v23 = vmax.f32 %v4459_v3, 0.0  ;;  %v4461_v63 = vadd.f32 %v4460_v20, %v10960_v34  ;;  %12831 = vst [vmem:[#allocation53_spill] sm:$0xff] %v11016_v30  ;;  %v4462_v9 = vpop.f32.mrf.mxu0  ;;  %v5800_v40 = vmul.f32 %v10996_v11, %v5480_v27  ;;  %v5840_v44 = vadd.f32 %v5839_v42, %v10902_v26 }
 0x440   : > { %v5498_v14 = vmax.f32 %v4574_v31, 0.0  ;;  %v4576_v49 = vadd.f32 %v4575_v51, %v10960_v34  ;;  %v11020_v57 = vmul.f32 %v10996_v11, %v5483_v39  ;;  %v5861_v21 = vadd.f32 %v5860_v4, %v10907_v60 }
 0x441   : > { %v5496_v0 = vmax.f32 %v4461_v63, 0.0  ;;  %v4463_v53 = vadd.f32 %v4462_v9, %v10960_v34  ;;  %v4725_v37 = vpop.f32.mrf.mxu1  ;;  %v5801_v3 = vmul.f32 %v10996_v11, %v5481_v23  ;;  %v4612_v31 = vpop.f32.mrf.mxu0  ;;  %v5841_v27 = vadd.f32 %v5840_v44, %v10923_v7 }
 0x442   : > { %v5499_v54 = vmax.f32 %v4576_v49, 0.0  ;;  %v4726_v20 = vadd.f32 %v4725_v37, %v12767_v19  ;;  %v11028_v51 = vmul.f32 %v11016_v30, %v5498_v14  ;;  %v5862_v39 = vadd.f32 %v5861_v21, %v10938_v17 }
 0x443   : > { %v5497_v26 = vmax.f32 %v4463_v53, 0.0  ;;  %v4613_v60 = vadd.f32 %v4612_v31, %v12767_v19  ;;  %v4727_v4 = vpop.f32.mrf.mxu1  ;;  %v11034_v42 = vmul.f32 %v11016_v30, %v5496_v0  ;;  %v4614_v49 = vpop.f32.mrf.mxu0  ;;  %v5842_v14 = vadd.f32 %v5841_v27, %v10951_v36 }
 0x444   : > { %v11037_v63 = vmul.f32 %v11016_v30, %v5499_v54  ;;  %v5262_v23 = vmax.f32 %v4726_v20, 0.0  ;;  %v4728_v9 = vadd.f32 %v4727_v4, %v12767_v19  ;;  %v5863_v7 = vadd.f32 %v5862_v39, %v10963_v2 }
 0x445   : > { %v5260_v44 = vmax.f32 %v4613_v60, 0.0  ;;  %v4615_v17 = vadd.f32 %v4614_v49, %v12767_v19  ;;  %v4729_v21 = vpop.f32.mrf.mxu1  ;;  %v11044_v53 = vmul.f32 %v11016_v30, %v5497_v26  ;;  %v11048_v0 = vadd.f32 %v10734_v1, %v10694_v28  ;;  %v4616_v31 = vpop.f32.mrf.mxu0 }
 0x446   : > { %12832 = vst [vmem:[#allocation54_spill] sm:$0xff] %v11037_v63  ;;  %v5582_v54 = vmul.f32 %v10510_v56, %v5262_v23  ;;  %v5263_v37 = vmax.f32 %v4728_v9, 0.0  ;;  %v4730_v20 = vadd.f32 %v4729_v21, %v10492_v59  ;;  %v5843_v36 = vadd.f32 %v5842_v14, %v10975_v41 }
 0x447   : > { %v5580_v2 = vmul.f32 %v10510_v56, %v5260_v44  ;;  %v5261_v27 = vmax.f32 %v4615_v17, 0.0  ;;  %v4617_v39 = vadd.f32 %v4616_v31, %v10492_v59  ;;  %v4731_v60 = vpop.f32.mrf.mxu1  ;;  %v5864_v26 = vadd.f32 %v5863_v7, %v10986_v32  ;;  %v4618_v28 = vpop.f32.mrf.mxu0 }
 0x448   : > { %v5583_v4 = vmul.f32 %v10510_v56, %v5263_v37  ;;  %v5278_v1 = vmax.f32 %v4730_v20, 0.0  ;;  %v4732_v23 = vadd.f32 %v4731_v60, %v10492_v59  ;;  %v5844_v49 = vadd.f32 %v5843_v36, %v10999_v25 }
 0x449   : > { %v5581_v9 = vmul.f32 %v10510_v56, %v5261_v27  ;;  %v5276_v21 = vmax.f32 %v4617_v39, 0.0  ;;  %v4619_v41 = vadd.f32 %v4618_v28, %v10492_v59  ;;  %v4735_v14 = vpop.f32.mrf.mxu1  ;;  %v5865_v44 = vadd.f32 %v5864_v26, %v5785_v10  ;;  %v4622_v63 = vpop.f32.mrf.mxu0 }
 0x44a   : > { %v5598_v17 = vmul.f32 %v10503_v47, %v5278_v1  ;;  %v5279_v31 = vmax.f32 %v4732_v23, 0.0  ;;  %v4736_v32 = vadd.f32 %v4735_v14, %v10442_v55  ;;  %v11063_v7 = vadd.f32 %v5844_v49, %v5800_v40 }
 0x44b   : > { %v5596_v37 = vmul.f32 %v10503_v47, %v5276_v21  ;;  %v5277_v20 = vmax.f32 %v4619_v41, 0.0  ;;  %v4623_v25 = vadd.f32 %v4622_v63, %v10442_v55  ;;  %v4737_v36 = vpop.f32.mrf.mxu1  ;;  %v11067_v27 = vadd.f32 %v5865_v44, %v5801_v3  ;;  %v4624_v26 = vpop.f32.mrf.mxu0 }
 0x44c   : > { %v5958_v39 = vadd.f32 %v5598_v17, %v5582_v54  ;;  %v5599_v60 = vmul.f32 %v10503_v47, %v5279_v31  ;;  %v5294_v10 = vmax.f32 %v4736_v32, 0.0  ;;  %v4738_v1 = vadd.f32 %v4737_v36, %v10442_v55 }
 0x44d   : > { %v5916_v28 = vadd.f32 %v5596_v37, %v5580_v2  ;;  %v5597_v23 = vmul.f32 %v10503_v47, %v5277_v20  ;;  %v5292_v40 = vmax.f32 %v4623_v25, 0.0  ;;  %v4625_v49 = vadd.f32 %v4624_v26, %v10442_v55  ;;  %v4739_v21 = vpop.f32.mrf.mxu1  ;;  %v4626_v3 = vpop.f32.mrf.mxu0 }
 0x44e   : > { %v5979_v41 = vadd.f32 %v5599_v60, %v5583_v4  ;;  %v5614_v63 = vmul.f32 %v10523_v58, %v5294_v10  ;;  %v5295_v14 = vmax.f32 %v4738_v1, 0.0  ;;  %v4740_v54 = vadd.f32 %v4739_v21, %v10470_v48 }
 0x44f   : > { %v5937_v44 = vadd.f32 %v5597_v23, %v5581_v9  ;;  %v5612_v17 = vmul.f32 %v10523_v58, %v5292_v40  ;;  %v5293_v31 = vmax.f32 %v4625_v49, 0.0  ;;  %v4627_v32 = vadd.f32 %v4626_v3, %v10470_v48  ;;  %v4741_v2 = vpop.f32.mrf.mxu1  ;;  %v4628_v36 = vpop.f32.mrf.mxu0  ;;  %v12833_v3 = vld [vmem:[#allocation22_spill] sm:$0xff] }
 0x450   : > { %v5959_v37 = vadd.f32 %v5958_v39, %v5614_v63  ;;  %v5615_v20 = vmul.f32 %v10523_v58, %v5295_v14  ;;  %v5310_v25 = vmax.f32 %v4740_v54, 0.0  ;;  %v4742_v4 = vadd.f32 %v4741_v2, %v10470_v48 }
 0x451   : > { %v5917_v60 = vadd.f32 %v5916_v28, %v5612_v17  ;;  %v5613_v10 = vmul.f32 %v10523_v58, %v5293_v31  ;;  %v5308_v26 = vmax.f32 %v4627_v32, 0.0  ;;  %v4629_v1 = vadd.f32 %v4628_v36, %v10470_v48  ;;  %v4745_v9 = vpop.f32.mrf.mxu1  ;;  %v4632_v21 = vpop.f32.mrf.mxu0  ;;  %v12835_v58 = vld [vmem:[#allocation37_spill] sm:$0xff] }
 0x452   : > { %v5980_v23 = vadd.f32 %v5979_v41, %v5615_v20  ;;  %v5630_v40 = vmul.f32 %v10539_v13, %v5310_v25  ;;  %v5311_v49 = vmax.f32 %v4742_v4, 0.0  ;;  %v4746_v39 = vadd.f32 %v4745_v9, %v12833_v3 }
 0x453   : > { %v5938_v63 = vadd.f32 %v5937_v44, %v5613_v10  ;;  %v5628_v14 = vmul.f32 %v10539_v13, %v5308_v26  ;;  %v5309_v54 = vmax.f32 %v4629_v1, 0.0  ;;  %v4633_v2 = vadd.f32 %v4632_v21, %v12833_v3  ;;  %v4747_v28 = vpop.f32.mrf.mxu1  ;;  %v4634_v36 = vpop.f32.mrf.mxu0  ;;  %v12834_v26 = vld [vmem:[#allocation16_spill] sm:$0xff] }
 0x454   : > { %v5960_v17 = vadd.f32 %v5959_v37, %v5630_v40  ;;  %v5631_v31 = vmul.f32 %v10539_v13, %v5311_v49  ;;  %v5326_v32 = vmax.f32 %v4746_v39, 0.0  ;;  %v4748_v41 = vadd.f32 %v4747_v28, %v12833_v3 }
 0x455   : > { %v5918_v20 = vadd.f32 %v5917_v60, %v5628_v14  ;;  %v5629_v25 = vmul.f32 %v10539_v13, %v5309_v54  ;;  %v5324_v4 = vmax.f32 %v4633_v2, 0.0  ;;  %v4635_v9 = vadd.f32 %v4634_v36, %v12833_v3  ;;  %v4749_v44 = vpop.f32.mrf.mxu1  ;;  %v4636_v21 = vpop.f32.mrf.mxu0  ;;  %v12836_v3 = vld [vmem:[#allocation40_spill] sm:$0xff] }
 0x456   : > { %v5981_v10 = vadd.f32 %v5980_v23, %v5631_v31  ;;  %v5646_v1 = vmul.f32 %v12834_v26, %v5326_v32  ;;  %v5327_v48 = vmax.f32 %v4748_v41, 0.0  ;;  %v4750_v37 = vadd.f32 %v4749_v44, %v12835_v58 }
 0x457   : > { %v5939_v40 = vadd.f32 %v5938_v63, %v5629_v25  ;;  %v5644_v49 = vmul.f32 %v12834_v26, %v5324_v4  ;;  %v5325_v39 = vmax.f32 %v4635_v9, 0.0  ;;  %v4637_v28 = vadd.f32 %v4636_v21, %v12835_v58  ;;  %v4751_v60 = vpop.f32.mrf.mxu1  ;;  %v4638_v36 = vpop.f32.mrf.mxu0 }
 0x458   : > { %v5961_v14 = vadd.f32 %v5960_v17, %v5646_v1  ;;  %v5647_v54 = vmul.f32 %v12834_v26, %v5327_v48  ;;  %v5342_v2 = vmax.f32 %v4750_v37, 0.0  ;;  %v4752_v23 = vadd.f32 %v4751_v60, %v12835_v58 }
 0x459   : > { %v5919_v31 = vadd.f32 %v5918_v20, %v5644_v49  ;;  %v5645_v32 = vmul.f32 %v12834_v26, %v5325_v39  ;;  %v5340_v41 = vmax.f32 %v4637_v28, 0.0  ;;  %v4639_v44 = vadd.f32 %v4638_v36, %v12835_v58  ;;  %v4755_v63 = vpop.f32.mrf.mxu1  ;;  %v4642_v21 = vpop.f32.mrf.mxu0  ;;  %v12837_v58 = vld [vmem:[#allocation15_spill] sm:$0xff] }
 0x45a   : > { %v5982_v25 = vadd.f32 %v5981_v10, %v5647_v54  ;;  %v5662_v4 = vmul.f32 %v10557_v38, %v5342_v2  ;;  %v5343_v9 = vmax.f32 %v4752_v23, 0.0  ;;  %v4756_v17 = vadd.f32 %v4755_v63, %v12836_v3 }
 0x45b   : > { %v5940_v1 = vadd.f32 %v5939_v40, %v5645_v32  ;;  %v5660_v48 = vmul.f32 %v10557_v38, %v5340_v41  ;;  %v5341_v37 = vmax.f32 %v4639_v44, 0.0  ;;  %v4643_v60 = vadd.f32 %v4642_v21, %v12836_v3  ;;  %v4757_v20 = vpop.f32.mrf.mxu1  ;;  %v4644_v36 = vpop.f32.mrf.mxu0 }
 0x45c   : > { %v5962_v49 = vadd.f32 %v5961_v14, %v5662_v4  ;;  %v5663_v39 = vmul.f32 %v10557_v38, %v5343_v9  ;;  %v5358_v28 = vmax.f32 %v4756_v17, 0.0  ;;  %v4758_v10 = vadd.f32 %v4757_v20, %v12836_v3 }
 0x45d   : > { %v5920_v54 = vadd.f32 %v5919_v31, %v5660_v48  ;;  %v5661_v2 = vmul.f32 %v10557_v38, %v5341_v37  ;;  %v5356_v23 = vmax.f32 %v4643_v60, 0.0  ;;  %v4645_v63 = vadd.f32 %v4644_v36, %v12836_v3  ;;  %v4759_v40 = vpop.f32.mrf.mxu1  ;;  %v4646_v21 = vpop.f32.mrf.mxu0  ;;  %v12838_v3 = vld [vmem:[#allocation38_spill] sm:$0xff] }
 0x45e   : > { %v5983_v32 = vadd.f32 %v5982_v25, %v5663_v39  ;;  %v5678_v41 = vmul.f32 %v10580_v18, %v5358_v28  ;;  %v5359_v44 = vmax.f32 %v4758_v10, 0.0  ;;  %v4760_v14 = vadd.f32 %v4759_v40, %v12837_v58 }
 0x45f   : > { %v5941_v4 = vadd.f32 %v5940_v1, %v5661_v2  ;;  %v5676_v9 = vmul.f32 %v10580_v18, %v5356_v23  ;;  %v5357_v17 = vmax.f32 %v4645_v63, 0.0  ;;  %v4647_v20 = vadd.f32 %v4646_v21, %v12837_v58  ;;  %v4761_v31 = vpop.f32.mrf.mxu1  ;;  %v4648_v36 = vpop.f32.mrf.mxu0 }
 0x460   : > { %v5963_v48 = vadd.f32 %v5962_v49, %v5678_v41  ;;  %v5679_v37 = vmul.f32 %v10580_v18, %v5359_v44  ;;  %v5374_v60 = vmax.f32 %v4760_v14, 0.0  ;;  %v4762_v25 = vadd.f32 %v4761_v31, %v12837_v58 }
 0x461   : > { %v5921_v39 = vadd.f32 %v5920_v54, %v5676_v9  ;;  %v5677_v28 = vmul.f32 %v10580_v18, %v5357_v17  ;;  %v5372_v10 = vmax.f32 %v4647_v20, 0.0  ;;  %v4649_v40 = vadd.f32 %v4648_v36, %v12837_v58  ;;  %v4765_v1 = vpop.f32.mrf.mxu1  ;;  %v4652_v21 = vpop.f32.mrf.mxu0 }
 0x462   : > { %v5984_v2 = vadd.f32 %v5983_v32, %v5679_v37  ;;  %v5694_v23 = vmul.f32 %v10638_v33, %v5374_v60  ;;  %v5375_v63 = vmax.f32 %v4762_v25, 0.0  ;;  %v4766_v49 = vadd.f32 %v4765_v1, %v12838_v3 }
 0x463   : > { %v5942_v41 = vadd.f32 %v5941_v4, %v5677_v28  ;;  %v5692_v44 = vmul.f32 %v10638_v33, %v5372_v10  ;;  %v5373_v14 = vmax.f32 %v4649_v40, 0.0  ;;  %v4653_v31 = vadd.f32 %v4652_v21, %v12838_v3  ;;  %v4767_v54 = vpop.f32.mrf.mxu1  ;;  %v4654_v36 = vpop.f32.mrf.mxu0 }
 0x464   : > { %v5964_v9 = vadd.f32 %v5963_v48, %v5694_v23  ;;  %v5695_v17 = vmul.f32 %v10638_v33, %v5375_v63  ;;  %v5390_v20 = vmax.f32 %v4766_v49, 0.0  ;;  %v4768_v32 = vadd.f32 %v4767_v54, %v12838_v3 }
 0x465   : > { %v5922_v37 = vadd.f32 %v5921_v39, %v5692_v44  ;;  %v5693_v60 = vmul.f32 %v10638_v33, %v5373_v14  ;;  %v5388_v25 = vmax.f32 %v4653_v31, 0.0  ;;  %v4655_v1 = vadd.f32 %v4654_v36, %v12838_v3  ;;  %v4769_v4 = vpop.f32.mrf.mxu1  ;;  %v4656_v21 = vpop.f32.mrf.mxu0  ;;  %v12839_v3 = vld [vmem:[#allocation8_spill] sm:$0xff] }
 0x466   : > { %v5985_v28 = vadd.f32 %v5984_v2, %v5695_v17  ;;  %v5710_v10 = vmul.f32 %v10680_v29, %v5390_v20  ;;  %v5391_v40 = vmax.f32 %v4768_v32, 0.0  ;;  %v4770_v48 = vadd.f32 %v4769_v4, %v10611_v62 }
 0x467   : > { %v5943_v23 = vadd.f32 %v5942_v41, %v5693_v60  ;;  %v5708_v63 = vmul.f32 %v10680_v29, %v5388_v25  ;;  %v5389_v49 = vmax.f32 %v4655_v1, 0.0  ;;  %v4657_v54 = vadd.f32 %v4656_v21, %v10611_v62  ;;  %v4771_v39 = vpop.f32.mrf.mxu1  ;;  %v4658_v36 = vpop.f32.mrf.mxu0 }
 0x468   : > { %v5965_v44 = vadd.f32 %v5964_v9, %v5710_v10  ;;  %v5711_v14 = vmul.f32 %v10680_v29, %v5391_v40  ;;  %v5406_v31 = vmax.f32 %v4770_v48, 0.0  ;;  %v4772_v2 = vadd.f32 %v4771_v39, %v10611_v62 }
 0x469   : > { %v5923_v17 = vadd.f32 %v5922_v37, %v5708_v63  ;;  %v5709_v20 = vmul.f32 %v10680_v29, %v5389_v49  ;;  %v5404_v32 = vmax.f32 %v4657_v54, 0.0  ;;  %v4659_v4 = vadd.f32 %v4658_v36, %v10611_v62  ;;  %v4775_v41 = vpop.f32.mrf.mxu1  ;;  %v4662_v21 = vpop.f32.mrf.mxu0 }
 0x46a   : > { %v5986_v60 = vadd.f32 %v5985_v28, %v5711_v14  ;;  %v5726_v25 = vmul.f32 %v10750_v22, %v5406_v31  ;;  %v5407_v1 = vmax.f32 %v4772_v2, 0.0  ;;  %v4776_v9 = vadd.f32 %v4775_v41, %v12839_v3 }
 0x46b   : > { %v5944_v10 = vadd.f32 %v5943_v23, %v5709_v20  ;;  %v5724_v40 = vmul.f32 %v10750_v22, %v5404_v32  ;;  %v5405_v48 = vmax.f32 %v4659_v4, 0.0  ;;  %v4663_v39 = vadd.f32 %v4662_v21, %v12839_v3  ;;  %v4777_v37 = vpop.f32.mrf.mxu1  ;;  %v4664_v36 = vpop.f32.mrf.mxu0 }
 0x46c   : > { %v5966_v63 = vadd.f32 %v5965_v44, %v5726_v25  ;;  %v5727_v49 = vmul.f32 %v10750_v22, %v5407_v1  ;;  %v5422_v54 = vmax.f32 %v4776_v9, 0.0  ;;  %v4778_v28 = vadd.f32 %v4777_v37, %v12839_v3 }
 0x46d   : > { %v5924_v14 = vadd.f32 %v5923_v17, %v5724_v40  ;;  %v5725_v31 = vmul.f32 %v10750_v22, %v5405_v48  ;;  %v5420_v2 = vmax.f32 %v4663_v39, 0.0  ;;  %v4665_v41 = vadd.f32 %v4664_v36, %v12839_v3  ;;  %v4779_v23 = vpop.f32.mrf.mxu1  ;;  %v4666_v21 = vpop.f32.mrf.mxu0  ;;  %v12854_v22 = vld [vmem:[#allocation21_spill] sm:$0xff] }
 0x46e   : > { %v5987_v20 = vadd.f32 %v5986_v60, %v5727_v49  ;;  %v5742_v32 = vmul.f32 %v10828_v5, %v5422_v54  ;;  %v5423_v4 = vmax.f32 %v4778_v28, 0.0  ;;  %v4780_v44 = vadd.f32 %v4779_v23, %v10726_v8 }
 0x46f   : > { %v5945_v25 = vadd.f32 %v5944_v10, %v5725_v31  ;;  %v5740_v1 = vmul.f32 %v10828_v5, %v5420_v2  ;;  %v5421_v9 = vmax.f32 %v4665_v41, 0.0  ;;  %v4667_v37 = vadd.f32 %v4666_v21, %v10726_v8  ;;  %v4781_v17 = vpop.f32.mrf.mxu1  ;;  %v4668_v36 = vpop.f32.mrf.mxu0 }
 0x470   : > { %v5967_v40 = vadd.f32 %v5966_v63, %v5742_v32  ;;  %v5743_v48 = vmul.f32 %v10828_v5, %v5423_v4  ;;  %v5438_v39 = vmax.f32 %v4780_v44, 0.0  ;;  %v4782_v60 = vadd.f32 %v4781_v17, %v10726_v8 }
 0x471   : > { %v5925_v49 = vadd.f32 %v5924_v14, %v5740_v1  ;;  %v5741_v54 = vmul.f32 %v10828_v5, %v5421_v9  ;;  %v5436_v28 = vmax.f32 %v4667_v37, 0.0  ;;  %v4669_v23 = vadd.f32 %v4668_v36, %v10726_v8  ;;  %v4785_v10 = vpop.f32.mrf.mxu1  ;;  %v4672_v21 = vpop.f32.mrf.mxu0 }
 0x472   : > { %v5988_v31 = vadd.f32 %v5987_v20, %v5743_v48  ;;  %v5758_v2 = vmul.f32 %v10889_v52, %v5438_v39  ;;  %v5439_v41 = vmax.f32 %v4782_v60, 0.0  ;;  %v4786_v63 = vadd.f32 %v4785_v10, %v10803_v35 }
 0x473   : > { %v5946_v32 = vadd.f32 %v5945_v25, %v5741_v54  ;;  %v5756_v4 = vmul.f32 %v10889_v52, %v5436_v28  ;;  %v5437_v44 = vmax.f32 %v4669_v23, 0.0  ;;  %v4673_v17 = vadd.f32 %v4672_v21, %v10803_v35  ;;  %v4787_v14 = vpop.f32.mrf.mxu1  ;;  %v4674_v36 = vpop.f32.mrf.mxu0 }
 0x474   : > { %v5968_v1 = vadd.f32 %v5967_v40, %v5758_v2  ;;  %v5759_v9 = vmul.f32 %v10889_v52, %v5439_v41  ;;  %v5454_v37 = vmax.f32 %v4786_v63, 0.0  ;;  %v4788_v20 = vadd.f32 %v4787_v14, %v10803_v35 }
 0x475   : > { %v5926_v48 = vadd.f32 %v5925_v49, %v5756_v4  ;;  %v5757_v39 = vmul.f32 %v10889_v52, %v5437_v44  ;;  %v5452_v60 = vmax.f32 %v4673_v17, 0.0  ;;  %v4675_v10 = vadd.f32 %v4674_v36, %v10803_v35  ;;  %v4789_v25 = vpop.f32.mrf.mxu1  ;;  %v4676_v21 = vpop.f32.mrf.mxu0 }
 0x476   : > { %v5989_v54 = vadd.f32 %v5988_v31, %v5759_v9  ;;  %v5774_v28 = vmul.f32 %v10934_v6, %v5454_v37  ;;  %v5455_v23 = vmax.f32 %v4788_v20, 0.0  ;;  %v4790_v40 = vadd.f32 %v4789_v25, %v10868_v16 }
 0x477   : > { %v5947_v2 = vadd.f32 %v5946_v32, %v5757_v39  ;;  %v5772_v41 = vmul.f32 %v10934_v6, %v5452_v60  ;;  %v5453_v63 = vmax.f32 %v4675_v10, 0.0  ;;  %v4677_v14 = vadd.f32 %v4676_v21, %v10868_v16  ;;  %v4791_v49 = vpop.f32.mrf.mxu1  ;;  %v4678_v36 = vpop.f32.mrf.mxu0 }
 0x478   : > { %v5969_v4 = vadd.f32 %v5968_v1, %v5774_v28  ;;  %v5775_v44 = vmul.f32 %v10934_v6, %v5455_v23  ;;  %v5470_v17 = vmax.f32 %v4790_v40, 0.0  ;;  %v4792_v31 = vadd.f32 %v4791_v49, %v10868_v16 }
 0x479   : > { %v5927_v9 = vadd.f32 %v5926_v48, %v5772_v41  ;;  %v5773_v37 = vmul.f32 %v10934_v6, %v5453_v63  ;;  %v5468_v20 = vmax.f32 %v4677_v14, 0.0  ;;  %v4679_v25 = vadd.f32 %v4678_v36, %v10868_v16  ;;  %v4795_v32 = vpop.f32.mrf.mxu1  ;;  %v4682_v21 = vpop.f32.mrf.mxu0 }
 0x47a   : > { %v5990_v39 = vadd.f32 %v5989_v54, %v5775_v44  ;;  %v5790_v60 = vmul.f32 %v10972_v12, %v5470_v17  ;;  %v5471_v10 = vmax.f32 %v4792_v31, 0.0  ;;  %v4796_v1 = vadd.f32 %v4795_v32, %v10920_v61 }
 0x47b   : > { %v5948_v28 = vadd.f32 %v5947_v2, %v5773_v37  ;;  %v5788_v23 = vmul.f32 %v10972_v12, %v5468_v20  ;;  %v5469_v40 = vmax.f32 %v4679_v25, 0.0  ;;  %v4683_v49 = vadd.f32 %v4682_v21, %v10920_v61  ;;  %v4797_v48 = vpop.f32.mrf.mxu1  ;;  %v4684_v36 = vpop.f32.mrf.mxu0 }
 0x47c   : > { %v5970_v41 = vadd.f32 %v5969_v4, %v5790_v60  ;;  %v5791_v63 = vmul.f32 %v10972_v12, %v5471_v10  ;;  %v5486_v14 = vmax.f32 %v4796_v1, 0.0  ;;  %v4798_v54 = vadd.f32 %v4797_v48, %v10920_v61 }
 0x47d   : > { %v5928_v44 = vadd.f32 %v5927_v9, %v5788_v23  ;;  %v5789_v17 = vmul.f32 %v10972_v12, %v5469_v40  ;;  %v5484_v31 = vmax.f32 %v4683_v49, 0.0  ;;  %v4685_v32 = vadd.f32 %v4684_v36, %v10920_v61  ;;  %v4799_v2 = vpop.f32.mrf.mxu1  ;;  %v4686_v21 = vpop.f32.mrf.mxu0 }
 0x47e   : > { %v5991_v37 = vadd.f32 %v5990_v39, %v5791_v63  ;;  %v5806_v20 = vmul.f32 %v10996_v11, %v5486_v14  ;;  %v5487_v25 = vmax.f32 %v4798_v54, 0.0  ;;  %v4800_v4 = vadd.f32 %v4799_v2, %v10960_v34 }
 0x47f   : > { %v5949_v60 = vadd.f32 %v5948_v28, %v5789_v17  ;;  %v5804_v10 = vmul.f32 %v10996_v11, %v5484_v31  ;;  %v5485_v1 = vmax.f32 %v4685_v32, 0.0  ;;  %v4687_v48 = vadd.f32 %v4686_v21, %v10960_v34  ;;  %v4801_v9 = vpop.f32.mrf.mxu1  ;;  %v4688_v36 = vpop.f32.mrf.mxu0 }
 0x480   : > { %v5971_v23 = vadd.f32 %v5970_v41, %v5806_v20  ;;  %v5807_v40 = vmul.f32 %v10996_v11, %v5487_v25  ;;  %v5502_v49 = vmax.f32 %v4800_v4, 0.0  ;;  %v4802_v39 = vadd.f32 %v4801_v9, %v10960_v34 }
 0x481   : > { %v5929_v63 = vadd.f32 %v5928_v44, %v5804_v10  ;;  %v5805_v14 = vmul.f32 %v10996_v11, %v5485_v1  ;;  %v5500_v54 = vmax.f32 %v4687_v48, 0.0  ;;  %v4689_v2 = vadd.f32 %v4688_v36, %v10960_v34  ;;  %v11180_v41 = vpop.f32.mrf.mxu0  ;;  %v11182_v20 = vpop.f32.mrf.mxu1  ;;  %v12840_v48 = vld [vmem:[#allocation28_spill] sm:$0xff]  ;;  %v12841_v36 = vld [vmem:[#allocation10_spill] sm:$0xff]  ;;  %v12844_v11 = vld [vmem:[#allocation25_spill] sm:$0xff] }
 0x482   : > { %v5992_v28 = vadd.f32 %v5991_v37, %v5807_v40  ;;  %v5822_v17 = vmul.f32 %v11016_v30, %v5502_v49  ;;  %v5503_v31 = vmax.f32 %v4802_v39, 0.0  ;;  %v5846_v32 = vadd.f32 %v11063_v7, %v11034_v42  ;;  %v12842_v39 = vld [vmem:[#allocation14_spill] sm:$0xff] }
 0x483   : > { %v5950_v25 = vadd.f32 %v5949_v60, %v5805_v14  ;;  %v5820_v21 = vmul.f32 %v11016_v30, %v5500_v54  ;;  %v5501_v44 = vmax.f32 %v4689_v2, 0.0  ;;  %v5867_v4 = vadd.f32 %v11067_v27, %v11044_v53  ;;  %v11190_v40 = vpop.f32.mrf.mxu0  ;;  %v11192_v42 = vpop.f32.mrf.mxu1  ;;  %v12843_v27 = vld [vmem:[#allocation17_spill] sm:$0xff] }
 0x484   : > { %v5972_v10 = vadd.f32 %v5971_v23, %v5822_v17  ;;  %v5823_v37 = vmul.f32 %v11016_v30, %v5503_v31  ;;  %v5847_v1 = vrot.slane %v5846_v32, 4  ;;  %v5875_v9 = vadd.f32 %v11048_v0, %v12840_v48 }
 0x485   : > { %v5930_v7 = vadd.f32 %v5929_v63, %v5820_v21  ;;  %v5821_v60 = vmul.f32 %v11016_v30, %v5501_v44  ;;  %v5868_v49 = vrot.slane %v5867_v4, 4  ;;  %v5895_v14 = vadd.f32 %v12842_v39, %v12841_v36  ;;  %v11198_v17 = vpop.f32.mrf.mxu0  ;;  %v11200_v31 = vpop.f32.mrf.mxu1  ;;  %v12845_v30 = vld [vmem:[#allocation23_spill] sm:$0xff] }
 0x486   : > { %v5973_v54 = vrot.slane %v5972_v10, 4  ;;  %v5848_v53 = vadd.f32 %v5847_v1, %v5846_v32  ;;  %v5876_v23 = vadd.f32 %v5875_v9, %v12843_v27  ;;  %v5993_v2 = vadd.f32 %v5992_v28, %v5823_v37  ;;  %v12846_v9 = vld [vmem:[#allocation32_spill] sm:$0xff] }
 0x487   : > { %v5931_v0 = vrot.slane %v5930_v7, 4  ;;  %v5951_v48 = vadd.f32 %v5950_v25, %v5821_v60  ;;  %v5869_v34 = vadd.f32 %v5868_v49, %v5867_v4  ;;  %v5896_v63 = vadd.f32 %v5895_v14, %v12844_v11  ;;  %v11204_v36 = vpop.f32.mrf.mxu0  ;;  %v11206_v32 = vpop.f32.mrf.mxu1  ;;  %v12847_v25 = vld [vmem:[#allocation31_spill] sm:$0xff] }
 0x488   : > { %v5974_v21 = vadd.f32 %v5973_v54, %v5972_v10  ;;  %v5849_v44 = vrot.slane %v5848_v53, 2  ;;  %v5877_v61 = vadd.f32 %v5876_v23, %v12845_v30  ;;  %v5994_v12 = vrot.slane %v5993_v2, 4  ;;  %v12848_v54 = vld [vmem:[#allocation7_spill] sm:$0xff] }
 0x489   : > { %v5932_v1 = vadd.f32 %v5931_v0, %v5930_v7  ;;  %v5952_v28 = vrot.slane %v5951_v48, 4  ;;  %v5870_v37 = vrot.slane %v5869_v34, 2  ;;  %v5897_v39 = vadd.f32 %v5896_v63, %v12846_v9  ;;  %v11210_v11 = vpop.f32.mrf.mxu0  ;;  %v11212_v10 = vpop.f32.mrf.mxu1  ;;  %v12849_v0 = vld [vmem:[#allocation33_spill] sm:$0xff] }
 0x48a   : > { %v5975_v27 = vrot.slane %v5974_v21, 2  ;;  %v5850_v16 = vadd.f32 %v5849_v44, %v5848_v53  ;;  %v5878_v4 = vadd.f32 %v5877_v61, %v12847_v25  ;;  %v5995_v60 = vadd.f32 %v5994_v12, %v5993_v2  ;;  %v12850_v44 = vld [vmem:[#allocation18_spill] sm:$0xff] }
 0x48b   : > { %v5933_v30 = vrot.slane %v5932_v1, 2  ;;  %v5953_v49 = vadd.f32 %v5952_v28, %v5951_v48  ;;  %v5871_v14 = vadd.f32 %v5870_v37, %v5869_v34  ;;  %v5898_v23 = vadd.f32 %v5897_v39, %v12848_v54  ;;  %v11216_v63 = vpop.f32.mrf.mxu0  ;;  %v11218_v53 = vpop.f32.mrf.mxu1  ;;  %v12851_v48 = vld [vmem:[#allocation9_spill] sm:$0xff]  ;;  %v12852_v54 = vld [vmem:[#allocation30_spill] sm:$0xff] }
 0x48c   : > { %v5976_v6 = vadd.f32 %v5975_v27, %v5974_v21  ;;  %v5851_v7 = vrot.slane %v5850_v16, 1  ;;  %v5879_v35 = vadd.f32 %v5878_v4, %v12849_v0  ;;  %v5996_v52 = vrot.slane %v5995_v60, 2 }
 0x48d   : > { %v5934_v61 = vadd.f32 %v5933_v30, %v5932_v1  ;;  %v5954_v12 = vrot.slane %v5953_v49, 2  ;;  %v5872_v2 = vrot.slane %v5871_v14, 1  ;;  %v5899_v9 = vadd.f32 %v5898_v23, %v12850_v44  ;;  %v11222_v37 = vpop.f32.mrf.mxu0  ;;  %v11224_v21 = vpop.f32.mrf.mxu1  ;;  %v12853_v1 = vld [vmem:[#allocation20_spill] sm:$0xff] }
 0x48e   : > { %v5977_v25 = vrot.slane %v5976_v6, 1  ;;  %v5852_v8 = vadd.f32 %v5851_v7, %v5850_v16  ;;  %v5880_v34 = vadd.f32 %v5879_v35, %v12851_v48  ;;  %v5997_v28 = vadd.f32 %v5996_v52, %v5995_v60  ;;  %v12855_v60 = vld [vmem:[#allocation39_spill] sm:$0xff] }
 0x48f   : > { %v5935_v39 = vrot.slane %v5934_v61, 1  ;;  %v5955_v27 = vadd.f32 %v5954_v12, %v5953_v49  ;;  %v5873_v4 = vadd.f32 %v5872_v2, %v5871_v14  ;;  %v5900_v0 = vadd.f32 %v5899_v9, %v12852_v54  ;;  %v11229_v44 = vpop.f32.mrf.mxu0  ;;  %v11231_v16 = vpop.f32.mrf.mxu1  ;;  %v12857_v54 = vld [vmem:[#allocation44_spill] sm:$0xff] }
 0x490   : > { %v5978_v5 = vadd.f32 %v5977_v25, %v5976_v6  ;;  %v5881_v30 = vadd.f32 %v5880_v34, %v12853_v1  ;;  %v5998_v3 = vrot.slane %v5997_v28, 1  ;;  %v6170_v23 = vadd.f32 %v12854_v22, %v5852_v8  ;;  %v12856_v25 = vld [vmem:[#allocation5_spill] sm:$0xff]  ;;  %v12858_v1 = vld [vmem:[#allocation43_spill] sm:$0xff] }
 0x491   : > { %v5936_v35 = vadd.f32 %v5935_v39, %v5934_v61  ;;  %v5956_v52 = vrot.slane %v5955_v27, 1  ;;  %v5901_v7 = vadd.f32 %v5900_v0, %v12855_v60  ;;  %v6171_v48 = vadd.f32 %v12854_v22, %v5873_v4  ;;  %v11239_v2 = vpop.f32.mrf.mxu0  ;;  %v11241_v8 = vpop.f32.mrf.mxu1 }
 0x492   : > { %v6176_v49 = vadd.f32 %v12854_v22, %v5978_v5  ;;  %v5882_v14 = vadd.f32 %v5881_v30, %v10910_v50  ;;  %v5999_v6 = vadd.f32 %v5998_v3, %v5997_v28  ;;  %v4839_v12 = vadd.f32 %v11180_v41, %v12767_v19 }
 0x493   : > { %v6174_v9 = vadd.f32 %v12854_v22, %v5936_v35  ;;  %v5957_v61 = vadd.f32 %v5956_v52, %v5955_v27  ;;  %v5902_v34 = vadd.f32 %v5901_v7, %v12856_v25  ;;  %v6202_v39 = vcombine.low %v6170_v23, %v6171_v48  ;;  %v11249_v3 = vpop.f32.mrf.mxu0  ;;  %v11251_v41 = vpop.f32.mrf.mxu1  ;;  %v12859_v27 = vld [vmem:[#allocation36_spill] sm:$0xff] }
 0x494   : > { %v5883_v4 = vadd.f32 %v5882_v14, %v12857_v54  ;;  %v6177_v5 = vadd.f32 %v12854_v22, %v5999_v6  ;;  %v5264_v0 = vmax.f32 %v4839_v12, 0.0  ;;  %v4952_v50 = vadd.f32 %v11182_v20, %v12767_v19 }
 0x495   : > { %v6175_v28 = vadd.f32 %v12854_v22, %v5957_v61  ;;  %v5903_v30 = vadd.f32 %v5902_v34, %v12858_v1  ;;  %v11256_v35 = vrot.slane %v6202_v39, %v12859_v27  ;;  %v4841_v23 = vadd.f32 %v11190_v40, %v12767_v19  ;;  %v11262_v48 = vpop.f32.mrf.mxu0  ;;  %v11264_v14 = vpop.f32.mrf.mxu1 }
 0x496   : > { %v5884_v52 = vadd.f32 %v5883_v4, %v10941_v43  ;;  %v6205_v60 = vcombine.low %v6176_v49, %v6177_v5  ;;  %v5584_v7 = vmul.f32 %v10510_v56, %v5264_v0  ;;  %v5266_v20 = vmax.f32 %v4952_v50, 0.0 }
 0x497   : > { %v6204_v6 = vcombine.low %v6174_v9, %v6175_v28  ;;  %v5904_v12 = vadd.f32 %v5903_v30, %v10926_v45  ;;  %v5265_v61 = vmax.f32 %v4841_v23, 0.0  ;;  %v4954_v25 = vadd.f32 %v11192_v42, %v12767_v19  ;;  %v11274_v39 = vpop.f32.mrf.mxu0  ;;  %v11276_v54 = vpop.f32.mrf.mxu1  ;;  %v12860_v45 = vld [vmem:[#allocation47_spill] sm:$0xff]  ;;  %v12861_v30 = vld [vmem:[#allocation50_spill] sm:$0xff] }
 0x498   : > { %v5885_v34 = vadd.f32 %v5884_v52, %v10966_v15  ;;  %v6233_v40 = vrot.slane %v6205_v60, %v12859_v27  ;;  %v5586_v43 = vmul.f32 %v10510_v56, %v5266_v20  ;;  %v4843_v49 = vadd.f32 %v11198_v17, %v10492_v59 }
 0x499   : > { %v6226_v9 = vrot.slane %v6204_v6, %v12859_v27  ;;  %v5905_v4 = vadd.f32 %v5904_v12, %v12860_v45  ;;  %v5585_v5 = vmul.f32 %v10510_v56, %v5265_v61  ;;  %v5267_v42 = vmax.f32 %v4954_v25, 0.0  ;;  %v11286_v28 = vpop.f32.mrf.mxu0  ;;  %v11288_v1 = vpop.f32.mrf.mxu1  ;;  %v12862_v25 = vld [vmem:[#allocation52_spill] sm:$0xff] }
 0x49a   : > { %v5886_v15 = vadd.f32 %v5885_v34, %v10989_v24  ;;  %v5280_v0 = vmax.f32 %v4843_v49, 0.0  ;;  %v4956_v50 = vadd.f32 %v11200_v31, %v10492_v59  ;;  %v4845_v17 = vadd.f32 %v11204_v36, %v10492_v59 }
 0x49b   : > { %v5906_v23 = vadd.f32 %v5905_v4, %v12861_v30  ;;  %v6235_v52 = vcombine.low %v6226_v9, %v6233_v40  ;;  %v5587_v60 = vmul.f32 %v10510_v56, %v5267_v42  ;;  %v4958_v20 = vadd.f32 %v11206_v32, %v10492_v59  ;;  %v11296_v61 = vpop.f32.mrf.mxu0  ;;  %v11298_v36 = vpop.f32.mrf.mxu1 }
 0x49c   : > { %v5887_v24 = vadd.f32 %v5886_v15, %v11010_v46  ;;  %v5600_v6 = vmul.f32 %v10503_v47, %v5280_v0  ;;  %v5282_v31 = vmax.f32 %v4956_v50, 0.0  ;;  %v5281_v12 = vmax.f32 %v4845_v17, 0.0 }
 0x49d   : > { %v5907_v34 = vadd.f32 %v5906_v23, %v12862_v25  ;;  %v11302_v49 = vrot.slane %v6235_v52, %v12859_v27  ;;  %v5283_v40 = vmax.f32 %v4958_v20, 0.0  ;;  %v4849_v9 = vadd.f32 %v11210_v11, %v10442_v55  ;;  %v11309_v42 = vpop.f32.mrf.mxu0  ;;  %v11311_v15 = vpop.f32.mrf.mxu1 }
 0x49e   : > { %v5888_v32 = vadd.f32 %v5887_v24, %v11028_v51  ;;  %v6000_v46 = vadd.f32 %v5600_v6, %v5584_v7  ;;  %v5602_v45 = vmul.f32 %v10503_v47, %v5282_v31  ;;  %v5601_v4 = vmul.f32 %v10503_v47, %v5281_v12  ;;  %v12863_v24 = vld [vmem:[#allocation54_spill] sm:$0xff] }
 0x49f   : > { %v5908_v0 = vadd.f32 %v5907_v34, %v11020_v57  ;;  %v5603_v50 = vmul.f32 %v10503_v47, %v5283_v40  ;;  %v5296_v17 = vmax.f32 %v4849_v9, 0.0  ;;  %v4962_v30 = vadd.f32 %v11212_v10, %v10442_v55  ;;  %v11319_v52 = vpop.f32.mrf.mxu0  ;;  %v11321_v20 = vpop.f32.mrf.mxu1  ;;  %v12864_v57 = vld [vmem:[#allocation11_spill] sm:$0xff] }
 0x4a0   : > { %v5889_v11 = vrot.slane %v5888_v32, 4  ;;  %v6042_v23 = vadd.f32 %v5602_v45, %v5586_v43  ;;  %v6021_v51 = vadd.f32 %v5601_v4, %v5585_v5  ;;  %v4851_v7 = vadd.f32 %v11216_v63, %v10442_v55  ;;  %v12865_v43 = vld [vmem:[#allocation24_spill] sm:$0xff] }
 0x4a1   : > { %v5909_v6 = vadd.f32 %v5908_v0, %v12863_v24  ;;  %v6063_v31 = vadd.f32 %v5603_v50, %v5587_v60  ;;  %v5616_v12 = vmul.f32 %v12864_v57, %v5296_v17  ;;  %v5298_v25 = vmax.f32 %v4962_v30, 0.0  ;;  %v11329_v9 = vpop.f32.mrf.mxu0  ;;  %v11331_v63 = vpop.f32.mrf.mxu1 }
 0x4a2   : > { %v5890_v34 = vadd.f32 %v5889_v11, %v5888_v32  ;;  %v5297_v40 = vmax.f32 %v4851_v7, 0.0  ;;  %v4964_v10 = vadd.f32 %v11218_v53, %v10442_v55  ;;  %v4853_v5 = vadd.f32 %v11222_v37, %v12865_v43 }
 0x4a3   : > { %v5910_v45 = vrot.slane %v5909_v6, 4  ;;  %v6001_v4 = vadd.f32 %v6000_v46, %v5616_v12  ;;  %v5618_v0 = vmul.f32 %v12864_v57, %v5298_v25  ;;  %v4966_v60 = vadd.f32 %v11224_v21, %v12865_v43  ;;  %v11337_v53 = vpop.f32.mrf.mxu0  ;;  %v11339_v11 = vpop.f32.mrf.mxu1 }
 0x4a4   : > { %v5891_v50 = vrot.slane %v5890_v34, 2  ;;  %v5617_v32 = vmul.f32 %v12864_v57, %v5297_v40  ;;  %v5299_v17 = vmax.f32 %v4964_v10, 0.0  ;;  %v5312_v30 = vmax.f32 %v4853_v5, 0.0 }
 0x4a5   : > { %v5911_v37 = vadd.f32 %v5910_v45, %v5909_v6  ;;  %v6043_v7 = vadd.f32 %v6042_v23, %v5618_v0  ;;  %v5314_v24 = vmax.f32 %v4966_v60, 0.0  ;;  %v4855_v46 = vadd.f32 %v11229_v44, %v12865_v43  ;;  %v11345_v47 = vpop.f32.mrf.mxu0  ;;  %v11347_v40 = vpop.f32.mrf.mxu1 }
 0x4a6   : > { %v5892_v12 = vadd.f32 %v5891_v50, %v5890_v34  ;;  %v6022_v25 = vadd.f32 %v6021_v51, %v5617_v32  ;;  %v5619_v55 = vmul.f32 %v12864_v57, %v5299_v17  ;;  %v5632_v21 = vmul.f32 %v10539_v13, %v5312_v30  ;;  %v12866_v34 = vld [vmem:[#allocation22_spill] sm:$0xff]  ;;  %v12867_v57 = vld [vmem:[#allocation37_spill] sm:$0xff] }
 0x4a7   : > { %v5912_v10 = vrot.slane %v5911_v37, 2  ;;  %v5634_v5 = vmul.f32 %v10539_v13, %v5314_v24  ;;  %v5313_v56 = vmax.f32 %v4855_v46, 0.0  ;;  %v4968_v23 = vadd.f32 %v11231_v16, %v12865_v43  ;;  %v11354_v0 = vpop.f32.mrf.mxu0  ;;  %v11356_v60 = vpop.f32.mrf.mxu1 }
 0x4a8   : > { %v5893_v6 = vrot.slane %v5892_v12, 1  ;;  %v6064_v45 = vadd.f32 %v6063_v31, %v5619_v55  ;;  %v6002_v44 = vadd.f32 %v6001_v4, %v5632_v21  ;;  %v4859_v51 = vadd.f32 %v11239_v2, %v12866_v34 }
 0x4a9   : > { %v5913_v50 = vadd.f32 %v5912_v10, %v5911_v37  ;;  %v6044_v32 = vadd.f32 %v6043_v7, %v5634_v5  ;;  %v5633_v17 = vmul.f32 %v10539_v13, %v5313_v56  ;;  %v5315_v30 = vmax.f32 %v4968_v23, 0.0  ;;  %v11363_v31 = vpop.f32.mrf.mxu0  ;;  %v11365_v2 = vpop.f32.mrf.mxu1 }
 0x4aa   : > { %v5894_v24 = vadd.f32 %v5893_v6, %v5892_v12  ;;  %v5328_v46 = vmax.f32 %v4859_v51, 0.0  ;;  %v4972_v16 = vadd.f32 %v11241_v8, %v12866_v34  ;;  %v4861_v55 = vadd.f32 %v11249_v3, %v12866_v34 }
 0x4ab   : > { %v5914_v4 = vrot.slane %v5913_v50, 1  ;;  %v6023_v21 = vadd.f32 %v6022_v25, %v5633_v17  ;;  %v5635_v37 = vmul.f32 %v10539_v13, %v5315_v30  ;;  %v4974_v56 = vadd.f32 %v11251_v41, %v12866_v34  ;;  %v11372_v5 = vpop.f32.mrf.mxu0  ;;  %v11374_v3 = vpop.f32.mrf.mxu1 }
 0x4ac   : > { %v6172_v7 = vadd.f32 %v12854_v22, %v5894_v24  ;;  %v5648_v12 = vmul.f32 %v12834_v26, %v5328_v46  ;;  %v5330_v10 = vmax.f32 %v4972_v16, 0.0  ;;  %v5329_v8 = vmax.f32 %v4861_v55, 0.0 }
 0x4ad   : > { %v5915_v23 = vadd.f32 %v5914_v4, %v5913_v50  ;;  %v6065_v6 = vadd.f32 %v6064_v45, %v5635_v37  ;;  %v5331_v51 = vmax.f32 %v4974_v56, 0.0  ;;  %v4863_v25 = vadd.f32 %v11262_v48, %v12867_v57  ;;  %v11382_v46 = vpop.f32.mrf.mxu0  ;;  %v11384_v16 = vpop.f32.mrf.mxu1 }
 0x4ae   : > { %v6003_v17 = vadd.f32 %v6002_v44, %v5648_v12  ;;  %v5650_v30 = vmul.f32 %v12834_v26, %v5330_v10  ;;  %v5649_v41 = vmul.f32 %v12834_v26, %v5329_v8  ;;  %v4976_v24 = vadd.f32 %v11264_v14, %v12867_v57 }
 0x4af   : > { %v6173_v55 = vadd.f32 %v12854_v22, %v5915_v23  ;;  %v5651_v45 = vmul.f32 %v12834_v26, %v5331_v51  ;;  %v5344_v50 = vmax.f32 %v4863_v25, 0.0  ;;  %v4865_v48 = vadd.f32 %v11274_v39, %v12867_v57  ;;  %v11392_v12 = vpop.f32.mrf.mxu0  ;;  %v11394_v14 = vpop.f32.mrf.mxu1  ;;  %v12868_v26 = vld [vmem:[#allocation40_spill] sm:$0xff] }
 0x4b0   : > { %v6045_v44 = vadd.f32 %v6044_v32, %v5650_v30  ;;  %v6024_v4 = vadd.f32 %v6023_v21, %v5649_v41  ;;  %v5346_v37 = vmax.f32 %v4976_v24, 0.0  ;;  %v4978_v56 = vadd.f32 %v11276_v54, %v12867_v57 }
 0x4b1   : > { %v6203_v10 = vcombine.low %v6172_v7, %v6173_v55  ;;  %v6066_v8 = vadd.f32 %v6065_v6, %v5651_v45  ;;  %v5664_v23 = vmul.f32 %v10557_v38, %v5344_v50  ;;  %v5345_v13 = vmax.f32 %v4865_v48, 0.0  ;;  %v11402_v21 = vpop.f32.mrf.mxu0  ;;  %v11404_v54 = vpop.f32.mrf.mxu1 }
 0x4b2   : > { %v5666_v51 = vmul.f32 %v10557_v38, %v5346_v37  ;;  %v5347_v25 = vmax.f32 %v4978_v56, 0.0  ;;  %v4869_v39 = vadd.f32 %v11286_v28, %v12868_v26  ;;  %v4982_v32 = vadd.f32 %v11288_v1, %v12868_v26 }
 0x4b3   : > { %v6219_v30 = vrot.slane %v6203_v10, %v12859_v27  ;;  %v6004_v7 = vadd.f32 %v6003_v17, %v5664_v23  ;;  %v5665_v6 = vmul.f32 %v10557_v38, %v5345_v13  ;;  %v4871_v41 = vadd.f32 %v11296_v61, %v12868_v26  ;;  %v11411_v50 = vpop.f32.mrf.mxu0  ;;  %v11413_v1 = vpop.f32.mrf.mxu1 }
 0x4b4   : > { %v6046_v24 = vadd.f32 %v6045_v44, %v5666_v51  ;;  %v5667_v55 = vmul.f32 %v10557_v38, %v5347_v25  ;;  %v5360_v45 = vmax.f32 %v4869_v39, 0.0  ;;  %v5362_v28 = vmax.f32 %v4982_v32, 0.0 }
 0x4b5   : > { %v6234_v48 = vcombine.low %v11256_v35, %v6219_v30  ;;  %v6025_v37 = vadd.f32 %v6024_v4, %v5665_v6  ;;  %v5361_v56 = vmax.f32 %v4871_v41, 0.0  ;;  %v4984_v13 = vadd.f32 %v11298_v36, %v12868_v26  ;;  %v11422_v23 = vpop.f32.mrf.mxu0  ;;  %v11424_v51 = vpop.f32.mrf.mxu1 }
 0x4b6   : > { %v6067_v17 = vadd.f32 %v6066_v8, %v5667_v55  ;;  %v5680_v61 = vmul.f32 %v10580_v18, %v5360_v45  ;;  %v5682_v44 = vmul.f32 %v10580_v18, %v5362_v28  ;;  %v4873_v10 = vadd.f32 %v11309_v42, %v12837_v58 }
 0x4b7   : > { %v6242_v25 = vrot.slane %v6234_v48, %v12859_v27  ;;  %v5681_v35 = vmul.f32 %v10580_v18, %v5361_v56  ;;  %v5363_v4 = vmax.f32 %v4984_v13, 0.0  ;;  %v4986_v36 = vadd.f32 %v11311_v15, %v12837_v58  ;;  %v11438_v30 = vpop.f32.mrf.mxu0  ;;  %v11440_v6 = vpop.f32.mrf.mxu1 }
 0x4b8   : > { %v6005_v8 = vadd.f32 %v6004_v7, %v5680_v61  ;;  %v6047_v42 = vadd.f32 %v6046_v24, %v5682_v44  ;;  %v5376_v39 = vmax.f32 %v4873_v10, 0.0  ;;  %v4875_v32 = vadd.f32 %v11319_v52, %v12837_v58  ;;  %v12869_v24 = vld [vmem:[#allocation38_spill] sm:$0xff] }
 0x4b9   : > { %v6250_v41 = vcombine.low %v6242_v25, %v11302_v49  ;;  %v6026_v55 = vadd.f32 %v6025_v37, %v5681_v35  ;;  %v5683_v15 = vmul.f32 %v10580_v18, %v5363_v4  ;;  %v5378_v45 = vmax.f32 %v4986_v36, 0.0  ;;  %v11449_v52 = vpop.f32.mrf.mxu0  ;;  %v11451_v13 = vpop.f32.mrf.mxu1 }
 0x4ba   : > { %v5696_v28 = vmul.f32 %v10638_v33, %v5376_v39  ;;  %v5377_v48 = vmax.f32 %v4875_v32, 0.0  ;;  %v4988_v7 = vadd.f32 %v11321_v20, %v12837_v58  ;;  %v4879_v56 = vadd.f32 %v11329_v9, %v12869_v24 }
 0x4bb   : > { %6302 = vst [vmem:[%s11434_s14] sm:$0xff] %v6250_v41  ;;  %v6068_v61 = vadd.f32 %v6067_v17, %v5683_v15  ;;  %v5698_v49 = vmul.f32 %v10638_v33, %v5378_v45  ;;  %v4992_v37 = vadd.f32 %v11331_v63, %v12869_v24  ;;  %v4881_v44 = vadd.f32 %v11337_v53, %v12869_v24  ;;  %v11460_v9 = vpop.f32.mrf.mxu0  ;;  %v11462_v4 = vpop.f32.mrf.mxu1 }
 0x4bc   : > { %v6006_v10 = vadd.f32 %v6005_v8, %v5696_v28  ;;  %v5697_v20 = vmul.f32 %v10638_v33, %v5377_v48  ;;  %v5379_v25 = vmax.f32 %v4988_v7, 0.0  ;;  %v5392_v35 = vmax.f32 %v4879_v56, 0.0 }
 0x4bd   : > { %v6048_v36 = vadd.f32 %v6047_v42, %v5698_v49  ;;  %v5394_v39 = vmax.f32 %v4992_v37, 0.0  ;;  %v5393_v17 = vmax.f32 %v4881_v44, 0.0  ;;  %v4994_v32 = vadd.f32 %v11339_v11, %v12869_v24  ;;  %v11470_v15 = vpop.f32.mrf.mxu0  ;;  %v11472_v45 = vpop.f32.mrf.mxu1 }
 0x4be   : > { %v6027_v41 = vadd.f32 %v6026_v55, %v5697_v20  ;;  %v5699_v63 = vmul.f32 %v10638_v33, %v5379_v25  ;;  %v5712_v53 = vmul.f32 %v10680_v29, %v5392_v35  ;;  %v4883_v8 = vadd.f32 %v11345_v47, %v10611_v62 }
 0x4bf   : > { %v5714_v28 = vmul.f32 %v10680_v29, %v5394_v39  ;;  %v5713_v42 = vmul.f32 %v10680_v29, %v5393_v17  ;;  %v5395_v48 = vmax.f32 %v4994_v32, 0.0  ;;  %v4996_v11 = vadd.f32 %v11347_v40, %v10611_v62  ;;  %v11480_v37 = vpop.f32.mrf.mxu0  ;;  %v11482_v47 = vpop.f32.mrf.mxu1  ;;  %v12870_v39 = vld [vmem:[#allocation19_spill] sm:$0xff] }
 0x4c0   : > { %v6069_v55 = vadd.f32 %v6068_v61, %v5699_v63  ;;  %v6007_v7 = vadd.f32 %v6006_v10, %v5712_v53  ;;  %v5408_v56 = vmax.f32 %v4883_v8, 0.0  ;;  %v4885_v49 = vadd.f32 %v11354_v0, %v10611_v62  ;;  %v12871_v61 = vld [vmem:[#allocation8_spill] sm:$0xff] }
 0x4c1   : > { %v6049_v44 = vadd.f32 %v6048_v36, %v5714_v28  ;;  %v6028_v20 = vadd.f32 %v6027_v41, %v5713_v42  ;;  %v5715_v25 = vmul.f32 %v10680_v29, %v5395_v48  ;;  %v5410_v35 = vmax.f32 %v4996_v11, 0.0  ;;  %v11490_v63 = vpop.f32.mrf.mxu1  ;;  %v11497_v8 = vpop.f32.mrf.mxu0 }
 0x4c2   : > { %v5728_v17 = vmul.f32 %v12870_v39, %v5408_v56  ;;  %v5409_v32 = vmax.f32 %v4885_v49, 0.0  ;;  %v4998_v40 = vadd.f32 %v11356_v60, %v10611_v62  ;;  %v4889_v10 = vadd.f32 %v11363_v31, %v12871_v61 }
 0x4c3   : > { %v6070_v0 = vadd.f32 %v6069_v55, %v5715_v25  ;;  %v5730_v53 = vmul.f32 %v12870_v39, %v5410_v35  ;;  %v5002_v36 = vadd.f32 %v11365_v2, %v12871_v61  ;;  %v4891_v41 = vadd.f32 %v11372_v5, %v12871_v61  ;;  %v11500_v11 = vpop.f32.mrf.mxu1  ;;  %v11504_v25 = vpop.f32.mrf.mxu0  ;;  %v12872_v35 = vld [vmem:[#allocation29_spill] sm:$0xff] }
 0x4c4   : > { %v6008_v28 = vadd.f32 %v6007_v7, %v5728_v17  ;;  %v5729_v42 = vmul.f32 %v12870_v39, %v5409_v32  ;;  %v5411_v60 = vmax.f32 %v4998_v40, 0.0  ;;  %v5424_v48 = vmax.f32 %v4889_v10, 0.0  ;;  %v12873_v7 = vld [vmem:[#allocation3_spill] sm:$0xff] }
 0x4c5   : > { %v6050_v31 = vadd.f32 %v6049_v44, %v5730_v53  ;;  %v5426_v56 = vmax.f32 %v5002_v36, 0.0  ;;  %v5425_v55 = vmax.f32 %v4891_v41, 0.0  ;;  %v5004_v49 = vadd.f32 %v11374_v3, %v12871_v61  ;;  %v11510_v32 = vpop.f32.mrf.mxu1  ;;  %v11516_v53 = vpop.f32.mrf.mxu0 }
 0x4c6   : > { %v6029_v2 = vadd.f32 %v6028_v20, %v5729_v42  ;;  %v5731_v5 = vmul.f32 %v12870_v39, %v5411_v60  ;;  %v5744_v29 = vmul.f32 %v12872_v35, %v5424_v48  ;;  %v4893_v17 = vadd.f32 %v11382_v46, %v12873_v7 }
 0x4c7   : > { %v5746_v40 = vmul.f32 %v12872_v35, %v5426_v56  ;;  %v5745_v44 = vmul.f32 %v12872_v35, %v5425_v55  ;;  %v5427_v10 = vmax.f32 %v5004_v49, 0.0  ;;  %v5006_v3 = vadd.f32 %v11384_v16, %v12873_v7  ;;  %v11520_v60 = vpop.f32.mrf.mxu1  ;;  %v11523_v55 = vpop.f32.mrf.mxu0  ;;  %v12874_v49 = vld [vmem:[#allocation27_spill] sm:$0xff] }
 0x4c8   : > { %v6071_v20 = vadd.f32 %v6070_v0, %v5731_v5  ;;  %v6009_v36 = vadd.f32 %v6008_v28, %v5744_v29  ;;  %v5440_v41 = vmax.f32 %v4893_v17, 0.0  ;;  %v4895_v42 = vadd.f32 %v11392_v12, %v12873_v7  ;;  %v12875_v29 = vld [vmem:[#allocation42_spill] sm:$0xff] }
 0x4c9   : > { %v6051_v46 = vadd.f32 %v6050_v31, %v5746_v40  ;;  %v6030_v48 = vadd.f32 %v6029_v2, %v5745_v44  ;;  %v5747_v56 = vmul.f32 %v12872_v35, %v5427_v10  ;;  %v5442_v39 = vmax.f32 %v5006_v3, 0.0  ;;  %v11530_v5 = vpop.f32.mrf.mxu1  ;;  %v11537_v40 = vpop.f32.mrf.mxu0  ;;  %v12876_v35 = vld [vmem:[#allocation46_spill] sm:$0xff] }
 0x4ca   : > { %v5760_v61 = vmul.f32 %v12874_v49, %v5440_v41  ;;  %v5441_v16 = vmax.f32 %v4895_v42, 0.0  ;;  %v5008_v0 = vadd.f32 %v11394_v14, %v12873_v7  ;;  %v4899_v28 = vadd.f32 %v11402_v21, %v12875_v29 }
 0x4cb   : > { %v6072_v12 = vadd.f32 %v6071_v20, %v5747_v56  ;;  %v5762_v31 = vmul.f32 %v12874_v49, %v5442_v39  ;;  %v5012_v2 = vadd.f32 %v11404_v54, %v12875_v29  ;;  %v4901_v17 = vadd.f32 %v11411_v50, %v12875_v29  ;;  %v11540_v41 = vpop.f32.mrf.mxu1  ;;  %v11544_v56 = vpop.f32.mrf.mxu0 }
 0x4cc   : > { %v6010_v44 = vadd.f32 %v6009_v36, %v5760_v61  ;;  %v5761_v10 = vmul.f32 %v12874_v49, %v5441_v16  ;;  %v5443_v14 = vmax.f32 %v5008_v0, 0.0  ;;  %v5456_v3 = vmax.f32 %v4899_v28, 0.0  ;;  %v12877_v61 = vld [vmem:[#allocation34_spill] sm:$0xff] }
 0x4cd   : > { %v6052_v21 = vadd.f32 %v6051_v46, %v5762_v31  ;;  %v5458_v42 = vmax.f32 %v5012_v2, 0.0  ;;  %v5457_v20 = vmax.f32 %v4901_v17, 0.0  ;;  %v5014_v39 = vadd.f32 %v11413_v1, %v12875_v29  ;;  %v11550_v16 = vpop.f32.mrf.mxu1  ;;  %v11556_v31 = vpop.f32.mrf.mxu0 }
 0x4ce   : > { %v6031_v54 = vadd.f32 %v6030_v48, %v5761_v10  ;;  %v5763_v50 = vmul.f32 %v12874_v49, %v5443_v14  ;;  %v5776_v7 = vmul.f32 %v12876_v35, %v5456_v3  ;;  %v4903_v36 = vadd.f32 %v11422_v23, %v12877_v61 }
 0x4cf   : > { %v5778_v0 = vmul.f32 %v12876_v35, %v5458_v42  ;;  %v5777_v46 = vmul.f32 %v12876_v35, %v5457_v20  ;;  %v5459_v28 = vmax.f32 %v5014_v39, 0.0  ;;  %v5016_v1 = vadd.f32 %v11424_v51, %v12877_v61  ;;  %v11560_v14 = vpop.f32.mrf.mxu1  ;;  %v11563_v20 = vpop.f32.mrf.mxu0  ;;  %v12878_v39 = vld [vmem:[#allocation49_spill] sm:$0xff] }
 0x4d0   : > { %v6073_v48 = vadd.f32 %v6072_v12, %v5763_v50  ;;  %v6011_v2 = vadd.f32 %v6010_v44, %v5776_v7  ;;  %v5472_v17 = vmax.f32 %v4903_v36, 0.0  ;;  %v4905_v10 = vadd.f32 %v11438_v30, %v12877_v61  ;;  %v12879_v7 = vld [vmem:[#allocation45_spill] sm:$0xff] }
 0x4d1   : > { %v6053_v23 = vadd.f32 %v6052_v21, %v5778_v0  ;;  %v6032_v3 = vadd.f32 %v6031_v54, %v5777_v46  ;;  %v5779_v42 = vmul.f32 %v12876_v35, %v5459_v28  ;;  %v5474_v49 = vmax.f32 %v5016_v1, 0.0  ;;  %v11570_v50 = vpop.f32.mrf.mxu1  ;;  %v11577_v0 = vpop.f32.mrf.mxu0  ;;  %v12880_v35 = vld [vmem:[#allocation51_spill] sm:$0xff] }
 0x4d2   : > { %v5792_v29 = vmul.f32 %v12878_v39, %v5472_v17  ;;  %v5473_v51 = vmax.f32 %v4905_v10, 0.0  ;;  %v5018_v12 = vadd.f32 %v11440_v6, %v12877_v61  ;;  %v4909_v44 = vadd.f32 %v11449_v52, %v12879_v7 }
 0x4d3   : > { %v6074_v30 = vadd.f32 %v6073_v48, %v5779_v42  ;;  %v5794_v21 = vmul.f32 %v12878_v39, %v5474_v49  ;;  %v5022_v54 = vadd.f32 %v11451_v13, %v12879_v7  ;;  %v4911_v36 = vadd.f32 %v11460_v9, %v12879_v7  ;;  %v11580_v17 = vpop.f32.mrf.mxu1  ;;  %v11584_v42 = vpop.f32.mrf.mxu0 }
 0x4d4   : > { %v6012_v46 = vadd.f32 %v6011_v2, %v5792_v29  ;;  %v5793_v28 = vmul.f32 %v12878_v39, %v5473_v51  ;;  %v5475_v6 = vmax.f32 %v5018_v12, 0.0  ;;  %v5488_v1 = vmax.f32 %v4909_v44, 0.0  ;;  %v12881_v29 = vld [vmem:[#allocation48_spill] sm:$0xff] }
 0x4d5   : > { %v6054_v52 = vadd.f32 %v6053_v23, %v5794_v21  ;;  %v5490_v10 = vmax.f32 %v5022_v54, 0.0  ;;  %v5489_v48 = vmax.f32 %v4911_v36, 0.0  ;;  %v5024_v49 = vadd.f32 %v11462_v4, %v12879_v7  ;;  %v11590_v51 = vpop.f32.mrf.mxu1  ;;  %v11596_v21 = vpop.f32.mrf.mxu0 }
 0x4d6   : > { %v6033_v13 = vadd.f32 %v6032_v3, %v5793_v28  ;;  %v5795_v9 = vmul.f32 %v12878_v39, %v5475_v6  ;;  %v5808_v61 = vmul.f32 %v12880_v35, %v5488_v1  ;;  %v4913_v2 = vadd.f32 %v11470_v15, %v12881_v29 }
 0x4d7   : > { %v5810_v12 = vmul.f32 %v12880_v35, %v5490_v10  ;;  %v5809_v23 = vmul.f32 %v12880_v35, %v5489_v48  ;;  %v5491_v44 = vmax.f32 %v5024_v49, 0.0  ;;  %v5026_v4 = vadd.f32 %v11472_v45, %v12881_v29  ;;  %v11600_v6 = vpop.f32.mrf.mxu1  ;;  %v11603_v48 = vpop.f32.mrf.mxu0  ;;  %v12882_v49 = vld [vmem:[#allocation53_spill] sm:$0xff] }
 0x4d8   : > { %v6075_v3 = vadd.f32 %v6074_v30, %v5795_v9  ;;  %v6013_v54 = vadd.f32 %v6012_v46, %v5808_v61  ;;  %v5504_v36 = vmax.f32 %v4913_v2, 0.0  ;;  %v4915_v28 = vadd.f32 %v11480_v37, %v12881_v29 }
 0x4d9   : > { %v6055_v15 = vadd.f32 %v6054_v52, %v5810_v12  ;;  %v6034_v1 = vadd.f32 %v6033_v13, %v5809_v23  ;;  %v5811_v10 = vmul.f32 %v12880_v35, %v5491_v44  ;;  %v5506_v39 = vmax.f32 %v5026_v4, 0.0  ;;  %v11608_v61 = vpop.f32.mrf.mxu1  ;;  %v11613_v13 = vpop.f32.mrf.mxu0 }
 0x4da   : > { %v5824_v7 = vmul.f32 %v12882_v49, %v5504_v36  ;;  %v5505_v45 = vmax.f32 %v4915_v28, 0.0  ;;  %v5028_v30 = vadd.f32 %v11482_v47, %v12881_v29  ;;  %v5065_v52 = vadd.f32 %v11497_v8, %v12767_v19 }
 0x4db   : > { %v6076_v46 = vadd.f32 %v6075_v3, %v5811_v10  ;;  %v5826_v37 = vmul.f32 %v12882_v49, %v5506_v39  ;;  %v11616_v23 = vpop.f32.mrf.mxu1  ;;  %v5178_v47 = vadd.f32 %v11490_v63, %v12767_v19  ;;  %v11620_v4 = vpop.f32.mrf.mxu0  ;;  %v5067_v8 = vadd.f32 %v11504_v25, %v12767_v19 }
 0x4dc   : > { %v6014_v9 = vadd.f32 %v6013_v54, %v5824_v7  ;;  %v5825_v2 = vmul.f32 %v12882_v49, %v5505_v45  ;;  %v5507_v12 = vmax.f32 %v5028_v30, 0.0  ;;  %v5268_v54 = vmax.f32 %v5065_v52, 0.0 }
 0x4dd   : > { %v6056_v44 = vadd.f32 %v6055_v15, %v5826_v37  ;;  %v11625_v28 = vpop.f32.mrf.mxu1  ;;  %v5180_v10 = vadd.f32 %v11500_v11, %v12767_v19  ;;  %v11629_v15 = vpop.f32.mrf.mxu0  ;;  %v5182_v25 = vadd.f32 %v11510_v32, %v10492_v59  ;;  %v5071_v52 = vadd.f32 %v11523_v55, %v10492_v59  ;;  %v12885_v55 = vld [vmem:[#allocation26_spill] sm:$0xff] }
 0x4de   : > { %v6015_v3 = vrot.slane %v6014_v9, 4  ;;  %v6035_v36 = vadd.f32 %v6034_v1, %v5825_v2  ;;  %v5827_v39 = vmul.f32 %v12882_v49, %v5507_v12  ;;  %v5069_v1 = vadd.f32 %v11516_v53, %v10492_v59 }
 0x4df   : > { %v6057_v7 = vrot.slane %v6056_v44, 4  ;;  %v11633_v37 = vpop.f32.mrf.mxu1  ;;  %v5270_v12 = vmax.f32 %v5178_v47, 0.0  ;;  %v11639_v49 = vpop.f32.mrf.mxu0  ;;  %v5271_v53 = vmax.f32 %v5180_v10, 0.0  ;;  %v5588_v62 = vmul.f32 %v12885_v55, %v5268_v54 }
 0x4e0   : > { %v6016_v45 = vadd.f32 %v6015_v3, %v6014_v9  ;;  %v6036_v63 = vrot.slane %v6035_v36, 4  ;;  %v6077_v30 = vadd.f32 %v6076_v46, %v5827_v39  ;;  %12883 = vst [vmem:[#allocation15_spill] sm:$0xff] %v11633_v37  ;;  %v5269_v3 = vmax.f32 %v5067_v8, 0.0 }
 0x4e1   : > { %v6058_v2 = vadd.f32 %v6057_v7, %v6056_v44  ;;  %v11641_v46 = vpop.f32.mrf.mxu1  ;;  %v5284_v29 = vmax.f32 %v5069_v1, 0.0  ;;  %v5184_v44 = vadd.f32 %v11520_v60, %v10492_v59  ;;  %v11645_v47 = vpop.f32.mrf.mxu0  ;;  %v5285_v8 = vmax.f32 %v5071_v52, 0.0 }
 0x4e2   : > { %v6017_v19 = vrot.slane %v6016_v45, 2  ;;  %v6037_v11 = vadd.f32 %v6036_v63, %v6035_v36  ;;  %v6078_v9 = vrot.slane %v6077_v30, 4  ;;  %12884 = vst [vmem:[#allocation28_spill] sm:$0xff] %v11641_v46  ;;  %v5590_v36 = vmul.f32 %v12885_v55, %v5270_v12 }
 0x4e3   : > { %v6059_v39 = vrot.slane %v6058_v2, 2  ;;  %v5286_v63 = vmax.f32 %v5182_v25, 0.0  ;;  %v11649_v24 = vpop.f32.mrf.mxu0  ;;  %v5589_v37 = vmul.f32 %v12885_v55, %v5269_v3  ;;  %v11652_v59 = vpop.f32.mrf.mxu1  ;;  %v5287_v54 = vmax.f32 %v5184_v44, 0.0  ;;  %v12887_v25 = vld [vmem:[#allocation12_spill] sm:$0xff] }
 0x4e4   : > { %v6018_v32 = vadd.f32 %v6017_v19, %v6016_v45  ;;  %v6038_v7 = vrot.slane %v6037_v11, 2  ;;  %v6079_v35 = vadd.f32 %v6078_v9, %v6077_v30  ;;  %v5591_v45 = vmul.f32 %v12885_v55, %v5271_v53  ;;  %v12886_v30 = vld [vmem:[#allocation6_spill] sm:$0xff] }
 0x4e5   : > { %v6060_v33 = vadd.f32 %v6059_v39, %v6058_v2  ;;  %v5604_v19 = vmul.f32 %v12886_v30, %v5284_v29  ;;  %v5075_v52 = vadd.f32 %v11537_v40, %v12887_v25  ;;  %v5606_v39 = vmul.f32 %v12886_v30, %v5286_v63  ;;  %v11664_v53 = vpop.f32.mrf.mxu0 }
 0x4e6   : > { %v6019_v46 = vrot.slane %v6018_v32, 1  ;;  %v6039_v10 = vadd.f32 %v6038_v7, %v6037_v11  ;;  %v6080_v1 = vrot.slane %v6079_v35, 2  ;;  %v5605_v11 = vmul.f32 %v12886_v30, %v5285_v8 }
 0x4e7   : > { %v6061_v60 = vrot.slane %v6060_v33, 1  ;;  %v5188_v3 = vadd.f32 %v11530_v5, %v12887_v25  ;;  %v5077_v7 = vadd.f32 %v11544_v56, %v12887_v25  ;;  %v6084_v55 = vadd.f32 %v5604_v19, %v5588_v62  ;;  %v11678_v62 = vpop.f32.mrf.mxu0 }
 0x4e8   : > { %v6020_v2 = vadd.f32 %v6019_v46, %v6018_v32  ;;  %v6040_v9 = vrot.slane %v6039_v10, 1  ;;  %v6081_v12 = vadd.f32 %v6080_v1, %v6079_v35  ;;  %v5300_v32 = vmax.f32 %v5075_v52, 0.0  ;;  %v11666_v35 = vpop.f32.mrf.mxu1 }
 0x4e9   : > { %v6062_v29 = vadd.f32 %v6061_v60, %v6060_v33  ;;  %v5607_v63 = vmul.f32 %v12886_v30, %v5287_v54  ;;  %v5190_v8 = vadd.f32 %v11540_v41, %v12887_v25  ;;  %v5302_v56 = vmax.f32 %v5188_v3, 0.0  ;;  %v12888_v60 = vld [vmem:[#allocation11_spill] sm:$0xff] }
 0x4ea   : > { %v6041_v44 = vadd.f32 %v6040_v9, %v6039_v10  ;;  %v6082_v46 = vrot.slane %v6081_v12, 1  ;;  %v6178_v40 = vadd.f32 %v12854_v22, %v6020_v2  ;;  %v5079_v33 = vadd.f32 %v11556_v31, %v12865_v43 }
 0x4eb   : > { %v6126_v10 = vadd.f32 %v5606_v39, %v5590_v36  ;;  %v5620_v9 = vmul.f32 %v12888_v60, %v5300_v32  ;;  %v5301_v52 = vmax.f32 %v5077_v7, 0.0  ;;  %v5192_v2 = vadd.f32 %v11550_v16, %v12865_v43 }
 0x4ec   : > { %v6179_v5 = vadd.f32 %v12854_v22, %v6041_v44  ;;  %v6083_v1 = vadd.f32 %v6082_v46, %v6081_v12  ;;  %v6180_v30 = vadd.f32 %v12854_v22, %v6062_v29  ;;  %v5303_v54 = vmax.f32 %v5190_v8, 0.0  ;;  %v11682_v12 = vpop.f32.mrf.mxu1  ;;  %v12889_v8 = vld [vmem:[#allocation4_spill] sm:$0xff] }
 0x4ed   : > { %v6105_v25 = vadd.f32 %v5605_v11, %v5589_v37  ;;  %v6147_v3 = vadd.f32 %v5607_v63, %v5591_v45  ;;  %v5316_v31 = vmax.f32 %v5079_v33, 0.0  ;;  %v5318_v36 = vmax.f32 %v5192_v2, 0.0  ;;  %v11695_v45 = vpop.f32.mrf.mxu0 }
 0x4ee   : > { %v6251_v19 = vcombine.low %v6178_v40, %v6179_v5  ;;  %v6181_v41 = vadd.f32 %v12854_v22, %v6083_v1  ;;  %v5622_v16 = vmul.f32 %v12888_v60, %v5302_v56  ;;  %v5081_v44 = vadd.f32 %v11563_v20, %v12865_v43 }
 0x4ef   : > { %v6085_v29 = vadd.f32 %v6084_v55, %v5620_v9  ;;  %v5621_v46 = vmul.f32 %v12888_v60, %v5301_v52  ;;  %v5194_v32 = vadd.f32 %v11560_v14, %v12865_v43  ;;  %v5085_v37 = vadd.f32 %v11577_v0, %v12866_v34  ;;  %v11703_v55 = vpop.f32.mrf.mxu1 }
 0x4f0   : > { %v11685_v39 = vrot.slane %v6251_v19, %v12859_v27  ;;  %v6252_v7 = vcombine.low %v6180_v30, %v6181_v41  ;;  %v5623_v40 = vmul.f32 %v12888_v60, %v5303_v54  ;;  %v5317_v63 = vmax.f32 %v5081_v44, 0.0  ;;  %v11716_v30 = vpop.f32.mrf.mxu0 }
 0x4f1   : > { %v5198_v20 = vadd.f32 %v11570_v50, %v12866_v34  ;;  %v5636_v5 = vmul.f32 %v12889_v8, %v5316_v31  ;;  %v5638_v43 = vmul.f32 %v12889_v8, %v5318_v36  ;;  %v5319_v14 = vmax.f32 %v5194_v32, 0.0  ;;  %v11718_v54 = vpop.f32.mrf.mxu1 }
 0x4f2   : > { %v11698_v11 = vrot.slane %v6252_v7, %v12859_v27  ;;  %v5087_v0 = vadd.f32 %v11584_v42, %v12866_v34  ;;  %v5637_v56 = vmul.f32 %v12889_v8, %v5317_v63  ;;  %v5332_v33 = vmax.f32 %v5085_v37, 0.0 }
 0x4f3   : > { %v5200_v60 = vadd.f32 %v11580_v17, %v12866_v34  ;;  %v6127_v50 = vadd.f32 %v6126_v10, %v5622_v16  ;;  %v5334_v9 = vmax.f32 %v5198_v20, 0.0  ;;  %v5089_v2 = vadd.f32 %v11596_v21, %v12867_v57  ;;  %v12890_v34 = vld [vmem:[#allocation16_spill] sm:$0xff] }
 0x4f4   : > { %v6283_v1 = vcombine.low %v11685_v39, %v11698_v11  ;;  %v5333_v52 = vmax.f32 %v5087_v0, 0.0  ;;  %v6106_v19 = vadd.f32 %v6105_v25, %v5621_v46  ;;  %v6148_v41 = vadd.f32 %v6147_v3, %v5623_v40  ;;  %v11732_v46 = vpop.f32.mrf.mxu0 }
 0x4f5   : > { %v5335_v42 = vmax.f32 %v5200_v60, 0.0  ;;  %v6086_v31 = vadd.f32 %v6085_v29, %v5636_v5  ;;  %v6128_v36 = vadd.f32 %v6127_v50, %v5638_v43  ;;  %v5639_v7 = vmul.f32 %v12889_v8, %v5319_v14 }
 0x4f6   : > { %v5348_v44 = vmax.f32 %v5089_v2, 0.0  ;;  %v6107_v32 = vadd.f32 %v6106_v19, %v5637_v56  ;;  %v5652_v17 = vmul.f32 %v12890_v34, %v5332_v33  ;;  %v5202_v10 = vadd.f32 %v11590_v51, %v12867_v57  ;;  %v11748_v60 = vpop.f32.mrf.mxu0 }
 0x4f7   : > { %v5091_v21 = vadd.f32 %v11603_v48, %v12867_v57  ;;  %v5654_v25 = vmul.f32 %v12890_v34, %v5334_v9  ;;  %v5653_v3 = vmul.f32 %v12890_v34, %v5333_v52  ;;  %v5204_v16 = vadd.f32 %v11600_v6, %v12867_v57  ;;  %v11737_v48 = vpop.f32.mrf.mxu1 }
 0x4f8   : > { %v5095_v29 = vadd.f32 %v11613_v13, %v12868_v26  ;;  %v5655_v37 = vmul.f32 %v12890_v34, %v5335_v42  ;;  %v5350_v40 = vmax.f32 %v5202_v10, 0.0  ;;  %v5208_v51 = vadd.f32 %v11608_v61, %v12868_v26  ;;  %v11764_v10 = vpop.f32.mrf.mxu0 }
 0x4f9   : > { %v5349_v63 = vmax.f32 %v5091_v21, 0.0  ;;  %v5668_v20 = vmul.f32 %v10557_v38, %v5348_v44  ;;  %v5351_v8 = vmax.f32 %v5204_v16, 0.0  ;;  %v5097_v57 = vadd.f32 %v11620_v4, %v12868_v26  ;;  %v11750_v2 = vpop.f32.mrf.mxu1 }
 0x4fa   : > { %v5364_v5 = vmax.f32 %v5095_v29, 0.0  ;;  %v6149_v6 = vadd.f32 %v6148_v41, %v5639_v7  ;;  %v5670_v13 = vmul.f32 %v10557_v38, %v5350_v40  ;;  %v5210_v14 = vadd.f32 %v11616_v23, %v12868_v26  ;;  %v12894_v29 = vld [vmem:[#allocation13_spill] sm:$0xff] }
 0x4fb   : > { %v5669_v43 = vmul.f32 %v10557_v38, %v5349_v63  ;;  %v6087_v0 = vadd.f32 %v6086_v31, %v5652_v17  ;;  %v5366_v56 = vmax.f32 %v5208_v51, 0.0  ;;  %v5365_v61 = vmax.f32 %v5097_v57, 0.0  ;;  %v12892_v17 = vld [vmem:[#allocation38_spill] sm:$0xff] }
 0x4fc   : > { %v5099_v33 = vadd.f32 %v11629_v15, %v12837_v58  ;;  %v6129_v50 = vadd.f32 %v6128_v36, %v5654_v25  ;;  %v6108_v9 = vadd.f32 %v6107_v32, %v5653_v3  ;;  %v6150_v52 = vadd.f32 %v6149_v6, %v5655_v37  ;;  %v12891_v32 = vld [vmem:[#allocation15_spill] sm:$0xff]  ;;  %v12895_v6 = vld [vmem:[#allocation41_spill] sm:$0xff] }
 0x4fd   : > { %v5367_v4 = vmax.f32 %v5210_v14, 0.0  ;;  %v6088_v19 = vadd.f32 %v6087_v0, %v5668_v20  ;;  %v5671_v41 = vmul.f32 %v10557_v38, %v5351_v8  ;;  %v5684_v42 = vmul.f32 %v10580_v18, %v5364_v5 }
 0x4fe   : > { %v5380_v26 = vmax.f32 %v5099_v33, 0.0  ;;  %v6130_v23 = vadd.f32 %v6129_v50, %v5670_v13  ;;  %v6109_v31 = vadd.f32 %v6108_v9, %v5669_v43  ;;  %v5212_v7 = vadd.f32 %v11625_v28, %v12837_v58  ;;  %v12893_v28 = vld [vmem:[#allocation28_spill] sm:$0xff]  ;;  %v11780_v43 = vpop.f32.mrf.mxu0  ;;  %v12896_v9 = vld [vmem:[#allocation35_spill] sm:$0xff] }
 0x4ff   : > { %v5101_v15 = vadd.f32 %v11639_v49, %v12837_v58  ;;  %v5686_v36 = vmul.f32 %v10580_v18, %v5366_v56  ;;  %v5685_v44 = vmul.f32 %v10580_v18, %v5365_v61  ;;  %v5214_v34 = vadd.f32 %v12891_v32, %v12837_v58  ;;  %v11769_v49 = vpop.f32.mrf.mxu1 }
 0x500   : > { %v5105_v38 = vadd.f32 %v11645_v47, %v12892_v17  ;;  %v5687_v21 = vmul.f32 %v10580_v18, %v5367_v4  ;;  %v5382_v25 = vmax.f32 %v5212_v7, 0.0  ;;  %v5218_v16 = vadd.f32 %v12893_v28, %v12892_v17 }
 0x501   : > { %v5381_v3 = vmax.f32 %v5101_v15, 0.0  ;;  %v5700_v37 = vmul.f32 %v12894_v29, %v5380_v26  ;;  %v5383_v40 = vmax.f32 %v5214_v34, 0.0  ;;  %v5107_v58 = vadd.f32 %v11649_v24, %v12892_v17  ;;  %v5239_v61 = vpop.f32.mrf.mxu1  ;;  %v5128_v15 = vpop.f32.mrf.mxu0 }
 0x502   : > { %v5396_v63 = vmax.f32 %v5105_v38, 0.0  ;;  %v6151_v51 = vadd.f32 %v6150_v52, %v5671_v41  ;;  %v5702_v47 = vmul.f32 %v12894_v29, %v5382_v25  ;;  %v5220_v18 = vadd.f32 %v11652_v59, %v12892_v17 }
 0x503   : > { %v5701_v20 = vmul.f32 %v12894_v29, %v5381_v3  ;;  %v6089_v8 = vadd.f32 %v6088_v19, %v5684_v42  ;;  %v5398_v5 = vmax.f32 %v5218_v16, 0.0  ;;  %v5397_v57 = vmax.f32 %v5107_v58, 0.0  ;;  %v5241_v34 = vpop.f32.mrf.mxu1 }
 0x504   : > { %v5109_v13 = vadd.f32 %v11664_v53, %v12895_v6  ;;  %v6131_v14 = vadd.f32 %v6130_v23, %v5686_v36  ;;  %v6110_v0 = vadd.f32 %v6109_v31, %v5685_v44  ;;  %v6152_v56 = vadd.f32 %v6151_v51, %v5687_v21  ;;  %v12897_v31 = vld [vmem:[#allocation8_spill] sm:$0xff] }
 0x505   : > { %v5399_v24 = vmax.f32 %v5220_v18, 0.0  ;;  %v6090_v33 = vadd.f32 %v6089_v8, %v5700_v37  ;;  %v5703_v50 = vmul.f32 %v12894_v29, %v5383_v40  ;;  %v5716_v52 = vmul.f32 %v12896_v9, %v5396_v63  ;;  %v5130_v63 = vpop.f32.mrf.mxu0 }
 0x506   : > { %v5412_v4 = vmax.f32 %v5109_v13, 0.0  ;;  %v6132_v59 = vadd.f32 %v6131_v14, %v5702_v47  ;;  %v6111_v19 = vadd.f32 %v6110_v0, %v5701_v20  ;;  %v5222_v41 = vadd.f32 %v11666_v35, %v12895_v6 }
 0x507   : > { %v5111_v53 = vadd.f32 %v11678_v62, %v12895_v6  ;;  %v5718_v42 = vmul.f32 %v12896_v9, %v5398_v5  ;;  %v5717_v26 = vmul.f32 %v12896_v9, %v5397_v57  ;;  %v5224_v23 = vadd.f32 %v11682_v12, %v12895_v6  ;;  %v12898_v62 = vld [vmem:[#allocation19_spill] sm:$0xff]  ;;  %v12900_v5 = vld [vmem:[#allocation29_spill] sm:$0xff] }
 0x508   : > { %v5115_v7 = vadd.f32 %v11695_v45, %v12897_v31  ;;  %v5719_v36 = vmul.f32 %v12896_v9, %v5399_v24  ;;  %v5414_v44 = vmax.f32 %v5222_v41, 0.0  ;;  %v5228_v35 = vadd.f32 %v11703_v55, %v12897_v31  ;;  %v12899_v55 = vld [vmem:[#allocation3_spill] sm:$0xff]  ;;  %v5134_v9 = vpop.f32.mrf.mxu0 }
 0x509   : > { %v5413_v32 = vmax.f32 %v5111_v53, 0.0  ;;  %v5732_v17 = vmul.f32 %v12898_v62, %v5412_v4  ;;  %v5415_v38 = vmax.f32 %v5224_v23, 0.0  ;;  %v5117_v25 = vadd.f32 %v11716_v30, %v12897_v31  ;;  %v5243_v30 = vpop.f32.mrf.mxu1 }
 0x50a   : > { %v5428_v21 = vmax.f32 %v5115_v7, 0.0  ;;  %v6153_v12 = vadd.f32 %v6152_v56, %v5703_v50  ;;  %v5734_v3 = vmul.f32 %v12898_v62, %v5414_v44  ;;  %v5230_v28 = vadd.f32 %v11718_v54, %v12897_v31 }
 0x50b   : > { %v5733_v45 = vmul.f32 %v12898_v62, %v5413_v32  ;;  %v6091_v16 = vadd.f32 %v6090_v33, %v5716_v52  ;;  %v5430_v29 = vmax.f32 %v5228_v35, 0.0  ;;  %v5429_v37 = vmax.f32 %v5117_v25, 0.0  ;;  %v12901_v33 = vld [vmem:[#allocation42_spill] sm:$0xff]  ;;  %v5136_v35 = vpop.f32.mrf.mxu0 }
 0x50c   : > { %v5119_v40 = vadd.f32 %v11732_v46, %v12899_v55  ;;  %v6133_v58 = vadd.f32 %v6132_v59, %v5718_v42  ;;  %v6112_v51 = vadd.f32 %v6111_v19, %v5717_v26  ;;  %v6154_v47 = vadd.f32 %v6153_v12, %v5719_v36  ;;  %v5247_v19 = vpop.f32.mrf.mxu1  ;;  %v12903_v32 = vld [vmem:[#allocation34_spill] sm:$0xff] }
 0x50d   : > { %v5431_v20 = vmax.f32 %v5230_v28, 0.0  ;;  %v6092_v18 = vadd.f32 %v6091_v16, %v5732_v17  ;;  %v5735_v8 = vmul.f32 %v12898_v62, %v5415_v38  ;;  %v5748_v57 = vmul.f32 %v12900_v5, %v5428_v21 }
 0x50e   : > { %v5444_v6 = vmax.f32 %v5119_v40, 0.0  ;;  %v6134_v13 = vadd.f32 %v6133_v58, %v5734_v3  ;;  %v6113_v54 = vadd.f32 %v6112_v51, %v5733_v45  ;;  %v5232_v14 = vadd.f32 %v11737_v48, %v12899_v55  ;;  %v5249_v25 = vpop.f32.mrf.mxu1  ;;  %v12904_v3 = vld [vmem:[#allocation46_spill] sm:$0xff]  ;;  %v12905_v58 = vld [vmem:[#allocation45_spill] sm:$0xff] }
 0x50f   : > { %v5121_v46 = vadd.f32 %v11748_v60, %v12899_v55  ;;  %v5750_v0 = vmul.f32 %v12900_v5, %v5430_v29  ;;  %v5749_v56 = vmul.f32 %v12900_v5, %v5429_v37  ;;  %v5234_v24 = vadd.f32 %v11750_v2, %v12899_v55  ;;  %v12902_v60 = vld [vmem:[#allocation27_spill] sm:$0xff] }
 0x510   : > { %v5125_v50 = vadd.f32 %v11764_v10, %v12901_v33  ;;  %v5751_v52 = vmul.f32 %v12900_v5, %v5431_v20  ;;  %v5446_v4 = vmax.f32 %v5232_v14, 0.0  ;;  %v5238_v48 = vadd.f32 %v11769_v49, %v12901_v33 }
 0x511   : > { %v5445_v59 = vmax.f32 %v5121_v46, 0.0  ;;  %v5764_v41 = vmul.f32 %v12902_v60, %v5444_v6  ;;  %v5447_v53 = vmax.f32 %v5234_v24, 0.0  ;;  %v5127_v26 = vadd.f32 %v11780_v43, %v12901_v33  ;;  %v12906_v6 = vld [vmem:[#allocation49_spill] sm:$0xff]  ;;  %v12907_v24 = vld [vmem:[#allocation51_spill] sm:$0xff] }
 0x512   : > { %v5460_v42 = vmax.f32 %v5125_v50, 0.0  ;;  %v6155_v2 = vadd.f32 %v6154_v47, %v5735_v8  ;;  %v5766_v23 = vmul.f32 %v12902_v60, %v5446_v4  ;;  %v5240_v31 = vadd.f32 %v5239_v61, %v12901_v33  ;;  %v5138_v47 = vpop.f32.mrf.mxu0 }
 0x513   : > { %v5765_v10 = vmul.f32 %v12902_v60, %v5445_v59  ;;  %v6093_v7 = vadd.f32 %v6092_v18, %v5748_v57  ;;  %v5462_v36 = vmax.f32 %v5238_v48, 0.0  ;;  %v5461_v44 = vmax.f32 %v5127_v26, 0.0  ;;  %v5251_v57 = vpop.f32.mrf.mxu1 }
 0x514   : > { %v5129_v49 = vadd.f32 %v5128_v15, %v12903_v32  ;;  %v6135_v62 = vadd.f32 %v6134_v13, %v5750_v0  ;;  %v6114_v17 = vadd.f32 %v6113_v54, %v5749_v56  ;;  %v6156_v38 = vadd.f32 %v6155_v2, %v5751_v52  ;;  %v5140_v4 = vpop.f32.mrf.mxu0 }
 0x515   : > { %v5463_v21 = vmax.f32 %v5240_v31, 0.0  ;;  %v6094_v12 = vadd.f32 %v6093_v7, %v5764_v41  ;;  %v5767_v43 = vmul.f32 %v12902_v60, %v5447_v53  ;;  %v5780_v45 = vmul.f32 %v12904_v3, %v5460_v42  ;;  %v5253_v41 = vpop.f32.mrf.mxu1 }
 0x516   : > { %v5476_v28 = vmax.f32 %v5129_v49, 0.0  ;;  %v6136_v16 = vadd.f32 %v6135_v62, %v5766_v23  ;;  %v6115_v29 = vadd.f32 %v6114_v17, %v5765_v10  ;;  %v5242_v61 = vadd.f32 %v5241_v34, %v12903_v32 }
 0x517   : > { %v5131_v37 = vadd.f32 %v5130_v63, %v12903_v32  ;;  %v5782_v15 = vmul.f32 %v12904_v3, %v5462_v36  ;;  %v5781_v55 = vmul.f32 %v12904_v3, %v5461_v44  ;;  %v5244_v40 = vadd.f32 %v5243_v30, %v12903_v32  ;;  %v12909_v32 = vld [vmem:[#allocation53_spill] sm:$0xff] }
 0x518   : > { %v5135_v51 = vadd.f32 %v5134_v9, %v12905_v58  ;;  %v5783_v20 = vmul.f32 %v12904_v3, %v5463_v21  ;;  %v5478_v18 = vmax.f32 %v5242_v61, 0.0  ;;  %v5248_v5 = vadd.f32 %v5247_v19, %v12905_v58  ;;  %v12908_v9 = vld [vmem:[#allocation48_spill] sm:$0xff] }
 0x519   : > { %v5477_v8 = vmax.f32 %v5131_v37, 0.0  ;;  %v5796_v34 = vmul.f32 %v12906_v6, %v5476_v28  ;;  %v5479_v13 = vmax.f32 %v5244_v40, 0.0  ;;  %v5137_v54 = vadd.f32 %v5136_v35, %v12905_v58 }
 0x51a   : > { %v5492_v63 = vmax.f32 %v5135_v51, 0.0  ;;  %v6157_v14 = vadd.f32 %v6156_v38, %v5767_v43  ;;  %v6095_v46 = vadd.f32 %v6094_v12, %v5780_v45  ;;  %v5494_v0 = vmax.f32 %v5248_v5, 0.0 }
 0x51b   : > { %v5250_v30 = vadd.f32 %v5249_v25, %v12905_v58  ;;  %v6137_v56 = vadd.f32 %v6136_v16, %v5782_v15  ;;  %v5493_v50 = vmax.f32 %v5137_v54, 0.0  ;;  %v5139_v52 = vadd.f32 %v5138_v47, %v12908_v9 }
 0x51c   : > { %v5812_v33 = vmul.f32 %v12907_v24, %v5492_v63  ;;  %v6116_v59 = vadd.f32 %v6115_v29, %v5781_v55  ;;  %v5798_v48 = vmul.f32 %v12906_v6, %v5478_v18  ;;  %v5797_v19 = vmul.f32 %v12906_v6, %v5477_v8 }
 0x51d   : > { %v5495_v60 = vmax.f32 %v5250_v30, 0.0  ;;  %v6158_v53 = vadd.f32 %v6157_v14, %v5783_v20  ;;  %v6096_v42 = vadd.f32 %v6095_v46, %v5796_v34  ;;  %v5799_v26 = vmul.f32 %v12906_v6, %v5479_v13 }
 0x51e   : > { %v5508_v2 = vmax.f32 %v5139_v52, 0.0  ;;  %v5814_v23 = vmul.f32 %v12907_v24, %v5494_v0  ;;  %v5813_v10 = vmul.f32 %v12907_v24, %v5493_v50  ;;  %v5252_v31 = vadd.f32 %v5251_v57, %v12908_v9 }
 0x51f   : > { %v5141_v7 = vadd.f32 %v5140_v4, %v12908_v9  ;;  %v6097_v36 = vadd.f32 %v6096_v42, %v5812_v33  ;;  %v5815_v44 = vmul.f32 %v12907_v24, %v5495_v60  ;;  %v5254_v35 = vadd.f32 %v5253_v41, %v12908_v9 }
 0x520   : > { %v5828_v49 = vmul.f32 %v12909_v32, %v5508_v2  ;;  %v6138_v62 = vadd.f32 %v6137_v56, %v5798_v48  ;;  %v6117_v17 = vadd.f32 %v6116_v59, %v5797_v19  ;;  %v5510_v38 = vmax.f32 %v5252_v31, 0.0 }
 0x521   : > { %v5509_v21 = vmax.f32 %v5141_v7, 0.0  ;;  %v6159_v25 = vadd.f32 %v6158_v53, %v5799_v26  ;;  %v5511_v43 = vmax.f32 %v5254_v35, 0.0  ;;  %v6291_v2 = vrot.slane %v6283_v1, %v12859_v27 }
 0x522   : > { %v6098_v12 = vadd.f32 %v6097_v36, %v5828_v49  ;;  %v6139_v3 = vadd.f32 %v6138_v62, %v5814_v23  ;;  %v6118_v45 = vadd.f32 %v6117_v17, %v5813_v10  ;;  %v5830_v28 = vmul.f32 %v12909_v32, %v5510_v38 }
 0x523   : > { %v5829_v16 = vmul.f32 %v12909_v32, %v5509_v21  ;;  %v6160_v29 = vadd.f32 %v6159_v25, %v5815_v44  ;;  %v5831_v37 = vmul.f32 %v12909_v32, %v5511_v43 }
 0x524   : > { %v6099_v61 = vrot.slane %v6098_v12, 4  ;;  %v6140_v15 = vadd.f32 %v6139_v3, %v5830_v28 }
 0x525   : > { %v6119_v55 = vadd.f32 %v6118_v45, %v5829_v16  ;;  %v6161_v58 = vadd.f32 %v6160_v29, %v5831_v37 }
 0x526   : > { %v6100_v40 = vadd.f32 %v6099_v61, %v6098_v12  ;;  %v6141_v51 = vrot.slane %v6140_v15, 4 }
 0x527   : > { %v6120_v47 = vrot.slane %v6119_v55, 4  ;;  %v6162_v18 = vrot.slane %v6161_v58, 4 }
 0x528   : > { %v6101_v20 = vrot.slane %v6100_v40, 2  ;;  %v6142_v8 = vadd.f32 %v6141_v51, %v6140_v15 }
 0x529   : > { %v6121_v5 = vadd.f32 %v6120_v47, %v6119_v55  ;;  %v6163_v6 = vadd.f32 %v6162_v18, %v6161_v58 }
 0x52a   : > { %v6102_v57 = vadd.f32 %v6101_v20, %v6100_v40  ;;  %v6143_v34 = vrot.slane %v6142_v8, 2 }
 0x52b   : > { %v6122_v13 = vrot.slane %v6121_v5, 2  ;;  %v6164_v54 = vrot.slane %v6163_v6, 2 }
 0x52c   : > { %v6103_v63 = vrot.slane %v6102_v57, 1  ;;  %v6144_v14 = vadd.f32 %v6143_v34, %v6142_v8 }
 0x52d   : > { %v6123_v46 = vadd.f32 %v6122_v13, %v6121_v5  ;;  %v6165_v0 = vadd.f32 %v6164_v54, %v6163_v6 }
 0x52e   : > { %v6104_v30 = vadd.f32 %v6103_v63, %v6102_v57  ;;  %v6145_v56 = vrot.slane %v6144_v14, 1 }
 0x52f   : > { %v6124_v24 = vrot.slane %v6123_v46, 1  ;;  %v6166_v33 = vrot.slane %v6165_v0, 1 }
 0x530   : > { %v6146_v50 = vadd.f32 %v6145_v56, %v6144_v14  ;;  %v6182_v4 = vadd.f32 %v12854_v22, %v6104_v30 }
 0x531   : > { %v6125_v9 = vadd.f32 %v6124_v24, %v6123_v46  ;;  %v6167_v52 = vadd.f32 %v6166_v33, %v6165_v0 }
 0x532   : > { %v6184_v48 = vadd.f32 %v12854_v22, %v6146_v50 }
 0x533   : > { %v6183_v59 = vadd.f32 %v12854_v22, %v6125_v9  ;;  %v6185_v19 = vadd.f32 %v12854_v22, %v6167_v52 }
 0x535   : > { %v6253_v60 = vcombine.low %v6182_v4, %v6183_v59  ;;  %v6254_v41 = vcombine.low %v6184_v48, %v6185_v19 }
 0x537   : > { %v6275_v53 = vrot.slane %v6253_v60, %v12859_v27  ;;  %v6282_v42 = vrot.slane %v6254_v41, %v12859_v27 }
 0x539   : > { %v6284_v26 = vcombine.low %v6275_v53, %v6282_v42 }
 0x53b   : > { %v6298_v23 = vrot.slane %v6284_v26, %v12859_v27 }
 0x53d   : > { %v6299_v10 = vcombine.low %v6291_v2, %v6298_v23 }
 0x53f   : > { %6303 = vst [vmem:[%s11434_s14 + $0x8] sm:$0xff] %v6299_v10 }
 0x540 PF: > { %s17_s23 = sadd.s32 1, %s6514_s23  }
 0x541   : > { %p14_p4 = scmp.ge.s32.totalorder %s17_s23, 4  }
 0x543   :  { %16 = sbr.rel (!%p14_p4) target bundleno = 2 (0x2), region = 74 }

</bundles_post_ra>
